<compile_context>
chip_gen: v5e
topology: v5e:2x2
jax: 0.10.0
libtpu: 0.0.40
codegen_flags: <defaults>
</compile_context>

<pallas_src>
import functools

import jax
import jax.numpy as jnp
from jax.experimental import pallas as pl
from jax.experimental.pallas import tpu as pltpu


# ---------------------------------------------------------------------------
# Kernel 1: fused per-(batch, channel) affine (folded norm) + ReLU + zero-pad
#           + cast to the conv compute dtype.  One grid step per padded depth
#           plane; layout stays NCDHW.
# ---------------------------------------------------------------------------
def _norm_relu_pad_kernel(x_ref, scale_ref, shift_ref, o_ref, *, pd, ph, pw, D):
    # x_ref:     (Cin, H, W)    f32 (clamped source plane; ignored on pad planes)
    # scale_ref: (Cin, 1, 1)    f32
    # shift_ref: (Cin, 1, 1)    f32
    # o_ref:     (Cin, Hp, Wp)  compute dtype
    dp = pl.program_id(1)
    o_ref[...] = jnp.zeros(o_ref.shape, o_ref.dtype)

    @pl.when(jnp.logical_and(dp >= pd, dp < pd + D))
    def _interior():
        y = jnp.maximum(x_ref[...] * scale_ref[...] + shift_ref[...], 0.0)
        H, W = x_ref.shape[1], x_ref.shape[2]
        o_ref[:, ph:ph + H, pw:pw + W] = y.astype(o_ref.dtype)


def _norm_relu_pad(x, scale, shift, pads, compute_dtype):
    B, Cin, D, H, W = x.shape
    pd, ph, pw = pads
    Dp, Hp, Wp = D + 2 * pd, H + 2 * ph, W + 2 * pw
    kernel = functools.partial(_norm_relu_pad_kernel, pd=pd, ph=ph, pw=pw, D=D)
    return pl.pallas_call(
        kernel,
        out_shape=jax.ShapeDtypeStruct((B, Cin, Dp, Hp, Wp), compute_dtype),
        grid=(B, Dp),
        in_specs=[
            pl.BlockSpec(
                (None, Cin, None, H, W),
                lambda b, dp: (b, 0,
                               jnp.minimum(jnp.maximum(dp - pd, 0), D - 1),
                               0, 0),
            ),
            pl.BlockSpec((None, Cin, 1, 1), lambda b, dp: (b, 0, 0, 0)),
            pl.BlockSpec((None, Cin, 1, 1), lambda b, dp: (b, 0, 0, 0)),
        ],
        out_specs=pl.BlockSpec((None, Cin, None, Hp, Wp),
                               lambda b, dp: (b, 0, dp, 0, 0)),
        compiler_params=pltpu.CompilerParams(
            dimension_semantics=("parallel", "arbitrary")),
    )(x, scale.reshape(B, Cin, 1, 1), shift.reshape(B, Cin, 1, 1))


# ---------------------------------------------------------------------------
# Kernel 2: dilated / strided / grouped Conv3d (bias=False) over padded input.
#           Grid (B, Dout, KD); KD is the reduction axis (f32 VMEM accumulator).
# ---------------------------------------------------------------------------
def _dilated_conv_kernel(x_ref, w_ref, o_ref, acc_ref, *, dh, dw, sh, sw,
                         Hout, Wout, groups):
    # x_ref:   (Cin, Hp, Wp)            compute dtype (padded ReLU'd activations)
    # w_ref:   (KH, KW, Cout, Cin//g)   compute dtype (one depth tap of weights)
    # o_ref:   (Cout, Hout, Wout)       f32
    # acc_ref: (Cout, Hout*Wout)        f32 scratch, carried across the KD axis
    KH, KW, Cout, Cin_g = w_ref.shape
    Cin = x_ref.shape[0]
    HW = Hout * Wout
    kd = pl.program_id(2)

    @pl.when(kd == 0)
    def _init():
        acc_ref[...] = jnp.zeros_like(acc_ref)

    x = x_ref[...]  # (Cin, Hp, Wp)

    def tap(kh, kw):
        xs = x[:, kh * dh: kh * dh + sh * (Hout - 1) + 1: sh,
                  kw * dw: kw * dw + sw * (Wout - 1) + 1: sw]   # (Cin, Hout, Wout)
        return xs.reshape(Cin, HW)

    if groups == 1:
        part = jnp.zeros((Cout, HW), jnp.float32)
        for kh in range(KH):
            for kw in range(KW):
                part = part + jnp.dot(w_ref[kh, kw], tap(kh, kw),
                                      preferred_element_type=jnp.float32)
        acc_ref[...] += part
    else:
        Cout_g = Cout // groups
        for kh in range(KH):
            for kw in range(KW):
                xm = tap(kh, kw)
                w_t = w_ref[kh, kw]
                for g in range(groups):
                    acc_ref[g * Cout_g:(g + 1) * Cout_g, :] += jnp.dot(
                        w_t[g * Cout_g:(g + 1) * Cout_g, :],
                        xm[g * Cin_g:(g + 1) * Cin_g, :],
                        preferred_element_type=jnp.float32)

    @pl.when(kd == pl.num_programs(2) - 1)
    def _store():
        o_ref[...] = acc_ref[...].reshape(o_ref.shape).astype(o_ref.dtype)


# ---------------------------------------------------------------------------
# Host wrapper: DilatedConv3DBlock.forward
# ---------------------------------------------------------------------------
def dilated_conv3d_block_forward(x, params, *, kernel_size=(1, 1, 1), stride=1,
                                 groups=1, dilation=(1, 1, 1), norm='bn',
                                 eps=1e-5, compute_dtype=jnp.bfloat16):
    """y = Conv3d(ReLU(norm(x)))  with PyTorch Conv3d(k, stride, groups, dilation,
    padding=(k-1)//2*dilation, bias=False).  x is NCDHW."""
    assert isinstance(kernel_size, tuple) and isinstance(dilation, tuple)
    B, Cin, D, H, W = x.shape
    KD, KH, KW = kernel_size
    dd, dh, dw = dilation
    if isinstance(stride, int):
        stride = (stride,) * 3
    sd, sh, sw = stride
    pads = tuple((k - 1) // 2 * di for k, di in zip(kernel_size, dilation))
    pd, ph, pw = pads

    x = x.astype(jnp.float32)

    # ---- fold the normalization into per-(batch, channel) scale/shift ------
    if norm in ('bn', 'sync_bn'):
        # TODO(synk): eval-mode BatchNorm3d (running stats); training-mode batch
        # statistics are not implemented.
        s = params['gamma'] / jnp.sqrt(params['running_var'] + eps)
        t = params['beta'] - params['running_mean'] * s
        scale = jnp.broadcast_to(s[None, :], (B, Cin))
        shift = jnp.broadcast_to(t[None, :], (B, Cin))
    elif norm == 'in':
        m = jnp.mean(x, axis=(2, 3, 4))
        v = jnp.var(x, axis=(2, 3, 4))              # biased, as in PyTorch
        scale = 1.0 / jnp.sqrt(v + eps)
        shift = -m * scale
    elif norm == 'gn':
        G = 4
        xg = x.reshape(B, G, Cin // G, D, H, W)
        m = jnp.repeat(jnp.mean(xg, axis=(2, 3, 4, 5)), Cin // G, axis=1)
        v = jnp.repeat(jnp.var(xg, axis=(2, 3, 4, 5)), Cin // G, axis=1)
        inv = 1.0 / jnp.sqrt(v + eps)
        scale = params['gamma'][None, :] * inv
        shift = params['beta'][None, :] - m * scale
    else:
        raise ValueError('normalization type {} is not supported'.format(norm))

    # ---- kernel 1: affine + ReLU + zero-pad + bf16 cast ---------------------
    h_pad = _norm_relu_pad(x, scale.astype(jnp.float32),
                           shift.astype(jnp.float32), pads, compute_dtype)

    # ---- kernel 2: dilated conv as per-tap matmuls --------------------------
    w = params['weight']                               # (Cout, Cin//g, KD, KH, KW)
    Cout, Cin_g = w.shape[0], w.shape[1]
    assert Cin_g * groups == Cin and Cout % groups == 0
    w_r = jnp.transpose(w, (2, 3, 4, 0, 1)).astype(compute_dtype)  # (KD,KH,KW,Cout,Cin//g)

    Dp, Hp, Wp = D + 2 * pd, H + 2 * ph, W + 2 * pw
    Dout = (Dp - dd * (KD - 1) - 1) // sd + 1
    Hout = (Hp - dh * (KH - 1) - 1) // sh + 1
    Wout = (Wp - dw * (KW - 1) - 1) // sw + 1

    kernel = functools.partial(_dilated_conv_kernel, dh=dh, dw=dw, sh=sh, sw=sw,
                               Hout=Hout, Wout=Wout, groups=groups)
    out = pl.pallas_call(
        kernel,
        out_shape=jax.ShapeDtypeStruct((B, Cout, Dout, Hout, Wout), jnp.float32),
        grid=(B, Dout, KD),
        in_specs=[
            pl.BlockSpec((None, Cin, None, Hp, Wp),
                         lambda b, do, kd: (b, 0, do * sd + kd * dd, 0, 0)),
            pl.BlockSpec((None, KH, KW, Cout, Cin_g),
                         lambda b, do, kd: (kd, 0, 0, 0, 0)),
        ],
        out_specs=pl.BlockSpec((None, Cout, None, Hout, Wout),
                               lambda b, do, kd: (b, 0, do, 0, 0)),
        scratch_shapes=[pltpu.VMEM((Cout, Hout * Wout), jnp.float32)],
        compiler_params=pltpu.CompilerParams(
            dimension_semantics=("parallel", "parallel", "arbitrary")),
    )(h_pad, w_r)
    return out


# ---------------------------------------------------------------------------
# Pure-JAX reference (for correctness check)
# ---------------------------------------------------------------------------
def reference_forward(x, params, *, kernel_size, stride, groups, dilation, norm,
                      eps=1e-5):
    if isinstance(stride, int):
        stride = (stride,) * 3
    if norm in ('bn', 'sync_bn'):
        s = params['gamma'] / jnp.sqrt(params['running_var'] + eps)
        b = params['beta'] - params['running_mean'] * s
        h = x * s[None, :, None, None, None] + b[None, :, None, None, None]
    elif norm == 'in':
        m = jnp.mean(x, axis=(2, 3, 4), keepdims=True)
        v = jnp.var(x, axis=(2, 3, 4), keepdims=True)
        h = (x - m) / jnp.sqrt(v + eps)
    elif norm == 'gn':
        B, C = x.shape[:2]
        xg = x.reshape(B, 4, C // 4, *x.shape[2:])
        m = jnp.mean(xg, axis=(2, 3, 4, 5), keepdims=True)
        v = jnp.var(xg, axis=(2, 3, 4, 5), keepdims=True)
        h = ((xg - m) / jnp.sqrt(v + eps)).reshape(x.shape)
        h = (h * params['gamma'][None, :, None, None, None]
             + params['beta'][None, :, None, None, None])
    else:
        raise ValueError(norm)
    h = jnp.maximum(h, 0.0)
    pad = [((k - 1) // 2 * d,) * 2 for k, d in zip(kernel_size, dilation)]
    return jax.lax.conv_general_dilated(
        h, params['weight'], window_strides=stride, padding=pad,
        rhs_dilation=dilation, feature_group_count=groups,
        dimension_numbers=('NCDHW', 'OIDHW', 'NCDHW'),
        precision=jax.lax.Precision.HIGHEST)


if __name__ == "__main__":
    key = jax.random.PRNGKey(0)
    kx, kw_, kg, kb, km, kv = jax.random.split(key, 6)

    # Small but representative DilatedConv3DBlock configuration.
    B, Cin, Cout = 2, 16, 32
    D = H = W = 16
    kernel_size = (3, 3, 3)
    dilation = (2, 2, 2)
    stride = 1
    groups = 1
    norm = 'bn'

    x = jax.random.normal(kx, (B, Cin, D, H, W), jnp.float32)
    params = {
        'weight': 0.05 * jax.random.normal(
            kw_, (Cout, Cin // groups) + kernel_size, jnp.float32),
        'gamma': 1.0 + 0.1 * jax.random.normal(kg, (Cin,), jnp.float32),
        'beta': 0.1 * jax.random.normal(kb, (Cin,), jnp.float32),
        'running_mean': 0.1 * jax.random.normal(km, (Cin,), jnp.float32),
        'running_var': 1.0 + jnp.abs(0.1 * jax.random.normal(kv, (Cin,), jnp.float32)),
    }

    fwd = jax.jit(functools.partial(
        dilated_conv3d_block_forward, kernel_size=kernel_size, stride=stride,
        groups=groups, dilation=dilation, norm=norm))
    out = jax.block_until_ready(fwd(x, params))

    ref = jax.block_until_ready(reference_forward(
        x, params, kernel_size=kernel_size, stride=stride, groups=groups,
        dilation=dilation, norm=norm))

    assert out.shape == (B, Cout, D, H, W), out.shape
    assert bool(jnp.all(jnp.isfinite(out)))
    max_err = float(jnp.max(jnp.abs(out - ref)))
    assert max_err < 8e-2, f"max abs error vs reference: {max_err}"
    print("KERNEL_OK")
</pallas_src>

<mosaic_0001>
module attributes {stable_mosaic.version = 11 : i64} {
  func.func @_dilated_conv_kernel(%arg0: i32, %arg1: i32, %arg2: i32, %arg3: memref<1x16x1x20x20xbf16, #tpu.memory_space<vmem>>, %arg4: memref<1x3x3x32x16xbf16, #tpu.memory_space<vmem>>, %arg5: memref<1x32x1x16x16xf32, #tpu.memory_space<vmem>>, %arg6: memref<32x256xf32, #tpu.memory_space<vmem>>) attributes {dimension_semantics = [#tpu.dimension_semantics<parallel>, #tpu.dimension_semantics<parallel>, #tpu.dimension_semantics<arbitrary>], iteration_bounds = array<i64: 2, 16, 3>, scalar_prefetch = 0 : i64, scratch_operands = 1 : i64, tpu.core_type = #tpu.core_type<tc>, window_params = [{transform_indices = @transform_0, window_bounds = array<i64: 1, 16, 1, 20, 20>}, {transform_indices = @transform_1, window_bounds = array<i64: 1, 3, 3, 32, 16>}, {transform_indices = @transform_2, window_bounds = array<i64: 1, 32, 1, 16, 16>}]} {
    %c0_i32 = arith.constant 0 : i32
    %0 = arith.cmpi eq, %arg2, %c0_i32 : i32
    %1 = arith.extui %0 : i1 to i32
    %c0_i32_0 = arith.constant 0 : i32
    %2 = arith.cmpi ne, %1, %c0_i32_0 : i32
    scf.if %2 {
      %cst_62 = arith.constant 0.000000e+00 : f32
      %66 = vector.broadcast %cst_62 : f32 to vector<32x256xf32>
      %c0_63 = arith.constant 0 : index
      %c0_64 = arith.constant 0 : index
      %67 = vector.load %arg6[%c0_63, %c0_64] : memref<32x256xf32, #tpu.memory_space<vmem>>, vector<32x256xf32>
      tpu.vector_store %arg6[%c0_63, %c0_64], %66 {strides = array<i32>} : memref<32x256xf32, #tpu.memory_space<vmem>>, vector<32x256xf32>,
    } else {
    }
    %c0 = arith.constant 0 : index
    %c0_1 = arith.constant 0 : index
    %c0_2 = arith.constant 0 : index
    %c0_3 = arith.constant 0 : index
    %c0_4 = arith.constant 0 : index
    %3 = vector.load %arg3[%c0, %c0_1, %c0_2, %c0_3, %c0_4] : memref<1x16x1x20x20xbf16, #tpu.memory_space<vmem>>, vector<1x16x1x20x20xbf16>
    %4 = vector.shape_cast %3 : vector<1x16x1x20x20xbf16> to vector<16x20x20xbf16>
    %cst = arith.constant 0.000000e+00 : f32
    %5 = vector.broadcast %cst : f32 to vector<32x256xf32>
    %c0_5 = arith.constant 0 : index
    %c0_6 = arith.constant 0 : index
    %c0_7 = arith.constant 0 : index
    %c0_8 = arith.constant 0 : index
    %c0_9 = arith.constant 0 : index
    %6 = vector.load %arg4[%c0_5, %c0_6, %c0_7, %c0_8, %c0_9] : memref<1x3x3x32x16xbf16, #tpu.memory_space<vmem>>, vector<1x1x1x32x16xbf16>
    %7 = vector.shape_cast %6 : vector<1x1x1x32x16xbf16> to vector<32x16xbf16>
    %8 = vector.extract_strided_slice %4 {offsets = [0, 0, 0], sizes = [16, 16, 16], strides = [1, 1, 1]} : vector<16x20x20xbf16> to vector<16x16x16xbf16>
    %9 = vector.shape_cast %8 : vector<16x16x16xbf16> to vector<16x256xbf16>
    %cst_10 = arith.constant dense<0.000000e+00> : vector<32x256xf32>
    %10 = tpu.matmul %7, %9, %cst_10 {dimension_numbers = #tpu.dot_dimension_numbers<[1], [0], [0], [1], [0, 0, 1, 1], [], []>} : vector<32x16xbf16>, vector<16x256xbf16>, vector<32x256xf32> -> vector<32x256xf32>
    %11 = arith.addf %5, %10 : vector<32x256xf32>
    %c0_11 = arith.constant 0 : index
    %c0_12 = arith.constant 0 : index
    %c1 = arith.constant 1 : index
    %c0_13 = arith.constant 0 : index
    %c0_14 = arith.constant 0 : index
    %12 = vector.load %arg4[%c0_11, %c0_12, %c1, %c0_13, %c0_14] : memref<1x3x3x32x16xbf16, #tpu.memory_space<vmem>>, vector<1x1x1x32x16xbf16>
    %13 = vector.shape_cast %12 : vector<1x1x1x32x16xbf16> to vector<32x16xbf16>
    %14 = vector.extract_strided_slice %4 {offsets = [0, 0, 2], sizes = [16, 16, 16], strides = [1, 1, 1]} : vector<16x20x20xbf16> to vector<16x16x16xbf16>
    %15 = vector.shape_cast %14 : vector<16x16x16xbf16> to vector<16x256xbf16>
    %cst_15 = arith.constant dense<0.000000e+00> : vector<32x256xf32>
    %16 = tpu.matmul %13, %15, %cst_15 {dimension_numbers = #tpu.dot_dimension_numbers<[1], [0], [0], [1], [0, 0, 1, 1], [], []>} : vector<32x16xbf16>, vector<16x256xbf16>, vector<32x256xf32> -> vector<32x256xf32>
    %17 = arith.addf %11, %16 : vector<32x256xf32>
    %c0_16 = arith.constant 0 : index
    %c0_17 = arith.constant 0 : index
    %c2 = arith.constant 2 : index
    %c0_18 = arith.constant 0 : index
    %c0_19 = arith.constant 0 : index
    %18 = vector.load %arg4[%c0_16, %c0_17, %c2, %c0_18, %c0_19] : memref<1x3x3x32x16xbf16, #tpu.memory_space<vmem>>, vector<1x1x1x32x16xbf16>
    %19 = vector.shape_cast %18 : vector<1x1x1x32x16xbf16> to vector<32x16xbf16>
    %20 = vector.extract_strided_slice %4 {offsets = [0, 0, 4], sizes = [16, 16, 16], strides = [1, 1, 1]} : vector<16x20x20xbf16> to vector<16x16x16xbf16>
    %21 = vector.shape_cast %20 : vector<16x16x16xbf16> to vector<16x256xbf16>
    %cst_20 = arith.constant dense<0.000000e+00> : vector<32x256xf32>
    %22 = tpu.matmul %19, %21, %cst_20 {dimension_numbers = #tpu.dot_dimension_numbers<[1], [0], [0], [1], [0, 0, 1, 1], [], []>} : vector<32x16xbf16>, vector<16x256xbf16>, vector<32x256xf32> -> vector<32x256xf32>
    %23 = arith.addf %17, %22 : vector<32x256xf32>
    %c0_21 = arith.constant 0 : index
    %c1_22 = arith.constant 1 : index
    %c0_23 = arith.constant 0 : index
    %c0_24 = arith.constant 0 : index
    %c0_25 = arith.constant 0 : index
    %24 = vector.load %arg4[%c0_21, %c1_22, %c0_23, %c0_24, %c0_25] : memref<1x3x3x32x16xbf16, #tpu.memory_space<vmem>>, vector<1x1x1x32x16xbf16>
    %25 = vector.shape_cast %24 : vector<1x1x1x32x16xbf16> to vector<32x16xbf16>
    %26 = vector.extract_strided_slice %4 {offsets = [0, 2, 0], sizes = [16, 16, 16], strides = [1, 1, 1]} : vector<16x20x20xbf16> to vector<16x16x16xbf16>
    %27 = vector.shape_cast %26 : vector<16x16x16xbf16> to vector<16x256xbf16>
    %cst_26 = arith.constant dense<0.000000e+00> : vector<32x256xf32>
    %28 = tpu.matmul %25, %27, %cst_26 {dimension_numbers = #tpu.dot_dimension_numbers<[1], [0], [0], [1], [0, 0, 1, 1], [], []>} : vector<32x16xbf16>, vector<16x256xbf16>, vector<32x256xf32> -> vector<32x256xf32>
    %29 = arith.addf %23, %28 : vector<32x256xf32>
    %c0_27 = arith.constant 0 : index
    %c1_28 = arith.constant 1 : index
    %c1_29 = arith.constant 1 : index
    %c0_30 = arith.constant 0 : index
    %c0_31 = arith.constant 0 : index
    %30 = vector.load %arg4[%c0_27, %c1_28, %c1_29, %c0_30, %c0_31] : memref<1x3x3x32x16xbf16, #tpu.memory_space<vmem>>, vector<1x1x1x32x16xbf16>
    %31 = vector.shape_cast %30 : vector<1x1x1x32x16xbf16> to vector<32x16xbf16>
    %32 = vector.extract_strided_slice %4 {offsets = [0, 2, 2], sizes = [16, 16, 16], strides = [1, 1, 1]} : vector<16x20x20xbf16> to vector<16x16x16xbf16>
    %33 = vector.shape_cast %32 : vector<16x16x16xbf16> to vector<16x256xbf16>
    %cst_32 = arith.constant dense<0.000000e+00> : vector<32x256xf32>
    %34 = tpu.matmul %31, %33, %cst_32 {dimension_numbers = #tpu.dot_dimension_numbers<[1], [0], [0], [1], [0, 0, 1, 1], [], []>} : vector<32x16xbf16>, vector<16x256xbf16>, vector<32x256xf32> -> vector<32x256xf32>
    %35 = arith.addf %29, %34 : vector<32x256xf32>
    %c0_33 = arith.constant 0 : index
    %c1_34 = arith.constant 1 : index
    %c2_35 = arith.constant 2 : index
    %c0_36 = arith.constant 0 : index
    %c0_37 = arith.constant 0 : index
    %36 = vector.load %arg4[%c0_33, %c1_34, %c2_35, %c0_36, %c0_37] : memref<1x3x3x32x16xbf16, #tpu.memory_space<vmem>>, vector<1x1x1x32x16xbf16>
    %37 = vector.shape_cast %36 : vector<1x1x1x32x16xbf16> to vector<32x16xbf16>
    %38 = vector.extract_strided_slice %4 {offsets = [0, 2, 4], sizes = [16, 16, 16], strides = [1, 1, 1]} : vector<16x20x20xbf16> to vector<16x16x16xbf16>
    %39 = vector.shape_cast %38 : vector<16x16x16xbf16> to vector<16x256xbf16>
    %cst_38 = arith.constant dense<0.000000e+00> : vector<32x256xf32>
    %40 = tpu.matmul %37, %39, %cst_38 {dimension_numbers = #tpu.dot_dimension_numbers<[1], [0], [0], [1], [0, 0, 1, 1], [], []>} : vector<32x16xbf16>, vector<16x256xbf16>, vector<32x256xf32> -> vector<32x256xf32>
    %41 = arith.addf %35, %40 : vector<32x256xf32>
    %c0_39 = arith.constant 0 : index
    %c2_40 = arith.constant 2 : index
    %c0_41 = arith.constant 0 : index
    %c0_42 = arith.constant 0 : index
    %c0_43 = arith.constant 0 : index
    %42 = vector.load %arg4[%c0_39, %c2_40, %c0_41, %c0_42, %c0_43] : memref<1x3x3x32x16xbf16, #tpu.memory_space<vmem>>, vector<1x1x1x32x16xbf16>
    %43 = vector.shape_cast %42 : vector<1x1x1x32x16xbf16> to vector<32x16xbf16>
    %44 = vector.extract_strided_slice %4 {offsets = [0, 4, 0], sizes = [16, 16, 16], strides = [1, 1, 1]} : vector<16x20x20xbf16> to vector<16x16x16xbf16>
    %45 = vector.shape_cast %44 : vector<16x16x16xbf16> to vector<16x256xbf16>
    %cst_44 = arith.constant dense<0.000000e+00> : vector<32x256xf32>
    %46 = tpu.matmul %43, %45, %cst_44 {dimension_numbers = #tpu.dot_dimension_numbers<[1], [0], [0], [1], [0, 0, 1, 1], [], []>} : vector<32x16xbf16>, vector<16x256xbf16>, vector<32x256xf32> -> vector<32x256xf32>
    %47 = arith.addf %41, %46 : vector<32x256xf32>
    %c0_45 = arith.constant 0 : index
    %c2_46 = arith.constant 2 : index
    %c1_47 = arith.constant 1 : index
    %c0_48 = arith.constant 0 : index
    %c0_49 = arith.constant 0 : index
    %48 = vector.load %arg4[%c0_45, %c2_46, %c1_47, %c0_48, %c0_49] : memref<1x3x3x32x16xbf16, #tpu.memory_space<vmem>>, vector<1x1x1x32x16xbf16>
    %49 = vector.shape_cast %48 : vector<1x1x1x32x16xbf16> to vector<32x16xbf16>
    %50 = vector.extract_strided_slice %4 {offsets = [0, 4, 2], sizes = [16, 16, 16], strides = [1, 1, 1]} : vector<16x20x20xbf16> to vector<16x16x16xbf16>
    %51 = vector.shape_cast %50 : vector<16x16x16xbf16> to vector<16x256xbf16>
    %cst_50 = arith.constant dense<0.000000e+00> : vector<32x256xf32>
    %52 = tpu.matmul %49, %51, %cst_50 {dimension_numbers = #tpu.dot_dimension_numbers<[1], [0], [0], [1], [0, 0, 1, 1], [], []>} : vector<32x16xbf16>, vector<16x256xbf16>, vector<32x256xf32> -> vector<32x256xf32>
    %53 = arith.addf %47, %52 : vector<32x256xf32>
    %c0_51 = arith.constant 0 : index
    %c2_52 = arith.constant 2 : index
    %c2_53 = arith.constant 2 : index
    %c0_54 = arith.constant 0 : index
    %c0_55 = arith.constant 0 : index
    %54 = vector.load %arg4[%c0_51, %c2_52, %c2_53, %c0_54, %c0_55] : memref<1x3x3x32x16xbf16, #tpu.memory_space<vmem>>, vector<1x1x1x32x16xbf16>
    %55 = vector.shape_cast %54 : vector<1x1x1x32x16xbf16> to vector<32x16xbf16>
    %56 = vector.extract_strided_slice %4 {offsets = [0, 4, 4], sizes = [16, 16, 16], strides = [1, 1, 1]} : vector<16x20x20xbf16> to vector<16x16x16xbf16>
    %57 = vector.shape_cast %56 : vector<16x16x16xbf16> to vector<16x256xbf16>
    %cst_56 = arith.constant dense<0.000000e+00> : vector<32x256xf32>
    %58 = tpu.matmul %55, %57, %cst_56 {dimension_numbers = #tpu.dot_dimension_numbers<[1], [0], [0], [1], [0, 0, 1, 1], [], []>} : vector<32x16xbf16>, vector<16x256xbf16>, vector<32x256xf32> -> vector<32x256xf32>
    %59 = arith.addf %53, %58 : vector<32x256xf32>
    %c0_57 = arith.constant 0 : index
    %c0_58 = arith.constant 0 : index
    %60 = vector.load %arg6[%c0_57, %c0_58] : memref<32x256xf32, #tpu.memory_space<vmem>>, vector<32x256xf32>
    %61 = arith.addf %60, %59 : vector<32x256xf32>
    %c0_59 = arith.constant 0 : index
    %c0_60 = arith.constant 0 : index
    %62 = vector.load %arg6[%c0_59, %c0_60] : memref<32x256xf32, #tpu.memory_space<vmem>>, vector<32x256xf32>
    tpu.vector_store %arg6[%c0_59, %c0_60], %61 {strides = array<i32>} : memref<32x256xf32, #tpu.memory_space<vmem>>, vector<32x256xf32>,
    %c2_i32 = arith.constant 2 : i32
    %63 = arith.cmpi eq, %arg2, %c2_i32 : i32
    %64 = arith.extui %63 : i1 to i32
    %c0_i32_61 = arith.constant 0 : i32
    %65 = arith.cmpi ne, %64, %c0_i32_61 : i32
    scf.if %65 {
      %c0_62 = arith.constant 0 : index
      %c0_63 = arith.constant 0 : index
      %66 = vector.load %arg6[%c0_62, %c0_63] : memref<32x256xf32, #tpu.memory_space<vmem>>, vector<32x256xf32>
      %67 = vector.shape_cast %66 : vector<32x256xf32> to vector<32x16x16xf32>
      %c0_64 = arith.constant 0 : index
      %c0_65 = arith.constant 0 : index
      %c0_66 = arith.constant 0 : index
      %c0_67 = arith.constant 0 : index
      %c0_68 = arith.constant 0 : index
      %68 = vector.load %arg5[%c0_64, %c0_65, %c0_66, %c0_67, %c0_68] : memref<1x32x1x16x16xf32, #tpu.memory_space<vmem>>, vector<1x32x1x16x16xf32>
      %69 = vector.shape_cast %68 : vector<1x32x1x16x16xf32> to vector<32x16x16xf32>
      %70 = vector.shape_cast %67 : vector<32x16x16xf32> to vector<1x32x1x16x16xf32>
      tpu.vector_store %arg5[%c0_64, %c0_65, %c0_66, %c0_67, %c0_68], %70 {strides = array<i32>} : memref<1x32x1x16x16xf32, #tpu.memory_space<vmem>>, vector<1x32x1x16x16xf32>,
    } else {
    }
    return
  }
  func.func @transform_0(%arg0: i32, %arg1: i32, %arg2: i32) -> (i32, i32, i32, i32, i32) {
    %c1_i32 = arith.constant 1 : i32
    %0 = arith.muli %arg1, %c1_i32 : i32
    %c2_i32 = arith.constant 2 : i32
    %1 = arith.muli %arg2, %c2_i32 : i32
    %2 = arith.addi %0, %1 : i32
    %c0_i32 = arith.constant 0 : i32
    %c0_i32_0 = arith.constant 0 : i32
    %c0_i32_1 = arith.constant 0 : i32
    %c0_i32_2 = arith.constant 0 : i32
    return %arg0, %c0_i32, %2, %c0_i32_0, %c0_i32_1 : i32, i32, i32, i32, i32
  }
  func.func @transform_1(%arg0: i32, %arg1: i32, %arg2: i32) -> (i32, i32, i32, i32, i32) {
    %c0_i32 = arith.constant 0 : i32
    %c0_i32_0 = arith.constant 0 : i32
    %c0_i32_1 = arith.constant 0 : i32
    %c0_i32_2 = arith.constant 0 : i32
    %c0_i32_3 = arith.constant 0 : i32
    return %arg2, %c0_i32, %c0_i32_0, %c0_i32_1, %c0_i32_2 : i32, i32, i32, i32, i32
  }
  func.func @transform_2(%arg0: i32, %arg1: i32, %arg2: i32) -> (i32, i32, i32, i32, i32) {
    %c0_i32 = arith.constant 0 : i32
    %c0_i32_0 = arith.constant 0 : i32
    %c0_i32_1 = arith.constant 0 : i32
    %c0_i32_2 = arith.constant 0 : i32
    return %arg0, %c0_i32, %arg1, %c0_i32_0, %c0_i32_1 : i32, i32, i32, i32, i32
  }
}

module attributes {stable_mosaic.version = 11 : i64} {
  func.func @_norm_relu_pad_kernel(%arg0: i32, %arg1: i32, %arg2: memref<1x16x1x16x16xf32, #tpu.memory_space<vmem>>, %arg3: memref<1x16x1x1xf32, #tpu.memory_space<vmem>>, %arg4: memref<1x16x1x1xf32, #tpu.memory_space<vmem>>, %arg5: memref<1x16x1x20x20xbf16, #tpu.memory_space<vmem>>) attributes {dimension_semantics = [#tpu.dimension_semantics<parallel>, #tpu.dimension_semantics<arbitrary>], iteration_bounds = array<i64: 2, 20>, scalar_prefetch = 0 : i64, scratch_operands = 0 : i64, tpu.core_type = #tpu.core_type<tc>, window_params = [{transform_indices = @transform_0, window_bounds = array<i64: 1, 16, 1, 16, 16>}, {transform_indices = @transform_1, window_bounds = array<i64: 1, 16, 1, 1>}, {transform_indices = @transform_2, window_bounds = array<i64: 1, 16, 1, 1>}, {transform_indices = @transform_3, window_bounds = array<i64: 1, 16, 1, 20, 20>}]} {
    %cst = arith.constant 0.000000e+00 : bf16
    %0 = vector.broadcast %cst : bf16 to vector<16x20x20xbf16>
    %c0 = arith.constant 0 : index
    %c0_0 = arith.constant 0 : index
    %c0_1 = arith.constant 0 : index
    %c0_2 = arith.constant 0 : index
    %c0_3 = arith.constant 0 : index
    %1 = vector.load %arg5[%c0, %c0_0, %c0_1, %c0_2, %c0_3] : memref<1x16x1x20x20xbf16, #tpu.memory_space<vmem>>, vector<1x16x1x20x20xbf16>
    %2 = vector.shape_cast %1 : vector<1x16x1x20x20xbf16> to vector<16x20x20xbf16>
    %3 = vector.shape_cast %0 : vector<16x20x20xbf16> to vector<1x16x1x20x20xbf16>
    tpu.vector_store %arg5[%c0, %c0_0, %c0_1, %c0_2, %c0_3], %3 {strides = array<i32>} : memref<1x16x1x20x20xbf16, #tpu.memory_space<vmem>>, vector<1x16x1x20x20xbf16>,
    %c2_i32 = arith.constant 2 : i32
    %4 = arith.cmpi sge, %arg1, %c2_i32 : i32
    %c18_i32 = arith.constant 18 : i32
    %5 = arith.cmpi slt, %arg1, %c18_i32 : i32
    %6 = arith.andi %4, %5 : i1
    %7 = arith.extui %6 : i1 to i32
    %c0_i32 = arith.constant 0 : i32
    %8 = arith.cmpi ne, %7, %c0_i32 : i32
    scf.if %8 {
      %c0_4 = arith.constant 0 : index
      %c0_5 = arith.constant 0 : index
      %c0_6 = arith.constant 0 : index
      %c0_7 = arith.constant 0 : index
      %c0_8 = arith.constant 0 : index
      %9 = vector.load %arg2[%c0_4, %c0_5, %c0_6, %c0_7, %c0_8] : memref<1x16x1x16x16xf32, #tpu.memory_space<vmem>>, vector<1x16x1x16x16xf32>
      %10 = vector.shape_cast %9 : vector<1x16x1x16x16xf32> to vector<16x16x16xf32>
      %c0_9 = arith.constant 0 : index
      %c0_10 = arith.constant 0 : index
      %c0_11 = arith.constant 0 : index
      %c0_12 = arith.constant 0 : index
      %11 = vector.load %arg3[%c0_9, %c0_10, %c0_11, %c0_12] : memref<1x16x1x1xf32, #tpu.memory_space<vmem>>, vector<1x16x1x1xf32>
      %12 = vector.shape_cast %11 : vector<1x16x1x1xf32> to vector<16x1x1xf32>
      %13 = vector.broadcast %12 : vector<16x1x1xf32> to vector<16x16x16xf32>
      %14 = arith.mulf %10, %13 : vector<16x16x16xf32>
      %c0_13 = arith.constant 0 : index
      %c0_14 = arith.constant 0 : index
      %c0_15 = arith.constant 0 : index
      %c0_16 = arith.constant 0 : index
      %15 = vector.load %arg4[%c0_13, %c0_14, %c0_15, %c0_16] : memref<1x16x1x1xf32, #tpu.memory_space<vmem>>, vector<1x16x1x1xf32>
      %16 = vector.shape_cast %15 : vector<1x16x1x1xf32> to vector<16x1x1xf32>
      %17 = vector.broadcast %16 : vector<16x1x1xf32> to vector<16x16x16xf32>
      %18 = arith.addf %14, %17 : vector<16x16x16xf32>
      %cst_17 = arith.constant 0.000000e+00 : f32
      %19 = vector.broadcast %cst_17 : f32 to vector<16x16x16xf32>
      %20 = arith.maximumf %18, %19 : vector<16x16x16xf32>
      %21 = arith.truncf %20 : vector<16x16x16xf32> to vector<16x16x16xbf16>
      %c0_18 = arith.constant 0 : index
      %c0_19 = arith.constant 0 : index
      %c0_20 = arith.constant 0 : index
      %c2 = arith.constant 2 : index
      %c2_21 = arith.constant 2 : index
      %22 = vector.load %arg5[%c0_18, %c0_19, %c0_20, %c2, %c2_21] : memref<1x16x1x20x20xbf16, #tpu.memory_space<vmem>>, vector<1x16x1x16x16xbf16>
      %23 = vector.shape_cast %22 : vector<1x16x1x16x16xbf16> to vector<16x16x16xbf16>
      %24 = vector.shape_cast %21 : vector<16x16x16xbf16> to vector<1x16x1x16x16xbf16>
      tpu.vector_store %arg5[%c0_18, %c0_19, %c0_20, %c2, %c2_21], %24 {strides = array<i32>} : memref<1x16x1x20x20xbf16, #tpu.memory_space<vmem>>, vector<1x16x1x16x16xbf16>,
    } else {
    }
    return
  }
  func.func @transform_0(%arg0: i32, %arg1: i32) -> (i32, i32, i32, i32, i32) {
    %c2_i32 = arith.constant 2 : i32
    %0 = arith.subi %arg1, %c2_i32 : i32
    %c0_i32 = arith.constant 0 : i32
    %1 = arith.maxsi %0, %c0_i32 : i32
    %c15_i32 = arith.constant 15 : i32
    %2 = arith.minsi %1, %c15_i32 : i32
    %c0_i32_0 = arith.constant 0 : i32
    %c0_i32_1 = arith.constant 0 : i32
    %c0_i32_2 = arith.constant 0 : i32
    %c0_i32_3 = arith.constant 0 : i32
    return %arg0, %c0_i32_0, %2, %c0_i32_1, %c0_i32_2 : i32, i32, i32, i32, i32
  }
  func.func @transform_1(%arg0: i32, %arg1: i32) -> (i32, i32, i32, i32) {
    %c0_i32 = arith.constant 0 : i32
    %c0_i32_0 = arith.constant 0 : i32
    %c0_i32_1 = arith.constant 0 : i32
    %c0_i32_2 = arith.constant 0 : i32
    return %arg0, %c0_i32, %c0_i32_0, %c0_i32_1 : i32, i32, i32, i32
  }
  func.func @transform_2(%arg0: i32, %arg1: i32) -> (i32, i32, i32, i32) {
    %c0_i32 = arith.constant 0 : i32
    %c0_i32_0 = arith.constant 0 : i32
    %c0_i32_1 = arith.constant 0 : i32
    %c0_i32_2 = arith.constant 0 : i32
    return %arg0, %c0_i32, %c0_i32_0, %c0_i32_1 : i32, i32, i32, i32
  }
  func.func @transform_3(%arg0: i32, %arg1: i32) -> (i32, i32, i32, i32, i32) {
    %c0_i32 = arith.constant 0 : i32
    %c0_i32_0 = arith.constant 0 : i32
    %c0_i32_1 = arith.constant 0 : i32
    %c0_i32_2 = arith.constant 0 : i32
    return %arg0, %c0_i32, %arg1, %c0_i32_0, %c0_i32_1 : i32, i32, i32, i32, i32
  }
}

</mosaic_0001>

<bundles_post_ra>
// kernel: dilated_conv3d_block_forward.2
= control target key start
LH: loop header
LB: loop body
LE: loop exit
PB: predicated region body
PF: predicated region fallthrough
CT: control target
= control target key end

     0   :  { %8 = vsyncpa [#allocation3], 0  ;;  %s2314_s0 = inlined_call_operand.hbm [shape: f32[2,16,16,16,16], index: 0, kind: input, shape index: {}]   ;;  %s2315_s1 = inlined_call_operand.vmem [shape: f32[2,16,1,1], index: 1, kind: input, shape index: {}]   ;;  %s2316_s2 = inlined_call_operand.vmem [shape: f32[2,16,1,1], index: 2, kind: input, shape index: {}]   ;;  %s2317_s3 = inlined_call_operand.vmem [shape: bf16[2,16,20,20,20], index: 3, kind: output, shape index: {}]  }
   0x1   :  { %10 = vsyncpa [#allocation3 + $0x1], 0  ;;  %s1669_s12 = smov 0   ;;  %s1671_s13 = smov 0  }
   0x2   :  { %s1673_s14 = smov 0   ;;  %s1675_s15 = smov 0  }
   0x3   :  { %s1677_s16 = smov 0   ;;  %s1679_s17 = smov 0  }
   0x4   :  { %s1681_s18 = smov 0   ;;  %s1683_s19 = smov 0  }
   0x5   :  { %s1685_s20 = smov 0   ;;  %s1687_s21 = smov 0  }
   0x6 LB: > { %2322 = sst [smem:[#allocation9_spill]] %s1630_s19  ;;  %s1379_s22 = sadd.s32 4294967295, %s1638_s21   ;;  %s1638_s21 = sphi %s1687_s21, %s16_s21   ;;  %s1634_s20 = sphi %s1685_s20, %s2335_s20   ;;  %s1630_s19 = sphi %s1683_s19, %s2334_s19   ;;  %s1626_s18 = sphi %s1681_s18, %s2333_s18   ;;  %s1622_s17 = sphi %s1679_s17, %s2332_s17   ;;  %s1618_s16 = sphi %s1677_s16, %s2340_s16   ;;  %s1614_s15 = sphi %s1675_s15, %s2339_s15   ;;  %s1610_s14 = sphi %s1673_s14, %s2338_s14   ;;  %s1606_s13 = sphi %s1671_s13, %s2337_s13   ;;  %s1602_s12 = sphi %s1669_s12, %s2336_s12  }
   0x7   : > { %2323 = sst [smem:[#allocation10_spill]] %s1634_s20  ;;  %s25_s23 = sadd.s32 1, %s1630_s19 }
   0x8   : > { %p26_p0 = scmp.ge.s32.totalorder %s25_s23, 20  ;;  %s28_s24 = sadd.s32 1, %s1634_s20 }
   0x9   : > { %s1381_s25 = sadd.s32 4294967294, %s1630_s19  ;;  %s47_s26 = sadd.s32 1, %s1618_s16 }
   0xa   : > { %s2342_s23 = smov (%p26_p0, %s25_s23), 0  ;;  %s2344_s24 = smov (!%p26_p0, %s28_s24), %s1634_s20 }
   0xb   : > { %2324 = sst [smem:[#allocation11_spill]] %s2342_s23  ;;  %p33_p1 = scmp.gt.s32.totalorder %s1381_s25, 0 }
   0xc   : > { %p1382_p2 = scmp.lt.s32.totalorder %s1381_s25, 15  ;;  %p30_p3 = scmp.ge.s32.totalorder %s2344_s24, 2 }
   0xd   : > { %s1387_s27 = sadd.s32 4294967294, %s2342_s23  ;;  %s2346_s25 = smov (!%p33_p1, %s1381_s25), 0 }
   0xe   : > { %s2348_s24 = smov (%p30_p3, %s2344_s24), 0  ;;  %s2350_s25 = smov (!%p1382_p2, %s2346_s25), 15 }
   0xf   : > { %2325 = sst [smem:[#allocation12_spill]] %s2348_s24  ;;  %p38_p4 = scmp.gt.s32.totalorder %s1387_s27, 0 }
  0x10   : > { %p1388_p5 = scmp.lt.s32.totalorder %s1387_s27, 15  ;;  %s42_s28 = ssub.s32 %s1634_s20, %s2348_s24 }
  0x11   : > { %p54_p6 = scmp.ne.s32.totalorder %s1618_s16, %s1614_s15  ;;  %s2352_s27 = smov (!%p38_p4, %s1387_s27), 0 }
  0x12   : > { %p55_p7 = scmp.eq.s32.totalorder %s1638_s21, 0  ;;  %p60_p8 = scmp.ne.s32.totalorder %s1614_s15, %s1610_s14 }
  0x13   : > { %s2354_s27 = smov (!%p1388_p5, %s2352_s27), 15  ;;  %p61_p10 = scmp.eq.s32.totalorder %s1379_s22, 0 }
  0x14   : > { %p1739_p9 = por %p55_p7, %p54_p6  ;;  %s43_s30 = ssub.s32 %s2350_s25, %s2354_s27 }
  0x15   : > { %s123_s4 = ssub.s32 %s1630_s19, %s2342_s23  ;;  %s44_s5 = sor.u32 %s43_s30, %s42_s28 }
  0x16   : > { %p1748_p11 = por %p61_p10, %p60_p8  ;;  %p45_p12 = scmp.eq.s32.totalorder %s44_s5, 0 }
  0x17   : > { %s124_s7 = sor.u32 %s123_s4, %s42_s28  ;;  %s127_s8 = sadd.s32 1, %s1606_s13 }
  0x18   : > { %p125_p13 = scmp.eq.s32.totalorder %s124_s7, 0  ;;  %p137_p0 = scmp.ne.s32.totalorder %s1606_s13, %s1602_s12 }
  0x19   : > { %s1754_s9 = scalar_select %p45_p12, %s1618_s16, %s47_s26  }
  0x1a   : > { %s1757_s10 = scalar_select %p125_p13, %s1606_s13, %s127_s8  }
  0x1b   : > { %p138_p1 = scmp.eq.s32.totalorder %s1379_s22, 39  ;;  %p1394_p3 = scmp.ge.s32.totalorder %s1638_s21, 40 }
  0x1d   : > { %p1763_p2 = por %p138_p1, %p137_p0  ;;  %160 = sbr.rel (%p1394_p3) target bundleno = 50 (0x32), region = 16 }
  0x22   : > { %s164_s14 = sand.u32 1, %s1618_s16   ;;  %s1402_s26 = sshll.u32 %s2350_s25, 1 }
  0x23   : > { %s1395_s27 = sshll.u32 %s164_s14, 8  ;;  %s1403_s28 = sshll.u32 %s1634_s20, 9 }
  0x24   : > { %s178_s30 = sadd.s32 %s1403_s28, %s1402_s26  ;;  %s168_s4 = scalar_lea.vmem [#allocation2], %s1395_s27 }
  0x25   : > { %s1404_s22 = sshll.u32 %s178_s30, 3  ;;  %s195_s5 = sshll.u32 %s168_s4, 4  ;;  %s196_s5 = int_to_ptr.vmem [resolvable:$true] %s195_s5 }
  0x26   : > { %s180_s24 = scalar_lea.hbm %s2314_s0, %s1404_s22  ;;  %s1640_s19 = smov 4096  }
  0x27   : > { %s1423_s23 = scalar_select %p1739_p9, [#allocation0], [#allocation7] }
  0x28   : > { %1424 = sst [smem:[#allocation6]] (%p1739_p9), %s1640_s19  ;;  %s193_s20 = sshll.u32 %s180_s24, 4  ;;  %s194_s20 = int_to_ptr.hbm [resolvable:$true] %s193_s20 }
  0x29   : > { %s185_s25 = sld [smem:[%s1423_s23]]   ;;  %s1641_s26 = smov 256  }
  0x2a   : > { %1425 = sst [smem:[#allocation6 + $0x1]] (%p1739_p9), %s1641_s26  ;;  %s1642_s27 = smov 2  }
  0x2b   : > { %1426 = sst [smem:[#allocation6 + $0x2]] (%p1739_p9), %s1642_s27  ;;  %s1643_s28 = smov 128  }
  0x2c   : > { %1427 = sst [smem:[#allocation6 + $0x3]] (%p1739_p9), %s1643_s28  ;;  %s1644_s22 = smov 8  }
  0x2d   : > { %1428 = sst [smem:[#allocation6 + $0x4]] (%p1739_p9), %s1643_s28  ;;  %s165_s23 = scalar_lea.sflag [#allocation3], %s164_s14 }
  0x2e   : > { %1429 = sst [smem:[#allocation6 + $0x5]] (%p1739_p9), %s1644_s22  ;;  %s1645_s4 = smov [#allocation5]  }
  0x2f   : > { %s1405_s30 = sshll.u32 %s185_s25, 26 }
  0x30   : > { %s1406_s19 = sadd.s32 134217728, %s1405_s30 }
  0x31   : > { %1430 = dma.general (%p1739_p9), %s194_s20, 4096, %s196_s5, %s165_s23, %s1645_s4, [#allocation6], %s1406_s19, 0  }
  0x32 PF: > { %p1407_p4 = scmp.ge.s32.totalorder %s1638_s21, 1  ;;  %p230_p5 = scmp.lt.s32.totalorder %s1638_s21, 41 }
  0x34   : > { %p231_p6 = pnand %p1407_p4, %p230_p5 }
  0x35   : > { %s236_s24 = sand.u32 (!%p231_p6), 1, %s1614_s15  }
  0x36   : > { %234 = sbr.rel (%p231_p6) target bundleno = 556 (0x22c), region = 32  ;;  %s1408_s7 = sshll.u32 (!%p231_p6), %s236_s24, 8 }
  0x37   : > { %s237_s8 = scalar_lea.sflag (!%p231_p6), [#allocation3], %s236_s24  ;;  %s1793_s25 = scalar_lea.vmem (!%p231_p6), [#allocation2], %s1408_s7 }
  0x3b   : > { %1597 = dma.done.wait (%p1748_p11), %s237_s8, 4096  }
  0x3c   : > { %1599 = vsyncadd (%p1748_p11), %s237_s8, 4294963200  ;;  %s268_s20 = sand.u32 1, %s1602_s12   ;;  %p276_p7 = scmp.lt.s32.totalorder %s1626_s18, 1  ;;  %vm285_vm0 = vcmask 158720   ;;  %v1646_v0 = vmov 0   ;;  %vm288_vm1 = vcmask 156672  }
  0x3d   : > { %s1420_s29 = smul.u32 192, %s268_s20  ;;  %p335_p8 = scmp.ge.s32.totalorder %s1622_s17, 2 }
  0x3e   : > { %s277_s14 = scalar_select %p276_p7, %s1626_s18, 1 }
  0x3f   : > { %p336_p9 = scmp.lt.s32.totalorder %s1622_s17, 18  ;;  %s1804_s26 = scalar_lea.vmem [#allocation4], %s1420_s29 }
  0x40   : > { %s1409_s5 = sshll.u32 %s277_s14, 4  ;;  %286 = vst.msk [vmem:[%s1804_s26] sm:$0xf] %vm285_vm0, %v1646_v0 }
  0x41   : > { %s1811_s27 = scalar_lea.vmem %s2315_s1, %s1409_s5  ;;  %s1816_s22 = scalar_lea.vmem %s2316_s2, %s1409_s5  ;;  %287 = vst.msk [vmem:[%s1804_s26 + $0x4] sm:$0xf] %vm285_vm0, %v1646_v0 }
  0x42   : > { %290 = vst.msk [vmem:[%s1804_s26 + $0xc] sm:$0xf] %vm285_vm0, %v1646_v0  ;;  %p1822_p10 = pnand %p336_p9, %p335_p8 }
  0x43   : > { %291 = vst.msk [vmem:[%s1804_s26 + $0x10] sm:$0xf] %vm285_vm0, %v1646_v0  ;;  %s1648_s23 = smov (!%p1822_p10), 2  }
  0x44   : > { %293 = vst.msk [vmem:[%s1804_s26 + $0x18] sm:$0xf] %vm285_vm0, %v1646_v0 }
  0x45   : > { %294 = vst.msk [vmem:[%s1804_s26 + $0x1c] sm:$0xf] %vm285_vm0, %v1646_v0 }
  0x46   : > { %296 = vst.msk [vmem:[%s1804_s26 + $0x24] sm:$0xf] %vm285_vm0, %v1646_v0 }
  0x47   : > { %297 = vst.msk [vmem:[%s1804_s26 + $0x28] sm:$0xf] %vm285_vm0, %v1646_v0 }
  0x48   : > { %299 = vst.msk [vmem:[%s1804_s26 + $0x30] sm:$0xf] %vm285_vm0, %v1646_v0 }
  0x49   : > { %300 = vst.msk [vmem:[%s1804_s26 + $0x34] sm:$0xf] %vm285_vm0, %v1646_v0 }
  0x4a   : > { %302 = vst.msk [vmem:[%s1804_s26 + $0x3c] sm:$0xf] %vm285_vm0, %v1646_v0 }
  0x4b   : > { %303 = vst.msk [vmem:[%s1804_s26 + $0x40] sm:$0xf] %vm285_vm0, %v1646_v0 }
  0x4c   : > { %305 = vst.msk [vmem:[%s1804_s26 + $0x48] sm:$0xf] %vm285_vm0, %v1646_v0 }
  0x4d   : > { %306 = vst.msk [vmem:[%s1804_s26 + $0x4c] sm:$0xf] %vm285_vm0, %v1646_v0 }
  0x4e   : > { %308 = vst.msk [vmem:[%s1804_s26 + $0x54] sm:$0xf] %vm285_vm0, %v1646_v0 }
  0x4f   : > { %309 = vst.msk [vmem:[%s1804_s26 + $0x58] sm:$0xf] %vm285_vm0, %v1646_v0 }
  0x50   : > { %311 = vst.msk [vmem:[%s1804_s26 + $0x60] sm:$0xf] %vm285_vm0, %v1646_v0 }
  0x51   : > { %312 = vst.msk [vmem:[%s1804_s26 + $0x64] sm:$0xf] %vm285_vm0, %v1646_v0 }
  0x52   : > { %314 = vst.msk [vmem:[%s1804_s26 + $0x6c] sm:$0xf] %vm285_vm0, %v1646_v0 }
  0x53   : > { %315 = vst.msk [vmem:[%s1804_s26 + $0x70] sm:$0xf] %vm285_vm0, %v1646_v0 }
  0x54   : > { %317 = vst.msk [vmem:[%s1804_s26 + $0x78] sm:$0xf] %vm285_vm0, %v1646_v0 }
  0x55   : > { %318 = vst.msk [vmem:[%s1804_s26 + $0x7c] sm:$0xf] %vm285_vm0, %v1646_v0 }
  0x56   : > { %320 = vst.msk [vmem:[%s1804_s26 + $0x84] sm:$0xf] %vm285_vm0, %v1646_v0 }
  0x57   : > { %321 = vst.msk [vmem:[%s1804_s26 + $0x88] sm:$0xf] %vm285_vm0, %v1646_v0 }
  0x58   : > { %323 = vst.msk [vmem:[%s1804_s26 + $0x90] sm:$0xf] %vm285_vm0, %v1646_v0 }
  0x59   : > { %324 = vst.msk [vmem:[%s1804_s26 + $0x94] sm:$0xf] %vm285_vm0, %v1646_v0 }
  0x5a   : > { %326 = vst.msk [vmem:[%s1804_s26 + $0x9c] sm:$0xf] %vm285_vm0, %v1646_v0 }
  0x5b   : > { %327 = vst.msk [vmem:[%s1804_s26 + $0xa0] sm:$0xf] %vm285_vm0, %v1646_v0 }
  0x5c   : > { %329 = vst.msk [vmem:[%s1804_s26 + $0xa8] sm:$0xf] %vm285_vm0, %v1646_v0 }
  0x5d   : > { %330 = vst.msk [vmem:[%s1804_s26 + $0xac] sm:$0xf] %vm285_vm0, %v1646_v0 }
  0x5e   : > { %332 = vst.msk [vmem:[%s1804_s26 + $0xb4] sm:$0xf] %vm285_vm0, %v1646_v0 }
  0x5f   : > { %333 = vst.msk [vmem:[%s1804_s26 + $0xb8] sm:$0xf] %vm285_vm0, %v1646_v0 }
  0x60   : > { %289 = vst.msk [vmem:[%s1804_s26 + $0x8] sm:$0x3] %vm288_vm1, %v1646_v0 }
  0x61   : > { %292 = vst.msk [vmem:[%s1804_s26 + $0x14] sm:$0x3] %vm288_vm1, %v1646_v0 }
  0x62   : > { %295 = vst.msk [vmem:[%s1804_s26 + $0x20] sm:$0x3] %vm288_vm1, %v1646_v0 }
  0x63   : > { %298 = vst.msk [vmem:[%s1804_s26 + $0x2c] sm:$0x3] %vm288_vm1, %v1646_v0 }
  0x64   : > { %301 = vst.msk [vmem:[%s1804_s26 + $0x38] sm:$0x3] %vm288_vm1, %v1646_v0 }
  0x65   : > { %304 = vst.msk [vmem:[%s1804_s26 + $0x44] sm:$0x3] %vm288_vm1, %v1646_v0 }
  0x66   : > { %307 = vst.msk [vmem:[%s1804_s26 + $0x50] sm:$0x3] %vm288_vm1, %v1646_v0 }
  0x67   : > { %310 = vst.msk [vmem:[%s1804_s26 + $0x5c] sm:$0x3] %vm288_vm1, %v1646_v0 }
  0x68   : > { %313 = vst.msk [vmem:[%s1804_s26 + $0x68] sm:$0x3] %vm288_vm1, %v1646_v0 }
  0x69   : > { %316 = vst.msk [vmem:[%s1804_s26 + $0x74] sm:$0x3] %vm288_vm1, %v1646_v0 }
  0x6a   : > { %319 = vst.msk [vmem:[%s1804_s26 + $0x80] sm:$0x3] %vm288_vm1, %v1646_v0 }
  0x6b   : > { %322 = vst.msk [vmem:[%s1804_s26 + $0x8c] sm:$0x3] %vm288_vm1, %v1646_v0  ;;  %340 = sbr.rel (%p1822_p10) target bundleno = 517 (0x205), region = 40 }
  0x6c   : > { %325 = vst.msk [vmem:[%s1804_s26 + $0x98] sm:$0x3] %vm288_vm1, %v1646_v0 }
  0x6d   : > { %328 = vst.msk [vmem:[%s1804_s26 + $0xa4] sm:$0x3] %vm288_vm1, %v1646_v0 }
  0x6e   : > { %331 = vst.msk [vmem:[%s1804_s26 + $0xb0] sm:$0x3] %vm288_vm1, %v1646_v0 }
  0x6f   : > { %334 = vst.msk [vmem:[%s1804_s26 + $0xbc] sm:$0x3] %vm288_vm1, %v1646_v0 }
  0x70   : > { %v1524_v1 = vld [vmem:[%s1811_s27 + $0x4] ss:$0 sm:$0xff]  ;;  %v1647_v2 = vmov 0   ;;  %v1525_v3 = vld [vmem:[%s1811_s27 + $0x2] ss:$0 sm:$0xff]  ;;  %v343_v49 = vld [vmem:[%s1793_s25 + $0x10] sm:$0xff] }
  0x71   : > { %1523 = vset.pattern.permute.xlu2 %v1647_v2  ;;  %1522 = vset.pattern.permute.xlu1 %v1647_v2  ;;  %v1526_v4 = vld [vmem:[%s1811_s27] ss:$0 sm:$0xff]  ;;  %v1527_v5 = vld [vmem:[%s1811_s27 + $0x5] ss:$0 sm:$0xff]  ;;  %v1528_v6 = vld [vmem:[%s1811_s27 + $0x3] ss:$0 sm:$0xff] }
  0x72   : > { %1521 = vset.pattern.permute.xlu0 %v1647_v2  ;;  %438 = vperm.xlu2 %1523, %v1524_v1   ;;  %v1529_v7 = vld [vmem:[%s1811_s27 + $0x1] ss:$0 sm:$0xff]  ;;  %v1530_v8 = vld [vmem:[%s1811_s27 + $0x8] ss:$0 sm:$0xff]  ;;  %v1531_v9 = vld [vmem:[%s1811_s27 + $0x7] ss:$0 sm:$0xff] }
  0x73   : > { %430 = vperm.xlu1 %1522, %v1525_v3   ;;  %422 = vperm.xlu0 %1521, %v1526_v4   ;;  %v1532_v10 = vld [vmem:[%s1811_s27 + $0x6] ss:$0 sm:$0xff]  ;;  %v1533_v11 = vld [vmem:[%s1811_s27 + $0xb] ss:$0 sm:$0xff]  ;;  %v1534_v12 = vld [vmem:[%s1811_s27 + $0xa] ss:$0 sm:$0xff] }
  0x74   : > { %v1535_v13 = vld [vmem:[%s1811_s27 + $0x9] ss:$0 sm:$0xff]  ;;  %v1536_v14 = vld [vmem:[%s1811_s27 + $0xe] ss:$0 sm:$0xff]  ;;  %v1537_v15 = vld [vmem:[%s1811_s27 + $0xd] ss:$0 sm:$0xff] }
  0x75   : > { %v1538_v16 = vld [vmem:[%s1811_s27 + $0xc] ss:$0 sm:$0xff]  ;;  %v1539_v17 = vld [vmem:[%s1816_s22 + $0x1] ss:$0 sm:$0xff]  ;;  %v1540_v18 = vld [vmem:[%s1816_s22] ss:$0 sm:$0xff] }
  0x76   : > { %v1541_v19 = vld [vmem:[%s1811_s27 + $0xf] ss:$0 sm:$0xff]  ;;  %v1542_v20 = vld [vmem:[%s1816_s22 + $0x4] ss:$0 sm:$0xff]  ;;  %v1543_v21 = vld [vmem:[%s1816_s22 + $0x3] ss:$0 sm:$0xff] }
  0x77   : > { %v1544_v22 = vld [vmem:[%s1816_s22 + $0x2] ss:$0 sm:$0xff]  ;;  %v1545_v23 = vld [vmem:[%s1816_s22 + $0x7] ss:$0 sm:$0xff]  ;;  %v1546_v24 = vld [vmem:[%s1816_s22 + $0x6] ss:$0 sm:$0xff] }
  0x78   : > { %v1547_v25 = vld [vmem:[%s1816_s22 + $0x5] ss:$0 sm:$0xff]  ;;  %v1548_v26 = vld [vmem:[%s1816_s22 + $0xa] ss:$0 sm:$0xff]  ;;  %v1549_v27 = vld [vmem:[%s1816_s22 + $0x9] ss:$0 sm:$0xff] }
  0x79   : > { %v1550_v28 = vld [vmem:[%s1816_s22 + $0x8] ss:$0 sm:$0xff]  ;;  %v1551_v29 = vld [vmem:[%s1816_s22 + $0xd] ss:$0 sm:$0xff]  ;;  %v1552_v30 = vld [vmem:[%s1816_s22 + $0xc] ss:$0 sm:$0xff] }
  0x7a   : > { %442 = vperm.xlu2 %1523, %v1527_v5   ;;  %v1553_v31 = vld [vmem:[%s1816_s22 + $0xb] ss:$0 sm:$0xff]  ;;  %v1554_v32 = vld [vmem:[%s1816_s22 + $0xf] ss:$0 sm:$0xff]  ;;  %v1555_v33 = vld [vmem:[%s1816_s22 + $0xe] ss:$0 sm:$0xff] }
  0x7b   : > { %434 = vperm.xlu1 %1522, %v1528_v6   ;;  %426 = vperm.xlu0 %1521, %v1529_v7   ;;  %v341_v50 = vld [vmem:[%s1793_s25] sm:$0xff]  ;;  %v342_v51 = vld [vmem:[%s1793_s25 + $0x8] sm:$0xff]  ;;  %v344_v52 = vld [vmem:[%s1793_s25 + $0x18] sm:$0xff]  ;;  %vm757_vm2 = vcmask 1040384   ;;  %vm758_vm3 = vcmask 1044484   ;;  %vm984_vm5 = vcmask 142353  }
  0x7c   : > { %v345_v3 = vld [vmem:[%s1793_s25 + $0x20] sm:$0xff]  ;;  %v346_v4 = vld [vmem:[%s1793_s25 + $0x28] sm:$0xff]  ;;  %vm1983_vm4 = vmor %vm757_vm2, %vm758_vm3  ;;  %vm988_vm6 = vcmask 139280   ;;  %vm986_vm7 = vcmask 142352  }
  0x82   : > { %454 = vperm.xlu2 %1523, %v1530_v8  }
  0x83   : > { %450 = vperm.xlu1 %1522, %v1531_v9   ;;  %446 = vperm.xlu0 %1521, %v1532_v10  }
  0x8a   : > { %466 = vperm.xlu2 %1523, %v1533_v11  }
  0x8b   : > { %462 = vperm.xlu1 %1522, %v1534_v12   ;;  %458 = vperm.xlu0 %1521, %v1535_v13  }
  0x92   : > { %478 = vperm.xlu2 %1523, %v1536_v14  }
  0x93   : > { %474 = vperm.xlu1 %1522, %v1537_v15   ;;  %470 = vperm.xlu0 %1521, %v1538_v16  }
  0x9a   : > { %570 = vperm.xlu2 %1523, %v1539_v17   ;;  %v347_v17 = vld [vmem:[%s1793_s25 + $0x30] sm:$0xff] }
  0x9b   : > { %566 = vperm.xlu1 %1522, %v1540_v18   ;;  %482 = vperm.xlu0 %1521, %v1541_v19  }
  0xa2   : > { %582 = vperm.xlu2 %1523, %v1542_v20  }
  0xa3   : > { %578 = vperm.xlu1 %1522, %v1543_v21   ;;  %574 = vperm.xlu0 %1521, %v1544_v22  }
  0xaa   : > { %594 = vperm.xlu2 %1523, %v1545_v23   ;;  %v348_v23 = vld [vmem:[%s1793_s25 + $0x38] sm:$0xff] }
  0xab   : > { %590 = vperm.xlu1 %1522, %v1546_v24   ;;  %586 = vperm.xlu0 %1521, %v1547_v25  }
  0xb2   : > { %606 = vperm.xlu2 %1523, %v1548_v26  }
  0xb3   : > { %602 = vperm.xlu1 %1522, %v1549_v27   ;;  %598 = vperm.xlu0 %1521, %v1550_v28  }
  0xba   : > { %618 = vperm.xlu2 %1523, %v1551_v29  }
  0xbb   : > { %614 = vperm.xlu1 %1522, %v1552_v30   ;;  %610 = vperm.xlu0 %1521, %v1553_v31  }
  0xc3   : > { %626 = vperm.xlu1 %1522, %v1554_v32   ;;  %622 = vperm.xlu0 %1521, %v1555_v33  }
  0xcc   : > { %v1950_v34 = vpop.permute.xlu2 %438 }
  0xd4   : > { %v1952_v35 = vpop.permute.xlu2 %442 }
  0xdc   : > { %v1954_v38 = vpop.permute.xlu2 %454 }
  0xe4   : > { %v1956_v41 = vpop.permute.xlu2 %466 }
  0xe5   : > { %v431_v36 = vpop.permute.xlu1 %430  ;;  %v423_v37 = vpop.permute.xlu0 %422 }
  0xe6   : > { %v485_v55 = vmul.f32 %v423_v37, %v341_v50  ;;  %v486_v56 = vmul.f32 %v423_v37, %v342_v51  ;;  %v489_v11 = vmul.f32 %v431_v36, %v345_v3  ;;  %v490_v12 = vmul.f32 %v431_v36, %v346_v4  ;;  %v352_v4 = vld [vmem:[%s1793_s25 + $0x58] sm:$0xff] }
  0xec   : > { %v1966_v46 = vpop.permute.xlu2 %478 }
  0xed   : > { %v435_v39 = vpop.permute.xlu1 %434  ;;  %v427_v40 = vpop.permute.xlu0 %426 }
  0xee   : > { %v487_v54 = vmul.f32 %v427_v40, %v343_v49  ;;  %v488_v57 = vmul.f32 %v427_v40, %v344_v52  ;;  %v491_v26 = vmul.f32 %v435_v39, %v347_v17  ;;  %v492_v29 = vmul.f32 %v435_v39, %v348_v23  ;;  %v349_v40 = vld [vmem:[%s1793_s25 + $0x40] sm:$0xff]  ;;  %v350_v52 = vld [vmem:[%s1793_s25 + $0x48] sm:$0xff] }
  0xef   : > { %v493_v39 = vmul.f32 %v1950_v34, %v349_v40 }
  0xf4   : > { %v571_v53 = vpop.permute.xlu2 %570 }
  0xf5   : > { %v1958_v42 = vpop.permute.xlu1 %450  ;;  %v1960_v43 = vpop.permute.xlu0 %446  ;;  %v631_v58 = vadd.f32 %v571_v53, %v487_v54  ;;  %v632_v60 = vadd.f32 %v571_v53, %v488_v57 }
  0xf7   : > { %v663_v0 = vmax.f32 %v631_v58, 0.0  ;;  %v664_v5 = vmax.f32 %v632_v60, 0.0 }
  0xf9   : > { %v695_v8 = vpack.c.bf16 %v663_v0, %v663_v0  ;;  %v696_v13 = vpack.c.bf16 %v664_v5, %v664_v5  ;;  %v351_v0 = vld [vmem:[%s1793_s25 + $0x50] sm:$0xff] }
  0xfb   : > { %v765_v21 = vrot.slane %v695_v8, 7  ;;  %v767_v27 = vrot.slane %v696_v13, 7  ;;  %v496_v8 = vmul.f32 %v1952_v35, %v352_v4 }
  0xfc   : > { %v583_v53 = vpop.permute.xlu2 %582 }
  0xfd   : > { %v1962_v44 = vpop.permute.xlu1 %462  ;;  %v1964_v45 = vpop.permute.xlu0 %458  ;;  %v766_v30 = vrot.slane %v765_v21, 4  ;;  %v769_v37 = vrot.slane %v767_v27, 4  ;;  %v637_v57 = vadd.f32 %v583_v53, %v493_v39 }
  0xff   : > { %v768_v51 = vsel %vm1983_vm4, %v766_v30, %v767_v27 }
 0x104   : > { %v595_v40 = vpop.permute.xlu2 %594 }
 0x105   : > { %v1968_v47 = vpop.permute.xlu1 %474  ;;  %v1970_v48 = vpop.permute.xlu0 %470 }
 0x10d   : > { %v567_v59 = vpop.permute.xlu1 %566  ;;  %v1976_v63 = vpop.permute.xlu0 %482 }
 0x10e   : > { %v629_v61 = vadd.f32 %v567_v59, %v485_v55  ;;  %v630_v62 = vadd.f32 %v567_v59, %v486_v56  ;;  %v494_v56 = vmul.f32 %v1950_v34, %v350_v52  ;;  %v495_v34 = vmul.f32 %v1952_v35, %v351_v0 }
 0x110   : > { %v661_v1 = vmax.f32 %v629_v61, 0.0  ;;  %v662_v2 = vmax.f32 %v630_v62, 0.0  ;;  %v638_v60 = vadd.f32 %v583_v53, %v494_v56 }
 0x112   : > { %v693_v6 = vpack.c.bf16 %v661_v1, %v661_v1  ;;  %v694_v7 = vpack.c.bf16 %v662_v2, %v662_v2  ;;  %v669_v1 = vmax.f32 %v637_v57, 0.0  ;;  %v357_v57 = vld [vmem:[%s1793_s25 + $0x80] sm:$0xff] }
 0x114   : > { %v760_v9 = vrot.slane %v693_v6, 7  ;;  %v762_v10 = vrot.slane %v694_v7, 7  ;;  %v670_v6 = vmax.f32 %v638_v60, 0.0 }
 0x115   : > { %v575_v15 = vpop.permute.xlu0 %574  ;;  %v579_v24 = vpop.permute.xlu1 %578 }
 0x116   : > { %v761_v14 = vrot.slane %v760_v9, 4  ;;  %840 = vrot.lane.b32.xlu2 %v760_v9, %s1648_s23  ;;  %v764_v16 = vrot.slane %v762_v10, 4  ;;  %v633_v18 = vadd.f32 %v575_v15, %v489_v11  ;;  %v634_v19 = vadd.f32 %v575_v15, %v490_v12  ;;  %v353_v15 = vld [vmem:[%s1793_s25 + $0x60] sm:$0xff] }
 0x117   : > { %v635_v31 = vadd.f32 %v579_v24, %v491_v26  ;;  %v636_v33 = vadd.f32 %v579_v24, %v492_v29  ;;  %v701_v9 = vpack.c.bf16 %v669_v1, %v669_v1  ;;  %v702_v12 = vpack.c.bf16 %v670_v6, %v670_v6 }
 0x118   : > { %844 = vrot.lane.b32.xlu1 %v764_v16, %s1648_s23  ;;  %v763_v22 = vsel %vm1983_vm4, %v761_v14, %v762_v10  ;;  %v665_v25 = vmax.f32 %v633_v18, 0.0  ;;  %v666_v28 = vmax.f32 %v634_v19, 0.0  ;;  %v354_v19 = vld [vmem:[%s1793_s25 + $0x68] sm:$0xff]  ;;  %v497_v35 = vmul.f32 %v1960_v43, %v353_v15 }
 0x119   : > { %842 = vrot.lane.b32.xlu0 %v763_v22, %s1648_s23  ;;  %v667_v49 = vmax.f32 %v635_v31, 0.0  ;;  %v668_v54 = vmax.f32 %v636_v33, 0.0  ;;  %v780_v16 = vrot.slane %v701_v9, 7  ;;  %v782_v22 = vrot.slane %v702_v12, 7  ;;  %v355_v31 = vld [vmem:[%s1793_s25 + $0x70] sm:$0xff]  ;;  %v360_v12 = vld [vmem:[%s1793_s25 + $0x98] sm:$0xff] }
 0x11a   : > { %v697_v32 = vpack.c.bf16 %v665_v25, %v665_v25  ;;  %v698_v36 = vpack.c.bf16 %v666_v28, %v666_v28  ;;  %v498_v24 = vmul.f32 %v1960_v43, %v354_v19  ;;  %v499_v43 = vmul.f32 %v1958_v42, %v355_v31 }
 0x11b   : > { %v699_v58 = vpack.c.bf16 %v667_v49, %v667_v49  ;;  %v700_v61 = vpack.c.bf16 %v668_v54, %v668_v54  ;;  %v781_v25 = vrot.slane %v780_v16, 4  ;;  %v784_v30 = vrot.slane %v782_v22, 4 }
 0x11c   : > { %v770_v50 = vrot.slane %v697_v32, 7  ;;  %v772_v55 = vrot.slane %v698_v36, 7  ;;  %v643_v52 = vadd.f32 %v595_v40, %v499_v43 }
 0x11d   : > { %v775_v2 = vrot.slane %v699_v58, 7  ;;  %v587_v5 = vpop.permute.xlu0 %586  ;;  %v777_v7 = vrot.slane %v700_v61, 7  ;;  %v783_v36 = vsel %vm1983_vm4, %v781_v25, %v782_v22  ;;  %v358_v61 = vld [vmem:[%s1793_s25 + $0x88] sm:$0xff] }
 0x11e   : > { %846 = vrot.lane.b32.xlu2 %v765_v21, %s1648_s23  ;;  %v771_v59 = vrot.slane %v770_v50, 4  ;;  %v774_v62 = vrot.slane %v772_v55, 4  ;;  %v639_v11 = vadd.f32 %v587_v5, %v495_v34  ;;  %v640_v13 = vadd.f32 %v587_v5, %v496_v8  ;;  %v591_v21 = vpop.permute.xlu1 %590  ;;  %v359_v8 = vld [vmem:[%s1793_s25 + $0x90] sm:$0xff] }
 0x11f   : > { %v776_v10 = vrot.slane %v775_v2, 4  ;;  %v779_v14 = vrot.slane %v777_v7, 4  ;;  %v641_v26 = vadd.f32 %v591_v21, %v497_v35  ;;  %v642_v28 = vadd.f32 %v591_v21, %v498_v24 }
 0x120   : > { %850 = vrot.lane.b32.xlu1 %v769_v37, %s1648_s23  ;;  %v773_v3 = vsel %vm1983_vm4, %v771_v59, %v772_v55  ;;  %v671_v17 = vmax.f32 %v639_v11, 0.0  ;;  %v672_v23 = vmax.f32 %v640_v13, 0.0  ;;  %v356_v37 = vld [vmem:[%s1793_s25 + $0x78] sm:$0xff]  ;;  %v675_v58 = vmax.f32 %v643_v52, 0.0 }
 0x121   : > { %848 = vrot.lane.b32.xlu0 %v768_v51, %s1648_s23  ;;  %v778_v18 = vsel %vm1983_vm4, %v776_v10, %v777_v7  ;;  %v673_v32 = vmax.f32 %v641_v26, 0.0  ;;  %v674_v49 = vmax.f32 %v642_v28, 0.0  ;;  %v500_v51 = vmul.f32 %v1958_v42, %v356_v37  ;;  %v607_v28 = vpop.permute.xlu2 %606 }
 0x122   : > { %v703_v27 = vpack.c.bf16 %v671_v17, %v671_v17  ;;  %v704_v29 = vpack.c.bf16 %v672_v23, %v672_v23  ;;  %v501_v42 = vmul.f32 %v1954_v38, %v357_v57  ;;  %v361_v23 = vld [vmem:[%s1793_s25 + $0xa0] sm:$0xff] }
 0x123   : > { %v705_v53 = vpack.c.bf16 %v673_v32, %v673_v32  ;;  %v644_v54 = vadd.f32 %v595_v40, %v500_v51  ;;  %v706_v55 = vpack.c.bf16 %v674_v49, %v674_v49  ;;  %v363_v49 = vld [vmem:[%s1793_s25 + $0xb0] sm:$0xff] }
 0x124   : > { %v785_v33 = vrot.slane %v703_v27, 7  ;;  %v362_v27 = vld [vmem:[%s1793_s25 + $0xa8] sm:$0xff] }
 0x125   : > { %v790_v59 = vrot.slane %v705_v53, 7  ;;  %v676_v0 = vmax.f32 %v644_v54, 0.0  ;;  %v792_v1 = vrot.slane %v706_v55, 7  ;;  %v506_v31 = vmul.f32 %v1962_v44, %v362_v27  ;;  %v364_v53 = vld [vmem:[%s1793_s25 + $0xb8] sm:$0xff]  ;;  %v369_v27 = vld [vmem:[%s1793_s25 + $0xe0] sm:$0xff] }
 0x126   : > { %852 = vrot.lane.b32.xlu2 %v770_v50, %s1648_s23  ;;  %v787_v50 = vrot.slane %v704_v29, 7  ;;  %v786_v39 = vrot.slane %v785_v33, 4  ;;  %v603_v13 = vpop.permute.xlu1 %602 }
 0x127   : > { %v791_v4 = vrot.slane %v790_v59, 4  ;;  %v708_v34 = vpack.c.bf16 %v676_v0, %v676_v0  ;;  %v794_v7 = vrot.slane %v792_v1, 4  ;;  %v650_v37 = vadd.f32 %v607_v28, %v506_v31 }
 0x128   : > { %856 = vrot.lane.b32.xlu1 %v774_v62, %s1648_s23  ;;  %v789_v56 = vrot.slane %v787_v50, 4  ;;  %v788_v60 = vsel %vm1983_vm4, %v786_v39, %v787_v50  ;;  %v599_v62 = vpop.permute.xlu0 %598 }
 0x129   : > { %854 = vrot.lane.b32.xlu0 %v773_v3, %s1648_s23  ;;  %v707_v3 = vpack.c.bf16 %v675_v58, %v675_v58  ;;  %v645_v5 = vadd.f32 %v599_v62, %v501_v42  ;;  %v793_v11 = vsel %vm1983_vm4, %v791_v4, %v792_v1  ;;  %v682_v54 = vmax.f32 %v650_v37, 0.0  ;;  %v365_v42 = vld [vmem:[%s1793_s25 + $0xc0] sm:$0xff] }
 0x12b   : > { %v795_v9 = vrot.slane %v707_v3, 7  ;;  %v677_v10 = vmax.f32 %v645_v5, 0.0  ;;  %v366_v3 = vld [vmem:[%s1793_s25 + $0xc8] sm:$0xff] }
 0x12d   : > { %v796_v17 = vrot.slane %v795_v9, 4  ;;  %v709_v19 = vpack.c.bf16 %v677_v10, %v677_v10 }
 0x12e   : > { %858 = vrot.lane.b32.xlu2 %v775_v2, %s1648_s23  ;;  %v502_v2 = vmul.f32 %v1954_v38, %v358_v61  ;;  %v503_v38 = vmul.f32 %v1964_v45, %v359_v8  ;;  %v615_v4 = vpop.permute.xlu1 %614 }
 0x12f   : > { %v800_v25 = vrot.slane %v709_v19, 7 }
 0x130   : > { %862 = vrot.lane.b32.xlu1 %v779_v14, %s1648_s23  ;;  %v646_v6 = vadd.f32 %v599_v62, %v502_v2  ;;  %v797_v14 = vrot.slane %v708_v34, 7  ;;  %v611_v39 = vpop.permute.xlu0 %610 }
 0x131   : > { %860 = vrot.lane.b32.xlu0 %v778_v18, %s1648_s23  ;;  %v647_v18 = vadd.f32 %v603_v13, %v503_v38  ;;  %v619_v38 = vpop.permute.xlu2 %618 }
 0x132   : > { %v678_v15 = vmax.f32 %v646_v6, 0.0  ;;  %v799_v22 = vrot.slane %v797_v14, 4  ;;  %v798_v26 = vsel %vm1983_vm4, %v796_v17, %v797_v14  ;;  %v510_v6 = vmul.f32 %v1970_v48, %v366_v3  ;;  %v368_v17 = vld [vmem:[%s1793_s25 + $0xd8] sm:$0xff] }
 0x133   : > { %v679_v24 = vmax.f32 %v647_v18, 0.0 }
 0x134   : > { %v710_v35 = vpack.c.bf16 %v678_v15, %v678_v15  ;;  %v654_v10 = vadd.f32 %v615_v4, %v510_v6 }
 0x136   : > { %864 = vrot.lane.b32.xlu2 %v780_v16, %s1648_s23  ;;  %v504_v16 = vmul.f32 %v1964_v45, %v360_v12  ;;  %v505_v45 = vmul.f32 %v1962_v44, %v361_v23  ;;  %v507_v44 = vmul.f32 %v1956_v41, %v363_v49  ;;  %v686_v18 = vmax.f32 %v654_v10, 0.0 }
 0x138   : > { %868 = vrot.lane.b32.xlu1 %v784_v30, %s1648_s23  ;;  %v648_v21 = vadd.f32 %v603_v13, %v504_v16  ;;  %v802_v30 = vrot.slane %v710_v35, 7  ;;  %v649_v32 = vadd.f32 %v607_v28, %v505_v45  ;;  %v367_v13 = vld [vmem:[%s1793_s25 + $0xd0] sm:$0xff]  ;;  %v623_v31 = vpop.permute.xlu0 %622 }
 0x139   : > { %866 = vrot.lane.b32.xlu0 %v783_v36, %s1648_s23  ;;  %v801_v36 = vrot.slane %v800_v25, 4 }
 0x13a   : > { %v680_v29 = vmax.f32 %v648_v21, 0.0  ;;  %v804_v43 = vrot.slane %v802_v30, 4  ;;  %v681_v50 = vmax.f32 %v649_v32, 0.0  ;;  %v512_v21 = vmul.f32 %v1968_v47, %v368_v17 }
 0x13b   : > { %v803_v52 = vsel %vm1983_vm4, %v801_v36, %v802_v30  ;;  %v513_v32 = vmul.f32 %v1966_v46, %v369_v27 }
 0x13c   : > { %v712_v40 = vpack.c.bf16 %v680_v29, %v680_v29  ;;  %v713_v57 = vpack.c.bf16 %v681_v50, %v681_v50 }
 0x13d   : > { %v657_v49 = vadd.f32 %v623_v31, %v513_v32 }
 0x13e   : > { %870 = vrot.lane.b32.xlu2 %v785_v33, %s1648_s23  ;;  %v711_v33 = vpack.c.bf16 %v679_v24, %v679_v24  ;;  %v807_v55 = vrot.slane %v712_v40, 7  ;;  %v810_v0 = vrot.slane %v713_v57, 7  ;;  %v656_v24 = vadd.f32 %v619_v38, %v512_v21 }
 0x140   : > { %874 = vrot.lane.b32.xlu1 %v789_v56, %s1648_s23  ;;  %v805_v51 = vrot.slane %v711_v33, 7  ;;  %v508_v56 = vmul.f32 %v1956_v41, %v364_v53  ;;  %v809_v62 = vrot.slane %v807_v55, 4  ;;  %v509_v41 = vmul.f32 %v1970_v48, %v365_v42  ;;  %v371_v53 = vld [vmem:[%s1793_s25 + $0xf0] sm:$0xff] }
 0x141   : > { %872 = vrot.lane.b32.xlu0 %v788_v60, %s1648_s23  ;;  %v714_v60 = vpack.c.bf16 %v682_v54, %v682_v54  ;;  %v511_v48 = vmul.f32 %v1968_v47, %v367_v13  ;;  %v370_v47 = vld [vmem:[%s1793_s25 + $0xe8] sm:$0xff]  ;;  %v688_v33 = vmax.f32 %v656_v24, 0.0  ;;  %v515_v57 = vmul.f32 %v1976_v63, %v371_v53 }
 0x142   : > { %v806_v58 = vrot.slane %v805_v51, 4  ;;  %v652_v61 = vadd.f32 %v611_v39, %v508_v56  ;;  %v653_v8 = vadd.f32 %v615_v4, %v509_v41  ;;  %v514_v37 = vmul.f32 %v1966_v46, %v370_v47  ;;  %v372_v56 = vld [vmem:[%s1793_s25 + $0xf8] sm:$0xff]  ;;  %v627_v46 = vpop.permute.xlu1 %626 }
 0x143   : > { %v812_v5 = vrot.slane %v714_v60, 7  ;;  %v655_v35 = vadd.f32 %v619_v38, %v511_v48  ;;  %v720_v50 = vpack.c.bf16 %v688_v33, %v688_v33  ;;  %v516_v60 = vmul.f32 %v1976_v63, %v372_v56 }
 0x144   : > { %v808_v2 = vsel %vm1983_vm4, %v806_v58, %v807_v55  ;;  %v684_v34 = vmax.f32 %v652_v61, 0.0  ;;  %v685_v14 = vmax.f32 %v653_v8, 0.0 }
 0x145   : > { %v814_v12 = vrot.slane %v812_v5, 4  ;;  %v687_v28 = vmax.f32 %v655_v35, 0.0  ;;  %v827_v58 = vrot.slane %v720_v50, 7 }
 0x146   : > { %876 = vrot.lane.b32.xlu2 %v790_v59, %s1648_s23  ;;  %v651_v59 = vadd.f32 %v611_v39, %v507_v44  ;;  %v689_v44 = vmax.f32 %v657_v49, 0.0 }
 0x147   : > { %v719_v40 = vpack.c.bf16 %v687_v28, %v687_v28 }
 0x148   : > { %880 = vrot.lane.b32.xlu1 %v794_v7, %s1648_s23  ;;  %v683_v1 = vmax.f32 %v651_v59, 0.0  ;;  %v811_v7 = vrot.slane %v810_v0, 4  ;;  %v721_v42 = vpack.c.bf16 %v689_v44, %v689_v44 }
 0x149   : > { %878 = vrot.lane.b32.xlu0 %v793_v11, %s1648_s23  ;;  %v716_v11 = vpack.c.bf16 %v684_v34, %v684_v34  ;;  %v825_v39 = vrot.slane %v719_v40, 7 }
 0x14a   : > { %v813_v16 = vsel %vm1983_vm4, %v811_v7, %v812_v5  ;;  %v830_v4 = vrot.slane %v721_v42, 7 }
 0x14b   : > { %v817_v19 = vrot.slane %v716_v11, 7  ;;  %v826_v61 = vrot.slane %v825_v39, 4 }
 0x14c   : > { %v831_v7 = vrot.slane %v830_v4, 4 }
 0x14d   : > { %v828_v5 = vsel %vm1983_vm4, %v826_v61, %v827_v58 }
 0x14e   : > { %882 = vrot.lane.b32.xlu2 %v795_v9, %s1648_s23  ;;  %v715_v9 = vpack.c.bf16 %v683_v1, %v683_v1 }
 0x150   : > { %886 = vrot.lane.b32.xlu1 %v799_v22, %s1648_s23  ;;  %v815_v15 = vrot.slane %v715_v9, 7  ;;  %v717_v22 = vpack.c.bf16 %v685_v14, %v685_v14 }
 0x151   : > { %884 = vrot.lane.b32.xlu0 %v798_v26, %s1648_s23  ;;  %v819_v26 = vrot.slane %v817_v19, 4 }
 0x152   : > { %v816_v23 = vrot.slane %v815_v15, 4  ;;  %v820_v45 = vrot.slane %v717_v22, 7 }
 0x154   : > { %v818_v30 = vsel %vm1983_vm4, %v816_v23, %v817_v19 }
 0x156   : > { %888 = vrot.lane.b32.xlu2 %v800_v25, %s1648_s23  ;;  %v718_v25 = vpack.c.bf16 %v686_v18, %v686_v18 }
 0x158   : > { %892 = vrot.lane.b32.xlu1 %v804_v43, %s1648_s23  ;;  %v822_v36 = vrot.slane %v718_v25, 7  ;;  %v821_v43 = vrot.slane %v820_v45, 4 }
 0x159   : > { %890 = vrot.lane.b32.xlu0 %v803_v52, %s1648_s23 }
 0x15a   : > { %v824_v52 = vrot.slane %v822_v36, 4  ;;  %v823_v55 = vsel %vm1983_vm4, %v821_v43, %v822_v36 }
 0x15e   : > { %894 = vrot.lane.b32.xlu2 %v805_v51, %s1648_s23  ;;  %v658_v51 = vadd.f32 %v623_v31, %v514_v37 }
 0x160   : > { %898 = vrot.lane.b32.xlu1 %v809_v62, %s1648_s23  ;;  %v690_v59 = vmax.f32 %v658_v51, 0.0  ;;  %v659_v62 = vadd.f32 %v627_v46, %v515_v57 }
 0x161   : > { %896 = vrot.lane.b32.xlu0 %v808_v2, %s1648_s23  ;;  %v829_v2 = vrot.slane %v827_v58, 4 }
 0x162   : > { %v722_v1 = vpack.c.bf16 %v690_v59, %v690_v59  ;;  %v691_v3 = vmax.f32 %v659_v62, 0.0 }
 0x164   : > { %v832_v34 = vrot.slane %v722_v1, 7  ;;  %v723_v6 = vpack.c.bf16 %v691_v3, %v691_v3 }
 0x166   : > { %900 = vrot.lane.b32.xlu2 %v810_v0, %s1648_s23  ;;  %v660_v0 = vadd.f32 %v627_v46, %v516_v60  ;;  %v834_v9 = vrot.slane %v832_v34, 4  ;;  %v835_v10 = vrot.slane %v723_v6, 7 }
 0x168   : > { %904 = vrot.lane.b32.xlu1 %v814_v12, %s1648_s23  ;;  %v692_v63 = vmax.f32 %v660_v0, 0.0  ;;  %v833_v12 = vsel %vm1983_vm4, %v831_v7, %v832_v34 }
 0x169   : > { %902 = vrot.lane.b32.xlu0 %v813_v16, %s1648_s23 }
 0x16a   : > { %v724_v8 = vpack.c.bf16 %v692_v63, %v692_v63 }
 0x16c   : > { %v837_v13 = vrot.slane %v724_v8, 7 }
 0x16e   : > { %906 = vrot.lane.b32.xlu2 %v815_v15, %s1648_s23  ;;  %v836_v15 = vrot.slane %v835_v10, 4  ;;  %v839_v16 = vrot.slane %v837_v13, 4 }
 0x170   : > { %910 = vrot.lane.b32.xlu1 %v819_v26, %s1648_s23  ;;  %v841_v29 = vpop.permute.xlu2 %840  ;;  %v838_v48 = vsel %vm1983_vm4, %v836_v15, %v837_v13 }
 0x171   : > { %985 = vst.msk [vmem:[%s1804_s26] sm:$0xe] %vm984_vm5, %v841_v29  ;;  %908 = vrot.lane.b32.xlu0 %v818_v30, %s1648_s23 }
 0x176   : > { %912 = vrot.lane.b32.xlu2 %v820_v45, %s1648_s23 }
 0x178   : > { %916 = vrot.lane.b32.xlu1 %v824_v52, %s1648_s23  ;;  %v847_v54 = vpop.permute.xlu2 %846 }
 0x179   : > { %990 = vst.msk [vmem:[%s1804_s26 + $0xc] sm:$0xe] %vm984_vm5, %v847_v54  ;;  %914 = vrot.lane.b32.xlu0 %v823_v55, %s1648_s23 }
 0x17e   : > { %918 = vrot.lane.b32.xlu2 %v825_v39, %s1648_s23 }
 0x180   : > { %922 = vrot.lane.b32.xlu1 %v829_v2, %s1648_s23  ;;  %v853_v41 = vpop.permute.xlu2 %852 }
 0x181   : > { %993 = vst.msk [vmem:[%s1804_s26 + $0x18] sm:$0xe] %vm984_vm5, %v853_v41  ;;  %920 = vrot.lane.b32.xlu0 %v828_v5, %s1648_s23 }
 0x186   : > { %924 = vrot.lane.b32.xlu2 %v830_v4, %s1648_s23 }
 0x188   : > { %928 = vrot.lane.b32.xlu1 %v834_v9, %s1648_s23  ;;  %v859_v11 = vpop.permute.xlu2 %858 }
 0x189   : > { %996 = vst.msk [vmem:[%s1804_s26 + $0x24] sm:$0xe] %vm984_vm5, %v859_v11  ;;  %926 = vrot.lane.b32.xlu0 %v833_v12, %s1648_s23 }
 0x18a   : > { %v845_v38 = vpop.permute.xlu1 %844 }
 0x18b   : > { %989 = vst.msk [vmem:[%s1804_s26 + $0x8] sm:$0x1] %vm988_vm6, %v845_v38  ;;  %v843_v14 = vpop.permute.xlu0 %842 }
 0x18c   : > { %987 = vst.msk [vmem:[%s1804_s26 + $0x4] sm:$0xf] %vm986_vm7, %v843_v14 }
 0x18e   : > { %930 = vrot.lane.b32.xlu2 %v835_v10, %s1648_s23 }
 0x190   : > { %934 = vrot.lane.b32.xlu1 %v839_v16, %s1648_s23  ;;  %v865_v17 = vpop.permute.xlu2 %864 }
 0x191   : > { %999 = vst.msk [vmem:[%s1804_s26 + $0x30] sm:$0xe] %vm984_vm5, %v865_v17  ;;  %932 = vrot.lane.b32.xlu0 %v838_v48, %s1648_s23 }
 0x192   : > { %v851_v18 = vpop.permute.xlu1 %850 }
 0x193   : > { %992 = vst.msk [vmem:[%s1804_s26 + $0x14] sm:$0x1] %vm988_vm6, %v851_v18  ;;  %v849_v19 = vpop.permute.xlu0 %848 }
 0x194   : > { %991 = vst.msk [vmem:[%s1804_s26 + $0x10] sm:$0xf] %vm986_vm7, %v849_v19 }
 0x198   : > { %v871_v21 = vpop.permute.xlu2 %870 }
 0x199   : > { %1002 = vst.msk [vmem:[%s1804_s26 + $0x3c] sm:$0xe] %vm984_vm5, %v871_v21 }
 0x19a   : > { %v857_v20 = vpop.permute.xlu1 %856 }
 0x19b   : > { %995 = vst.msk [vmem:[%s1804_s26 + $0x20] sm:$0x1] %vm988_vm6, %v857_v20  ;;  %v855_v35 = vpop.permute.xlu0 %854 }
 0x19c   : > { %994 = vst.msk [vmem:[%s1804_s26 + $0x1c] sm:$0xf] %vm986_vm7, %v855_v35 }
 0x1a0   : > { %v877_v22 = vpop.permute.xlu2 %876 }
 0x1a1   : > { %1005 = vst.msk [vmem:[%s1804_s26 + $0x48] sm:$0xe] %vm984_vm5, %v877_v22 }
 0x1a2   : > { %v863_v23 = vpop.permute.xlu1 %862 }
 0x1a3   : > { %998 = vst.msk [vmem:[%s1804_s26 + $0x2c] sm:$0x1] %vm988_vm6, %v863_v23  ;;  %v861_v24 = vpop.permute.xlu0 %860 }
 0x1a4   : > { %997 = vst.msk [vmem:[%s1804_s26 + $0x28] sm:$0xf] %vm986_vm7, %v861_v24 }
 0x1a8   : > { %v883_v25 = vpop.permute.xlu2 %882 }
 0x1a9   : > { %1008 = vst.msk [vmem:[%s1804_s26 + $0x54] sm:$0xe] %vm984_vm5, %v883_v25 }
 0x1aa   : > { %v869_v26 = vpop.permute.xlu1 %868 }
 0x1ab   : > { %1001 = vst.msk [vmem:[%s1804_s26 + $0x38] sm:$0x1] %vm988_vm6, %v869_v26  ;;  %v867_v27 = vpop.permute.xlu0 %866 }
 0x1ac   : > { %1000 = vst.msk [vmem:[%s1804_s26 + $0x34] sm:$0xf] %vm986_vm7, %v867_v27 }
 0x1b0   : > { %v889_v28 = vpop.permute.xlu2 %888 }
 0x1b1   : > { %1011 = vst.msk [vmem:[%s1804_s26 + $0x60] sm:$0xe] %vm984_vm5, %v889_v28 }
 0x1b2   : > { %v875_v45 = vpop.permute.xlu1 %874 }
 0x1b3   : > { %1004 = vst.msk [vmem:[%s1804_s26 + $0x44] sm:$0x1] %vm988_vm6, %v875_v45  ;;  %v873_v29 = vpop.permute.xlu0 %872 }
 0x1b4   : > { %1003 = vst.msk [vmem:[%s1804_s26 + $0x40] sm:$0xf] %vm986_vm7, %v873_v29 }
 0x1b8   : > { %v895_v30 = vpop.permute.xlu2 %894 }
 0x1b9   : > { %1014 = vst.msk [vmem:[%s1804_s26 + $0x6c] sm:$0xe] %vm984_vm5, %v895_v30 }
 0x1ba   : > { %v881_v47 = vpop.permute.xlu1 %880 }
 0x1bb   : > { %1007 = vst.msk [vmem:[%s1804_s26 + $0x50] sm:$0x1] %vm988_vm6, %v881_v47  ;;  %v879_v31 = vpop.permute.xlu0 %878 }
 0x1bc   : > { %1006 = vst.msk [vmem:[%s1804_s26 + $0x4c] sm:$0xf] %vm986_vm7, %v879_v31 }
 0x1c0   : > { %v901_v32 = vpop.permute.xlu2 %900 }
 0x1c1   : > { %1017 = vst.msk [vmem:[%s1804_s26 + $0x78] sm:$0xe] %vm984_vm5, %v901_v32 }
 0x1c2   : > { %v887_v33 = vpop.permute.xlu1 %886 }
 0x1c3   : > { %1010 = vst.msk [vmem:[%s1804_s26 + $0x5c] sm:$0x1] %vm988_vm6, %v887_v33  ;;  %v885_v36 = vpop.permute.xlu0 %884 }
 0x1c4   : > { %1009 = vst.msk [vmem:[%s1804_s26 + $0x58] sm:$0xf] %vm986_vm7, %v885_v36 }
 0x1c8   : > { %v907_v37 = vpop.permute.xlu2 %906 }
 0x1c9   : > { %1020 = vst.msk [vmem:[%s1804_s26 + $0x84] sm:$0xe] %vm984_vm5, %v907_v37 }
 0x1ca   : > { %v893_v40 = vpop.permute.xlu1 %892 }
 0x1cb   : > { %1013 = vst.msk [vmem:[%s1804_s26 + $0x68] sm:$0x1] %vm988_vm6, %v893_v40  ;;  %v891_v43 = vpop.permute.xlu0 %890 }
 0x1cc   : > { %1012 = vst.msk [vmem:[%s1804_s26 + $0x64] sm:$0xf] %vm986_vm7, %v891_v43 }
 0x1d0   : > { %v913_v49 = vpop.permute.xlu2 %912 }
 0x1d1   : > { %1023 = vst.msk [vmem:[%s1804_s26 + $0x90] sm:$0xe] %vm984_vm5, %v913_v49 }
 0x1d2   : > { %v899_v50 = vpop.permute.xlu1 %898 }
 0x1d3   : > { %1016 = vst.msk [vmem:[%s1804_s26 + $0x74] sm:$0x1] %vm988_vm6, %v899_v50  ;;  %v897_v51 = vpop.permute.xlu0 %896 }
 0x1d4   : > { %1015 = vst.msk [vmem:[%s1804_s26 + $0x70] sm:$0xf] %vm986_vm7, %v897_v51 }
 0x1d8   : > { %v919_v52 = vpop.permute.xlu2 %918 }
 0x1d9   : > { %1026 = vst.msk [vmem:[%s1804_s26 + $0x9c] sm:$0xe] %vm984_vm5, %v919_v52 }
 0x1da   : > { %v905_v53 = vpop.permute.xlu1 %904 }
 0x1db   : > { %1019 = vst.msk [vmem:[%s1804_s26 + $0x80] sm:$0x1] %vm988_vm6, %v905_v53  ;;  %v903_v39 = vpop.permute.xlu0 %902 }
 0x1dc   : > { %1018 = vst.msk [vmem:[%s1804_s26 + $0x7c] sm:$0xf] %vm986_vm7, %v903_v39 }
 0x1e0   : > { %v925_v44 = vpop.permute.xlu2 %924 }
 0x1e1   : > { %1029 = vst.msk [vmem:[%s1804_s26 + $0xa8] sm:$0xe] %vm984_vm5, %v925_v44 }
 0x1e2   : > { %v911_v54 = vpop.permute.xlu1 %910 }
 0x1e3   : > { %1022 = vst.msk [vmem:[%s1804_s26 + $0x8c] sm:$0x1] %vm988_vm6, %v911_v54  ;;  %v909_v55 = vpop.permute.xlu0 %908 }
 0x1e4   : > { %1021 = vst.msk [vmem:[%s1804_s26 + $0x88] sm:$0xf] %vm986_vm7, %v909_v55 }
 0x1e8   : > { %v931_v56 = vpop.permute.xlu2 %930 }
 0x1e9   : > { %1032 = vst.msk [vmem:[%s1804_s26 + $0xb4] sm:$0xe] %vm984_vm5, %v931_v56 }
 0x1ea   : > { %v917_v46 = vpop.permute.xlu1 %916 }
 0x1eb   : > { %1025 = vst.msk [vmem:[%s1804_s26 + $0x98] sm:$0x1] %vm988_vm6, %v917_v46  ;;  %v915_v57 = vpop.permute.xlu0 %914 }
 0x1ec   : > { %1024 = vst.msk [vmem:[%s1804_s26 + $0x94] sm:$0xf] %vm986_vm7, %v915_v57 }
 0x1f2   : > { %v923_v58 = vpop.permute.xlu1 %922 }
 0x1f3   : > { %1028 = vst.msk [vmem:[%s1804_s26 + $0xa4] sm:$0x1] %vm988_vm6, %v923_v58  ;;  %v921_v59 = vpop.permute.xlu0 %920 }
 0x1f4   : > { %1027 = vst.msk [vmem:[%s1804_s26 + $0xa0] sm:$0xf] %vm986_vm7, %v921_v59 }
 0x1fa   : > { %v929_v60 = vpop.permute.xlu1 %928 }
 0x1fb   : > { %1031 = vst.msk [vmem:[%s1804_s26 + $0xb0] sm:$0x1] %vm988_vm6, %v929_v60  ;;  %v927_v61 = vpop.permute.xlu0 %926 }
 0x1fc   : > { %1030 = vst.msk [vmem:[%s1804_s26 + $0xac] sm:$0xf] %vm986_vm7, %v927_v61 }
 0x202   : > { %v935_v62 = vpop.permute.xlu1 %934 }
 0x203   : > { %1034 = vst.msk [vmem:[%s1804_s26 + $0xbc] sm:$0x1] %vm988_vm6, %v935_v62  ;;  %v933_v42 = vpop.permute.xlu0 %932 }
 0x204   : > { %1033 = vst.msk [vmem:[%s1804_s26 + $0xb8] sm:$0xf] %vm986_vm7, %v933_v42 }
 0x205 PF: > { %1041 = sbr.rel (!%p1763_p2) target bundleno = 556 (0x22c), region = 44  ;;  %v1063_v0 = vld [vmem:[%s1804_s26] sm:$0xff] (%p1763_p2)   ;;  %v1067_v1 = vld [vmem:[%s1804_s26 + $0x8] sm:$0xf] (%p1763_p2)  ;;  %v1069_v2 = vld [vmem:[%s1804_s26 + $0xc] sm:$0xff] (%p1763_p2)  }
 0x206   : > { %s1421_s4 = smul.u32 (%p1763_p2), 3, %s1622_s17  ;;  %v1073_v3 = vld [vmem:[%s1804_s26 + $0x14] sm:$0xf] (%p1763_p2)  ;;  %v1075_v4 = vld [vmem:[%s1804_s26 + $0x18] sm:$0xff] (%p1763_p2)   ;;  %v1079_v41 = vld [vmem:[%s1804_s26 + $0x20] sm:$0xf] (%p1763_p2) }
 0x207   : > { %s1422_s24 = smul.u32 (%p1763_p2), 960, %s1626_s18  ;;  %v1081_v5 = vld [vmem:[%s1804_s26 + $0x24] sm:$0xff] (%p1763_p2)   ;;  %v1085_v63 = vld [vmem:[%s1804_s26 + $0x2c] sm:$0xf] (%p1763_p2)  ;;  %v1087_v34 = vld [vmem:[%s1804_s26 + $0x30] sm:$0xff] (%p1763_p2)  }
 0x208   : > { %v1091_v6 = vld [vmem:[%s1804_s26 + $0x38] sm:$0xf] (%p1763_p2)  ;;  %v1093_v7 = vld [vmem:[%s1804_s26 + $0x3c] sm:$0xff] (%p1763_p2)   ;;  %v1097_v8 = vld [vmem:[%s1804_s26 + $0x44] sm:$0xf] (%p1763_p2) }
 0x209   : > { %s1044_s7 = sadd.s32 (%p1763_p2), %s1422_s24, %s1421_s4  ;;  %v1099_v9 = vld [vmem:[%s1804_s26 + $0x48] sm:$0xff] (%p1763_p2)   ;;  %v1103_v10 = vld [vmem:[%s1804_s26 + $0x50] sm:$0xf] (%p1763_p2)  ;;  %v1105_v11 = vld [vmem:[%s1804_s26 + $0x54] sm:$0xff] (%p1763_p2)  }
 0x20a   : > { %s1411_s8 = sshll.u32 %s1044_s7, 2  ;;  %v1109_v12 = vld [vmem:[%s1804_s26 + $0x5c] sm:$0xf]  ;;  %v1111_v13 = vld [vmem:[%s1804_s26 + $0x60] sm:$0xff]   ;;  %v1115_v38 = vld [vmem:[%s1804_s26 + $0x68] sm:$0xf] }
 0x20b   : > { %s2220_s20 = scalar_lea.vmem %s2317_s3, %s1411_s8  ;;  %v1117_v14 = vld [vmem:[%s1804_s26 + $0x6c] sm:$0xff]   ;;  %v1121_v15 = vld [vmem:[%s1804_s26 + $0x74] sm:$0xf]  ;;  %v1123_v16 = vld [vmem:[%s1804_s26 + $0x78] sm:$0xff]  }
 0x20c   : > { %1064 = vst [vmem:[%s2220_s20] sm:$0xff] %v1063_v0   ;;  %v1127_v17 = vld [vmem:[%s1804_s26 + $0x80] sm:$0xf]  ;;  %v1129_v48 = vld [vmem:[%s1804_s26 + $0x84] sm:$0xff]   ;;  %v1133_v18 = vld [vmem:[%s1804_s26 + $0x8c] sm:$0xf] }
 0x20d   : > { %1068 = vst [vmem:[%s2220_s20 + $0x8] sm:$0xf] %v1067_v1  ;;  %v1135_v19 = vld [vmem:[%s1804_s26 + $0x90] sm:$0xff]   ;;  %v1139_v21 = vld [vmem:[%s1804_s26 + $0x98] sm:$0xf]  ;;  %v1141_v20 = vld [vmem:[%s1804_s26 + $0x9c] sm:$0xff]  }
 0x20e   : > { %1070 = vst [vmem:[%s2220_s20 + $0xf0] sm:$0xff] %v1069_v2   ;;  %v1145_v35 = vld [vmem:[%s1804_s26 + $0xa4] sm:$0xf]  ;;  %v1147_v22 = vld [vmem:[%s1804_s26 + $0xa8] sm:$0xff]   ;;  %v1151_v23 = vld [vmem:[%s1804_s26 + $0xb0] sm:$0xf] }
 0x20f   : > { %1074 = vst [vmem:[%s2220_s20 + $0xf8] sm:$0xf] %v1073_v3  ;;  %v1153_v24 = vld [vmem:[%s1804_s26 + $0xb4] sm:$0xff]   ;;  %v1157_v25 = vld [vmem:[%s1804_s26 + $0xbc] sm:$0xf] }
 0x210   : > { %1076 = vst [vmem:[%s2220_s20 + $0x1e0] sm:$0xff] %v1075_v4  }
 0x211   : > { %1080 = vst [vmem:[%s2220_s20 + $0x1e8] sm:$0xf] %v1079_v41 }
 0x212   : > { %1082 = vst [vmem:[%s2220_s20 + $0x2d0] sm:$0xff] %v1081_v5  }
 0x213   : > { %1086 = vst [vmem:[%s2220_s20 + $0x2d8] sm:$0xf] %v1085_v63 }
 0x214   : > { %1088 = vst [vmem:[%s2220_s20 + $0x3c0] sm:$0xff] %v1087_v34  }
 0x215   : > { %1092 = vst [vmem:[%s2220_s20 + $0x3c8] sm:$0xf] %v1091_v6 }
 0x216   : > { %1094 = vst [vmem:[%s2220_s20 + $0x4b0] sm:$0xff] %v1093_v7  }
 0x217   : > { %1098 = vst [vmem:[%s2220_s20 + $0x4b8] sm:$0xf] %v1097_v8 }
 0x218   : > { %1100 = vst [vmem:[%s2220_s20 + $0x5a0] sm:$0xff] %v1099_v9  }
 0x219   : > { %1104 = vst [vmem:[%s2220_s20 + $0x5a8] sm:$0xf] %v1103_v10 }
 0x21a   : > { %1106 = vst [vmem:[%s2220_s20 + $0x690] sm:$0xff] %v1105_v11  }
 0x21b   : > { %1110 = vst [vmem:[%s2220_s20 + $0x698] sm:$0xf] %v1109_v12 }
 0x21c   : > { %1112 = vst [vmem:[%s2220_s20 + $0x780] sm:$0xff] %v1111_v13  }
 0x21d   : > { %1116 = vst [vmem:[%s2220_s20 + $0x788] sm:$0xf] %v1115_v38 }
 0x21e   : > { %1118 = vst [vmem:[%s2220_s20 + $0x870] sm:$0xff] %v1117_v14  }
 0x21f   : > { %1122 = vst [vmem:[%s2220_s20 + $0x878] sm:$0xf] %v1121_v15 }
 0x220   : > { %1124 = vst [vmem:[%s2220_s20 + $0x960] sm:$0xff] %v1123_v16  }
 0x221   : > { %1128 = vst [vmem:[%s2220_s20 + $0x968] sm:$0xf] %v1127_v17 }
 0x222   : > { %1130 = vst [vmem:[%s2220_s20 + $0xa50] sm:$0xff] %v1129_v48  }
 0x223   : > { %1134 = vst [vmem:[%s2220_s20 + $0xa58] sm:$0xf] %v1133_v18 }
 0x224   : > { %1136 = vst [vmem:[%s2220_s20 + $0xb40] sm:$0xff] %v1135_v19  }
 0x225   : > { %1140 = vst [vmem:[%s2220_s20 + $0xb48] sm:$0xf] %v1139_v21 }
 0x226   : > { %1142 = vst [vmem:[%s2220_s20 + $0xc30] sm:$0xff] %v1141_v20  }
 0x227   : > { %1146 = vst [vmem:[%s2220_s20 + $0xc38] sm:$0xf] %v1145_v35 }
 0x228   : > { %1148 = vst [vmem:[%s2220_s20 + $0xd20] sm:$0xff] %v1147_v22  }
 0x229   : > { %1152 = vst [vmem:[%s2220_s20 + $0xd28] sm:$0xf] %v1151_v23 }
 0x22a   : > { %1154 = vst [vmem:[%s2220_s20 + $0xe10] sm:$0xff] %v1153_v24  }
 0x22b   : > { %1158 = vst [vmem:[%s2220_s20 + $0xe18] sm:$0xf] %v1157_v25 }
 0x22c PF: > { %s16_s21 = sadd.s32 1, %s1638_s21   ;;  %s2332_s17 = sld [smem:[#allocation9_spill]] }
 0x22d   : > { %p13_p11 = scmp.ge.s32.totalorder %s16_s21, 42   ;;  %s2333_s18 = sld [smem:[#allocation10_spill]] }
 0x22e   : > { %s2334_s19 = sld [smem:[#allocation11_spill]]  ;;  %s2336_s12 = smov %s1606_s13 }
 0x22f   : > { %s2335_s20 = sld [smem:[#allocation12_spill]]  ;;  %s2337_s13 = smov %s1757_s10 }
 0x230   : > { %s2338_s14 = smov %s1614_s15  ;;  %s2339_s15 = smov %s1618_s16 }
 0x231   : > { %s2340_s16 = smov %s1754_s9  ;;  %15 = sbr.rel (!%p13_p11) target bundleno = 6 (0x6), region = 128 }
 0x236   :  { %1288 = vsyncpa [#allocation3], 1 }
 0x237   :  { %1290 = vsyncpa [#allocation3 + $0x1], 1 }

// kernel: dilated_conv3d_block_forward.3
= control target key start
LH: loop header
LB: loop body
LE: loop exit
PB: predicated region body
PF: predicated region fallthrough
CT: control target
= control target key end

     0   :  { %s7937_s9 = smov 0   ;;  %s7939_s10 = smov 0   ;;  %s12850_s0 = inlined_call_operand.vmem [shape: bf16[2,16,20,20,20], index: 0, kind: input, shape index: {}]   ;;  %s12851_s1 = inlined_call_operand.vmem [shape: bf16[3,3,3,32,16], index: 1, kind: input, shape index: {}]   ;;  %s12852_s2 = inlined_call_operand.vmem [shape: f32[2,32,16,16,16], index: 2, kind: output, shape index: {}]  }
   0x1   :  { %s7941_s11 = smov 0   ;;  %s7943_s12 = smov 0  }
   0x2   :  { %s7945_s13 = smov 0   ;;  %s7947_s14 = smov 0  }
   0x3   :  { %s7949_s15 = smov 0   ;;  %s7951_s16 = smov 0  }
   0x4   :  { %s7953_s17 = smov 0   ;;  %s7955_s18 = smov 0  }
   0x5   :  { %s7957_s19 = smov 0  }
   0x6 LB: > { %s24_s20 = sadd.s32 1, %s7889_s16  ;;  %s27_s21 = sadd.s32 1, %s7893_s17  ;;  %s7901_s19 = sphi %s7957_s19, %s12_s19   ;;  %s7897_s18 = sphi %s7955_s18, %s13307_s18   ;;  %s7893_s17 = sphi %s7953_s17, %s13306_s17   ;;  %s7889_s16 = sphi %s7951_s16, %s13305_s16   ;;  %s7885_s15 = sphi %s7949_s15, %s13304_s15   ;;  %s7881_s14 = sphi %s7947_s14, %s13303_s14   ;;  %s7877_s13 = sphi %s7945_s13, %s13302_s13   ;;  %s7873_s12 = sphi %s7943_s12, %s13301_s12   ;;  %s7869_s11 = sphi %s7941_s11, %s13300_s11   ;;  %s7865_s10 = sphi %s7939_s10, %s13299_s10   ;;  %s7861_s9 = sphi %s7937_s9, %s13298_s9  }
   0x7   : > { %p25_p0 = scmp.ge.s32.totalorder %s24_s20, 3  ;;  %s7412_s22 = sadd.s32 4294967295, %s7901_s19  }
   0x8   : > { %s7414_s23 = sshll.u32 %s7889_s16, 1  ;;  %s31_s24 = sadd.s32 1, %s7897_s18 }
   0x9   : > { %s13309_s20 = smov (%p25_p0, %s24_s20), 0  ;;  %s13311_s21 = smov (!%p25_p0, %s27_s21), %s7893_s17 }
   0xa   : > { %s8001_s25 = sadd.s32 %s7893_s17, %s7414_s23  ;;  %p29_p1 = scmp.ge.s32.totalorder %s13311_s21, 16 }
   0xb   : > { %s7415_s26 = sshll.u32 %s13309_s20, 1  ;;  %p51_p2 = scmp.ne.s32.totalorder %s7873_s12, %s7869_s11 }
   0xc   : > { %p52_p3 = scmp.eq.s32.totalorder %s7901_s19, 0  ;;  %s13313_s21 = smov (%p29_p1, %s13311_s21), 0 }
   0xd   : > { %s13315_s24 = smov (!%p29_p1, %s31_s24), %s7897_s18  ;;  %s38_s27 = sadd.s32 %s7415_s26, %s13313_s21 }
   0xe   : > { %p8011_p4 = por %p52_p3, %p51_p2  ;;  %p33_p5 = scmp.ge.s32.totalorder %s13315_s24, 2 }
   0xf   : > { %s44_s29 = sadd.s32 1, %s7873_s12  ;;  %s40_s30 = ssub.s32 %s8001_s25, %s38_s27 }
  0x10   : > { %s94_s3 = ssub.s32 %s7893_s17, %s13313_s21  ;;  %s13317_s24 = smov (%p33_p5, %s13315_s24), 0 }
  0x11   : > { %p108_p6 = scmp.ne.s32.totalorder %s7865_s10, %s7861_s9  ;;  %p109_p7 = scmp.eq.s32.totalorder %s7412_s22, 95 }
  0x12   : > { %s39_s4 = ssub.s32 %s7897_s18, %s13317_s24  ;;  %s98_s5 = sadd.s32 1, %s7865_s10 }
  0x13   : > { %s41_s6 = sor.u32 %s40_s30, %s39_s4  ;;  %s95_s7 = sor.u32 %s94_s3, %s39_s4 }
  0x14   : > { %p42_p8 = scmp.eq.s32.totalorder %s41_s6, 0  ;;  %p96_p9 = scmp.eq.s32.totalorder %s95_s7, 0 }
  0x15   : > { %p8026_p10 = por %p109_p7, %p108_p6  ;;  %p7417_p11 = scmp.ge.s32.totalorder %s7901_s19, 96 }
  0x16   : > { %s8031_s23 = scalar_select %p42_p8, %s7873_s12, %s44_s29  }
  0x17   : > { %s8034_s26 = scalar_select %p96_p9, %s7865_s10, %s98_s5  }
  0x18   : > { %131 = sbr.rel (%p7417_p11) target bundleno = 70 (0x46), region = 16 }
  0x1d   : > { %134 = sbr.rel (!%p8011_p4) target bundleno = 70 (0x46), region = 20  ;;  %s136_s22 = sand.u32 (%p8011_p4), 1, %s7873_s12  }
  0x1e   : > { %s7624_s27 = smul.u32 (%p8011_p4), 3, %s8001_s25 }
  0x1f   : > { %s7623_s30 = smul.u32 (%p8011_p4), 192, %s136_s22 }
  0x20   : > { %s7625_s3 = smul.u32 (%p8011_p4), 960, %s7897_s18 }
  0x21   : > { %s8050_s25 = scalar_lea.vmem (%p8011_p4), [#allocation3], %s7623_s30 }
  0x22   : > { %s143_s4 = sadd.s32 %s7625_s3, %s7624_s27 }
  0x23   : > { %s7419_s6 = sshll.u32 %s143_s4, 2 }
  0x24   : > { %s8045_s5 = scalar_lea.vmem %s12850_s0, %s7419_s6 }
  0x25   : > { %v162_v0 = vld [vmem:[%s8045_s5] sm:$0xff]   ;;  %v166_v1 = vld [vmem:[%s8045_s5 + $0x8] sm:$0xf]  ;;  %v168_v2 = vld [vmem:[%s8045_s5 + $0xf0] sm:$0xff]  }
  0x26   : > { %163 = vst [vmem:[%s8050_s25] sm:$0xff] %v162_v0   ;;  %v172_v3 = vld [vmem:[%s8045_s5 + $0xf8] sm:$0xf]  ;;  %v174_v4 = vld [vmem:[%s8045_s5 + $0x1e0] sm:$0xff]   ;;  %v178_v5 = vld [vmem:[%s8045_s5 + $0x1e8] sm:$0xf] }
  0x27   : > { %167 = vst [vmem:[%s8050_s25 + $0x8] sm:$0xf] %v166_v1  ;;  %v180_v6 = vld [vmem:[%s8045_s5 + $0x2d0] sm:$0xff]   ;;  %v184_v7 = vld [vmem:[%s8045_s5 + $0x2d8] sm:$0xf]  ;;  %v186_v8 = vld [vmem:[%s8045_s5 + $0x3c0] sm:$0xff]  }
  0x28   : > { %169 = vst [vmem:[%s8050_s25 + $0xc] sm:$0xff] %v168_v2   ;;  %v190_v9 = vld [vmem:[%s8045_s5 + $0x3c8] sm:$0xf]  ;;  %v192_v10 = vld [vmem:[%s8045_s5 + $0x4b0] sm:$0xff]   ;;  %v196_v11 = vld [vmem:[%s8045_s5 + $0x4b8] sm:$0xf] }
  0x29   : > { %173 = vst [vmem:[%s8050_s25 + $0x14] sm:$0xf] %v172_v3  ;;  %v198_v12 = vld [vmem:[%s8045_s5 + $0x5a0] sm:$0xff]   ;;  %v202_v13 = vld [vmem:[%s8045_s5 + $0x5a8] sm:$0xf]  ;;  %v204_v14 = vld [vmem:[%s8045_s5 + $0x690] sm:$0xff]  }
  0x2a   : > { %175 = vst [vmem:[%s8050_s25 + $0x18] sm:$0xff] %v174_v4   ;;  %v208_v15 = vld [vmem:[%s8045_s5 + $0x698] sm:$0xf]  ;;  %v210_v16 = vld [vmem:[%s8045_s5 + $0x780] sm:$0xff]   ;;  %v214_v17 = vld [vmem:[%s8045_s5 + $0x788] sm:$0xf] }
  0x2b   : > { %179 = vst [vmem:[%s8050_s25 + $0x20] sm:$0xf] %v178_v5  ;;  %v216_v18 = vld [vmem:[%s8045_s5 + $0x870] sm:$0xff]   ;;  %v220_v19 = vld [vmem:[%s8045_s5 + $0x878] sm:$0xf]  ;;  %v222_v20 = vld [vmem:[%s8045_s5 + $0x960] sm:$0xff]  }
  0x2c   : > { %181 = vst [vmem:[%s8050_s25 + $0x24] sm:$0xff] %v180_v6   ;;  %v226_v21 = vld [vmem:[%s8045_s5 + $0x968] sm:$0xf]  ;;  %v228_v22 = vld [vmem:[%s8045_s5 + $0xa50] sm:$0xff]   ;;  %v232_v23 = vld [vmem:[%s8045_s5 + $0xa58] sm:$0xf] }
  0x2d   : > { %185 = vst [vmem:[%s8050_s25 + $0x2c] sm:$0xf] %v184_v7  ;;  %v234_v24 = vld [vmem:[%s8045_s5 + $0xb40] sm:$0xff]   ;;  %v238_v25 = vld [vmem:[%s8045_s5 + $0xb48] sm:$0xf]  ;;  %v240_v26 = vld [vmem:[%s8045_s5 + $0xc30] sm:$0xff]  }
  0x2e   : > { %187 = vst [vmem:[%s8050_s25 + $0x30] sm:$0xff] %v186_v8   ;;  %v244_v27 = vld [vmem:[%s8045_s5 + $0xc38] sm:$0xf]  ;;  %v246_v28 = vld [vmem:[%s8045_s5 + $0xd20] sm:$0xff]   ;;  %v250_v29 = vld [vmem:[%s8045_s5 + $0xd28] sm:$0xf] }
  0x2f   : > { %191 = vst [vmem:[%s8050_s25 + $0x38] sm:$0xf] %v190_v9  ;;  %v252_v30 = vld [vmem:[%s8045_s5 + $0xe10] sm:$0xff]   ;;  %v256_v31 = vld [vmem:[%s8045_s5 + $0xe18] sm:$0xf] }
  0x30   : > { %193 = vst [vmem:[%s8050_s25 + $0x3c] sm:$0xff] %v192_v10  }
  0x31   : > { %197 = vst [vmem:[%s8050_s25 + $0x44] sm:$0xf] %v196_v11 }
  0x32   : > { %199 = vst [vmem:[%s8050_s25 + $0x48] sm:$0xff] %v198_v12  }
  0x33   : > { %203 = vst [vmem:[%s8050_s25 + $0x50] sm:$0xf] %v202_v13 }
  0x34   : > { %205 = vst [vmem:[%s8050_s25 + $0x54] sm:$0xff] %v204_v14  }
  0x35   : > { %209 = vst [vmem:[%s8050_s25 + $0x5c] sm:$0xf] %v208_v15 }
  0x36   : > { %211 = vst [vmem:[%s8050_s25 + $0x60] sm:$0xff] %v210_v16  }
  0x37   : > { %215 = vst [vmem:[%s8050_s25 + $0x68] sm:$0xf] %v214_v17 }
  0x38   : > { %217 = vst [vmem:[%s8050_s25 + $0x6c] sm:$0xff] %v216_v18  }
  0x39   : > { %221 = vst [vmem:[%s8050_s25 + $0x74] sm:$0xf] %v220_v19 }
  0x3a   : > { %223 = vst [vmem:[%s8050_s25 + $0x78] sm:$0xff] %v222_v20  }
  0x3b   : > { %227 = vst [vmem:[%s8050_s25 + $0x80] sm:$0xf] %v226_v21 }
  0x3c   : > { %229 = vst [vmem:[%s8050_s25 + $0x84] sm:$0xff] %v228_v22  }
  0x3d   : > { %233 = vst [vmem:[%s8050_s25 + $0x8c] sm:$0xf] %v232_v23 }
  0x3e   : > { %235 = vst [vmem:[%s8050_s25 + $0x90] sm:$0xff] %v234_v24  }
  0x3f   : > { %239 = vst [vmem:[%s8050_s25 + $0x98] sm:$0xf] %v238_v25 }
  0x40   : > { %241 = vst [vmem:[%s8050_s25 + $0x9c] sm:$0xff] %v240_v26  }
  0x41   : > { %245 = vst [vmem:[%s8050_s25 + $0xa4] sm:$0xf] %v244_v27 }
  0x42   : > { %247 = vst [vmem:[%s8050_s25 + $0xa8] sm:$0xff] %v246_v28  }
  0x43   : > { %251 = vst [vmem:[%s8050_s25 + $0xb0] sm:$0xf] %v250_v29 }
  0x44   : > { %253 = vst [vmem:[%s8050_s25 + $0xb4] sm:$0xff] %v252_v30  }
  0x45   : > { %257 = vst [vmem:[%s8050_s25 + $0xbc] sm:$0xf] %v256_v31 }
  0x46 PF: > { %p7420_p12 = scmp.ge.s32.totalorder %s7901_s19, 1  ;;  %p384_p13 = scmp.lt.s32.totalorder %s7901_s19, 97 }
  0x48   : > { %p385_p0 = pnand %p7420_p12, %p384_p13 }
  0x4a   : > { %388 = sbr.rel (%p385_p0) target bundleno = 2257 (0x8d1), region = 65 }
  0x4f   : > { %s391_s28 = sand.u32 1, %s7869_s11   ;;  %s413_s22 = sand.u32 1, %s7861_s9  }
  0x50   : > { %s7626_s27 = smul.u32 192, %s391_s28  ;;  %s7421_s30 = sshll.u32 %s413_s22, 9 }
  0x51   : > { %p418_p1 = scmp.lt.s32.totalorder %s7877_s13, 2  ;;  %s8126_s25 = scalar_lea.vmem [#allocation4], %s7421_s30 }
  0x52   : > { %s8124_s5 = scalar_lea.vmem [#allocation3], %s7626_s27  ;;  %p7423_p2 = scmp.ne.s32.totalorder %s7877_s13, 0 }
  0x53   : > { %s419_s3 = scalar_select %p418_p1, %s7877_s13, 2 }
  0x54   : > { %427 = sbr.rel (%p7423_p2) target bundleno = 98 (0x62), region = 73 }
  0x55   : > { %s7627_s4 = smul.u32 144, %s419_s3 }
  0x57   : > { %s8122_s29 = scalar_lea.vmem %s12851_s1, %s7627_s4 }
  0x59   : > { %v7903_v32 = vmov 0.0  }
  0x5a   : > { %428 = vst [vmem:[#allocation2 + $0x30] sm:$0xff] %v7903_v32 }
  0x5b   : > { %429 = vst [vmem:[#allocation2] sm:$0xff] %v7903_v32 }
  0x5c   : > { %430 = vst [vmem:[#allocation2 + $0x18] sm:$0xff] %v7903_v32 }
  0x5d   : > { %431 = vst [vmem:[#allocation2 + $0x10] sm:$0xff] %v7903_v32 }
  0x5e   : > { %432 = vst [vmem:[#allocation2 + $0x8] sm:$0xff] %v7903_v32 }
  0x5f   : > { %433 = vst [vmem:[#allocation2 + $0x20] sm:$0xff] %v7903_v32 }
  0x60   : > { %434 = vst [vmem:[#allocation2 + $0x28] sm:$0xff] %v7903_v32 }
  0x61   : > { %435 = vst [vmem:[#allocation2 + $0x38] sm:$0xff] %v7903_v32 }
  0x62 PF: > { %v8130_v33 = vld [vmem:[%s8124_s5] sm:$0xf]  ;;  %v8133_v34 = vld [vmem:[%s8124_s5 + $0x30] sm:$0xf]  ;;  %v8136_v35 = vld [vmem:[%s8124_s5 + $0xc] sm:$0xf] }
  0x63   : > { %v8139_v36 = vld [vmem:[%s8124_s5 + $0x18] sm:$0xf]  ;;  %v8142_v37 = vld [vmem:[%s8124_s5 + $0x3c] sm:$0xf]  ;;  %v8145_v38 = vld [vmem:[%s8124_s5 + $0x48] sm:$0xf] }
  0x64   : > { %v8148_v39 = vld [vmem:[%s8124_s5 + $0x24] sm:$0xf]  ;;  %v8151_v40 = vld [vmem:[%s8124_s5 + $0x54] sm:$0xf]  ;;  %v8154_v41 = vld [vmem:[%s8124_s5 + $0x60] sm:$0xf] }
  0x65   : > { %v8157_v42 = vld [vmem:[%s8124_s5 + $0x90] sm:$0xf]  ;;  %v8160_v43 = vld [vmem:[%s8124_s5 + $0xa8] sm:$0xf]  ;;  %v488_v44 = vrot.slane %v8133_v34, 4  ;;  %vm489_vm0 = vcmask 1047556  }
  0x66   : > { %13001 = vst [vmem:[#allocation5_spill] sm:$0xff] %v8157_v42  ;;  %v8164_v45 = vld [vmem:[%s8124_s5 + $0x9c] sm:$0xf]  ;;  %v7904_v46 = vmov 1983009808   ;;  %v495_v48 = vrot.slane %v8145_v38, 4 }
  0x67   : > { %13002 = vst [vmem:[#allocation6_spill] sm:$0xff] %v8160_v43  ;;  %v492_v47 = vunpack.c.l.s4 %v7904_v46  ;;  %v517_v49 = vrot.slane %v8142_v37, 4  ;;  %v8169_v50 = vld [vmem:[%s8124_s5 + $0x6c] sm:$0xf]  ;;  %v490_v51 = vsel %vm489_vm0, %v488_v44, %v8130_v33  ;;  %v7905_v52 = vmov 1934713408  }
  0x68   : > { %13003 = vst [vmem:[#allocation7_spill] sm:$0xff] %v8164_v45  ;;  %v506_v53 = vunpack.c.l.s4 %v7905_v52  ;;  %v523_v54 = vrot.slane %v8151_v40, 4  ;;  %v545_v55 = vrot.slane %v8157_v42, 4  ;;  %v8176_v56 = vld [vmem:[%s8124_s5 + $0x78] sm:$0xf]  ;;  %v496_v59 = vsel %vm489_vm0, %v495_v48, %v8139_v36  ;;  %s7906_s9 = smov 64  }
  0x69   : > { %v8179_v57 = vld [vmem:[%s8124_s5 + $0xb4] sm:$0xf]  ;;  %v8181_v58 = vunpack.c.0.s8 %v492_v47  ;;  %v518_v60 = vsel %vm489_vm0, %v517_v49, %v8136_v35  ;;  %v551_v61 = vrot.slane %v8160_v43, 4  ;;  %v573_v0 = vrot.slane %v8164_v45, 4  ;;  %v8194_v1 = vld [vmem:[%s8124_s5 + $0x84] sm:$0xf] }
  0x6a   : > { %13004 = vst [vmem:[#allocation8_spill] sm:$0xff] %v8179_v57  ;;  %v524_v62 = vsel %vm489_vm0, %v523_v54, %v8148_v39  ;;  %v546_v63 = vsel %vm489_vm0, %v545_v55, %v8154_v41  ;;  %v8198_v4 = vunpack.c.0.s8 %v506_v53  ;;  %v579_v9 = vrot.slane %v8179_v57, 4  ;;  %v8237_v52 = vld [vmem:[%s8124_s5 + $0x34] sm:$0xf]  ;;  %s7907_s11 = smov 80   ;;  %s7908_s28 = smov 16  }
  0x6b   : > { %13005 = vst [vmem:[#allocation9_spill] sm:$0xff] %v8181_v58  ;;  %v494_v2 = vperm.slane %v490_v51, %v8181_v58  ;;  %v500_v3 = vperm.slane %v496_v59, %v8181_v58  ;;  %v522_v5 = vperm.slane %v518_v60, %v8181_v58  ;;  %v550_v6 = vperm.slane %v546_v63, %v8181_v58  ;;  %v8245_v60 = vld [vmem:[%s8124_s5 + $0x4c] sm:$0xf]  ;;  %s7909_s22 = smov 32   ;;  %s7910_s27 = smov 96  }
  0x6c   : > { %13006 = vst [vmem:[#allocation10_spill] sm:$0xff] %v8194_v1  ;;  %v552_v7 = vsel %vm489_vm0, %v551_v61, %v8176_v56  ;;  %v574_v8 = vsel %vm489_vm0, %v573_v0, %v8169_v50  ;;  %v528_v11 = vperm.slane %v524_v62, %v8181_v58  ;;  %v580_v16 = vsel %vm489_vm0, %v579_v9, %v8194_v1  ;;  %v8270_v9 = vld [vmem:[%s8124_s5 + $0x40] sm:$0xf]  ;;  %s7911_s30 = smov 112   ;;  %s7912_s3 = smov 48  }
  0x6d   : > { %13007 = vst [vmem:[#allocation11_spill] sm:$0xff] %v8198_v4  ;;  %v503_v10 = vrot.slane %v494_v2, 4  ;;  %v531_v12 = vrot.slane %v522_v5, 4  ;;  %v578_v13 = vperm.slane %v574_v8, %v8181_v58  ;;  %v556_v14 = vperm.slane %v552_v7, %v8181_v58  ;;  %v8264_v7 = vld [vmem:[%s8124_s5 + $0x10] sm:$0xf]  ;;  %s7913_s4 = smov 126  }
  0x6e   : > { %v559_v15 = vrot.slane %v550_v6, 4  ;;  %v584_v19 = vperm.slane %v580_v16, %v8181_v58  ;;  %v501_v32 = vrot.slane %v500_v3, 4  ;;  %v529_v44 = vrot.slane %v528_v11, 4  ;;  %v8267_v8 = vld [vmem:[%s8124_s5 + $0x1c] sm:$0xf]  ;;  %s7914_s6 = smov 124  }
  0x6f   : > { %v504_v17 = vsel %vm489_vm0, %v500_v3, %v503_v10  ;;  %v532_v18 = vsel %vm489_vm0, %v528_v11, %v531_v12  ;;  %v587_v20 = vrot.slane %v578_v13, 4  ;;  %v557_v46 = vrot.slane %v556_v14, 4  ;;  %p7596_p3 = scmp.ne.s32.totalorder %s7877_s13, 2 }
  0x70   : > { %v8216_v21 = vperm.slane %v504_v17, %v8198_v4  ;;  %v8219_v22 = vperm.slane %v532_v18, %v8198_v4  ;;  %v560_v23 = vsel %vm489_vm0, %v556_v14, %v559_v15  ;;  %v585_v47 = vrot.slane %v584_v19, 4  ;;  %v8277_v14 = vld [vmem:[%s8124_s5 + $0x58] sm:$0xf]  ;;  %s7915_s7 = smov (!%p7596_p3), 112   ;;  %s7917_s13 = smov (!%p7596_p3), 80  }
  0x71   : > { %v8223_v24 = vperm.slane %v560_v23, %v8198_v4  ;;  %v588_v25 = vsel %vm489_vm0, %v584_v19, %v587_v20  ;;  %v502_v53 = vsel %vm489_vm0, %v501_v32, %v494_v2  ;;  %v530_v54 = vsel %vm489_vm0, %v529_v44, %v522_v5  ;;  %v8258_v2 = vld [vmem:[%s8124_s5 + $0x4] sm:$0xf]  ;;  %v8282_v19 = vld [vmem:[%s8124_s5 + $0x94] sm:$0xf]  ;;  %v8285_v20 = vld [vmem:[%s8124_s5 + $0xac] sm:$0xf] }
  0x72   : > { %v8227_v26 = vperm.slane %v588_v25, %v8198_v4  ;;  %v727_v27 = vpack.i.b16 %v8219_v22, %v8216_v21  ;;  %v728_v48 = vshrl.u32 %v8216_v21, 16  ;;  %v729_v49 = vshrl.u32 %v8219_v22, 16  ;;  %13012 = vst [vmem:[#allocation16_spill] sm:$0xff] %v8282_v19 }
  0x73   : > { %v776_v51 = vshrl.u32 %v8223_v24, 16  ;;  %v558_v55 = vsel %vm489_vm0, %v557_v46, %v550_v6  ;;  %v8248_v61 = vperm.slane %v502_v53, %v8198_v4  ;;  %v8251_v62 = vperm.slane %v530_v54, %v8198_v4  ;;  %13013 = vst [vmem:[#allocation17_spill] sm:$0xff] %v8285_v20  ;;  %v8302_v46 = vld [vmem:[%s8124_s5 + $0x7c] sm:$0xf] }
  0x74   : > { %v775_v28 = vpack.i.b16 %v8227_v26, %v8223_v24  ;;  %v827_v29 = vunpack.c.l.b16 %v727_v27  ;;  %v777_v59 = vshrl.u32 %v8227_v26, 16  ;;  %v8254_v63 = vperm.slane %v558_v55, %v8198_v4  ;;  %v8290_v27 = vld [vmem:[%s8124_s5 + $0x28] sm:$0xf]  ;;  %13014 = vst [vmem:[#allocation18_spill] sm:$0xff] %v8302_v46 }
  0x75   : > { %13008 = vst [vmem:[#allocation12_spill] sm:$0xff] %v8248_v61  ;;  %v586_v0 = vsel %vm489_vm0, %v585_v47, %v578_v13  ;;  %v730_v5 = vpack.i.b16 %v729_v49, %v728_v48  ;;  %v601_v10 = vrot.slane %v8237_v52, 4  ;;  %v716_v11 = vshrl.u32 %v8248_v61, 16  ;;  %v8305_v47 = vld [vmem:[%s8124_s5 + $0xa0] sm:$0xf] }
  0x76   : > { %v828_v30 = vunpack.c.l.b16 %v775_v28  ;;  %13009 = vst [vmem:[#allocation13_spill] sm:$0xff] %v8251_v62  ;;  %v8261_v3 = vperm.slane %v586_v0, %v8198_v4  ;;  %v778_v6 = vpack.i.b16 %v777_v59, %v776_v51  ;;  %v717_v12 = vshrl.u32 %v8251_v62, 16  ;;  %v8293_v28 = vld [vmem:[%s8124_s5 + $0x64] sm:$0xf]  ;;  %v8317_v0 = vld [vmem:[%s8124_s5 + $0x70] sm:$0xf] }
  0x77   : > { %13010 = vst [vmem:[#allocation14_spill] sm:$0xff] %v8254_v63  ;;  %v764_v13 = vshrl.u32 %v8254_v63, 16  ;;  %v607_v15 = vrot.slane %v8245_v60, 4  ;;  %v832_v17 = vunpack.c.l.b16 %v730_v5  ;;  %v602_v23 = vsel %vm489_vm0, %v601_v10, %v8258_v2  ;;  %v8320_v5 = vld [vmem:[%s8124_s5 + $0xb8] sm:$0xf] }
  0x78   : > { %v829_v31 = vpack.c.b16 %v828_v30, %v827_v29  ;;  %13011 = vst [vmem:[#allocation15_spill] sm:$0xff] %v8261_v3  ;;  %v765_v16 = vshrl.u32 %v8261_v3, 16  ;;  %v833_v18 = vunpack.c.l.b16 %v778_v6  ;;  %v718_v25 = vpack.i.b16 %v717_v12, %v716_v11 }
  0x79   : > { %v8296_v29 = vperm.slane %v602_v23, %v8181_v58  ;;  %v608_v30 = vsel %vm489_vm0, %v607_v15, %v8267_v8  ;;  %13015 = vst [vmem:[#allocation19_spill] sm:$0xff] %v8305_v47  ;;  %v635_v49 = vrot.slane %v8277_v14, 4  ;;  %v657_v54 = vrot.slane %v8282_v19, 4 }
  0x7a   : > { %830 = vrot.lane.b32.xlu1 %v829_v31, %s7906_s9  ;;  %v629_v31 = vrot.slane %v8270_v9, 4  ;;  %v766_v32 = vpack.i.b16 %v765_v16, %v764_v13  ;;  %v834_v44 = vpack.c.b16 %v833_v18, %v832_v17  ;;  %v8308_v48 = vperm.slane %v608_v30, %v8181_v58  ;;  %13016 = vst [vmem:[#allocation20_spill] sm:$0xff] %v8320_v5  ;;  %v8337_v18 = vld [vmem:[%s8124_s5 + $0x88] sm:$0xf] }
  0x7b   : > { %v812_v51 = vunpack.c.l.b16 %v718_v25  ;;  %v663_v55 = vrot.slane %v8285_v20, 4  ;;  %v636_v11 = vsel %vm489_vm0, %v635_v49, %v8290_v27  ;;  %v658_v13 = vsel %vm489_vm0, %v657_v54, %v8293_v28  ;;  %13017 = vst [vmem:[#allocation21_spill] sm:$0xff] %v8337_v18 }
  0x7c   : > { %v630_v53 = vsel %vm489_vm0, %v629_v31, %v8264_v7  ;;  %v813_v59 = vunpack.c.l.b16 %v766_v32  ;;  %835 = vrot.lane.b32.xlu2 %v834_v44, %s7907_s11  ;;  %v613_v6 = vrot.slane %v8308_v48, 4  ;;  %v8329_v12 = vperm.slane %v636_v11, %v8181_v58 }
  0x7d   : > { %v8324_v10 = vperm.slane %v630_v53, %v8181_v58  ;;  %v664_v15 = vsel %vm489_vm0, %v663_v55, %v8302_v46  ;;  %v685_v16 = vrot.slane %v8305_v47, 4  ;;  %v8342_v25 = vperm.slane %v658_v13, %v8181_v58 }
  0x7e   : > { %v814_v17 = vpack.c.b16 %v813_v59, %v812_v51  ;;  %v614_v23 = vsel %vm489_vm0, %v613_v6, %v8296_v29  ;;  %v8345_v30 = vperm.slane %v664_v15, %v8181_v58  ;;  %v641_v32 = vrot.slane %v8329_v12, 4 }
  0x7f   : > { %v8348_v31 = vperm.slane %v614_v23, %v8198_v4  ;;  %v686_v44 = vsel %vm489_vm0, %v685_v16, %v8317_v0  ;;  %v691_v49 = vrot.slane %v8320_v5, 4  ;;  %v513_v54 = vrot.slane %v8248_v61, 4 }
  0x80   : > { %815 = vrot.lane.b32.xlu0 %v814_v17, %s7908_s28  ;;  %v669_v51 = vrot.slane %v8345_v30, 4  ;;  %v8357_v53 = vperm.slane %v686_v44, %v8181_v58  ;;  %v541_v55 = vrot.slane %v8251_v62, 4  ;;  %v642_v59 = vsel %vm489_vm0, %v641_v32, %v8324_v10 }
  0x81   : > { %v692_v6 = vsel %vm489_vm0, %v691_v49, %v8337_v18  ;;  %v740_v11 = vshrl.u32 %v8348_v31, 16  ;;  %v569_v13 = vrot.slane %v8254_v63, 4  ;;  %v8368_v15 = vperm.slane %v642_v59, %v8198_v4 }
  0x82   : > { %v670_v16 = vsel %vm489_vm0, %v669_v51, %v8342_v25  ;;  %v8373_v17 = vperm.slane %v692_v6, %v8181_v58  ;;  %v514_v23 = vsel %vm489_vm0, 0, %v513_v54  ;;  %v542_v44 = vsel %vm489_vm0, 0, %v541_v55 }
  0x83   : > { %v8377_v32 = vperm.slane %v670_v16, %v8198_v4  ;;  %v570_v49 = vsel %vm489_vm0, 0, %v569_v13  ;;  %v597_v62 = vrot.slane %v8261_v3, 4  ;;  %v741_v61 = vshrl.u32 %v8368_v15, 16 }
  0x84   : > { %v697_v59 = vrot.slane %v8373_v17, 4  ;;  %v721_v63 = vpack.i.b16 %v542_v44, %v514_v23  ;;  %v515_v51 = vrot.slane %v8216_v21, 4  ;;  %v543_v16 = vrot.slane %v8219_v22, 4 }
  0x85   : > { %v788_v6 = vshrl.u32 %v8377_v32, 16  ;;  %v598_v54 = vsel %vm489_vm0, 0, %v597_v62  ;;  %v571_v58 = vrot.slane %v8223_v24, 4  ;;  %v742_v13 = vpack.i.b16 %v741_v61, %v740_v11 }
  0x86   : > { %v698_v55 = vsel %vm489_vm0, %v697_v59, %v8357_v53  ;;  %v769_v3 = vpack.i.b16 %v598_v54, %v570_v49  ;;  %v817_v5 = vunpack.c.l.b16 %v721_v63  ;;  %v516_v20 = vsel %vm489_vm0, 0, %v515_v51 }
  0x87   : > { %v8392_v57 = vperm.slane %v698_v55, %v8198_v4  ;;  %v544_v21 = vsel %vm489_vm0, 0, %v543_v16  ;;  %v572_v43 = vsel %vm489_vm0, 0, %v571_v58  ;;  %v850_v62 = vunpack.c.l.b16 %v742_v13 }
  0x88   : > { %v818_v47 = vunpack.c.l.b16 %v769_v3  ;;  %v599_v22 = vrot.slane %v8227_v26, 4  ;;  %v733_v24 = vpack.i.b16 %v544_v21, %v516_v20  ;;  %v722_v59 = vshrl.u32 %v514_v23, 16 }
  0x89   : > { %v789_v45 = vshrl.u32 %v8392_v57, 16  ;;  %v723_v61 = vshrl.u32 %v542_v44, 16  ;;  %v770_v11 = vshrl.u32 %v570_v49, 16  ;;  %v771_v42 = vshrl.u32 %v598_v54, 16 }
  0x8a   : > { %v819_v63 = vpack.c.b16 %v818_v47, %v817_v5  ;;  %v600_v55 = vsel %vm489_vm0, 0, %v599_v22  ;;  %v837_v19 = vunpack.c.l.b16 %v733_v24  ;;  %v734_v1 = vshrl.u32 %v516_v20, 16 }
  0x8b   : > { %v790_v51 = vpack.i.b16 %v789_v45, %v788_v6  ;;  %v781_v18 = vpack.i.b16 %v600_v55, %v572_v43  ;;  %v724_v16 = vpack.i.b16 %v723_v61, %v722_v59  ;;  %v772_v58 = vpack.i.b16 %v771_v42, %v770_v11 }
  0x8c   : > { %820 = vrot.lane.b32.xlu0 %v819_v63, %s7909_s22  ;;  %v735_v26 = vshrl.u32 %v544_v21, 16  ;;  %v782_v3 = vshrl.u32 %v572_v43, 16  ;;  %v783_v13 = vshrl.u32 %v600_v55, 16  ;;  %v625_v47 = vrot.slane %v8348_v31, 4 }
  0x8d   : > { %v851_v46 = vunpack.c.l.b16 %v790_v51  ;;  %v838_v23 = vunpack.c.l.b16 %v781_v18  ;;  %v822_v44 = vunpack.c.l.b16 %v724_v16  ;;  %v823_v5 = vunpack.c.l.b16 %v772_v58 }
  0x8e   : > { %v736_v49 = vpack.i.b16 %v735_v26, %v734_v1  ;;  %v784_v22 = vpack.i.b16 %v783_v13, %v782_v3  ;;  %v653_v45 = vrot.slane %v8368_v15, 4  ;;  %v626_v20 = vsel %vm489_vm0, 0, %v625_v47 }
  0x8f   : > { %v852_v6 = vpack.c.b16 %v851_v46, %v850_v62  ;;  %v839_v54 = vpack.c.b16 %v838_v23, %v837_v19  ;;  %v681_v24 = vrot.slane %v8377_v32, 4  ;;  %v824_v42 = vpack.c.b16 %v823_v5, %v822_v44 }
  0x90   : > { %v842_v21 = vunpack.c.l.b16 %v736_v49  ;;  %v843_v43 = vunpack.c.l.b16 %v784_v22  ;;  %v654_v59 = vsel %vm489_vm0, 0, %v653_v45  ;;  %v709_v18 = vrot.slane %v8392_v57, 4 }
  0x91   : > { %853 = vrot.lane.b32.xlu1 %v852_v6, %s7908_s28  ;;  %840 = vrot.lane.b32.xlu2 %v839_v54, %s7910_s27  ;;  %v682_v1 = vsel %vm489_vm0, 0, %v681_v24  ;;  %v745_v46 = vpack.i.b16 %v654_v59, %v626_v20  ;;  %v615_v19 = vrot.slane %v8296_v29, 4  ;;  %v643_v61 = vrot.slane %v8324_v10, 4 }
  0x92   : > { %v844_v62 = vpack.c.b16 %v843_v43, %v842_v21  ;;  %v671_v11 = vrot.slane %v8342_v25, 4  ;;  %v699_v63 = vrot.slane %v8357_v53, 4  ;;  %v710_v55 = vsel %vm489_vm0, 0, %v709_v18 }
  0x93   : > { %v855_v51 = vunpack.c.l.b16 %v745_v46  ;;  %v616_v16 = vsel %vm489_vm0, %v8308_v48, %v615_v19  ;;  %v746_v58 = vshrl.u32 %v626_v20, 16  ;;  %v793_v26 = vpack.i.b16 %v710_v55, %v682_v1 }
  0x94   : > { %845 = vrot.lane.b32.xlu0 %v844_v62, %s7911_s30  ;;  %v624_v29 = vperm.slane %v616_v16, %v8198_v4  ;;  %v644_v10 = vsel %vm489_vm0, %v8329_v12, %v643_v61  ;;  %v672_v25 = vsel %vm489_vm0, %v8345_v30, %v671_v11  ;;  %v700_v48 = vsel %vm489_vm0, %v8373_v17, %v699_v63 }
  0x95   : > { %v652_v53 = vperm.slane %v644_v10, %v8198_v4  ;;  %v680_v3 = vperm.slane %v672_v25, %v8198_v4  ;;  %v747_v13 = vshrl.u32 %v654_v59, 16  ;;  %v856_v23 = vunpack.c.l.b16 %v793_v26 }
  0x96   : > { %v708_v44 = vperm.slane %v700_v48, %v8198_v4  ;;  %v794_v47 = vshrl.u32 %v682_v1, 16  ;;  %v795_v5 = vshrl.u32 %v710_v55, 16  ;;  %v752_v45 = vshrl.u32 %v624_v29, 16 }
  0x97   : > { %v751_v49 = vpack.i.b16 %v652_v53, %v624_v29  ;;  %v748_v22 = vpack.i.b16 %v747_v13, %v746_v58  ;;  %v753_v12 = vshrl.u32 %v652_v53, 16  ;;  %v857_v6 = vpack.c.b16 %v856_v23, %v855_v51 }
  0x98   : > { %v799_v54 = vpack.i.b16 %v708_v44, %v680_v3  ;;  %v796_v30 = vpack.i.b16 %v795_v5, %v794_v47  ;;  %v800_v20 = vshrl.u32 %v680_v3, 16  ;;  %v801_v43 = vshrl.u32 %v708_v44, 16 }
  0x99   : > { %825 = vrot.lane.b32.xlu1 %v824_v42, %s7912_s3  ;;  %v865_v24 = vunpack.c.l.b16 %v751_v49  ;;  %v860_v21 = vunpack.c.l.b16 %v748_v22  ;;  %v754_v17 = vpack.i.b16 %v753_v12, %v752_v45  ;;  %858 = vrot.lane.b32.xlu2 %v857_v6, %s7909_s22  ;;  %v627_v18 = vrot.slane %v624_v29, 4 }
  0x9a   : > { %v866_v59 = vunpack.c.l.b16 %v799_v54  ;;  %v861_v1 = vunpack.c.l.b16 %v796_v30  ;;  %v655_v46 = vrot.slane %v652_v53, 4  ;;  %v802_v19 = vpack.i.b16 %v801_v43, %v800_v20 }
  0x9b   : > { %v870_v62 = vunpack.c.l.b16 %v754_v17  ;;  %v683_v61 = vrot.slane %v680_v3, 4  ;;  %v711_v11 = vrot.slane %v708_v44, 4  ;;  %v628_v51 = vsel %vm489_vm0, 0, %v627_v18 }
  0x9c   : > { %v867_v63 = vpack.c.b16 %v866_v59, %v865_v24  ;;  %v862_v55 = vpack.c.b16 %v861_v1, %v860_v21  ;;  %v656_v42 = vsel %vm489_vm0, 0, %v655_v46  ;;  %v871_v16 = vunpack.c.l.b16 %v802_v19 }
  0x9d   : > { %v684_v58 = vsel %vm489_vm0, 0, %v683_v61  ;;  %v712_v26 = vsel %vm489_vm0, 0, %v711_v11  ;;  %v758_v10 = vshrl.u32 %v628_v51, 16  ;;  %v759_v29 = vshrl.u32 %v656_v42, 16 }
  0x9e   : > { %863 = vrot.lane.b32.xlu0 %v862_v55, %s7912_s3  ;;  %v806_v25 = vshrl.u32 %v684_v58, 16  ;;  %v807_v53 = vshrl.u32 %v712_v26, 16  ;;  %v757_v48 = vpack.i.b16 %v656_v42, %v628_v51  ;;  %v872_v3 = vpack.c.b16 %v871_v16, %v870_v62 }
  0x9f   : > { %v805_v13 = vpack.i.b16 %v712_v26, %v684_v58  ;;  %v760_v23 = vpack.i.b16 %v759_v29, %v758_v10  ;;  %vm885_vm1 = vcmask 130048   ;;  %vm889_vm2 = vcmask 261120  }
  0xa0   : > { %v808_v44 = vpack.i.b16 %v807_v53, %v806_v25  ;;  %v875_v47 = vunpack.c.l.b16 %v757_v48  ;;  %vm892_vm3 = vcmask 392192   ;;  %vm895_vm4 = vcmask 523264  }
  0xa1   : > { %868 = vrot.lane.b32.xlu1 %v867_v63, %s7906_s9  ;;  %v876_v5 = vunpack.c.l.b16 %v805_v13  ;;  %873 = vrot.lane.b32.xlu2 %v872_v3, %s7907_s11  ;;  %v880_v49 = vunpack.c.l.b16 %v760_v23  ;;  %vm898_vm5 = vcmask 654336   ;;  %vm901_vm6 = vcmask 785408  }
  0xa2   : > { %v881_v22 = vunpack.c.l.b16 %v808_v44  ;;  %vm904_vm7 = vcmask 916480   ;;  %vm2205_vm8 = vcmask 1042432   ;;  %vm2206_vm9 = vcmask 1046532  }
  0xa3   : > { %v877_v45 = vpack.c.b16 %v876_v5, %v875_v47  ;;  %v13030_v5 = vld [vmem:[#allocation9_spill] sm:$0xff]  ;;  %vm9210_vm10 = vmor %vm2205_vm8, %vm2206_vm9  ;;  %vm4029_vm11 = vcmask 1041408   ;;  %vm4030_vm12 = vcmask 1045508  }
  0xa4   : > { %v882_v12 = vpack.c.b16 %v881_v22, %v880_v49  ;;  %vm10421_vm13 = vmor %vm4029_vm11, %vm4030_vm12 }
  0xa6   : > { %878 = vrot.lane.b32.xlu0 %v877_v45, %s7910_s27 }
  0xa9   : > { %883 = vrot.lane.b32.xlu1 %v882_v12, %s7911_s30  ;;  %961 = vrot.lane.b32.xlu2 %v8130_v33, %s7913_s4 }
  0xae   : > { %963 = vrot.lane.b32.xlu0 %v8258_v2, %s7913_s4 }
  0xb1   : > { %965 = vrot.lane.b32.xlu1 %v8136_v35, %s7913_s4  ;;  %967 = vrot.lane.b32.xlu2 %v8264_v7, %s7913_s4  ;;  %v13019_v35 = vld [vmem:[#allocation10_spill] sm:$0xff]  ;;  %v13027_v7 = vld [vmem:[#allocation8_spill] sm:$0xff] }
  0xb6   : > { %969 = vrot.lane.b32.xlu0 %v8139_v36, %s7913_s4  ;;  %v13020_v36 = vld [vmem:[#allocation21_spill] sm:$0xff] }
  0xb9   : > { %971 = vrot.lane.b32.xlu1 %v8267_v8, %s7913_s4  ;;  %973 = vrot.lane.b32.xlu2 %v8148_v39, %s7913_s4  ;;  %v13022_v39 = vld [vmem:[#allocation16_spill] sm:$0xff] }
  0xbe   : > { %975 = vrot.lane.b32.xlu0 %v8290_v27, %s7913_s4 }
  0xc1   : > { %977 = vrot.lane.b32.xlu1 %v8133_v34, %s7913_s4  ;;  %979 = vrot.lane.b32.xlu2 %v8237_v52, %s7913_s4  ;;  %v13018_v34 = vld [vmem:[#allocation18_spill] sm:$0xff] }
  0xc2   : > { %v13025_v52 = vld [vmem:[#allocation6_spill] sm:$0xff] }
  0xc6   : > { %981 = vrot.lane.b32.xlu0 %v8142_v37, %s7913_s4  ;;  %v13021_v37 = vld [vmem:[#allocation5_spill] sm:$0xff] }
  0xc9   : > { %983 = vrot.lane.b32.xlu1 %v8270_v9, %s7913_s4  ;;  %985 = vrot.lane.b32.xlu2 %v8145_v38, %s7913_s4  ;;  %v13028_v9 = vld [vmem:[#allocation20_spill] sm:$0xff] }
  0xce   : > { %987 = vrot.lane.b32.xlu0 %v8245_v60, %s7913_s4  ;;  %v13026_v60 = vld [vmem:[#allocation17_spill] sm:$0xff] }
  0xd1   : > { %989 = vrot.lane.b32.xlu1 %v8151_v40, %s7913_s4  ;;  %991 = vrot.lane.b32.xlu2 %v8277_v14, %s7913_s4  ;;  %v13023_v40 = vld [vmem:[#allocation7_spill] sm:$0xff] }
  0xd6   : > { %993 = vrot.lane.b32.xlu0 %v8154_v41, %s7913_s4  ;;  %v8481_v33 = vpop.permute.xlu2 %835  ;;  %v13024_v41 = vld [vmem:[#allocation19_spill] sm:$0xff] }
  0xd9   : > { %995 = vrot.lane.b32.xlu1 %v8293_v28, %s7913_s4  ;;  %997 = vrot.lane.b32.xlu2 %v8169_v50, %s7913_s4 }
  0xde   : > { %999 = vrot.lane.b32.xlu0 %v8317_v0, %s7913_s4 }
  0xe1   : > { %1001 = vrot.lane.b32.xlu1 %v8176_v56, %s7913_s4  ;;  %1003 = vrot.lane.b32.xlu2 %v13018_v34, %s7913_s4 }
  0xe6   : > { %1005 = vrot.lane.b32.xlu0 %v13019_v35, %s7913_s4 }
  0xe9   : > { %1007 = vrot.lane.b32.xlu1 %v13020_v36, %s7913_s4  ;;  %1009 = vrot.lane.b32.xlu2 %v13021_v37, %s7913_s4 }
  0xeb   : > { %v8491_v38 = vpop.permute.xlu2 %840 }
  0xec   : > { %v8507_v2 = vpop.permute.xlu1 %830 }
  0xee   : > { %1011 = vrot.lane.b32.xlu0 %v13022_v39, %s7913_s4 }
  0xf1   : > { %1013 = vrot.lane.b32.xlu1 %v13023_v40, %s7913_s4  ;;  %1015 = vrot.lane.b32.xlu2 %v13024_v41, %s7913_s4 }
  0xf2   : > { %v8501_v56 = vpop.permute.xlu0 %815 }
  0xf3   : > { %v8499_v50 = vpop.permute.xlu2 %858 }
  0xf6   : > { %1017 = vrot.lane.b32.xlu0 %v13025_v52, %s7913_s4 }
  0xf9   : > { %1019 = vrot.lane.b32.xlu1 %v13026_v60, %s7913_s4  ;;  %1021 = vrot.lane.b32.xlu2 %v13027_v7, %s7913_s4 }
  0xfb   : > { %v8511_v8 = vpop.permute.xlu2 %873 }
  0xfe   : > { %1023 = vrot.lane.b32.xlu0 %v13028_v9, %s7913_s4  ;;  %v8515_v14 = vpop.permute.xlu0 %820 }
 0x103   : > { %v8517_v27 = vpop.permute.xlu1 %853  ;;  %v962_v28 = vpop.permute.xlu2 %961 }
 0x106   : > { %v8519_v0 = vpop.permute.xlu0 %845 }
 0x10b   : > { %v8521_v6 = vpop.permute.xlu1 %825  ;;  %v968_v54 = vpop.permute.xlu2 %967 }
 0x110   : > { %v8523_v30 = vpop.permute.xlu0 %863 }
 0x113   : > { %v8525_v20 = vpop.permute.xlu1 %868  ;;  %v974_v24 = vpop.permute.xlu2 %973 }
 0x118   : > { %v8527_v21 = vpop.permute.xlu0 %878 }
 0x11b   : > { %v8529_v17 = vpop.permute.xlu1 %883  ;;  %v980_v43 = vpop.permute.xlu2 %979 }
 0x11c   : > { %13029 = vst [vmem:[#allocation18_spill] sm:$0xff] %v8529_v17  ;;  %v1169_v3 = vrot.slane %v980_v43, 4 }
 0x120   : > { %v964_v59 = vpop.permute.xlu0 %963 }
 0x121   : > { %v1170_v35 = vsel %vm489_vm0, %v1169_v3, %v964_v59 }
 0x122   : > { %v1174_v9 = vperm.slane %v1170_v35, %v13030_v5 }
 0x123   : > { %v966_v1 = vpop.permute.xlu1 %965  ;;  %v986_v18 = vpop.permute.xlu2 %985 }
 0x124   : > { %v1063_v53 = vrot.slane %v986_v18, 4 }
 0x128   : > { %v970_v46 = vpop.permute.xlu0 %969 }
 0x129   : > { %v1064_v34 = vsel %vm489_vm0, %v1063_v53, %v970_v46 }
 0x12a   : > { %v1068_v60 = vperm.slane %v1064_v34, %v13030_v5 }
 0x12b   : > { %v972_v19 = vpop.permute.xlu1 %971  ;;  %v992_v62 = vpop.permute.xlu2 %991 }
 0x12c   : > { %v1203_v10 = vrot.slane %v992_v62, 4 }
 0x130   : > { %v976_v61 = vpop.permute.xlu0 %975 }
 0x131   : > { %v1204_v22 = vsel %vm489_vm0, %v1203_v10, %v976_v61 }
 0x132   : > { %v1208_v39 = vperm.slane %v1204_v22, %v13030_v5 }
 0x133   : > { %v978_v11 = vpop.permute.xlu1 %977  ;;  %v8531_v63 = vpop.permute.xlu2 %997 }
 0x134   : > { %v1057_v44 = vrot.slane %v978_v11, 4  ;;  %v1209_v59 = vrot.slane %v1208_v39, 4 }
 0x136   : > { %v1058_v37 = vsel %vm489_vm0, %v1057_v44, %v962_v28 }
 0x137   : > { %v1062_v43 = vperm.slane %v1058_v37, %v13030_v5 }
 0x138   : > { %v982_v55 = vpop.permute.xlu0 %981 }
 0x139   : > { %v1085_v47 = vrot.slane %v982_v55, 4  ;;  %v1071_v55 = vrot.slane %v1062_v43, 4 }
 0x13b   : > { %v984_v51 = vpop.permute.xlu1 %983  ;;  %v8533_v42 = vpop.permute.xlu2 %1003  ;;  %v1086_v40 = vsel %vm489_vm0, %v1085_v47, %v966_v1  ;;  %v1069_v1 = vrot.slane %v1068_v60, 4 }
 0x13c   : > { %v1197_v13 = vrot.slane %v984_v51, 4 }
 0x13d   : > { %v1070_v61 = vsel %vm489_vm0, %v1069_v1, %v1062_v43  ;;  %v1183_v43 = vrot.slane %v1174_v9, 4 }
 0x13e   : > { %v1198_v36 = vsel %vm489_vm0, %v1197_v13, %v968_v54  ;;  %v1090_v54 = vperm.slane %v1086_v40, %v13030_v5 }
 0x140   : > { %v988_v16 = vpop.permute.xlu0 %987  ;;  %v1099_v53 = vrot.slane %v1090_v54, 4 }
 0x141   : > { %v1175_v58 = vrot.slane %v988_v16, 4 }
 0x143   : > { %v990_v26 = vpop.permute.xlu1 %989  ;;  %v1176_v25 = vsel %vm489_vm0, %v1175_v58, %v972_v19  ;;  %v8536_v48 = vpop.permute.xlu2 %1009 }
 0x144   : > { %v1091_v29 = vrot.slane %v990_v26, 4  ;;  %v1180_v49 = vperm.slane %v1176_v25, %v13030_v5  ;;  %v8575_v26 = vperm.slane %v1070_v61, %v8198_v4  ;;  %v1113_v40 = vrot.slane %v8536_v48, 4 }
 0x146   : > { %v1092_v23 = vsel %vm489_vm0, %v1091_v29, %v974_v24  ;;  %v1181_v41 = vrot.slane %v1180_v49, 4  ;;  %v1202_v24 = vperm.slane %v1198_v36, %v13030_v5  ;;  %v1072_v29 = vsel %vm489_vm0, %v1068_v60, %v1071_v55 }
 0x147   : > { %v1096_v45 = vperm.slane %v1092_v23, %v13030_v5  ;;  %v1080_v44 = vperm.slane %v1072_v29, %v8198_v4  ;;  %v1081_v37 = vrot.slane %v8575_v26, 4  ;;  %v1184_v48 = vsel %vm489_vm0, %v1180_v49, %v1183_v43 }
 0x148   : > { %v994_v12 = vpop.permute.xlu0 %993  ;;  %v1182_v28 = vsel %vm489_vm0, %v1181_v41, %v1174_v9  ;;  %v1210_v62 = vsel %vm489_vm0, %v1209_v59, %v1202_v24  ;;  %v1211_v47 = vrot.slane %v1202_v24, 4  ;;  %v1284_v29 = vshrl.u32 %v8575_v26, 16 }
 0x149   : > { %v1097_v7 = vrot.slane %v1096_v45, 4  ;;  %v8564_v11 = vperm.slane %v1182_v28, %v8198_v4  ;;  %v8572_v58 = vperm.slane %v1210_v62, %v8198_v4  ;;  %v1100_v23 = vsel %vm489_vm0, %v1096_v45, %v1099_v53 }
 0x14a   : > { %v1108_v35 = vperm.slane %v1100_v23, %v8198_v4  ;;  %v1083_v36 = vrot.slane %v1080_v44, 4  ;;  %v1212_v60 = vsel %vm489_vm0, %v1208_v39, %v1211_v47  ;;  %v8596_v59 = vsel %vm489_vm0, 0, %v1081_v37 }
 0x14b   : > { %v8548_v52 = vpop.permute.xlu1 %995  ;;  %v8556_v18 = vpop.permute.xlu2 %1015  ;;  %v1098_v46 = vsel %vm489_vm0, %v1097_v7, %v1090_v54  ;;  %v1221_v41 = vrot.slane %v8572_v58, 4  ;;  %v8599_v28 = vperm.slane %v1212_v60, %v8198_v4  ;;  %v1114_v1 = vsel %vm489_vm0, %v1113_v40, %v994_v12 }
 0x14c   : > { %v8569_v16 = vperm.slane %v1098_v46, %v8198_v4  ;;  %v1111_v54 = vrot.slane %v1108_v35, 4  ;;  %v8593_v24 = vsel %vm489_vm0, 0, %v1083_v36  ;;  %v1296_v61 = vshrl.u32 %v1080_v44, 16 }
 0x14d   : > { %v8605_v62 = vsel %vm489_vm0, 0, %v1221_v41  ;;  %v1297_v55 = vshrl.u32 %v1108_v35, 16  ;;  %v1295_v40 = vpack.i.b16 %v1108_v35, %v1080_v44  ;;  %v1253_v60 = vrot.slane %v8556_v18, 4 }
 0x14e   : > { %v8609_v53 = vsel %vm489_vm0, 0, %v1111_v54  ;;  %v1285_v44 = vshrl.u32 %v8569_v16, 16 }
 0x14f   : > { %v8624_v43 = vpack.i.b16 %v1297_v55, %v1296_v61  ;;  %v1301_v54 = vpack.i.b16 %v8609_v53, %v8593_v24 }
 0x150   : > { %v8559_v19 = vpop.permute.xlu0 %999 }
 0x151   : > { %v1400_v25 = vunpack.c.l.b16 %v8624_v43  ;;  %v1254_v18 = vsel %vm489_vm0, %v1253_v60, %v8559_v19  ;;  %v1405_v10 = vunpack.c.l.b16 %v1301_v54 }
 0x152   : > { %v1258_v43 = vperm.slane %v1254_v18, %v13030_v5 }
 0x153   : > { %v8566_v51 = vpop.permute.xlu1 %1001  ;;  %v1022_v13 = vpop.permute.xlu2 %1021 }
 0x154   : > { %v1147_v34 = vrot.slane %v1022_v13, 4  ;;  %v1118_v13 = vperm.slane %v1114_v1, %v13030_v5 }
 0x156   : > { %v1127_v47 = vrot.slane %v1118_v13, 4 }
 0x158   : > { %v1006_v3 = vpop.permute.xlu0 %1005 }
 0x159   : > { %v1148_v7 = vsel %vm489_vm0, %v1147_v34, %v1006_v3  ;;  %v8619_v34 = vperm.slane %v1184_v48, %v8198_v4 }
 0x15a   : > { %v1152_v39 = vperm.slane %v1148_v7, %v13030_v5 }
 0x15b   : > { %v8584_v22 = vpop.permute.xlu1 %1007 }
 0x15c   : > { %v1153_v36 = vrot.slane %v1152_v39, 4 }
 0x160   : > { %v1012_v45 = vpop.permute.xlu0 %1011 }
 0x163   : > { %v1014_v46 = vpop.permute.xlu1 %1013 }
 0x164   : > { %v1141_v9 = vrot.slane %v1014_v46, 4  ;;  %v1225_v46 = vrot.slane %v1012_v45, 4 }
 0x166   : > { %v1142_v23 = vsel %vm489_vm0, %v1141_v9, %v8531_v63  ;;  %v1109_v63 = vrot.slane %v8569_v16, 4 }
 0x167   : > { %v1146_v37 = vperm.slane %v1142_v23, %v13030_v5 }
 0x168   : > { %v1018_v7 = vpop.permute.xlu0 %1017  ;;  %v8647_v12 = vsel %vm489_vm0, 0, %v1109_v63 }
 0x169   : > { %v1154_v1 = vsel %vm489_vm0, %v1153_v36, %v1146_v37  ;;  %v1155_v48 = vrot.slane %v1146_v37, 4  ;;  %v1119_v9 = vrot.slane %v1018_v7, 4  ;;  %v1395_v36 = vunpack.c.l.b16 %v1295_v40 }
 0x16a   : > { %v8634_v61 = vperm.slane %v1154_v1, %v8198_v4  ;;  %v1226_v1 = vsel %vm489_vm0, %v1225_v46, %v8548_v52 }
 0x16b   : > { %v1020_v55 = vpop.permute.xlu1 %1019  ;;  %v1120_v23 = vsel %vm489_vm0, %v1119_v9, %v8566_v51  ;;  %v1156_v41 = vsel %vm489_vm0, %v1152_v39, %v1155_v48  ;;  %v8652_v48 = vpack.i.b16 %v1285_v44, %v1284_v29  ;;  %v8661_v54 = vperm.slane %v1226_v1, %v13030_v5 }
 0x16c   : > { %v1231_v37 = vrot.slane %v1020_v55, 4  ;;  %v1124_v45 = vperm.slane %v1120_v23, %v13030_v5  ;;  %v1164_v7 = vperm.slane %v1156_v41, %v8198_v4  ;;  %v1165_v52 = vrot.slane %v8634_v61, 4 }
 0x16d   : > { %v1333_v44 = vshrl.u32 %v8634_v61, 16 }
 0x16e   : > { %v1232_v51 = vsel %vm489_vm0, %v1231_v37, %v8533_v42  ;;  %v1125_v39 = vrot.slane %v1124_v45, 4  ;;  %v1128_v40 = vsel %vm489_vm0, %v1124_v45, %v1127_v47  ;;  %v1167_v60 = vrot.slane %v1164_v7, 4 }
 0x16f   : > { %v8655_v41 = vperm.slane %v1232_v51, %v13030_v5  ;;  %v1136_v19 = vperm.slane %v1128_v40, %v8198_v4  ;;  %v1291_v47 = vshrl.u32 %v8647_v12, 16  ;;  %v1345_v23 = vshrl.u32 %v1164_v7, 16 }
 0x170   : > { %v1126_v42 = vsel %vm489_vm0, %v1125_v39, %v1118_v13  ;;  %v1024_v63 = vpop.permute.xlu0 %1023  ;;  %v1168_v13 = vsel %vm489_vm0, 0, %v1167_v60  ;;  %v1166_v51 = vsel %vm489_vm0, 0, %v1165_v52 }
 0x171   : > { %v1237_v29 = vrot.slane %v8655_v41, 4  ;;  %v1259_v46 = vrot.slane %v1024_v63, 4  ;;  %v1343_v9 = vpack.i.b16 %v1164_v7, %v1136_v19  ;;  %v1344_v55 = vshrl.u32 %v1136_v19, 16 }
 0x172   : > { %v1139_v37 = vrot.slane %v1136_v19, 4  ;;  %v8668_v45 = vperm.slane %v1126_v42, %v8198_v4  ;;  %v1339_v60 = vshrl.u32 %v1166_v51, 16 }
 0x173   : > { %v1260_v18 = vsel %vm489_vm0, %v1259_v46, %v8584_v22  ;;  %v1396_v1 = vunpack.c.l.b16 %v1343_v9  ;;  %v1346_v40 = vpack.i.b16 %v1345_v23, %v1344_v55  ;;  %v1238_v7 = vsel %vm489_vm0, %v1237_v29, %v8661_v54 }
 0x174   : > { %v1264_v39 = vperm.slane %v1260_v18, %v13030_v5  ;;  %v1140_v63 = vsel %vm489_vm0, 0, %v1139_v37  ;;  %v1332_v35 = vshrl.u32 %v8668_v45, 16  ;;  %v1137_v49 = vrot.slane %v8668_v45, 4 }
 0x175   : > { %v1397_v19 = vpack.c.b16 %v1396_v1, %v1395_v36  ;;  %v1349_v42 = vpack.i.b16 %v1168_v13, %v1140_v63  ;;  %v1401_v46 = vunpack.c.l.b16 %v1346_v40  ;;  %v1350_v23 = vshrl.u32 %v1140_v63, 16 }
 0x176   : > { %v1265_v22 = vrot.slane %v1264_v39, 4  ;;  %v1334_v9 = vpack.i.b16 %v1333_v44, %v1332_v35  ;;  %v1138_v55 = vsel %vm489_vm0, 0, %v1137_v49  ;;  %v1351_v37 = vshrl.u32 %v1168_v13, 16 }
 0x177   : > { %1398 = vrot.lane.b32.xlu1 %v1397_v19, %s7906_s9  ;;  %v1406_v52 = vunpack.c.l.b16 %v1349_v42  ;;  %v1402_v3 = vpack.c.b16 %v1401_v46, %v1400_v25  ;;  %v1337_v5 = vpack.i.b16 %v1166_v51, %v1138_v55  ;;  %v1244_v36 = vperm.slane %v1238_v7, %v8198_v4 }
 0x178   : > { %v1266_v18 = vsel %vm489_vm0, %v1265_v22, %v1258_v43  ;;  %v1381_v1 = vunpack.c.l.b16 %v1334_v9  ;;  %v1338_v17 = vshrl.u32 %v1138_v55, 16  ;;  %v1267_v35 = vrot.slane %v1258_v43, 4 }
 0x179   : > { %v1407_v29 = vpack.c.b16 %v1406_v52, %v1405_v10  ;;  %v1272_v40 = vperm.slane %v1266_v18, %v8198_v4  ;;  %1403 = vrot.lane.b32.xlu2 %v1402_v3, %s7907_s11  ;;  %v1380_v44 = vunpack.c.l.b16 %v8652_v48  ;;  %v1289_v49 = vpack.i.b16 %v8647_v12, %v8596_v59 }
 0x17a   : > { %v1303_v13 = vshrl.u32 %v8609_v53, 16  ;;  %v13031_v25 = vshrl.u32 %v8596_v59, 16  ;;  %v1340_v10 = vpack.i.b16 %v1339_v60, %v1338_v17  ;;  %v1352_v63 = vpack.i.b16 %v1351_v37, %v1350_v23 }
 0x17b   : > { %1408 = vrot.lane.b32.xlu0 %v1407_v29, %s7910_s27  ;;  %v1277_v7 = vrot.slane %v1272_v40, 4  ;;  %v1386_v19 = vunpack.c.l.b16 %v1337_v5  ;;  %v1308_v43 = vshrl.u32 %v8564_v11, 16  ;;  %v1357_v42 = vshrl.u32 %v1272_v40, 16 }
 0x17c   : > { %v1292_v51 = vpack.i.b16 %v1291_v47, %v13031_v25  ;;  %v1249_v3 = vrot.slane %v1244_v36, 4  ;;  %v1239_v48 = vrot.slane %v8661_v54, 4  ;;  %v1268_v22 = vsel %vm489_vm0, %v1264_v39, %v1267_v35 }
 0x17d   : > { %v1382_v12 = vpack.c.b16 %v1381_v1, %v1380_v44  ;;  %v1391_v46 = vunpack.c.l.b16 %v1340_v10  ;;  %v1385_v53 = vunpack.c.l.b16 %v1289_v49  ;;  %v13032_v9 = vshrl.u32 %v8593_v24, 16 }
 0x17e   : > { %v1356_v59 = vshrl.u32 %v1244_v36, 16  ;;  %v1278_v17 = vsel %vm489_vm0, 0, %v1277_v7  ;;  %v1240_v5 = vsel %vm489_vm0, %v8655_v41, %v1239_v48  ;;  %v1390_v47 = vunpack.c.l.b16 %v1292_v51 }
 0x17f   : > { %v1304_v52 = vpack.i.b16 %v1303_v13, %v13032_v9  ;;  %1383 = vrot.lane.b32.xlu1 %v1382_v12, %s7908_s28  ;;  %v1411_v60 = vunpack.c.l.b16 %v1352_v63  ;;  %v13033_v54 = vrot.slane %v8564_v11, 4  ;;  %v1387_v55 = vpack.c.b16 %v1386_v19, %v1385_v53 }
 0x180   : > { %v1358_v23 = vpack.i.b16 %v1357_v42, %v1356_v59  ;;  %v1250_v37 = vsel %vm489_vm0, 0, %v1249_v3  ;;  %v1276_v24 = vperm.slane %v1268_v22, %v8198_v4  ;;  %v1392_v18 = vpack.c.b16 %v1391_v46, %v1390_v47 }
 0x181   : > { %v1194_v39 = vsel %vm489_vm0, 0, %v13033_v54  ;;  %v1361_v29 = vpack.i.b16 %v1278_v17, %v1250_v37  ;;  %v1363_v1 = vshrl.u32 %v1278_v17, 16  ;;  %v1355_v35 = vpack.i.b16 %v1272_v40, %v1244_v36  ;;  %1388 = vrot.lane.b32.xlu2 %v1387_v55, %s7909_s22  ;;  %v8921_v54 = vld [vmem:[%s8124_s5 + $0xb8] sm:$0xf] }
 0x182   : > { %v1410_v41 = vunpack.c.l.b16 %v1304_v52  ;;  %v13034_v44 = vshrl.u32 %v8572_v58, 16  ;;  %v1313_v13 = vpack.i.b16 %v8605_v62, %v1194_v39  ;;  %v1195_v25 = vrot.slane %v8619_v34, 4 }
 0x183   : > { %1393 = vrot.lane.b32.xlu0 %v1392_v18, %s7912_s3  ;;  %v1314_v51 = vshrl.u32 %v1194_v39, 16  ;;  %v1362_v10 = vshrl.u32 %v1250_v37, 16  ;;  %v1248_v63 = vperm.slane %v1240_v5, %v8198_v4  ;;  %v13035_v7 = vpack.i.b16 %v8572_v58, %v8564_v11 }
 0x184   : > { %v1310_v49 = vpack.i.b16 %v13034_v44, %v1308_v43  ;;  %v1412_v40 = vpack.c.b16 %v1411_v60, %v1410_v41  ;;  %v1419_v19 = vunpack.c.l.b16 %v1358_v23  ;;  %v8719_v42 = vunpack.c.l.b16 %v1355_v35 }
 0x185   : > { %v8717_v36 = vunpack.c.l.b16 %v13035_v7  ;;  %v1331_v43 = vpack.i.b16 %v8634_v61, %v8668_v45  ;;  %v1424_v3 = vunpack.c.l.b16 %v1361_v29  ;;  %v1364_v48 = vpack.i.b16 %v1363_v1, %v1362_v10 }
 0x186   : > { %v1369_v22 = vshrl.u32 %v1276_v24, 16  ;;  %v1279_v12 = vrot.slane %v1276_v24, 4  ;;  %v1418_v46 = vunpack.c.l.b16 %v1310_v49  ;;  %v13036_v11 = vpack.i.b16 %v8569_v16, %v8575_v26 }
 0x187   : > { %v8730_v9 = vunpack.c.l.b16 %v1331_v43  ;;  %1413 = vrot.lane.b32.xlu1 %v1412_v40, %s7911_s30  ;;  %v1423_v52 = vunpack.c.l.b16 %v1313_v13  ;;  %v13037_v61 = vshrl.u32 %v8605_v62, 16  ;;  %v1368_v59 = vshrl.u32 %v1248_v63, 16 }
 0x188   : > { %v8728_v58 = vunpack.c.l.b16 %v13036_v11  ;;  %v1251_v17 = vrot.slane %v1248_v63, 4  ;;  %v1420_v5 = vpack.c.b16 %v1419_v19, %v1418_v46  ;;  %v1367_v47 = vpack.i.b16 %v1276_v24, %v1248_v63 }
 0x189   : > { %v1316_v45 = vpack.i.b16 %v13037_v61, %v1314_v51  ;;  %v1223_v60 = vrot.slane %v8599_v28, 4  ;;  %v1425_v16 = vpack.c.b16 %v1424_v3, %v1423_v52  ;;  %v1429_v26 = vunpack.c.l.b16 %v1364_v48  ;;  %v8756_v61 = vld [vmem:[%s8124_s5] sm:$0xf] }
 0x18a   : > { %v1370_v39 = vpack.i.b16 %v1369_v22, %v1368_v59  ;;  %v1280_v55 = vsel %vm489_vm0, 0, %v1279_v12  ;;  %1421 = vrot.lane.b32.xlu2 %v1420_v5, %s7908_s28  ;;  %v1319_v62 = vpack.i.b16 %v8599_v28, %v8619_v34  ;;  %v13038_v37 = vshrl.u32 %v8619_v34, 16  ;;  %v8766_v59 = vld [vmem:[%s8124_s5 + $0xc] sm:$0xf]  ;;  %v8776_v5 = vld [vmem:[%s8124_s5 + $0x18] sm:$0xf] }
 0x18b   : > { %1426 = vrot.lane.b32.xlu0 %v1425_v16, %s7909_s22  ;;  %v1428_v23 = vunpack.c.l.b16 %v1316_v45  ;;  %v13039_v24 = vshrl.u32 %v8599_v28, 16  ;;  %v1196_v29 = vsel %vm489_vm0, 0, %v1195_v25  ;;  %v1252_v1 = vsel %vm489_vm0, 0, %v1251_v17  ;;  %v8761_v45 = vld [vmem:[%s8124_s5 + $0x4] sm:$0xf] }
 0x18c   : > { %v1434_v35 = vunpack.c.l.b16 %v1367_v47  ;;  %v1375_v41 = vshrl.u32 %v1280_v55, 16  ;;  %v1439_v49 = vunpack.c.l.b16 %v1370_v39  ;;  %v1224_v13 = vsel %vm489_vm0, 0, %v1223_v60  ;;  %v8771_v17 = vld [vmem:[%s8124_s5 + $0x10] sm:$0xf]  ;;  %v8781_v47 = vld [vmem:[%s8124_s5 + $0x1c] sm:$0xf] }
 0x18d   : > { %v1322_v18 = vpack.i.b16 %v13039_v24, %v13038_v37  ;;  %v1430_v44 = vpack.c.b16 %v1429_v26, %v1428_v23  ;;  %v1373_v51 = vpack.i.b16 %v1280_v55, %v1252_v1  ;;  %v1433_v10 = vunpack.c.l.b16 %v1319_v62  ;;  %v8786_v60 = vld [vmem:[%s8124_s5 + $0x24] sm:$0xf]  ;;  %v8791_v16 = vld [vmem:[%s8124_s5 + $0x28] sm:$0xf]  ;;  %v8796_v26 = vld [vmem:[%s8124_s5 + $0x30] sm:$0xf] }
 0x18e   : > { %v1326_v63 = vshrl.u32 %v1196_v29, 16  ;;  %v1374_v7 = vshrl.u32 %v1252_v1, 16  ;;  %v1325_v40 = vpack.i.b16 %v1224_v13, %v1196_v29  ;;  %v1327_v19 = vshrl.u32 %v1224_v13, 16  ;;  %v8801_v39 = vld [vmem:[%s8124_s5 + $0x34] sm:$0xf] }
 0x18f   : > { %1431 = vrot.lane.b32.xlu1 %v1430_v44, %s7912_s3  ;;  %v1438_v34 = vunpack.c.l.b16 %v1322_v18  ;;  %v1435_v28 = vpack.c.b16 %v1434_v35, %v1433_v10  ;;  %v1444_v3 = vunpack.c.l.b16 %v1373_v51  ;;  %v8806_v55 = vld [vmem:[%s8124_s5 + $0x3c] sm:$0xf]  ;;  %v8811_v62 = vld [vmem:[%s8124_s5 + $0x40] sm:$0xf]  ;;  %v8816_v23 = vld [vmem:[%s8124_s5 + $0x48] sm:$0xf] }
 0x190   : > { %v1376_v25 = vpack.i.b16 %v1375_v41, %v1374_v7  ;;  %v1328_v48 = vpack.i.b16 %v1327_v19, %v1326_v63  ;;  %v1443_v22 = vunpack.c.l.b16 %v1325_v40  ;;  %v8821_v37 = vld [vmem:[%s8124_s5 + $0x4c] sm:$0xf]  ;;  %v8826_v24 = vld [vmem:[%s8124_s5 + $0x54] sm:$0xf]  ;;  %v8831_v18 = vld [vmem:[%s8124_s5 + $0x58] sm:$0xf] }
 0x191   : > { %v1440_v43 = vpack.c.b16 %v1439_v49, %v1438_v34  ;;  %13040 = vst [vmem:[#allocation10_spill] sm:$0xff] %v8826_v24  ;;  %v8836_v29 = vld [vmem:[%s8124_s5 + $0x60] sm:$0xf]  ;;  %v8841_v1 = vld [vmem:[%s8124_s5 + $0x64] sm:$0xf]  ;;  %v13048_v40 = vld [vmem:[#allocation14_spill] sm:$0xff] }
 0x192   : > { %1436 = vrot.lane.b32.xlu2 %v1435_v28, %s7906_s9  ;;  %v1449_v12 = vunpack.c.l.b16 %v1376_v25  ;;  %v1445_v46 = vpack.c.b16 %v1444_v3, %v1443_v22  ;;  %v1448_v11 = vunpack.c.l.b16 %v1328_v48  ;;  %v8846_v35 = vld [vmem:[%s8124_s5 + $0x6c] sm:$0xf]  ;;  %v8851_v41 = vld [vmem:[%s8124_s5 + $0x70] sm:$0xf]  ;;  %v8856_v44 = vld [vmem:[%s8124_s5 + $0x78] sm:$0xf] }
 0x193   : > { %1441 = vrot.lane.b32.xlu0 %v1440_v43, %s7907_s11  ;;  %13041 = vst [vmem:[#allocation21_spill] sm:$0xff] %v8851_v41  ;;  %v8861_v49 = vld [vmem:[%s8124_s5 + $0x7c] sm:$0xf]  ;;  %v8866_v51 = vld [vmem:[%s8124_s5 + $0x84] sm:$0xf]  ;;  %v13049_v28 = vld [vmem:[#allocation15_spill] sm:$0xff] }
 0x194   : > { %v1450_v52 = vpack.c.b16 %v1449_v12, %v1448_v11  ;;  %13042 = vst [vmem:[#allocation5_spill] sm:$0xff] %v8856_v44  ;;  %v8871_v10 = vld [vmem:[%s8124_s5 + $0x88] sm:$0xf]  ;;  %v8876_v63 = vld [vmem:[%s8124_s5 + $0x90] sm:$0xf]  ;;  %v763_v19 = vpack.i.b16 %v13049_v28, %v13048_v40  ;;  %v13050_v25 = vld [vmem:[#allocation12_spill] sm:$0xff] }
 0x195   : > { %13043 = vst [vmem:[#allocation16_spill] sm:$0xff] %v8861_v49  ;;  %v8881_v34 = vld [vmem:[%s8124_s5 + $0x94] sm:$0xf]  ;;  %v13051_v43 = vld [vmem:[#allocation13_spill] sm:$0xff]  ;;  %v8890_v48 = vld [vmem:[%s8124_s5 + $0x9c] sm:$0xf] }
 0x196   : > { %13044 = vst [vmem:[#allocation7_spill] sm:$0xff] %v8866_v51  ;;  %v715_v3 = vpack.i.b16 %v13051_v43, %v13050_v25  ;;  %v8895_v22 = vld [vmem:[%s8124_s5 + $0xa0] sm:$0xf]  ;;  %v8905_v25 = vld [vmem:[%s8124_s5 + $0xac] sm:$0xf] }
 0x197   : > { %1446 = vrot.lane.b32.xlu1 %v1445_v46, %s7910_s27  ;;  %13045 = vst [vmem:[#allocation19_spill] sm:$0xff] %v8871_v10  ;;  %v810_v46 = vunpack.c.l.b16 %v763_v19  ;;  %v8910_v43 = vld [vmem:[%s8124_s5 + $0xb4] sm:$0xf] }
 0x198   : > { %13046 = vst [vmem:[#allocation6_spill] sm:$0xff] %v8876_v63  ;;  %v809_v11 = vunpack.c.l.b16 %v715_v3 }
 0x199   : > { %13047 = vst [vmem:[#allocation17_spill] sm:$0xff] %v8881_v34 }
 0x19a   : > { %1451 = vrot.lane.b32.xlu2 %v1450_v52, %s7911_s30  ;;  %13052 = vst [vmem:[#allocation8_spill] sm:$0xff] %v8890_v48  ;;  %v8900_v52 = vld [vmem:[%s8124_s5 + $0xa8] sm:$0xf]  ;;  %v811_v40 = vpack.c.b16 %v810_v46, %v809_v11 }
 0x19b   : > { %1598 = vrot.lane.b32.xlu0 %v8756_v61, %s7914_s6  ;;  %13053 = vst [vmem:[#allocation20_spill] sm:$0xff] %v8895_v22 }
 0x19c   : > { %13054 = vst [vmem:[#allocation14_spill] sm:$0xff] %v8900_v52  ;;  %v888_v3 = vsel %vm885_vm1, %v811_v40, %v8501_v56  ;;  %v787_v56 = vpack.i.b16 %v8392_v57, %v8377_v32 }
 0x19d   : > { %13055 = vst [vmem:[#allocation15_spill] sm:$0xff] %v8905_v25  ;;  %v891_v46 = vsel %vm889_vm2, %v888_v3, %v8515_v14  ;;  %v13058_v14 = vpack.c.b16 %v8730_v9, %v8728_v58 }
 0x19e   : > { %13056 = vst [vmem:[#allocation12_spill] sm:$0xff] %v8910_v43  ;;  %v894_v11 = vsel %vm892_vm3, %v891_v46, %v8521_v6 }
 0x19f   : > { %1600 = vrot.lane.b32.xlu1 %v8761_v45, %s7914_s6  ;;  %13057 = vst [vmem:[#allocation13_spill] sm:$0xff] %v8921_v54  ;;  %v897_v40 = vsel %vm895_vm4, %v894_v11, %v8507_v2 }
 0x1a2   : > { %1602 = vrot.lane.b32.xlu2 %v8766_v59, %s7914_s6 }
 0x1a3   : > { %1604 = vrot.lane.b32.xlu0 %v8771_v17, %s7914_s6 }
 0x1a7   : > { %1606 = vrot.lane.b32.xlu1 %v8776_v5, %s7914_s6 }
 0x1aa   : > { %1608 = vrot.lane.b32.xlu2 %v8781_v47, %s7914_s6 }
 0x1ab   : > { %1610 = vrot.lane.b32.xlu0 %v8786_v60, %s7914_s6 }
 0x1af   : > { %1612 = vrot.lane.b32.xlu1 %v8791_v16, %s7914_s6 }
 0x1b2   : > { %1614 = vrot.lane.b32.xlu2 %v8796_v26, %s7914_s6 }
 0x1b3   : > { %1616 = vrot.lane.b32.xlu0 %v8801_v39, %s7914_s6 }
 0x1b7   : > { %1618 = vrot.lane.b32.xlu1 %v8806_v55, %s7914_s6 }
 0x1ba   : > { %1620 = vrot.lane.b32.xlu2 %v8811_v62, %s7914_s6 }
 0x1bb   : > { %1622 = vrot.lane.b32.xlu0 %v8816_v23, %s7914_s6 }
 0x1bf   : > { %1624 = vrot.lane.b32.xlu1 %v8821_v37, %s7914_s6 }
 0x1c2   : > { %1626 = vrot.lane.b32.xlu2 %v8826_v24, %s7914_s6 }
 0x1c3   : > { %1628 = vrot.lane.b32.xlu0 %v8831_v18, %s7914_s6 }
 0x1c7   : > { %1630 = vrot.lane.b32.xlu1 %v8836_v29, %s7914_s6 }
 0x1ca   : > { %1632 = vrot.lane.b32.xlu2 %v8841_v1, %s7914_s6 }
 0x1cb   : > { %1634 = vrot.lane.b32.xlu0 %v8846_v35, %s7914_s6 }
 0x1cf   : > { %1636 = vrot.lane.b32.xlu1 %v8851_v41, %s7914_s6 }
 0x1d2   : > { %1638 = vrot.lane.b32.xlu2 %v8856_v44, %s7914_s6 }
 0x1d3   : > { %1640 = vrot.lane.b32.xlu0 %v8861_v49, %s7914_s6  ;;  %v1404_v13 = vpop.permute.xlu2 %1403 }
 0x1d7   : > { %1642 = vrot.lane.b32.xlu1 %v8866_v51, %s7914_s6 }
 0x1da   : > { %1644 = vrot.lane.b32.xlu2 %v8871_v10, %s7914_s6 }
 0x1db   : > { %1646 = vrot.lane.b32.xlu0 %v8876_v63, %s7914_s6  ;;  %v1389_v7 = vpop.permute.xlu2 %1388 }
 0x1df   : > { %1648 = vrot.lane.b32.xlu1 %v8881_v34, %s7914_s6 }
 0x1e2   : > { %1650 = vrot.lane.b32.xlu2 %v8890_v48, %s7914_s6  ;;  %v848_v48 = vunpack.c.l.b16 %v787_v56 }
 0x1e3   : > { %1652 = vrot.lane.b32.xlu0 %v8895_v22, %s7914_s6 }
 0x1e4   : > { %v1422_v12 = vpop.permute.xlu2 %1421 }
 0x1e7   : > { %1654 = vrot.lane.b32.xlu1 %v8900_v52, %s7914_s6 }
 0x1e9   : > { %v1399_v28 = vpop.permute.xlu1 %1398 }
 0x1ea   : > { %1656 = vrot.lane.b32.xlu2 %v8905_v25, %s7914_s6  ;;  %v739_v25 = vpack.i.b16 %v8368_v15, %v8348_v31  ;;  %v900_v31 = vsel %vm898_vm5, %v897_v40, %v8481_v33 }
 0x1eb   : > { %1658 = vrot.lane.b32.xlu0 %v8910_v43, %s7914_s6  ;;  %v903_v58 = vsel %vm901_vm6, %v900_v31, %v8491_v38 }
 0x1ec   : > { %v1437_v19 = vpop.permute.xlu2 %1436  ;;  %v847_v15 = vunpack.c.l.b16 %v739_v25  ;;  %v906_v33 = vsel %vm904_vm7, %v903_v58, %v8519_v0 }
 0x1ed   : > { %v1409_v53 = vpop.permute.xlu0 %1408 }
 0x1ef   : > { %1660 = vrot.lane.b32.xlu1 %v8921_v54, %s7914_s6 }
 0x1f1   : > { %v1384_v22 = vpop.permute.xlu1 %1383 }
 0x1f2   : > { %v1455_v6 = vsel %vm885_vm1, %v13058_v14, %v1384_v22  ;;  %v849_v22 = vpack.c.b16 %v848_v48, %v847_v15 }
 0x1f3   : > { %v1457_v3 = vsel %vm889_vm2, %v1455_v6, %v1389_v7 }
 0x1f4   : > { %v1452_v46 = vpop.permute.xlu2 %1451 }
 0x1f5   : > { %v1394_v54 = vpop.permute.xlu0 %1393 }
 0x1f6   : > { %v1459_v57 = vsel %vm892_vm3, %v1457_v3, %v1394_v54 }
 0x1f7   : > { %v1461_v32 = vsel %vm895_vm4, %v1459_v57, %v1399_v28 }
 0x1f8   : > { %v1463_v2 = vsel %vm898_vm5, %v1461_v32, %v1404_v13  ;;  %v910_v13 = vsel %vm885_vm1, %v849_v22, %v8517_v27 }
 0x1f9   : > { %v1414_v9 = vpop.permute.xlu1 %1413  ;;  %v1465_v7 = vsel %vm901_vm6, %v1463_v2, %v1409_v53  ;;  %v912_v38 = vsel %vm889_vm2, %v910_v13, %v8499_v50  ;;  %v13059_v53 = vpack.c.b16 %v8719_v42, %v8717_v36 }
 0x1fa   : > { %v1467_v11 = vsel %vm904_vm7, %v1465_v7, %v1414_v9  ;;  %v914_v56 = vsel %vm892_vm3, %v912_v38, %v8523_v30 }
 0x1fb   : > { %1508 = vmatpush.bf16.msra.mxu0 %v1467_v11  ;;  %7621 = vmatpush.bf16.msra.mxu2 %v1467_v11  ;;  %v1471_v48 = vsel %vm885_vm1, %v13059_v53, %v1422_v12  ;;  %v916_v27 = vsel %vm895_vm4, %v914_v56, %v8525_v20  ;;  %v13060_v20 = vld [vmem:[#allocation18_spill] sm:$0xff] }
 0x1fc   : > { %v1603_v54 = vpop.permute.xlu2 %1602  ;;  %v918_v36 = vsel %vm898_vm5, %v916_v27, %v8511_v8 }
 0x1fd   : > { %v1427_v28 = vpop.permute.xlu0 %1426  ;;  %v920_v42 = vsel %vm901_vm6, %v918_v36, %v8527_v21 }
 0x1fe   : > { %v1473_v0 = vsel %vm889_vm2, %v1471_v48, %v1427_v28  ;;  %v922_v57 = vsel %vm904_vm7, %v920_v42, %v13060_v20 }
 0x1ff   : > { %1562 = vmatpush.bf16.msrb.mxu2 %v906_v33 }
 0x201   : > { %v1432_v25 = vpop.permute.xlu1 %1431 }
 0x202   : > { %v1475_v40 = vsel %vm892_vm3, %v1473_v0, %v1432_v25  ;;  %v13061_v0 = vld [vmem:[#allocation9_spill] sm:$0xff] }
 0x203   : > { %v1477_v50 = vsel %vm895_vm4, %v1475_v40, %v1437_v19 }
 0x204   : > { %v1609_v14 = vpop.permute.xlu2 %1608 }
 0x205   : > { %v1442_v6 = vpop.permute.xlu0 %1441 }
 0x206   : > { %v1479_v12 = vsel %vm898_vm5, %v1477_v50, %v1442_v6 }
 0x209   : > { %v1447_v30 = vpop.permute.xlu1 %1446 }
 0x20a   : > { %v1481_v3 = vsel %vm901_vm6, %v1479_v12, %v1447_v30 }
 0x20b   : > { %v1483_v31 = vsel %vm904_vm7, %v1481_v3, %v1452_v46 }
 0x20c   : > { %v1615_v15 = vpop.permute.xlu2 %1614  ;;  %1527 = vmatpush.bf16.msra.mxu1 %v1483_v31  ;;  %7622 = vmatpush.bf16.msra.mxu3 %v1483_v31 }
 0x20d   : > { %v1599_v19 = vpop.permute.xlu0 %1598  ;;  %v1694_v53 = vrot.slane %v1615_v15, 4 }
 0x20f   : > { %v1695_v6 = vsel %vm489_vm0, %v1694_v53, %v1599_v19 }
 0x210   : > { %1581 = vmatpush.bf16.msrb.mxu3 %v922_v57  ;;  %v1699_v3 = vperm.slane %v1695_v6, %v13061_v0 }
 0x211   : > { %v1601_v32 = vpop.permute.xlu1 %1600 }
 0x214   : > { %v1621_v8 = vpop.permute.xlu2 %1620 }
 0x215   : > { %v1605_v2 = vpop.permute.xlu0 %1604 }
 0x219   : > { %v1607_v58 = vpop.permute.xlu1 %1606 }
 0x21c   : > { %v1627_v21 = vpop.permute.xlu2 %1626 }
 0x21d   : > { %v1611_v9 = vpop.permute.xlu0 %1610  ;;  %v1728_v28 = vrot.slane %v1627_v21, 4 }
 0x21f   : > { %v1729_v56 = vsel %vm489_vm0, %v1728_v28, %v1611_v9  ;;  %v1708_v28 = vrot.slane %v1699_v3, 4 }
 0x220   : > { %v1733_v36 = vperm.slane %v1729_v56, %v13061_v0 }
 0x221   : > { %v1613_v7 = vpop.permute.xlu1 %1612 }
 0x222   : > { %v1734_v15 = vrot.slane %v1733_v36, 4 }
 0x224   : > { %v8971_v22 = vpop.permute.xlu2 %1632 }
 0x225   : > { %v1617_v11 = vpop.permute.xlu0 %1616 }
 0x229   : > { %v1619_v33 = vpop.permute.xlu1 %1618 }
 0x22a   : > { %v1722_v48 = vrot.slane %v1619_v33, 4  ;;  %v1834_v33 = vrot.slane %v1621_v8, 4 }
 0x22c   : > { %v8973_v46 = vpop.permute.xlu2 %1638  ;;  %v1723_v50 = vsel %vm489_vm0, %v1722_v48, %v1603_v54 }
 0x22d   : > { %v1623_v13 = vpop.permute.xlu0 %1622  ;;  %v1727_v31 = vperm.slane %v1723_v50, %v13061_v0  ;;  %v1835_v50 = vsel %vm489_vm0, %v1834_v33, %v1605_v2 }
 0x22e   : > { %v1700_v38 = vrot.slane %v1623_v13, 4 }
 0x22f   : > { %v1735_v19 = vsel %vm489_vm0, %v1734_v15, %v1727_v31  ;;  %v1736_v21 = vrot.slane %v1727_v31, 4 }
 0x230   : > { %v1701_v25 = vsel %vm489_vm0, %v1700_v38, %v1607_v58  ;;  %v8993_v13 = vperm.slane %v1735_v19, %v8198_v4 }
 0x231   : > { %v1705_v40 = vperm.slane %v1701_v25, %v13061_v0  ;;  %v1625_v27 = vpop.permute.xlu1 %1624  ;;  %v1806_v25 = vrot.slane %v1617_v11, 4 }
 0x232   : > { %v1812_v54 = vrot.slane %v1625_v27, 4  ;;  %13063 = vst [vmem:[#allocation22_spill] sm:$0xff] %v8993_v13  ;;  %v1737_v27 = vsel %vm489_vm0, %v1733_v36, %v1736_v21  ;;  %v1746_v21 = vrot.slane %v8993_v13, 4  ;;  %v1922_v44 = vshrl.u32 %v8993_v13, 16 }
 0x233   : > { %v1706_v42 = vrot.slane %v1705_v40, 4  ;;  %v1709_v56 = vsel %vm489_vm0, %v1705_v40, %v1708_v28  ;;  %v1745_v40 = vperm.slane %v1737_v27, %v8198_v4 }
 0x234   : > { %v8981_v12 = vpop.permute.xlu2 %1644  ;;  %v1813_v6 = vsel %vm489_vm0, %v1812_v54, %v1609_v14  ;;  %v1717_v11 = vperm.slane %v1709_v56, %v8198_v4  ;;  %v1839_v14 = vperm.slane %v1835_v50, %v13061_v0 }
 0x235   : > { %v1629_v30 = vpop.permute.xlu0 %1628  ;;  %v1707_v20 = vsel %vm489_vm0, %v1706_v42, %v1699_v3  ;;  %v1817_v3 = vperm.slane %v1813_v6, %v13061_v0  ;;  %v1934_v50 = vshrl.u32 %v1745_v40, 16 }
 0x236   : > { %v1840_v57 = vrot.slane %v1629_v30, 4  ;;  %v8990_v9 = vperm.slane %v1707_v20, %v8198_v4  ;;  %v1720_v28 = vrot.slane %v1717_v11, 4  ;;  %v1848_v6 = vrot.slane %v1839_v14, 4 }
 0x237   : > { %v1818_v33 = vrot.slane %v1817_v3, 4  ;;  %v1933_v20 = vshrl.u32 %v1717_v11, 16 }
 0x238   : > { %13062 = vst [vmem:[#allocation18_spill] sm:$0xff] %v8990_v9  ;;  %v1841_v38 = vsel %vm489_vm0, %v1840_v57, %v1613_v7  ;;  %v1807_v7 = vsel %vm489_vm0, %v1806_v25, %v1601_v32  ;;  %v1718_v2 = vrot.slane %v8990_v9, 4  ;;  %v1921_v57 = vshrl.u32 %v8990_v9, 16 }
 0x239   : > { %v8986_v58 = vpop.permute.xlu1 %1630  ;;  %v1845_v42 = vperm.slane %v1841_v38, %v13061_v0  ;;  %v1811_v32 = vperm.slane %v1807_v7, %v13061_v0  ;;  %v1748_v38 = vrot.slane %v1745_v40, 4  ;;  %v1747_v25 = vsel %vm489_vm0, 0, %v1746_v21 }
 0x23a   : > { %v1719_v7 = vsel %vm489_vm0, 0, %v1718_v2  ;;  %v1721_v51 = vsel %vm489_vm0, 0, %v1720_v28  ;;  %v1932_v9 = vpack.i.b16 %v1745_v40, %v1717_v11  ;;  %v9042_v13 = vpack.i.b16 %v1934_v50, %v1933_v20 }
 0x23b   : > { %v1846_v15 = vrot.slane %v1845_v42, 4  ;;  %v1820_v31 = vrot.slane %v1811_v32, 4  ;;  %v1849_v54 = vsel %vm489_vm0, %v1845_v42, %v1848_v6  ;;  %v1819_v56 = vsel %vm489_vm0, %v1818_v33, %v1811_v32 }
 0x23c   : > { %v8996_v53 = vpop.permute.xlu2 %1650  ;;  %v1927_v2 = vshrl.u32 %v1719_v7, 16  ;;  %v9040_v6 = vpack.i.b16 %v1922_v44, %v1921_v57  ;;  %v9045_v32 = vperm.slane %v1849_v54, %v8198_v4  ;;  %v1926_v33 = vpack.i.b16 %v1747_v25, %v1719_v7 }
 0x23d   : > { %v8998_v48 = vpop.permute.xlu0 %1634  ;;  %v1847_v8 = vsel %vm489_vm0, %v1846_v15, %v1839_v14  ;;  %v1749_v14 = vsel %vm489_vm0, 0, %v1748_v38  ;;  %v1821_v15 = vsel %vm489_vm0, %v1817_v3, %v1820_v31  ;;  %v1778_v42 = vrot.slane %v8996_v53, 4 }
 0x23e   : > { %v9037_v34 = vperm.slane %v1847_v8, %v8198_v4  ;;  %v1928_v28 = vshrl.u32 %v1747_v25, 16  ;;  %v1938_v38 = vpack.i.b16 %v1749_v14, %v1721_v51  ;;  %v9048_v3 = vperm.slane %v1819_v56, %v8198_v4 }
 0x23f   : > { %v1939_v8 = vshrl.u32 %v1721_v51, 16  ;;  %v1940_v40 = vshrl.u32 %v1749_v14, 16  ;;  %v1829_v53 = vperm.slane %v1821_v15, %v8198_v4  ;;  %v9055_v20 = vunpack.c.l.b16 %v1932_v9 }
 0x240   : > { %13064 = vst [vmem:[#allocation23_spill] sm:$0xff] %v9037_v34  ;;  %v9053_v31 = vpack.i.b16 %v1928_v28, %v1927_v2  ;;  %v1858_v57 = vrot.slane %v9037_v34, 4  ;;  %v1779_v54 = vsel %vm489_vm0, %v1778_v42, %v8998_v48  ;;  %v1860_v51 = vrot.slane %v9045_v32, 4 }
 0x241   : > { %v9007_v30 = vpop.permute.xlu1 %1636  ;;  %13065 = vst [vmem:[#allocation24_spill] sm:$0xff] %v9048_v3  ;;  %v9066_v50 = vunpack.c.l.b16 %v1938_v38  ;;  %v1830_v9 = vrot.slane %v9048_v3, 4  ;;  %v9069_v15 = vpack.i.b16 %v1940_v40, %v1939_v8  ;;  %v1832_v48 = vrot.slane %v1829_v53, 4 }
 0x242   : > { %v9072_v2 = vperm.slane %v1779_v54, %v13061_v0  ;;  %v1945_v28 = vshrl.u32 %v9048_v3, 16  ;;  %v1946_v38 = vshrl.u32 %v9037_v34, 16  ;;  %v1861_v8 = vsel %vm489_vm0, 0, %v1860_v51 }
 0x243   : > { %v1831_v44 = vsel %vm489_vm0, 0, %v1830_v9  ;;  %v1958_v42 = vshrl.u32 %v9045_v32, 16  ;;  %v1957_v3 = vshrl.u32 %v1829_v53, 16  ;;  %v1964_v51 = vshrl.u32 %v1861_v8, 16 }
 0x244   : > { %v1657_v27 = vpop.permute.xlu2 %1656  ;;  %v1951_v63 = vshrl.u32 %v1831_v44, 16 }
 0x245   : > { %v1641_v19 = vpop.permute.xlu0 %1640  ;;  %v1868_v52 = vrot.slane %v1657_v27, 4  ;;  %v9064_v27 = vunpack.c.l.b16 %v1926_v33 }
 0x247   : > { %v1869_v11 = vsel %vm489_vm0, %v1868_v52, %v1641_v19 }
 0x248   : > { %v1873_v52 = vperm.slane %v1869_v11, %v13061_v0  ;;  %v1859_v11 = vsel %vm489_vm0, 0, %v1858_v57 }
 0x249   : > { %v9028_v36 = vpop.permute.xlu1 %1642  ;;  %v1952_v56 = vshrl.u32 %v1859_v11, 16  ;;  %v1950_v9 = vpack.i.b16 %v1859_v11, %v1831_v44 }
 0x24a   : > { %v1874_v40 = vrot.slane %v1873_v52, 4 }
 0x24d   : > { %v1647_v21 = vpop.permute.xlu0 %1646 }
 0x24e   : > { %v1750_v7 = vrot.slane %v1647_v21, 4  ;;  %v1956_v21 = vpack.i.b16 %v9045_v32, %v1829_v53 }
 0x250   : > { %v1751_v57 = vsel %vm489_vm0, %v1750_v7, %v8986_v58  ;;  %v9096_v7 = vpack.i.b16 %v1958_v42, %v1957_v3 }
 0x251   : > { %v1649_v19 = vpop.permute.xlu1 %1648  ;;  %v1755_v32 = vperm.slane %v1751_v57, %v13061_v0  ;;  %v9118_v57 = vunpack.c.l.b16 %v1950_v9 }
 0x252   : > { %v1862_v14 = vrot.slane %v1649_v19, 4 }
 0x254   : > { %v1863_v33 = vsel %vm489_vm0, %v1862_v14, %v8971_v22  ;;  %v1833_v22 = vsel %vm489_vm0, 0, %v1832_v48 }
 0x255   : > { %v1867_v19 = vperm.slane %v1863_v33, %v13061_v0  ;;  %v1653_v54 = vpop.permute.xlu0 %1652  ;;  %v9092_v33 = vpack.i.b16 %v1946_v38, %v1945_v28  ;;  %v1963_v48 = vshrl.u32 %v1833_v22, 16  ;;  %v1792_v28 = vrot.slane %v9072_v2, 4 }
 0x256   : > { %v1890_v25 = vrot.slane %v1653_v54, 4  ;;  %v1962_v11 = vpack.i.b16 %v1861_v8, %v1833_v22 }
 0x257   : > { %v1875_v14 = vsel %vm489_vm0, %v1874_v40, %v1867_v19  ;;  %v1876_v34 = vrot.slane %v1867_v19, 4  ;;  %v9100_v19 = vpack.i.b16 %v1952_v56, %v1951_v63  ;;  %v9107_v38 = vpack.i.b16 %v1964_v51, %v1963_v48 }
 0x258   : > { %v9090_v43 = vperm.slane %v1875_v14, %v8198_v4  ;;  %v1891_v40 = vsel %vm489_vm0, %v1890_v25, %v9007_v30  ;;  %v1764_v63 = vrot.slane %v1755_v32, 4  ;;  %v9123_v51 = vunpack.c.l.b16 %v1962_v11 }
 0x259   : > { %v1655_v10 = vpop.permute.xlu1 %1654  ;;  %v1877_v58 = vsel %vm489_vm0, %v1873_v52, %v1876_v34  ;;  %v9112_v52 = vunpack.c.l.b16 %v1956_v21  ;;  %v1895_v30 = vperm.slane %v1891_v40, %v13061_v0 }
 0x25a   : > { %13066 = vst [vmem:[#allocation25_spill] sm:$0xff] %v9090_v43  ;;  %v1756_v53 = vrot.slane %v1655_v10, 4  ;;  %v9103_v54 = vperm.slane %v1877_v58, %v8198_v4  ;;  %v1886_v3 = vrot.slane %v9090_v43, 4 }
 0x25c   : > { %v1757_v34 = vsel %vm489_vm0, %v1756_v53, %v8973_v46  ;;  %v1888_v10 = vrot.slane %v9103_v54, 4  ;;  %v9130_v53 = vsel %vm489_vm0, 0, %v1886_v3 }
 0x25d   : > { %v1761_v25 = vperm.slane %v1757_v34, %v13061_v0  ;;  %v1659_v56 = vpop.permute.xlu0 %1658  ;;  %v1904_v34 = vrot.slane %v1895_v30, 4 }
 0x25e   : > { %v1784_v8 = vrot.slane %v1659_v56, 4  ;;  %v9133_v9 = vsel %vm489_vm0, 0, %v1888_v10 }
 0x25f   : > { %v1762_v14 = vrot.slane %v1761_v25, 4  ;;  %v1765_v21 = vsel %vm489_vm0, %v1761_v25, %v1764_v63  ;;  %v1993_v25 = vshrl.u32 %v9090_v43, 16 }
 0x260   : > { %v1785_v48 = vsel %vm489_vm0, %v1784_v8, %v9028_v36  ;;  %v1773_v40 = vperm.slane %v1765_v21, %v8198_v4 }
 0x261   : > { %v1763_v56 = vsel %vm489_vm0, %v1762_v14, %v1755_v32  ;;  %v1789_v63 = vperm.slane %v1785_v48, %v13061_v0  ;;  %v1661_v11 = vpop.permute.xlu1 %1660 }
 0x262   : > { %v1896_v58 = vrot.slane %v1661_v11, 4  ;;  %v9139_v22 = vperm.slane %v1763_v56, %v8198_v4  ;;  %v1776_v36 = vrot.slane %v1773_v40, 4  ;;  %v1981_v11 = vshrl.u32 %v1773_v40, 16 }
 0x263   : > { %v1790_v3 = vrot.slane %v1789_v63, 4  ;;  %v1793_v21 = vsel %vm489_vm0, %v1789_v63, %v1792_v28 }
 0x264   : > { %13067 = vst [vmem:[#allocation26_spill] sm:$0xff] %v9139_v22  ;;  %v1897_v32 = vsel %vm489_vm0, %v1896_v58, %v8981_v12  ;;  %v1774_v14 = vrot.slane %v9139_v22, 4  ;;  %v1801_v48 = vperm.slane %v1793_v21, %v8198_v4  ;;  %v1969_v8 = vshrl.u32 %v9139_v22, 16 }
 0x265   : > { %v1791_v56 = vsel %vm489_vm0, %v1790_v3, %v9072_v2  ;;  %v1901_v42 = vperm.slane %v1897_v32, %v13061_v0  ;;  %v1777_v28 = vsel %vm489_vm0, 0, %v1776_v36 }
 0x266   : > { %v9155_v63 = vperm.slane %v1791_v56, %v8198_v4  ;;  %v1775_v46 = vsel %vm489_vm0, 0, %v1774_v14  ;;  %v1980_v12 = vpack.i.b16 %v1801_v48, %v1773_v40  ;;  %v1982_v58 = vshrl.u32 %v1801_v48, 16 }
 0x267   : > { %v1902_v10 = vrot.slane %v1901_v42, 4  ;;  %v1905_v21 = vsel %vm489_vm0, %v1901_v42, %v1904_v34  ;;  %v1975_v44 = vshrl.u32 %v1775_v46, 16  ;;  %v1804_v43 = vrot.slane %v1801_v48, 4 }
 0x268   : > { %13068 = vst [vmem:[#allocation27_spill] sm:$0xff] %v9155_v63  ;;  %v1970_v2 = vshrl.u32 %v9155_v63, 16  ;;  %v1802_v3 = vrot.slane %v9155_v63, 4  ;;  %v9161_v32 = vunpack.c.l.b16 %v1980_v12  ;;  %v1983_v22 = vpack.i.b16 %v1982_v58, %v1981_v11 }
 0x269   : > { %v1903_v36 = vsel %vm489_vm0, %v1902_v10, %v1895_v30  ;;  %v1805_v56 = vsel %vm489_vm0, 0, %v1804_v43  ;;  %v1987_v0 = vshrl.u32 %v1777_v28, 16  ;;  %v1913_v40 = vperm.slane %v1905_v21, %v8198_v4 }
 0x26a   : > { %v1971_v14 = vpack.i.b16 %v1970_v2, %v1969_v8  ;;  %v1803_v49 = vsel %vm489_vm0, 0, %v1802_v3  ;;  %v2034_v42 = vpack.c.b16 %v9161_v32, %v9055_v20  ;;  %v2038_v34 = vunpack.c.l.b16 %v1983_v22 }
 0x26b   : > { %v1974_v48 = vpack.i.b16 %v1803_v49, %v1775_v46  ;;  %v1976_v24 = vshrl.u32 %v1803_v49, 16  ;;  %v1986_v63 = vpack.i.b16 %v1805_v56, %v1777_v28  ;;  %v1988_v12 = vshrl.u32 %v1805_v56, 16 }
 0x26c   : > { %v2018_v41 = vunpack.c.l.b16 %v1971_v14  ;;  %v13069_v11 = vunpack.c.l.b16 %v9042_v13  ;;  %v9172_v43 = vperm.slane %v1903_v36, %v8198_v4  ;;  %v2004_v10 = vpack.i.b16 %v1913_v40, %v9103_v54 }
 0x26d   : > { %v2023_v8 = vunpack.c.l.b16 %v1974_v48  ;;  %v1977_v58 = vpack.i.b16 %v1976_v24, %v1975_v44  ;;  %v2043_v21 = vunpack.c.l.b16 %v1986_v63  ;;  %v1989_v2 = vpack.i.b16 %v1988_v12, %v1987_v0 }
 0x26e   : > { %v2039_v30 = vpack.c.b16 %v2038_v34, %v13069_v11  ;;  %v13070_v20 = vunpack.c.l.b16 %v9040_v6  ;;  %v1994_v49 = vshrl.u32 %v9172_v43, 16  ;;  %v1914_v46 = vrot.slane %v9172_v43, 4 }
 0x26f   : > { %v9179_v28 = vunpack.c.l.b16 %v2004_v10  ;;  %v2024_v13 = vpack.c.b16 %v2023_v8, %v9064_v27  ;;  %v2028_v3 = vunpack.c.l.b16 %v1977_v58  ;;  %v2044_v32 = vpack.c.b16 %v2043_v21, %v9066_v50 }
 0x270   : > { %v2019_v22 = vpack.c.b16 %v2018_v41, %v13070_v20  ;;  %v2048_v36 = vunpack.c.l.b16 %v1989_v2  ;;  %v1995_v24 = vpack.i.b16 %v1994_v49, %v1993_v25  ;;  %v1915_v0 = vsel %vm489_vm0, 0, %v1914_v46 }
 0x271   : > { %v2072_v41 = vpack.c.b16 %v9179_v28, %v9112_v52  ;;  %v2006_v6 = vshrl.u32 %v1913_v40, 16  ;;  %2025 = vrot.lane.b32.xlu0 %v2024_v13, %s7909_s22  ;;  %v13071_v44 = vunpack.c.l.b16 %v9053_v31  ;;  %v13072_v27 = vunpack.c.l.b16 %v9069_v15 }
 0x272   : > { %2020 = vrot.lane.b32.xlu2 %v2019_v22, %s7908_s28  ;;  %v1998_v50 = vpack.i.b16 %v1915_v0, %v9130_v53  ;;  %v2000_v14 = vshrl.u32 %v1915_v0, 16  ;;  %v2056_v34 = vunpack.c.l.b16 %v1995_v24  ;;  %v13073_v25 = vshrl.u32 %v9103_v54, 16 }
 0x273   : > { %v2029_v63 = vpack.c.b16 %v2028_v3, %v13071_v44  ;;  %v9192_v56 = vpack.c.b16 %v2048_v36, %v13072_v27  ;;  %v1916_v12 = vrot.slane %v1913_v40, 4  ;;  %v13074_v31 = vshrl.u32 %v9130_v53, 16 }
 0x274   : > { %v2007_v48 = vpack.i.b16 %v2006_v6, %v13073_v25  ;;  %v9198_v11 = vunpack.c.l.b16 %v1998_v50  ;;  %v7472_v15 = vrot.slane %v8756_v61, 9  ;;  %v13075_v8 = vunpack.c.l.b16 %v9092_v33 }
 0x275   : > { %2030 = vrot.lane.b32.xlu1 %v2029_v63, %s7912_s3  ;;  %v2001_v10 = vpack.i.b16 %v2000_v14, %v13074_v31  ;;  %v1917_v2 = vsel %vm489_vm0, 0, %v1916_v12  ;;  %v12916_v54 = vrot.slane %v8761_v45, 5  ;;  %v13078_v61 = vunpack.c.l.b16 %v9096_v7 }
 0x276   : > { %v2057_v58 = vpack.c.b16 %v2056_v34, %v13075_v8  ;;  %v2076_v21 = vunpack.c.l.b16 %v2007_v48  ;;  %v2062_v40 = vpack.c.b16 %v9198_v11, %v9118_v57  ;;  %v2010_v22 = vpack.i.b16 %v1917_v2, %v9133_v9  ;;  %v13086_v8 = vld [vmem:[#allocation10_spill] sm:$0xff] }
 0x277   : > { %v2066_v20 = vunpack.c.l.b16 %v2001_v10  ;;  %v2012_v49 = vshrl.u32 %v1917_v2, 16  ;;  %v9222_v46 = vsel %vm9210_vm10, %v7472_v15, %v12916_v54  ;;  %v7473_v57 = vrot.slane %v8766_v59, 9  ;;  %v13085_v15 = vld [vmem:[#allocation21_spill] sm:$0xff] }
 0x278   : > { %v9216_v33 = vpack.c.b16 %v2076_v21, %v13078_v61  ;;  %v12915_v13 = vrot.slane %v8771_v17, 5  ;;  %v13079_v3 = vunpack.c.l.b16 %v9100_v19  ;;  %v9230_v24 = vunpack.c.l.b16 %v2010_v22 }
 0x279   : > { %v13080_v7 = vshrl.u32 %v9133_v9, 16  ;;  %v12914_v6 = vrot.slane %v8781_v47, 5  ;;  %v12913_v44 = vrot.slane %v8791_v16, 5  ;;  %v7476_v19 = vrot.slane %v8796_v26, 9  ;;  %2040 = vrot.lane.b32.xlu0 %v2039_v30, %s7907_s11 }
 0x27a   : > { %v9228_v36 = vpack.c.b16 %v2066_v20, %v13079_v3  ;;  %2035 = vrot.lane.b32.xlu2 %v2034_v42, %s7906_s9  ;;  %v9240_v59 = vsel %vm9210_vm10, %v7473_v57, %v12915_v13  ;;  %v12912_v63 = vrot.slane %v8801_v39, 5  ;;  %v13081_v42 = vrot.slane %v8776_v5, 9  ;;  %v13088_v20 = vld [vmem:[#allocation16_spill] sm:$0xff]  ;;  %v13090_v57 = vld [vmem:[#allocation6_spill] sm:$0xff] }
 0x27b   : > { %v2013_v0 = vpack.i.b16 %v2012_v49, %v13080_v7  ;;  %v7477_v14 = vrot.slane %v8806_v55, 9  ;;  %v13082_v26 = vrot.slane %v8786_v60, 9  ;;  %v12911_v5 = vrot.slane %v8811_v62, 5  ;;  %v13089_v49 = vld [vmem:[#allocation19_spill] sm:$0xff]  ;;  %v13091_v7 = vld [vmem:[#allocation17_spill] sm:$0xff] }
 0x27c   : > { %v9254_v50 = vsel %vm9210_vm10, %v13081_v42, %v12914_v6  ;;  %v9269_v34 = vsel %vm9210_vm10, %v7476_v19, %v12912_v63  ;;  %v12909_v25 = vrot.slane %v8821_v37, 5  ;;  %v13083_v55 = vunpack.c.l.b16 %v9107_v38  ;;  %v13092_v19 = vld [vmem:[#allocation8_spill] sm:$0xff]  ;;  %v13093_v42 = vld [vmem:[#allocation5_spill] sm:$0xff] }
 0x27d   : > { %v2086_v27 = vunpack.c.l.b16 %v2013_v0  ;;  %v9263_v30 = vsel %vm9210_vm10, %v13082_v26, %v12913_v44  ;;  %2045 = vrot.lane.b32.xlu1 %v2044_v32, %s7910_s27  ;;  %v12908_v60 = vrot.slane %v8831_v18, 5  ;;  %v7480_v12 = vrot.slane %v8836_v29, 9 }
 0x27e   : > { %v12905_v11 = vrot.slane %v8841_v1, 5  ;;  %v9285_v31 = vsel %vm9210_vm10, %v7477_v14, %v12911_v5  ;;  %v13084_v32 = vrot.slane %v8816_v23, 9  ;;  %v7481_v10 = vrot.slane %v8846_v35, 9 }
 0x27f   : > { %v9276_v48 = vpack.c.b16 %v2086_v27, %v13083_v55  ;;  %v12904_v29 = vrot.slane %v13085_v15, 5  ;;  %v13087_v21 = vrot.slane %v13086_v8, 9  ;;  %v12902_v22 = vrot.slane %v13088_v20, 5  ;;  %v13096_v55 = vld [vmem:[#allocation7_spill] sm:$0xff] }
 0x280   : > { %v9293_v38 = vsel %vm9210_vm10, %v13084_v32, %v12909_v25  ;;  %v9309_v23 = vsel %vm9210_vm10, %v7480_v12, %v12905_v11  ;;  %v12901_v35 = vrot.slane %v13089_v49, 5  ;;  %v7484_v3 = vrot.slane %v13090_v57, 9 }
 0x281   : > { %v9303_v2 = vsel %vm9210_vm10, %v13087_v21, %v12908_v60  ;;  %v9317_v61 = vsel %vm9210_vm10, %v7481_v10, %v12904_v29  ;;  %v12903_v0 = vrot.slane %v13091_v7, 5  ;;  %v7485_v27 = vrot.slane %v13092_v19, 9  ;;  %v13099_v10 = vld [vmem:[#allocation20_spill] sm:$0xff]  ;;  %v13100_v21 = vld [vmem:[#allocation15_spill] sm:$0xff]  ;;  %2058 = vrot.lane.b32.xlu0 %v2057_v58, %s7908_s28 }
 0x282   : > { %v13094_v14 = vrot.slane %v13093_v42, 9  ;;  %v13097_v12 = vrot.slane %v13096_v55, 9  ;;  %v12906_v8 = vrot.slane %v13099_v10, 5  ;;  %v12907_v57 = vrot.slane %v13100_v21, 5  ;;  %2050 = vrot.lane.b32.xlu2 %v9192_v56, %s7911_s30  ;;  %v13102_v42 = vld [vmem:[#allocation13_spill] sm:$0xff]  ;;  %v13104_v56 = vld [vmem:[#allocation14_spill] sm:$0xff] }
 0x283   : > { %v9346_v19 = vsel %vm9210_vm10, %v7484_v3, %v12903_v0  ;;  %v2352_v55 = vrot.slane %v9269_v34, 4  ;;  %v2380_v0 = vrot.slane %v9285_v31, 4  ;;  %v2386_v29 = vrot.slane %v9303_v2, 4  ;;  %v13107_v58 = vld [vmem:[#allocation12_spill] sm:$0xff] }
 0x284   : > { %v9328_v26 = vsel %vm9210_vm10, %v13094_v14, %v12902_v22  ;;  %v9336_v32 = vsel %vm9210_vm10, %v13097_v12, %v12901_v35  ;;  %13101 = vst [vmem:[#allocation16_spill] sm:$0xff] %v9346_v19  ;;  %v12910_v14 = vrot.slane %v13102_v42, 5  ;;  %v2358_v12 = vrot.slane %v9293_v38, 4 }
 0x285   : > { %13095 = vst [vmem:[#allocation21_spill] sm:$0xff] %v9328_v26  ;;  %v9356_v35 = vsel %vm9210_vm10, %v7485_v27, %v12906_v8  ;;  %v13105_v22 = vrot.slane %v13104_v56, 9  ;;  %v13108_v11 = vrot.slane %v13107_v58, 9  ;;  %v2353_v8 = vsel %vm489_vm0, %v2352_v55, %v9222_v46  ;;  %2063 = vrot.lane.b32.xlu1 %v2062_v40, %s7909_s22 }
 0x286   : > { %13098 = vst [vmem:[#allocation10_spill] sm:$0xff] %v9336_v32  ;;  %v2359_v56 = vsel %vm489_vm0, %v2358_v12, %v9254_v50  ;;  %v2381_v58 = vsel %vm489_vm0, %v2380_v0, %v9240_v59 }
 0x287   : > { %13103 = vst [vmem:[#allocation19_spill] sm:$0xff] %v9356_v35  ;;  %v9364_v3 = vsel %vm9210_vm10, %v13105_v22, %v12907_v57  ;;  %v9374_v27 = vsel %vm9210_vm10, %v13108_v11, %v12910_v14  ;;  %v2408_v22 = vrot.slane %v9346_v19, 4  ;;  %v13110_v57 = vld [vmem:[#allocation9_spill] sm:$0xff]  ;;  %v2387_v11 = vsel %vm489_vm0, %v2386_v29, %v9263_v30 }
 0x288   : > { %13106 = vst [vmem:[#allocation6_spill] sm:$0xff] %v9364_v3  ;;  %v2357_v60 = vperm.slane %v2353_v8, %v13110_v57  ;;  %v2363_v25 = vperm.slane %v2359_v56, %v13110_v57  ;;  %v2385_v14 = vperm.slane %v2381_v58, %v13110_v57  ;;  %v2391_v55 = vperm.slane %v2387_v11, %v13110_v57 }
 0x289   : > { %13109 = vst [vmem:[#allocation17_spill] sm:$0xff] %v9374_v27  ;;  %v2409_v12 = vsel %vm489_vm0, %v2408_v22, %v9309_v23  ;;  %v2414_v5 = vrot.slane %v9364_v3, 4  ;;  %v2436_v56 = vrot.slane %v9356_v35, 4  ;;  %v2442_v63 = vrot.slane %v9374_v27, 4  ;;  %2073 = vrot.lane.b32.xlu0 %v2072_v41, %s7906_s9 }
 0x28a   : > { %v2364_v40 = vrot.slane %v2363_v25, 4  ;;  %v2413_v8 = vperm.slane %v2409_v12, %v13110_v57  ;;  %v2392_v0 = vrot.slane %v2391_v55, 4  ;;  %v2366_v44 = vrot.slane %v2357_v60, 4  ;;  %2068 = vrot.lane.b32.xlu2 %v9228_v36, %s7912_s3 }
 0x28b   : > { %v2415_v29 = vsel %vm489_vm0, %v2414_v5, %v9328_v26  ;;  %v2394_v58 = vrot.slane %v2385_v14, 4  ;;  %v2437_v22 = vsel %vm489_vm0, %v2436_v56, %v9317_v61  ;;  %v2443_v12 = vsel %vm489_vm0, %v2442_v63, %v9336_v32 }
 0x28c   : > { %v2365_v11 = vsel %vm489_vm0, %v2364_v40, %v2357_v60  ;;  %v2419_v6 = vperm.slane %v2415_v29, %v13110_v57  ;;  %v2393_v5 = vsel %vm489_vm0, %v2392_v0, %v2385_v14  ;;  %v2441_v54 = vperm.slane %v2437_v22, %v13110_v57 }
 0x28d   : > { %v9407_v13 = vperm.slane %v2365_v11, %v8198_v4  ;;  %v2447_v60 = vperm.slane %v2443_v12, %v13110_v57  ;;  %v9417_v40 = vperm.slane %v2393_v5, %v8198_v4  ;;  %v2367_v36 = vsel %vm489_vm0, %v2363_v25, %v2366_v44  ;;  %2078 = vrot.lane.b32.xlu1 %v9216_v33, %s7907_s11 }
 0x28e   : > { %v2420_v63 = vrot.slane %v2419_v6, 4  ;;  %v2395_v56 = vsel %vm489_vm0, %v2391_v55, %v2394_v58  ;;  %v2375_v11 = vperm.slane %v2367_v36, %v8198_v4  ;;  %v2422_v22 = vrot.slane %v2413_v8, 4 }
 0x28f   : > { %v2448_v29 = vrot.slane %v2447_v60, 4  ;;  %v2579_v14 = vshrl.u32 %v9407_v13, 16  ;;  %v2376_v0 = vrot.slane %v9407_v13, 4  ;;  %v2580_v28 = vshrl.u32 %v9417_v40, 16 }
 0x290   : > { %v2421_v52 = vsel %vm489_vm0, %v2420_v63, %v2413_v8  ;;  %v2404_v41 = vrot.slane %v9417_v40, 4  ;;  %v2403_v44 = vperm.slane %v2395_v56, %v8198_v4  ;;  %v2423_v8 = vsel %vm489_vm0, %v2419_v6, %v2422_v22 }
 0x291   : > { %v9431_v25 = vperm.slane %v2421_v52, %v8198_v4  ;;  %v2449_v55 = vsel %vm489_vm0, %v2448_v29, %v2441_v54  ;;  %v2377_v58 = vsel %vm489_vm0, 0, %v2376_v0  ;;  %v2581_v33 = vpack.i.b16 %v2580_v28, %v2579_v14  ;;  %2088 = vrot.lane.b32.xlu0 %v9276_v48, %s7911_s30 }
 0x292   : > { %v9436_v12 = vperm.slane %v2449_v55, %v8198_v4  ;;  %v2405_v5 = vsel %vm489_vm0, 0, %v2404_v41  ;;  %v2585_v63 = vshrl.u32 %v2377_v58, 16  ;;  %v13111_v14 = vpack.c.b16 %v9230_v24, %v9123_v51 }
 0x293   : > { %v2627_v36 = vshrl.u32 %v9431_v25, 16  ;;  %v2432_v9 = vrot.slane %v9431_v25, 4  ;;  %v2584_v56 = vpack.i.b16 %v2405_v5, %v2377_v58  ;;  %v2586_v27 = vshrl.u32 %v2405_v5, 16 }
 0x294   : > { %v2628_v52 = vshrl.u32 %v9436_v12, 16  ;;  %v2675_v3 = vunpack.c.l.b16 %v2581_v33  ;;  %v2460_v29 = vrot.slane %v9436_v12, 4  ;;  %2083 = vrot.lane.b32.xlu2 %v13111_v14, %s7910_s27  ;;  %v2431_v55 = vperm.slane %v2423_v8, %v8198_v4 }
 0x295   : > { %v2433_v0 = vsel %vm489_vm0, 0, %v2432_v9  ;;  %v2680_v28 = vunpack.c.l.b16 %v2584_v56  ;;  %v2587_v41 = vpack.i.b16 %v2586_v27, %v2585_v63  ;;  %v2450_v35 = vrot.slane %v2441_v54, 4 }
 0x296   : > { %v2629_v58 = vpack.i.b16 %v2628_v52, %v2627_v36  ;;  %v2461_v33 = vsel %vm489_vm0, 0, %v2460_v29  ;;  %v2633_v5 = vshrl.u32 %v2433_v0, 16  ;;  %v2590_v32 = vpack.i.b16 %v2403_v44, %v2375_v11 }
 0x297   : > { %v2632_v6 = vpack.i.b16 %v2461_v33, %v2433_v0  ;;  %v2634_v22 = vshrl.u32 %v2461_v33, 16  ;;  %v2685_v19 = vunpack.c.l.b16 %v2587_v41  ;;  %v2451_v24 = vsel %vm489_vm0, %v2447_v60, %v2450_v35 }
 0x298   : > { %v2676_v51 = vunpack.c.l.b16 %v2629_v58  ;;  %v2591_v9 = vshrl.u32 %v2375_v11, 16  ;;  %v2592_v56 = vshrl.u32 %v2403_v44, 16  ;;  %v2459_v8 = vperm.slane %v2451_v24, %v8198_v4 }
 0x299   : > { %v2681_v27 = vunpack.c.l.b16 %v2632_v6  ;;  %v2635_v63 = vpack.i.b16 %v2634_v22, %v2633_v5  ;;  %v2690_v14 = vunpack.c.l.b16 %v2590_v32  ;;  %v2639_v52 = vshrl.u32 %v2431_v55, 16 }
 0x29a   : > { %v2677_v48 = vpack.c.b16 %v2676_v51, %v2675_v3  ;;  %v2593_v36 = vpack.i.b16 %v2592_v56, %v2591_v9  ;;  %v2378_v29 = vrot.slane %v2375_v11, 4  ;;  %v2638_v0 = vpack.i.b16 %v2459_v8, %v2431_v55  ;;  %v438_v51 = vld [vmem:[%s8124_s5 + $0x8] sm:$0x3]  ;;  %v441_v56 = vld [vmem:[%s8124_s5 + $0x14] sm:$0x3] }
 0x29b   : > { %v2682_v26 = vpack.c.b16 %v2681_v27, %v2680_v28  ;;  %v2686_v54 = vunpack.c.l.b16 %v2635_v63  ;;  %v2640_v41 = vshrl.u32 %v2459_v8, 16  ;;  %v2406_v60 = vrot.slane %v2403_v44, 4 }
 0x29c   : > { %2678 = vrot.lane.b32.xlu1 %v2677_v48, %s7908_s28  ;;  %v2695_v58 = vunpack.c.l.b16 %v2593_v36  ;;  %v2379_v35 = vsel %vm489_vm0, 0, %v2378_v29  ;;  %v2434_v33 = vrot.slane %v2431_v55, 4  ;;  %v2691_v3 = vunpack.c.l.b16 %v2638_v0  ;;  %v444_v36 = vld [vmem:[%s8124_s5 + $0x20] sm:$0x3] }
 0x29d   : > { %2683 = vrot.lane.b32.xlu2 %v2682_v26, %s7909_s22  ;;  %v2687_v32 = vpack.c.b16 %v2686_v54, %v2685_v19  ;;  %v2641_v5 = vpack.i.b16 %v2640_v41, %v2639_v52  ;;  %v2462_v6 = vrot.slane %v2459_v8, 4  ;;  %v2407_v11 = vsel %vm489_vm0, 0, %v2406_v60 }
 0x29e   : > { %v2435_v28 = vsel %vm489_vm0, 0, %v2434_v33  ;;  %v2597_v22 = vshrl.u32 %v2379_v35, 16  ;;  %v13112_v24 = vrot.slane %v8761_v45, 5  ;;  %v2692_v44 = vpack.c.b16 %v2691_v3, %v2690_v14  ;;  %v447_v33 = vld [vmem:[%s8124_s5 + $0x2c] sm:$0x3] }
 0x29f   : > { %2688 = vrot.lane.b32.xlu0 %v2687_v32, %s7912_s3  ;;  %v2696_v55 = vunpack.c.l.b16 %v2641_v5  ;;  %v2463_v26 = vsel %vm489_vm0, 0, %v2462_v6  ;;  %v2596_v19 = vpack.i.b16 %v2407_v11, %v2379_v35  ;;  %v2598_v63 = vshrl.u32 %v2407_v11, 16  ;;  %v450_v35 = vld [vmem:[%s8124_s5 + $0x38] sm:$0x3]  ;;  %v453_v3 = vld [vmem:[%s8124_s5 + $0x44] sm:$0x3] }
 0x2a0   : > { %v2212_v9 = vrot.slane %v13112_v24, 4  ;;  %v2644_v27 = vpack.i.b16 %v2463_v26, %v2435_v28  ;;  %v2645_v8 = vshrl.u32 %v2435_v28, 16  ;;  %v2646_v48 = vshrl.u32 %v2463_v26, 16  ;;  %v459_v26 = vld [vmem:[%s8124_s5 + $0x5c] sm:$0x3] }
 0x2a1   : > { %v2697_v52 = vpack.c.b16 %v2696_v55, %v2695_v58  ;;  %v2700_v29 = vunpack.c.l.b16 %v2596_v19  ;;  %v2213_v45 = vrot.slane %v438_v51, 5  ;;  %v13113_v54 = vrot.slane %v8771_v17, 5  ;;  %v456_v55 = vld [vmem:[%s8124_s5 + $0x50] sm:$0x3] }
 0x2a2   : > { %v2701_v14 = vunpack.c.l.b16 %v2644_v27  ;;  %v2599_v41 = vpack.i.b16 %v2598_v63, %v2597_v22  ;;  %v2647_v60 = vpack.i.b16 %v2646_v48, %v2645_v8  ;;  %v2220_v32 = vrot.slane %v441_v56, 5  ;;  %v465_v8 = vld [vmem:[%s8124_s5 + $0x74] sm:$0x3] }
 0x2a3   : > { %v2219_v0 = vrot.slane %v13113_v54, 4  ;;  %v9474_v5 = vsel %vm9210_vm10, %v2212_v9, %v2213_v45  ;;  %v13114_v58 = vrot.slane %v8781_v47, 5  ;;  %v2227_v11 = vrot.slane %v444_v36, 5  ;;  %v462_v47 = vld [vmem:[%s8124_s5 + $0x68] sm:$0x3] }
 0x2a4   : > { %v13115_v17 = vrot.slane %v8791_v16, 5  ;;  %2693 = vrot.lane.b32.xlu1 %v2692_v44, %s7906_s9  ;;  %v2702_v22 = vpack.c.b16 %v2701_v14, %v2700_v29  ;;  %v2705_v51 = vunpack.c.l.b16 %v2599_v41  ;;  %v2706_v24 = vunpack.c.l.b16 %v2647_v60  ;;  %v468_v54 = vld [vmem:[%s8124_s5 + $0x80] sm:$0x3] }
 0x2a5   : > { %v2226_v6 = vrot.slane %v13114_v58, 4  ;;  %v9485_v9 = vsel %vm9210_vm10, %v2219_v0, %v2220_v32  ;;  %2698 = vrot.lane.b32.xlu2 %v2697_v52, %s7907_s11  ;;  %v2234_v44 = vrot.slane %v447_v33, 5  ;;  %v13116_v19 = vrot.slane %v8801_v39, 5  ;;  %v471_v0 = vld [vmem:[%s8124_s5 + $0x8c] sm:$0x3] }
 0x2a6   : > { %v2233_v28 = vrot.slane %v13115_v17, 4  ;;  %v2241_v27 = vrot.slane %v450_v35, 5  ;;  %v2707_v63 = vpack.c.b16 %v2706_v24, %v2705_v51  ;;  %v13117_v48 = vrot.slane %v8811_v62, 5  ;;  %v480_v24 = vld [vmem:[%s8124_s5 + $0xb0] sm:$0x3] }
 0x2a7   : > { %v9491_v16 = vsel %vm9210_vm10, %v2226_v6, %v2227_v11  ;;  %v2240_v56 = vrot.slane %v13116_v19, 4  ;;  %v2248_v29 = vrot.slane %v453_v3, 5  ;;  %v13118_v52 = vrot.slane %v8821_v37, 5  ;;  %2703 = vrot.lane.b32.xlu0 %v2702_v22, %s7910_s27  ;;  %v474_v37 = vld [vmem:[%s8124_s5 + $0x98] sm:$0x3] }
 0x2a8   : > { %v2247_v36 = vrot.slane %v13117_v48, 4  ;;  %v9505_v39 = vsel %vm9210_vm10, %v2233_v28, %v2234_v44  ;;  %v2255_v62 = vrot.slane %v456_v55, 5  ;;  %v13119_v41 = vrot.slane %v8831_v18, 5  ;;  %v477_v6 = vld [vmem:[%s8124_s5 + $0xa4] sm:$0x3] }
 0x2a9   : > { %v2254_v45 = vrot.slane %v13118_v52, 4  ;;  %v9509_v14 = vsel %vm9210_vm10, %v2240_v56, %v2241_v27  ;;  %v2262_v35 = vrot.slane %v459_v26, 5  ;;  %v13120_v32 = vrot.slane %v8841_v1, 5  ;;  %v483_v19 = vld [vmem:[%s8124_s5 + $0xbc] sm:$0x3] }
 0x2aa   : > { %v2261_v60 = vrot.slane %v13119_v41, 4  ;;  %v9516_v33 = vsel %vm9210_vm10, %v2247_v36, %v2248_v29  ;;  %v2269_v58 = vrot.slane %v462_v47, 5  ;;  %v13121_v17 = vrot.slane %v13085_v15, 5 }
 0x2ab   : > { %v2268_v3 = vrot.slane %v13120_v32, 4  ;;  %v9523_v11 = vsel %vm9210_vm10, %v2254_v45, %v2255_v62  ;;  %v2276_v28 = vrot.slane %v465_v8, 5  ;;  %v13122_v22 = vrot.slane %v13088_v20, 5 }
 0x2ac   : > { %v2275_v18 = vrot.slane %v13121_v17, 4  ;;  %v9532_v55 = vsel %vm9210_vm10, %v2261_v60, %v2262_v35  ;;  %v2283_v26 = vrot.slane %v468_v54, 5  ;;  %v13123_v47 = vrot.slane %v13089_v49, 5  ;;  %2708 = vrot.lane.b32.xlu1 %v2707_v63, %s7911_s30 }
 0x2ad   : > { %v2282_v51 = vrot.slane %v13122_v22, 4  ;;  %v9536_v1 = vsel %vm9210_vm10, %v2268_v3, %v2269_v58  ;;  %v2290_v20 = vrot.slane %v471_v0, 5  ;;  %v13125_v56 = vrot.slane %v13091_v7, 5 }
 0x2ae   : > { %v2289_v44 = vrot.slane %v13123_v47, 4  ;;  %v9543_v15 = vsel %vm9210_vm10, %v2275_v18, %v2276_v28  ;;  %v2297_v8 = vrot.slane %v474_v37, 5  ;;  %v13127_v36 = vrot.slane %v13099_v10, 5 }
 0x2af   : > { %13124 = vst [vmem:[#allocation8_spill] sm:$0xff] %v9543_v15  ;;  %v2296_v27 = vrot.slane %v13125_v56, 4  ;;  %v9550_v48 = vsel %vm9210_vm10, %v2282_v51, %v2283_v26  ;;  %v2304_v29 = vrot.slane %v477_v6, 5  ;;  %v13128_v52 = vrot.slane %v13100_v21, 5 }
 0x2b0   : > { %13126 = vst [vmem:[#allocation5_spill] sm:$0xff] %v9550_v48  ;;  %v2303_v49 = vrot.slane %v13127_v36, 4  ;;  %v9558_v54 = vsel %vm9210_vm10, %v2289_v44, %v2290_v20  ;;  %v2311_v63 = vrot.slane %v480_v24, 5  ;;  %v13131_v0 = vrot.slane %v13102_v42, 5 }
 0x2b1   : > { %v2310_v45 = vrot.slane %v13128_v52, 4  ;;  %13129 = vst [vmem:[#allocation7_spill] sm:$0xff] %v9558_v54  ;;  %v9562_v7 = vsel %vm9210_vm10, %v2296_v27, %v2297_v8  ;;  %v2318_v41 = vrot.slane %v483_v19, 5  ;;  %v2464_v21 = vrot.slane %v9509_v14, 4 }
 0x2b2   : > { %13130 = vst [vmem:[#allocation20_spill] sm:$0xff] %v9562_v7  ;;  %v2317_v62 = vrot.slane %v13131_v0, 4  ;;  %v9568_v10 = vsel %vm9210_vm10, %v2303_v49, %v2304_v29  ;;  %v2470_v60 = vrot.slane %v9523_v11, 4  ;;  %v2492_v35 = vrot.slane %v9516_v33, 4 }
 0x2b3   : > { %13132 = vst [vmem:[#allocation15_spill] sm:$0xff] %v9568_v10  ;;  %v9574_v37 = vsel %vm9210_vm10, %v2310_v45, %v2311_v63  ;;  %v2498_v32 = vrot.slane %v9532_v55, 4  ;;  %v2520_v42 = vrot.slane %v9562_v7, 4  ;;  %v2465_v58 = vsel %vm489_vm0, %v2464_v21, %v9474_v5 }
 0x2b4   : > { %13133 = vst [vmem:[#allocation13_spill] sm:$0xff] %v9574_v37  ;;  %v9581_v3 = vsel %vm9210_vm10, %v2317_v62, %v2318_v41  ;;  %v2471_v6 = vsel %vm489_vm0, %v2470_v60, %v9491_v16  ;;  %v2526_v17 = vrot.slane %v9574_v37, 4  ;;  %v2469_v18 = vperm.slane %v2465_v58, %v13110_v57 }
 0x2b5   : > { %13134 = vst [vmem:[#allocation14_spill] sm:$0xff] %v9581_v3  ;;  %v2475_v28 = vperm.slane %v2471_v6, %v13110_v57  ;;  %v2493_v22 = vsel %vm489_vm0, %v2492_v35, %v9485_v9  ;;  %v2499_v53 = vsel %vm489_vm0, %v2498_v32, %v9505_v39  ;;  %v2521_v26 = vsel %vm489_vm0, %v2520_v42, %v9536_v1 }
 0x2b6   : > { %v2497_v51 = vperm.slane %v2493_v22, %v13110_v57  ;;  %v2503_v24 = vperm.slane %v2499_v53, %v13110_v57  ;;  %v2527_v47 = vsel %vm489_vm0, %v2526_v17, %v9550_v48  ;;  %v2525_v19 = vperm.slane %v2521_v26, %v13110_v57 }
 0x2b7   : > { %v2476_v44 = vrot.slane %v2475_v28, 4  ;;  %v2531_v20 = vperm.slane %v2527_v47, %v13110_v57  ;;  %v2548_v56 = vrot.slane %v9568_v10, 4  ;;  %v2554_v8 = vrot.slane %v9581_v3, 4 }
 0x2b8   : > { %v2504_v27 = vrot.slane %v2503_v24, 4 }
 0x2b9   : > { %v2477_v36 = vsel %vm489_vm0, %v2476_v44, %v2469_v18  ;;  %v2532_v49 = vrot.slane %v2531_v20, 4  ;;  %v2549_v29 = vsel %vm489_vm0, %v2548_v56, %v9543_v15  ;;  %v2555_v63 = vsel %vm489_vm0, %v2554_v8, %v9558_v54 }
 0x2ba   : > { %v9608_v52 = vperm.slane %v2477_v36, %v8198_v4  ;;  %v2505_v45 = vsel %vm489_vm0, %v2504_v27, %v2497_v51  ;;  %v2553_v41 = vperm.slane %v2549_v29, %v13110_v57  ;;  %v2559_v21 = vperm.slane %v2555_v63, %v13110_v57 }
 0x2bb   : > { %v9614_v0 = vperm.slane %v2505_v45, %v8198_v4  ;;  %v2533_v62 = vsel %vm489_vm0, %v2532_v49, %v2525_v19  ;;  %v2478_v8 = vrot.slane %v2469_v18, 4  ;;  %v2506_v36 = vrot.slane %v2497_v51, 4 }
 0x2bc   : > { %13135 = vst [vmem:[#allocation12_spill] sm:$0xff] %v9608_v52  ;;  %v9620_v60 = vperm.slane %v2533_v62, %v8198_v4  ;;  %v2603_v35 = vshrl.u32 %v9608_v52, 16  ;;  %v2560_v32 = vrot.slane %v2559_v21, 4  ;;  %v2488_v26 = vrot.slane %v9608_v52, 4 }
 0x2bd   : > { %13136 = vst [vmem:[#allocation28_spill] sm:$0xff] %v9614_v0  ;;  %v2604_v42 = vshrl.u32 %v9614_v0, 16  ;;  %v2516_v47 = vrot.slane %v9614_v0, 4  ;;  %v2534_v63 = vrot.slane %v2525_v19, 4  ;;  %v2479_v18 = vsel %vm489_vm0, %v2475_v28, %v2478_v8 }
 0x2be   : > { %13137 = vst [vmem:[#allocation29_spill] sm:$0xff] %v9620_v60  ;;  %v2561_v58 = vsel %vm489_vm0, %v2560_v32, %v2553_v41  ;;  %v2651_v22 = vshrl.u32 %v9620_v60, 16  ;;  %v2544_v44 = vrot.slane %v9620_v60, 4  ;;  %v2489_v49 = vsel %vm489_vm0, 0, %v2488_v26 }
 0x2bf   : > { %v2605_v6 = vpack.i.b16 %v2604_v42, %v2603_v35  ;;  %v9626_v17 = vperm.slane %v2561_v58, %v8198_v4  ;;  %v2517_v29 = vsel %vm489_vm0, 0, %v2516_v47  ;;  %v2609_v42 = vshrl.u32 %v2489_v49, 16 }
 0x2c0   : > { %v2545_v45 = vsel %vm489_vm0, 0, %v2544_v44  ;;  %v2608_v32 = vpack.i.b16 %v2517_v29, %v2489_v49  ;;  %v2507_v51 = vsel %vm489_vm0, %v2503_v24, %v2506_v36  ;;  %v2487_v19 = vperm.slane %v2479_v18, %v8198_v4 }
 0x2c1   : > { %13138 = vst [vmem:[#allocation30_spill] sm:$0xff] %v9626_v17  ;;  %v2713_v53 = vunpack.c.l.b16 %v2605_v6  ;;  %v2652_v56 = vshrl.u32 %v9626_v17, 16  ;;  %v2572_v27 = vrot.slane %v9626_v17, 4  ;;  %v2610_v6 = vshrl.u32 %v2517_v29, 16 }
 0x2c2   : > { %v2657_v57 = vshrl.u32 %v2545_v45, 16  ;;  %v2718_v17 = vunpack.c.l.b16 %v2608_v32  ;;  %v2515_v44 = vperm.slane %v2507_v51, %v8198_v4  ;;  %v2615_v8 = vshrl.u32 %v2487_v19, 16 }
 0x2c3   : > { %v2653_v62 = vpack.i.b16 %v2652_v56, %v2651_v22  ;;  %v2573_v35 = vsel %vm489_vm0, 0, %v2572_v27  ;;  %v2611_v47 = vpack.i.b16 %v2610_v6, %v2609_v42  ;;  %v2535_v56 = vsel %vm489_vm0, %v2531_v20, %v2534_v63 }
 0x2c4   : > { %v2656_v58 = vpack.i.b16 %v2573_v35, %v2545_v45  ;;  %v2658_v60 = vshrl.u32 %v2573_v35, 16  ;;  %v2562_v27 = vrot.slane %v2553_v41, 4  ;;  %v2614_v24 = vpack.i.b16 %v2515_v44, %v2487_v19 }
 0x2c5   : > { %v2714_v0 = vunpack.c.l.b16 %v2653_v62  ;;  %v2723_v29 = vunpack.c.l.b16 %v2611_v47  ;;  %v2543_v62 = vperm.slane %v2535_v56, %v8198_v4  ;;  %v2490_v20 = vrot.slane %v2487_v19, 4 }
 0x2c6   : > { %v2719_v26 = vunpack.c.l.b16 %v2656_v58  ;;  %v2659_v52 = vpack.i.b16 %v2658_v60, %v2657_v57  ;;  %v2563_v28 = vsel %vm489_vm0, %v2559_v21, %v2562_v27  ;;  %v2616_v57 = vshrl.u32 %v2515_v44, 16 }
 0x2c7   : > { %v2715_v22 = vpack.c.b16 %v2714_v0, %v2713_v53  ;;  %v2571_v60 = vperm.slane %v2563_v28, %v8198_v4  ;;  %v2663_v53 = vshrl.u32 %v2543_v62, 16  ;;  %v2728_v41 = vunpack.c.l.b16 %v2614_v24 }
 0x2c8   : > { %v2720_v49 = vpack.c.b16 %v2719_v26, %v2718_v17  ;;  %v2724_v45 = vunpack.c.l.b16 %v2659_v52  ;;  %v2617_v17 = vpack.i.b16 %v2616_v57, %v2615_v8  ;;  %v2518_v36 = vrot.slane %v2515_v44, 4 }
 0x2c9   : > { %2716 = vrot.lane.b32.xlu2 %v2715_v22, %s7908_s28  ;;  %v2546_v52 = vrot.slane %v2543_v62, 4  ;;  %v2662_v63 = vpack.i.b16 %v2571_v60, %v2543_v62  ;;  %v2664_v35 = vshrl.u32 %v2571_v60, 16  ;;  %v2491_v21 = vsel %vm489_vm0, 0, %v2490_v20 }
 0x2ca   : > { %2721 = vrot.lane.b32.xlu0 %v2720_v49, %s7909_s22  ;;  %v2725_v0 = vpack.c.b16 %v2724_v45, %v2723_v29  ;;  %v2574_v32 = vrot.slane %v2571_v60, 4  ;;  %v2733_v42 = vunpack.c.l.b16 %v2617_v17  ;;  %v2519_v58 = vsel %vm489_vm0, 0, %v2518_v36  ;;  %v13140_v17 = vld [vmem:[#allocation27_spill] sm:$0xff] }
 0x2cb   : > { %v2547_v6 = vsel %vm489_vm0, 0, %v2546_v52  ;;  %v2621_v18 = vshrl.u32 %v2491_v21, 16  ;;  %v2729_v51 = vunpack.c.l.b16 %v2662_v63  ;;  %v2665_v26 = vpack.i.b16 %v2664_v35, %v2663_v53  ;;  %v13141_v35 = vld [vmem:[#allocation22_spill] sm:$0xff] }
 0x2cc   : > { %2726 = vrot.lane.b32.xlu1 %v2725_v0, %s7912_s3  ;;  %v2575_v47 = vsel %vm489_vm0, 0, %v2574_v32  ;;  %v2620_v19 = vpack.i.b16 %v2519_v58, %v2491_v21  ;;  %v2622_v44 = vshrl.u32 %v2519_v58, 16  ;;  %v2669_v56 = vshrl.u32 %v2547_v6, 16  ;;  %v2021_v20 = vpop.permute.xlu2 %2020  ;;  %v13142_v21 = vld [vmem:[#allocation18_spill] sm:$0xff] }
 0x2cd   : > { %v2668_v22 = vpack.i.b16 %v2575_v47, %v2547_v6  ;;  %v2670_v27 = vshrl.u32 %v2575_v47, 16  ;;  %v2730_v49 = vpack.c.b16 %v2729_v51, %v2728_v41  ;;  %v2734_v29 = vunpack.c.l.b16 %v2665_v26  ;;  %v13139_v41 = vld [vmem:[#allocation26_spill] sm:$0xff] }
 0x2ce   : > { %v2738_v45 = vunpack.c.l.b16 %v2620_v19  ;;  %v2623_v28 = vpack.i.b16 %v2622_v44, %v2621_v18  ;;  %v1968_v36 = vpack.i.b16 %v13140_v17, %v13139_v41  ;;  %v13143_v32 = vpack.i.b16 %v13141_v35, %v13142_v21 }
 0x2cf   : > { %v2739_v62 = vunpack.c.l.b16 %v2668_v22  ;;  %v2671_v24 = vpack.i.b16 %v2670_v27, %v2669_v56  ;;  %v2735_v8 = vpack.c.b16 %v2734_v29, %v2733_v42  ;;  %v13144_v27 = vld [vmem:[#allocation25_spill] sm:$0xff] }
 0x2d0   : > { %v2743_v0 = vunpack.c.l.b16 %v2623_v28  ;;  %v2015_v52 = vunpack.c.l.b16 %v1968_v36  ;;  %v2014_v42 = vunpack.c.l.b16 %v13143_v32  ;;  %v13146_v28 = vld [vmem:[#allocation23_spill] sm:$0xff]  ;;  %v2578_v32 = vpack.i.b16 %v9417_v40, %v9407_v13 }
 0x2d1   : > { %2731 = vrot.lane.b32.xlu2 %v2730_v49, %s7906_s9  ;;  %v2740_v57 = vpack.c.b16 %v2739_v62, %v2738_v45  ;;  %v2744_v60 = vunpack.c.l.b16 %v2671_v24  ;;  %v1992_v49 = vpack.i.b16 %v9172_v43, %v13144_v27  ;;  %v13145_v62 = vld [vmem:[#allocation24_spill] sm:$0xff] }
 0x2d2   : > { %2736 = vrot.lane.b32.xlu0 %v2735_v8, %s7907_s11  ;;  %v2016_v58 = vpack.c.b16 %v2015_v52, %v2014_v42  ;;  %v1944_v24 = vpack.i.b16 %v13146_v28, %v13145_v62  ;;  %v2626_v42 = vpack.i.b16 %v9436_v12, %v9431_v25  ;;  %v13147_v12 = vld [vmem:[#allocation21_spill] sm:$0xff]  ;;  %v13149_v28 = vld [vmem:[#allocation16_spill] sm:$0xff] }
 0x2d3   : > { %v2745_v53 = vpack.c.b16 %v2744_v60, %v2743_v0 }
 0x2d4   : > { %2741 = vrot.lane.b32.xlu1 %v2740_v57, %s7910_s27  ;;  %v2036_v63 = vpop.permute.xlu2 %2035  ;;  %v2092_v18 = vsel %vm885_vm1, %v2016_v58, %v2021_v20  ;;  %v2053_v57 = vunpack.c.l.b16 %v1992_v49  ;;  %v2052_v0 = vunpack.c.l.b16 %v1944_v24 }
 0x2d6   : > { %v2054_v43 = vpack.c.b16 %v2053_v57, %v2052_v0 }
 0x2d9   : > { %2746 = vrot.lane.b32.xlu2 %v2745_v53, %s7911_s30 }
 0x2da   : > { %2847 = vrot.lane.b32.xlu0 %v9222_v46, %s7913_s4 }
 0x2dc   : > { %2849 = vrot.lane.b32.xlu1 %v9474_v5, %s7913_s4  ;;  %v2051_v19 = vpop.permute.xlu2 %2050 }
 0x2e1   : > { %2851 = vrot.lane.b32.xlu2 %v9240_v59, %s7913_s4 }
 0x2e2   : > { %2853 = vrot.lane.b32.xlu0 %v9485_v9, %s7913_s4 }
 0x2e3   : > { %v2026_v6 = vpop.permute.xlu0 %2025 }
 0x2e4   : > { %2855 = vrot.lane.b32.xlu1 %v9254_v50, %s7913_s4  ;;  %v2094_v51 = vsel %vm889_vm2, %v2092_v18, %v2026_v6  ;;  %v2069_v60 = vpop.permute.xlu2 %2068  ;;  %v2672_v6 = vunpack.c.l.b16 %v2578_v32  ;;  %v2673_v18 = vunpack.c.l.b16 %v2626_v42 }
 0x2e6   : > { %v2674_v13 = vpack.c.b16 %v2673_v18, %v2672_v6 }
 0x2e7   : > { %v2031_v26 = vpop.permute.xlu1 %2030 }
 0x2e8   : > { %v2096_v47 = vsel %vm892_vm3, %v2094_v51, %v2031_v26 }
 0x2e9   : > { %2857 = vrot.lane.b32.xlu2 %v9491_v16, %s7913_s4  ;;  %v2098_v22 = vsel %vm895_vm4, %v2096_v47, %v2036_v63 }
 0x2ea   : > { %2859 = vrot.lane.b32.xlu0 %v9263_v30, %s7913_s4 }
 0x2eb   : > { %v2041_v44 = vpop.permute.xlu0 %2040 }
 0x2ec   : > { %2861 = vrot.lane.b32.xlu1 %v9505_v39, %s7913_s4  ;;  %v2100_v56 = vsel %vm898_vm5, %v2098_v22, %v2041_v44  ;;  %v7606_v44 = vld [vmem:[%s8122_s29 + $0x18] sm:$0xff] }
 0x2ed   : > { %7437 = vmatmul.msk.bf16.vlgmr.msra.gmra.mxu2 %vm885_vm1, %v7606_v44  ;;  %7439 = vmatmul.msk.bf16.vlgmr.msra.gmra.mxu3 %vm885_vm1, %v7606_v44 }
 0x2ee   : > { %v2084_v63 = vpop.permute.xlu2 %2083 }
 0x2ef   : > { %v2046_v29 = vpop.permute.xlu1 %2045 }
 0x2f0   : > { %v2102_v45 = vsel %vm901_vm6, %v2100_v56, %v2046_v29  ;;  %v13148_v56 = vld [vmem:[#allocation10_spill] sm:$0xff] }
 0x2f1   : > { %2863 = vrot.lane.b32.xlu2 %v9269_v34, %s7913_s4  ;;  %v2104_v8 = vsel %vm904_vm7, %v2102_v45, %v2051_v19 }
 0x2f2   : > { %2865 = vrot.lane.b32.xlu0 %v9509_v14, %s7913_s4  ;;  %2145 = vmatpush.bf16.msrb.mxu0 %v2104_v8 }
 0x2f3   : > { %v2059_v53 = vpop.permute.xlu0 %2058 }
 0x2f4   : > { %2867 = vrot.lane.b32.xlu1 %v9285_v31, %s7913_s4  ;;  %v2108_v41 = vsel %vm885_vm1, %v2054_v43, %v2059_v53 }
 0x2f7   : > { %v2064_v20 = vpop.permute.xlu1 %2063  ;;  %v2684_v40 = vpop.permute.xlu2 %2683 }
 0x2f8   : > { %v2110_v17 = vsel %vm889_vm2, %v2108_v41, %v2064_v20  ;;  %v13151_v20 = vld [vmem:[#allocation6_spill] sm:$0xff]  ;;  %v13152_v41 = vld [vmem:[#allocation17_spill] sm:$0xff] }
 0x2f9   : > { %2869 = vrot.lane.b32.xlu2 %v9516_v33, %s7913_s4  ;;  %v2112_v52 = vsel %vm892_vm3, %v2110_v17, %v2069_v60  ;;  %v13150_v60 = vld [vmem:[#allocation19_spill] sm:$0xff] }
 0x2fa   : > { %2871 = vrot.lane.b32.xlu0 %v9293_v38, %s7913_s4 }
 0x2fb   : > { %v2074_v36 = vpop.permute.xlu0 %2073 }
 0x2fc   : > { %2873 = vrot.lane.b32.xlu1 %v9523_v11, %s7913_s4  ;;  %v2114_v35 = vsel %vm895_vm4, %v2112_v52, %v2074_v36  ;;  %v13153_v36 = vld [vmem:[#allocation12_spill] sm:$0xff] }
 0x2fd   : > { %v13154_v52 = vld [vmem:[#allocation28_spill] sm:$0xff] }
 0x2ff   : > { %v2079_v21 = vpop.permute.xlu1 %2078  ;;  %v2699_v29 = vpop.permute.xlu2 %2698 }
 0x300   : > { %v2116_v58 = vsel %vm898_vm5, %v2114_v35, %v2079_v21  ;;  %v13155_v35 = vld [vmem:[#allocation29_spill] sm:$0xff]  ;;  %v13156_v21 = vld [vmem:[#allocation30_spill] sm:$0xff] }
 0x301   : > { %2875 = vrot.lane.b32.xlu2 %v9303_v2, %s7913_s4  ;;  %v2118_v26 = vsel %vm901_vm6, %v2116_v58, %v2084_v63  ;;  %v2602_v63 = vpack.i.b16 %v13154_v52, %v13153_v36  ;;  %v2650_v32 = vpack.i.b16 %v13156_v21, %v13155_v35 }
 0x302   : > { %2877 = vrot.lane.b32.xlu0 %v9532_v55, %s7913_s4 }
 0x303   : > { %v2089_v51 = vpop.permute.xlu0 %2088  ;;  %v2710_v58 = vunpack.c.l.b16 %v2602_v63  ;;  %v2711_v6 = vunpack.c.l.b16 %v2650_v32 }
 0x304   : > { %2879 = vrot.lane.b32.xlu1 %v9309_v23, %s7913_s4  ;;  %v2120_v47 = vsel %vm904_vm7, %v2118_v26, %v2089_v51 }
 0x305   : > { %2164 = vmatpush.bf16.msrb.mxu1 %v2120_v47  ;;  %v2712_v18 = vpack.c.b16 %v2711_v6, %v2710_v58 }
 0x309   : > { %2881 = vrot.lane.b32.xlu2 %v9536_v1, %s7913_s4 }
 0x30a   : > { %2883 = vrot.lane.b32.xlu0 %v9317_v61, %s7913_s4 }
 0x30c   : > { %2885 = vrot.lane.b32.xlu1 %v9543_v15, %s7913_s4 }
 0x30e   : > { %v2679_v25 = vpop.permute.xlu1 %2678 }
 0x30f   : > { %v2750_v19 = vsel %vm885_vm1, %v2674_v13, %v2679_v25 }
 0x310   : > { %v2752_v27 = vsel %vm889_vm2, %v2750_v19, %v2684_v40 }
 0x311   : > { %2887 = vrot.lane.b32.xlu2 %v13147_v12, %s7913_s4  ;;  %v2689_v22 = vpop.permute.xlu0 %2688 }
 0x312   : > { %2889 = vrot.lane.b32.xlu0 %v9550_v48, %s7913_s4  ;;  %v2754_v49 = vsel %vm892_vm3, %v2752_v27, %v2689_v22 }
 0x314   : > { %2891 = vrot.lane.b32.xlu1 %v13148_v56, %s7913_s4 }
 0x316   : > { %v2694_v45 = vpop.permute.xlu1 %2693 }
 0x317   : > { %v2756_v62 = vsel %vm895_vm4, %v2754_v49, %v2694_v45 }
 0x318   : > { %v2758_v8 = vsel %vm898_vm5, %v2756_v62, %v2699_v29 }
 0x319   : > { %2893 = vrot.lane.b32.xlu2 %v9558_v54, %s7913_s4  ;;  %v2704_v24 = vpop.permute.xlu0 %2703 }
 0x31a   : > { %2895 = vrot.lane.b32.xlu0 %v13149_v28, %s7913_s4  ;;  %v2760_v57 = vsel %vm901_vm6, %v2758_v8, %v2704_v24 }
 0x31c   : > { %2897 = vrot.lane.b32.xlu1 %v9562_v7, %s7913_s4 }
 0x31e   : > { %v2709_v0 = vpop.permute.xlu1 %2708 }
 0x31f   : > { %v2762_v53 = vsel %vm904_vm7, %v2760_v57, %v2709_v0 }
 0x320   : > { %2803 = vmatpush.bf16.msra.mxu2 %v2762_v53 }
 0x321   : > { %2899 = vrot.lane.b32.xlu2 %v13150_v60, %s7913_s4 }
 0x322   : > { %2901 = vrot.lane.b32.xlu0 %v9568_v10, %s7913_s4 }
 0x323   : > { %v2717_v43 = vpop.permute.xlu2 %2716 }
 0x324   : > { %2903 = vrot.lane.b32.xlu1 %v13151_v20, %s7913_s4  ;;  %v2766_v47 = vsel %vm885_vm1, %v2712_v18, %v2717_v43 }
 0x329   : > { %2905 = vrot.lane.b32.xlu2 %v9574_v37, %s7913_s4 }
 0x32a   : > { %2907 = vrot.lane.b32.xlu0 %v13152_v41, %s7913_s4  ;;  %v13157_v41 = vld [vmem:[#allocation9_spill] sm:$0xff] }
 0x32b   : > { %v2732_v17 = vpop.permute.xlu2 %2731 }
 0x32c   : > { %2909 = vrot.lane.b32.xlu1 %v9581_v3, %s7913_s4 }
 0x333   : > { %v2747_v42 = vpop.permute.xlu2 %2746 }
 0x33b   : > { %v2852_v51 = vpop.permute.xlu2 %2851 }
 0x33c   : > { %v2722_v26 = vpop.permute.xlu0 %2721 }
 0x33d   : > { %v2768_v40 = vsel %vm889_vm2, %v2766_v47, %v2722_v26 }
 0x33e   : > { %v2727_v13 = vpop.permute.xlu1 %2726 }
 0x33f   : > { %v2770_v25 = vsel %vm892_vm3, %v2768_v40, %v2727_v13 }
 0x340   : > { %v2772_v22 = vsel %vm895_vm4, %v2770_v25, %v2732_v17 }
 0x343   : > { %v2858_v19 = vpop.permute.xlu2 %2857 }
 0x344   : > { %v2737_v44 = vpop.permute.xlu0 %2736 }
 0x345   : > { %v2774_v27 = vsel %vm898_vm5, %v2772_v22, %v2737_v44 }
 0x346   : > { %v2742_v49 = vpop.permute.xlu1 %2741 }
 0x347   : > { %v2776_v29 = vsel %vm901_vm6, %v2774_v27, %v2742_v49 }
 0x348   : > { %v2778_v45 = vsel %vm904_vm7, %v2776_v29, %v2747_v42 }
 0x349   : > { %2822 = vmatpush.bf16.msra.mxu3 %v2778_v45 }
 0x34b   : > { %v2864_v62 = vpop.permute.xlu2 %2863 }
 0x34c   : > { %v2848_v24 = vpop.permute.xlu0 %2847  ;;  %v2943_v29 = vrot.slane %v2864_v62, 4 }
 0x34e   : > { %v2850_v8 = vpop.permute.xlu1 %2849 }
 0x353   : > { %v2870_v53 = vpop.permute.xlu2 %2869 }
 0x354   : > { %v2854_v57 = vpop.permute.xlu0 %2853  ;;  %v3083_v10 = vrot.slane %v2870_v53, 4 }
 0x356   : > { %v2856_v0 = vpop.permute.xlu1 %2855  ;;  %v3084_v53 = vsel %vm489_vm0, %v3083_v10, %v2854_v57 }
 0x35b   : > { %v2876_v52 = vpop.permute.xlu2 %2875 }
 0x35c   : > { %v2860_v43 = vpop.permute.xlu0 %2859  ;;  %v2977_v22 = vrot.slane %v2876_v52, 4 }
 0x35e   : > { %v2862_v36 = vpop.permute.xlu1 %2861  ;;  %v2978_v3 = vsel %vm489_vm0, %v2977_v22, %v2860_v43  ;;  %v3088_v22 = vperm.slane %v3084_v53, %v13157_v41 }
 0x35f   : > { %v2982_v28 = vperm.slane %v2978_v3, %v13157_v41 }
 0x363   : > { %v9769_v35 = vpop.permute.xlu2 %2881 }
 0x364   : > { %v2866_v63 = vpop.permute.xlu0 %2865 }
 0x365   : > { %v3055_v52 = vrot.slane %v2866_v63, 4 }
 0x366   : > { %v2868_v17 = vpop.permute.xlu1 %2867 }
 0x367   : > { %v2971_v27 = vrot.slane %v2868_v17, 4 }
 0x369   : > { %v2972_v60 = vsel %vm489_vm0, %v2971_v27, %v2852_v51 }
 0x36a   : > { %v2976_v62 = vperm.slane %v2972_v60, %v13157_v41 }
 0x36b   : > { %v2888_v58 = vpop.permute.xlu2 %2887 }
 0x36c   : > { %v2872_v21 = vpop.permute.xlu0 %2871 }
 0x36d   : > { %v2949_v13 = vrot.slane %v2872_v21, 4  ;;  %v2944_v21 = vsel %vm489_vm0, %v2943_v29, %v2848_v24  ;;  %v3056_v24 = vsel %vm489_vm0, %v3055_v52, %v2850_v8 }
 0x36e   : > { %v2874_v32 = vpop.permute.xlu1 %2873 }
 0x36f   : > { %v2950_v44 = vsel %vm489_vm0, %v2949_v13, %v2856_v0  ;;  %v3061_v45 = vrot.slane %v2874_v32, 4  ;;  %v2948_v32 = vperm.slane %v2944_v21, %v13157_v41  ;;  %v2985_v21 = vrot.slane %v2976_v62, 4 }
 0x370   : > { %v2954_v37 = vperm.slane %v2950_v44, %v13157_v41 }
 0x371   : > { %v3062_v0 = vsel %vm489_vm0, %v3061_v45, %v2858_v19  ;;  %v2957_v10 = vrot.slane %v2948_v32, 4 }
 0x372   : > { %v2955_v13 = vrot.slane %v2954_v37, 4  ;;  %v3066_v51 = vperm.slane %v3062_v0, %v13157_v41 }
 0x373   : > { %v9773_v47 = vpop.permute.xlu2 %2893  ;;  %v2958_v53 = vsel %vm489_vm0, %v2954_v37, %v2957_v10 }
 0x374   : > { %v2878_v6 = vpop.permute.xlu0 %2877  ;;  %v2956_v3 = vsel %vm489_vm0, %v2955_v13, %v2948_v32  ;;  %v9811_v37 = vperm.slane %v2958_v53, %v8198_v4 }
 0x375   : > { %v3089_v20 = vrot.slane %v2878_v6, 4  ;;  %v2983_v6 = vrot.slane %v2982_v28, 4  ;;  %v9796_v57 = vperm.slane %v2956_v3, %v8198_v4 }
 0x376   : > { %v2880_v18 = vpop.permute.xlu1 %2879 }
 0x377   : > { %v3090_v43 = vsel %vm489_vm0, %v3089_v20, %v2862_v36  ;;  %v2984_v60 = vsel %vm489_vm0, %v2983_v6, %v2976_v62  ;;  %v3060_v20 = vperm.slane %v3056_v24, %v13157_v41  ;;  %v3067_v36 = vrot.slane %v3066_v51, 4 }
 0x378   : > { %v3094_v63 = vperm.slane %v3090_v43, %v13157_v41  ;;  %v9799_v52 = vperm.slane %v2984_v60, %v8198_v4  ;;  %v3097_v43 = vrot.slane %v3088_v22, 4  ;;  %v3170_v60 = vshrl.u32 %v9796_v57, 16 }
 0x379   : > { %v3069_v24 = vrot.slane %v3060_v20, 4 }
 0x37a   : > { %v3095_v0 = vrot.slane %v3094_v63, 4 }
 0x37b   : > { %v2900_v49 = vpop.permute.xlu2 %2899 }
 0x37c   : > { %v2884_v42 = vpop.permute.xlu0 %2883  ;;  %v3027_v29 = vrot.slane %v2900_v49, 4 }
 0x37e   : > { %v9771_v26 = vpop.permute.xlu1 %2885  ;;  %v3028_v49 = vsel %vm489_vm0, %v3027_v29, %v2884_v42 }
 0x383   : > { %v2906_v19 = vpop.permute.xlu2 %2905 }
 0x384   : > { %v2890_v40 = vpop.permute.xlu0 %2889  ;;  %v3117_v8 = vrot.slane %v2906_v19, 4 }
 0x386   : > { %v9775_v25 = vpop.permute.xlu1 %2891  ;;  %v3118_v62 = vsel %vm489_vm0, %v3117_v8, %v2890_v40  ;;  %v2967_v40 = vrot.slane %v9796_v57, 4 }
 0x38c   : > { %v2896_v7 = vpop.permute.xlu0 %2895 }
 0x38d   : > { %v2999_v44 = vrot.slane %v2896_v7, 4  ;;  %v3068_v7 = vsel %vm489_vm0, %v3067_v36, %v3060_v20  ;;  %v3171_v20 = vshrl.u32 %v9799_v52, 16  ;;  %v9820_v36 = vsel %vm489_vm0, %v3066_v51, %v3069_v24 }
 0x38e   : > { %v2898_v17 = vpop.permute.xlu1 %2897  ;;  %v9834_v51 = vsel %vm489_vm0, %v3094_v63, %v3097_v43 }
 0x38f   : > { %v3111_v6 = vrot.slane %v2898_v17, 4  ;;  %v3000_v32 = vsel %vm489_vm0, %v2999_v44, %v2880_v18  ;;  %v3096_v17 = vsel %vm489_vm0, %v3095_v0, %v3088_v22  ;;  %v3032_v44 = vperm.slane %v3028_v49, %v13157_v41 }
 0x390   : > { %v3004_v18 = vperm.slane %v3000_v32, %v13157_v41  ;;  %v9827_v22 = vperm.slane %v3118_v62, %v13157_v41  ;;  %v2995_v0 = vrot.slane %v9799_v52, 4 }
 0x391   : > { %v3041_v49 = vrot.slane %v3032_v44, 4 }
 0x392   : > { %v3123_v63 = vrot.slane %v9827_v22, 4 }
 0x394   : > { %v2902_v27 = vpop.permute.xlu0 %2901 }
 0x395   : > { %v3139_v24 = vrot.slane %v2902_v27, 4 }
 0x396   : > { %v2904_v45 = vpop.permute.xlu1 %2903 }
 0x397   : > { %v3005_v13 = vrot.slane %v2904_v45, 4  ;;  %v2986_v45 = vsel %vm489_vm0, %v2982_v28, %v2985_v21  ;;  %v9823_v28 = vperm.slane %v3068_v7, %v8198_v4 }
 0x399   : > { %v3006_v3 = vsel %vm489_vm0, %v3005_v13, %v2888_v58  ;;  %v3112_v58 = vsel %vm489_vm0, %v3111_v6, %v9769_v35  ;;  %v9830_v35 = vpack.i.b16 %v3171_v20, %v3170_v60  ;;  %v9837_v13 = vperm.slane %v3096_v17, %v8198_v4 }
 0x39a   : > { %v3010_v19 = vperm.slane %v3006_v3, %v13157_v41  ;;  %v9840_v53 = vperm.slane %v3112_v58, %v13157_v41  ;;  %v2968_v3 = vsel %vm489_vm0, 0, %v2967_v40  ;;  %v3013_v60 = vrot.slane %v3004_v18, 4 }
 0x39b   : > { %v3266_v27 = vunpack.c.l.b16 %v9830_v35  ;;  %v2996_v20 = vsel %vm489_vm0, 0, %v2995_v0  ;;  %v2994_v0 = vperm.slane %v2986_v45, %v8198_v4 }
 0x39c   : > { %v3011_v42 = vrot.slane %v3010_v19, 4  ;;  %v2908_v10 = vpop.permute.xlu0 %2907  ;;  %v3175_v40 = vpack.i.b16 %v2996_v20, %v2968_v3  ;;  %v3177_v35 = vshrl.u32 %v2996_v20, 16 }
 0x39d   : > { %v3033_v8 = vrot.slane %v2908_v10, 4  ;;  %v3140_v10 = vsel %vm489_vm0, %v3139_v24, %v9771_v26  ;;  %v3181_v20 = vpack.i.b16 %v2994_v0, %v9811_v37  ;;  %v2997_v56 = vrot.slane %v2994_v0, 4 }
 0x39e   : > { %v3012_v29 = vsel %vm489_vm0, %v3011_v42, %v3004_v18  ;;  %v2910_v21 = vpop.permute.xlu1 %2909  ;;  %v3144_v24 = vperm.slane %v3140_v10, %v13157_v41 }
 0x39f   : > { %v3145_v6 = vrot.slane %v2910_v21, 4  ;;  %v9843_v7 = vperm.slane %v3012_v29, %v8198_v4  ;;  %v3034_v32 = vsel %vm489_vm0, %v3033_v8, %v9775_v25  ;;  %v3124_v25 = vsel %vm489_vm0, %v3123_v63, %v9840_v53 }
 0x3a0   : > { %v3038_v43 = vperm.slane %v3034_v32, %v13157_v41  ;;  %v3176_v29 = vshrl.u32 %v2968_v3, 16 }
 0x3a1   : > { %13158 = vst [vmem:[#allocation26_spill] sm:$0xff] %v9843_v7  ;;  %v3146_v62 = vsel %vm489_vm0, %v3145_v6, %v9773_v47  ;;  %v3014_v47 = vsel %vm489_vm0, %v3010_v19, %v3013_v60  ;;  %v3023_v18 = vrot.slane %v9843_v7, 4  ;;  %v9868_v6 = vperm.slane %v3124_v25, %v8198_v4 }
 0x3a2   : > { %v9853_v17 = vperm.slane %v3146_v62, %v13157_v41  ;;  %v3039_v58 = vrot.slane %v3038_v43, 4  ;;  %v3042_v42 = vsel %vm489_vm0, %v3038_v43, %v3041_v49  ;;  %v3022_v3 = vperm.slane %v3014_v47, %v8198_v4 }
 0x3a3   : > { %v3050_v26 = vperm.slane %v3042_v42, %v8198_v4  ;;  %v3271_v49 = vunpack.c.l.b16 %v3175_v40  ;;  %v3218_v63 = vshrl.u32 %v9843_v7, 16  ;;  %v3024_v43 = vsel %vm489_vm0, 0, %v3023_v18 }
 0x3a4   : > { %v3040_v21 = vsel %vm489_vm0, %v3039_v58, %v3032_v44  ;;  %v3151_v19 = vrot.slane %v9853_v17, 4  ;;  %v3182_v44 = vshrl.u32 %v9811_v37, 16  ;;  %v3178_v60 = vpack.i.b16 %v3177_v35, %v3176_v29 }
 0x3a5   : > { %v9871_v32 = vperm.slane %v3040_v21, %v8198_v4  ;;  %v3183_v25 = vshrl.u32 %v2994_v0, 16  ;;  %v2969_v58 = vrot.slane %v9811_v37, 4  ;;  %v3053_v47 = vrot.slane %v3050_v26, 4 }
 0x3a6   : > { %v3152_v42 = vsel %vm489_vm0, %v3151_v19, %v3144_v24  ;;  %v3224_v8 = vshrl.u32 %v3024_v43, 16  ;;  %v3231_v7 = vshrl.u32 %v3050_v26, 16  ;;  %v3230_v37 = vshrl.u32 %v3022_v3, 16 }
 0x3a7   : > { %13159 = vst [vmem:[#allocation27_spill] sm:$0xff] %v9871_v32  ;;  %v3219_v45 = vshrl.u32 %v9871_v32, 16  ;;  %v3051_v62 = vrot.slane %v9871_v32, 4  ;;  %v3184_v18 = vpack.i.b16 %v3183_v25, %v3182_v44  ;;  %v3025_v32 = vrot.slane %v3022_v3, 4 }
 0x3a8   : > { %v9887_v29 = vperm.slane %v3152_v42, %v8198_v4  ;;  %v3276_v19 = vunpack.c.l.b16 %v3178_v60  ;;  %v3281_v0 = vunpack.c.l.b16 %v3181_v20  ;;  %v2998_v44 = vsel %vm489_vm0, 0, %v2997_v56 }
 0x3a9   : > { %v3220_v10 = vpack.i.b16 %v3219_v45, %v3218_v63  ;;  %v3052_v40 = vsel %vm489_vm0, 0, %v3051_v62  ;;  %v3229_v63 = vpack.i.b16 %v3050_v26, %v3022_v3  ;;  %v3054_v45 = vsel %vm489_vm0, 0, %v3053_v47 }
 0x3aa   : > { %v3223_v21 = vpack.i.b16 %v3052_v40, %v3024_v43  ;;  %v3225_v41 = vshrl.u32 %v3052_v40, 16  ;;  %v3232_v43 = vpack.i.b16 %v3231_v7, %v3230_v37  ;;  %v2970_v40 = vsel %vm489_vm0, 0, %v2969_v58 }
 0x3ab   : > { %v3267_v54 = vunpack.c.l.b16 %v3220_v10  ;;  %v3153_v10 = vrot.slane %v3144_v24, 4  ;;  %v3026_v25 = vsel %vm489_vm0, 0, %v3025_v32  ;;  %v3282_v26 = vunpack.c.l.b16 %v3229_v63 }
 0x3ac   : > { %v3272_v35 = vunpack.c.l.b16 %v3223_v21  ;;  %v3226_v48 = vpack.i.b16 %v3225_v41, %v3224_v8  ;;  %v3286_v41 = vunpack.c.l.b16 %v3184_v18  ;;  %v3243_v8 = vshrl.u32 %v9887_v29, 16 }
 0x3ad   : > { %v3268_v12 = vpack.c.b16 %v3267_v54, %v3266_v27  ;;  %v3235_v27 = vpack.i.b16 %v3054_v45, %v3026_v25  ;;  %v3237_v7 = vshrl.u32 %v3054_v45, 16  ;;  %v3163_v3 = vrot.slane %v9887_v29, 4 }
 0x3ae   : > { %v3273_v62 = vpack.c.b16 %v3272_v35, %v3271_v49  ;;  %v3277_v15 = vunpack.c.l.b16 %v3226_v48  ;;  %v3187_v48 = vpack.i.b16 %v2998_v44, %v2970_v40  ;;  %v3188_v24 = vshrl.u32 %v2970_v40, 16 }
 0x3af   : > { %3269 = vrot.lane.b32.xlu2 %v3268_v12, %s7908_s28  ;;  %v3287_v12 = vunpack.c.l.b16 %v3232_v43  ;;  %v3195_v56 = vshrl.u32 %v9837_v13, 16  ;;  %v3242_v32 = vshrl.u32 %v9868_v6, 16  ;;  %v3189_v49 = vshrl.u32 %v2998_v44, 16 }
 0x3b0   : > { %3274 = vrot.lane.b32.xlu0 %v3273_v62, %s7909_s22  ;;  %v3278_v54 = vpack.c.b16 %v3277_v15, %v3276_v19  ;;  %v3236_v60 = vshrl.u32 %v3026_v25, 16  ;;  %v3107_v15 = vrot.slane %v9837_v13, 4  ;;  %v3135_v20 = vrot.slane %v9868_v6, 4 }
 0x3b1   : > { %v3154_v58 = vsel %vm489_vm0, %v9853_v17, %v3153_v10  ;;  %v3292_v42 = vunpack.c.l.b16 %v3235_v27  ;;  %v3194_v47 = vshrl.u32 %v9823_v28, 16  ;;  %v3244_v21 = vpack.i.b16 %v3243_v8, %v3242_v32 }
 0x3b2   : > { %3279 = vrot.lane.b32.xlu1 %v3278_v54, %s7912_s3  ;;  %v3283_v18 = vpack.c.b16 %v3282_v26, %v3281_v0  ;;  %v3238_v35 = vpack.i.b16 %v3237_v7, %v3236_v60  ;;  %v3079_v37 = vrot.slane %v9823_v28, 4  ;;  %v3164_v19 = vsel %vm489_vm0, 0, %v3163_v3 }
 0x3b3   : > { %v13160_v63 = vrot.slane %v9840_v53, 4  ;;  %v3288_v62 = vpack.c.b16 %v3287_v12, %v3286_v41  ;;  %v3291_v43 = vunpack.c.l.b16 %v3187_v48  ;;  %v3196_v40 = vpack.i.b16 %v3195_v56, %v3194_v47 }
 0x3b4   : > { %v3162_v17 = vperm.slane %v3154_v58, %v8198_v4  ;;  %v3190_v10 = vpack.i.b16 %v3189_v49, %v3188_v24  ;;  %v3108_v0 = vsel %vm489_vm0, 0, %v3107_v15  ;;  %v3136_v44 = vsel %vm489_vm0, 0, %v3135_v20 }
 0x3b5   : > { %v3126_v45 = vsel %vm489_vm0, %v9827_v22, %v13160_v63  ;;  %v3106_v25 = vperm.slane %v9834_v51, %v8198_v4  ;;  %v3293_v53 = vpack.c.b16 %v3292_v42, %v3291_v43  ;;  %v3305_v54 = vunpack.c.l.b16 %v3244_v21 }
 0x3b6   : > { %v3247_v22 = vpack.i.b16 %v3164_v19, %v3136_v44  ;;  %v3297_v41 = vunpack.c.l.b16 %v3238_v35  ;;  %v3080_v27 = vsel %vm489_vm0, 0, %v3079_v37  ;;  %v3249_v8 = vshrl.u32 %v3164_v19, 16 }
 0x3b7   : > { %3284 = vrot.lane.b32.xlu2 %v3283_v18, %s7906_s9  ;;  %v3134_v26 = vperm.slane %v3126_v45, %v8198_v4  ;;  %v3078_v48 = vperm.slane %v9820_v36, %v8198_v4  ;;  %v3304_v7 = vunpack.c.l.b16 %v3196_v40  ;;  %v3199_v3 = vpack.i.b16 %v3108_v0, %v3080_v27 }
 0x3b8   : > { %3289 = vrot.lane.b32.xlu0 %v3288_v62, %s7907_s11  ;;  %v3296_v12 = vunpack.c.l.b16 %v3190_v10  ;;  %v3201_v51 = vshrl.u32 %v3108_v0, 16  ;;  %v3248_v24 = vshrl.u32 %v3136_v44, 16  ;;  %v3165_v56 = vrot.slane %v3162_v17, 4 }
 0x3b9   : > { %v3306_v32 = vpack.c.b16 %v3305_v54, %v3304_v7  ;;  %v3310_v49 = vunpack.c.l.b16 %v3247_v22  ;;  %v3200_v60 = vshrl.u32 %v3080_v27, 16  ;;  %v3255_v15 = vshrl.u32 %v3162_v17, 16 }
 0x3ba   : > { %3294 = vrot.lane.b32.xlu1 %v3293_v53, %s7910_s27  ;;  %v3298_v20 = vpack.c.b16 %v3297_v41, %v3296_v12  ;;  %v3250_v58 = vpack.i.b16 %v3249_v8, %v3248_v24  ;;  %v3109_v42 = vrot.slane %v3106_v25, 4  ;;  %v3137_v47 = vrot.slane %v3134_v26, 4 }
 0x3bb   : > { %v3309_v21 = vunpack.c.l.b16 %v3199_v3  ;;  %v3253_v18 = vpack.i.b16 %v3162_v17, %v3134_v26  ;;  %v3207_v35 = vshrl.u32 %v3106_v25, 16  ;;  %v3254_v36 = vshrl.u32 %v3134_v26, 16 }
 0x3bc   : > { %v3202_v37 = vpack.i.b16 %v3201_v51, %v3200_v60  ;;  %v3081_v19 = vrot.slane %v3078_v48, 4  ;;  %v3166_v63 = vsel %vm489_vm0, 0, %v3165_v56  ;;  %v3205_v62 = vpack.i.b16 %v3106_v25, %v3078_v48 }
 0x3bd   : > { %v3311_v45 = vpack.c.b16 %v3310_v49, %v3309_v21  ;;  %v3206_v43 = vshrl.u32 %v3078_v48, 16  ;;  %v3256_v40 = vpack.i.b16 %v3255_v15, %v3254_v36  ;;  %v3315_v10 = vunpack.c.l.b16 %v3250_v58 }
 0x3be   : > { %v3110_v0 = vsel %vm489_vm0, 0, %v3109_v42  ;;  %v3138_v44 = vsel %vm489_vm0, 0, %v3137_v47  ;;  %v3320_v17 = vunpack.c.l.b16 %v3253_v18  ;;  %v3261_v54 = vshrl.u32 %v3166_v63, 16  ;;  %v13174_v18 = vld [vmem:[#allocation17_spill] sm:$0xff] }
 0x3bf   : > { %3299 = vrot.lane.b32.xlu2 %v3298_v20, %s7911_s30  ;;  %v3208_v53 = vpack.i.b16 %v3207_v35, %v3206_v43  ;;  %v3314_v22 = vunpack.c.l.b16 %v3202_v37  ;;  %v3082_v41 = vsel %vm489_vm0, 0, %v3081_v19  ;;  %v3319_v27 = vunpack.c.l.b16 %v3205_v62 }
 0x3c0   : > { %3307 = vrot.lane.b32.xlu0 %v3306_v32, %s7908_s28  ;;  %v3325_v8 = vunpack.c.l.b16 %v3256_v40  ;;  %v3213_v26 = vshrl.u32 %v3110_v0, 16  ;;  %v3260_v7 = vshrl.u32 %v3138_v44, 16  ;;  %v3259_v48 = vpack.i.b16 %v3166_v63, %v3138_v44 }
 0x3c1   : > { %v3316_v25 = vpack.c.b16 %v3315_v10, %v3314_v22  ;;  %v3169_v3 = vpack.i.b16 %v9799_v52, %v9796_v57  ;;  %v3321_v12 = vpack.c.b16 %v3320_v17, %v3319_v27  ;;  %v3324_v51 = vunpack.c.l.b16 %v3208_v53 }
 0x3c2   : > { %3312 = vrot.lane.b32.xlu1 %v3311_v45, %s7909_s22  ;;  %v3212_v24 = vshrl.u32 %v3082_v41, 16  ;;  %v3262_v56 = vpack.i.b16 %v3261_v54, %v3260_v7  ;;  %v3211_v32 = vpack.i.b16 %v3110_v0, %v3082_v41  ;;  %v3330_v15 = vunpack.c.l.b16 %v3259_v48  ;;  %v13175_v45 = vld [vmem:[#allocation14_spill] sm:$0xff] }
 0x3c3   : > { %v3326_v49 = vpack.c.b16 %v3325_v8, %v3324_v51  ;;  %v3193_v57 = vpack.i.b16 %v9837_v13, %v9823_v28  ;;  %v13173_v28 = vld [vmem:[#allocation13_spill] sm:$0xff]  ;;  %v3241_v0 = vpack.i.b16 %v9887_v29, %v9868_v6 }
 0x3c4   : > { %v3214_v60 = vpack.i.b16 %v3213_v26, %v3212_v24  ;;  %v3335_v20 = vunpack.c.l.b16 %v3262_v56  ;;  %v3329_v58 = vunpack.c.l.b16 %v3211_v32 }
 0x3c5   : > { %v3302_v54 = vunpack.c.l.b16 %v3241_v0  ;;  %v3301_v22 = vunpack.c.l.b16 %v3193_v57 }
 0x3c6   : > { %v3334_v42 = vunpack.c.l.b16 %v3214_v60  ;;  %v3331_v47 = vpack.c.b16 %v3330_v15, %v3329_v58 }
 0x3c7   : > { %3317 = vrot.lane.b32.xlu2 %v3316_v25, %s7912_s3  ;;  %v3303_v8 = vpack.c.b16 %v3302_v54, %v3301_v22  ;;  %v10082_v22 = vld [vmem:[%s8124_s5 + $0x3c] sm:$0xf] }
 0x3c8   : > { %3322 = vrot.lane.b32.xlu0 %v3321_v12, %s7906_s9  ;;  %v3336_v52 = vpack.c.b16 %v3335_v20, %v3334_v42 }
 0x3ca   : > { %3327 = vrot.lane.b32.xlu1 %v3326_v49, %s7907_s11 }
 0x3cf   : > { %3332 = vrot.lane.b32.xlu2 %v3331_v47, %s7910_s27 }
 0x3d0   : > { %3337 = vrot.lane.b32.xlu0 %v3336_v52, %s7911_s30 }
 0x3d2   : > { %3438 = vrot.lane.b32.xlu1 %v9222_v46, %s7914_s6  ;;  %v13161_v46 = vld [vmem:[#allocation8_spill] sm:$0xff] }
 0x3d7   : > { %3440 = vrot.lane.b32.xlu2 %v9474_v5, %s7914_s6  ;;  %v13168_v5 = vld [vmem:[#allocation19_spill] sm:$0xff] }
 0x3d8   : > { %3442 = vrot.lane.b32.xlu0 %v9240_v59, %s7914_s6  ;;  %v13162_v59 = vld [vmem:[#allocation21_spill] sm:$0xff] }
 0x3da   : > { %3444 = vrot.lane.b32.xlu1 %v9485_v9, %s7914_s6  ;;  %v13169_v9 = vld [vmem:[#allocation26_spill] sm:$0xff] }
 0x3df   : > { %3446 = vrot.lane.b32.xlu2 %v9254_v50, %s7914_s6 }
 0x3e0   : > { %3448 = vrot.lane.b32.xlu0 %v9491_v16, %s7914_s6  ;;  %v13170_v16 = vld [vmem:[#allocation27_spill] sm:$0xff] }
 0x3e2   : > { %3450 = vrot.lane.b32.xlu1 %v9263_v30, %s7914_s6  ;;  %v13163_v30 = vld [vmem:[#allocation5_spill] sm:$0xff] }
 0x3e7   : > { %3452 = vrot.lane.b32.xlu2 %v9505_v39, %s7914_s6  ;;  %v3217_v39 = vpack.i.b16 %v13170_v16, %v13169_v9 }
 0x3e8   : > { %3454 = vrot.lane.b32.xlu0 %v9269_v34, %s7914_s6  ;;  %v7605_v34 = vld [vmem:[%s8122_s29 + $0x10] sm:$0xff] }
 0x3e9   : > { %7436 = vmatmul.msk.bf16.vlgmr.msra.gmra.mxu0 %vm885_vm1, %v7605_v34  ;;  %7438 = vmatmul.msk.bf16.vlgmr.msra.gmra.mxu1 %vm885_vm1, %v7605_v34 }
 0x3ea   : > { %3456 = vrot.lane.b32.xlu1 %v9509_v14, %s7914_s6 }
 0x3ef   : > { %3458 = vrot.lane.b32.xlu2 %v9285_v31, %s7914_s6  ;;  %v13164_v31 = vld [vmem:[#allocation10_spill] sm:$0xff] }
 0x3f0   : > { %3460 = vrot.lane.b32.xlu0 %v9516_v33, %s7914_s6  ;;  %v13171_v33 = vld [vmem:[#allocation15_spill] sm:$0xff] }
 0x3f2   : > { %3462 = vrot.lane.b32.xlu1 %v9293_v38, %s7914_s6  ;;  %v13165_v38 = vld [vmem:[#allocation7_spill] sm:$0xff] }
 0x3f7   : > { %3464 = vrot.lane.b32.xlu2 %v9523_v11, %s7914_s6  ;;  %v3264_v11 = vunpack.c.l.b16 %v3217_v39 }
 0x3f8   : > { %3466 = vrot.lane.b32.xlu0 %v9303_v2, %s7914_s6 }
 0x3fa   : > { %3468 = vrot.lane.b32.xlu1 %v9532_v55, %s7914_s6  ;;  %v3263_v55 = vunpack.c.l.b16 %v3169_v3 }
 0x3fc   : > { %v3265_v13 = vpack.c.b16 %v3264_v11, %v3263_v55 }
 0x3ff   : > { %3470 = vrot.lane.b32.xlu2 %v9309_v23, %s7914_s6  ;;  %v13166_v23 = vld [vmem:[#allocation16_spill] sm:$0xff] }
 0x400   : > { %3472 = vrot.lane.b32.xlu0 %v9536_v1, %s7914_s6  ;;  %v13172_v1 = vld [vmem:[#allocation6_spill] sm:$0xff] }
 0x402   : > { %3474 = vrot.lane.b32.xlu1 %v9317_v61, %s7914_s6  ;;  %v13167_v61 = vld [vmem:[#allocation20_spill] sm:$0xff] }
 0x407   : > { %3476 = vrot.lane.b32.xlu2 %v13161_v46, %s7914_s6 }
 0x408   : > { %3478 = vrot.lane.b32.xlu0 %v13162_v59, %s7914_s6 }
 0x409   : > { %v3270_v50 = vpop.permute.xlu2 %3269 }
 0x40a   : > { %3480 = vrot.lane.b32.xlu1 %v13163_v30, %s7914_s6  ;;  %v3341_v36 = vsel %vm885_vm1, %v3265_v13, %v3270_v50  ;;  %v13176_v50 = vld [vmem:[#allocation9_spill] sm:$0xff] }
 0x40f   : > { %3482 = vrot.lane.b32.xlu2 %v13164_v31, %s7914_s6 }
 0x410   : > { %3484 = vrot.lane.b32.xlu0 %v13165_v38, %s7914_s6 }
 0x411   : > { %v3285_v2 = vpop.permute.xlu2 %3284 }
 0x412   : > { %3486 = vrot.lane.b32.xlu1 %v13166_v23, %s7914_s6 }
 0x417   : > { %3488 = vrot.lane.b32.xlu2 %v13167_v61, %s7914_s6 }
 0x418   : > { %3490 = vrot.lane.b32.xlu0 %v13168_v5, %s7914_s6 }
 0x419   : > { %v3300_v14 = vpop.permute.xlu2 %3299 }
 0x41a   : > { %3492 = vrot.lane.b32.xlu1 %v13171_v33, %s7914_s6 }
 0x41f   : > { %3494 = vrot.lane.b32.xlu2 %v13172_v1, %s7914_s6 }
 0x420   : > { %3496 = vrot.lane.b32.xlu0 %v13173_v28, %s7914_s6 }
 0x421   : > { %v3318_v21 = vpop.permute.xlu2 %3317 }
 0x422   : > { %3498 = vrot.lane.b32.xlu1 %v13174_v18, %s7914_s6  ;;  %v3275_v35 = vpop.permute.xlu0 %3274 }
 0x423   : > { %v3343_v37 = vsel %vm889_vm2, %v3341_v36, %v3275_v35 }
 0x424   : > { %v3280_v19 = vpop.permute.xlu1 %3279 }
 0x425   : > { %v3345_v63 = vsel %vm892_vm3, %v3343_v37, %v3280_v19 }
 0x426   : > { %v3347_v43 = vsel %vm895_vm4, %v3345_v63, %v3285_v2  ;;  %v10059_v63 = vld [vmem:[%s8124_s5] sm:$0xf] }
 0x427   : > { %3500 = vrot.lane.b32.xlu2 %v13175_v45, %s7914_s6 }
 0x429   : > { %v3333_v62 = vpop.permute.xlu2 %3332 }
 0x42a   : > { %v3290_v40 = vpop.permute.xlu0 %3289 }
 0x42b   : > { %v3349_v10 = vsel %vm898_vm5, %v3347_v43, %v3290_v40  ;;  %v10067_v40 = vld [vmem:[%s8124_s5 + $0x18] sm:$0xf] }
 0x42c   : > { %v3295_v44 = vpop.permute.xlu1 %3294 }
 0x42d   : > { %v3351_v17 = vsel %vm901_vm6, %v3349_v10, %v3295_v44  ;;  %v10074_v44 = vld [vmem:[%s8124_s5 + $0x24] sm:$0xf] }
 0x42e   : > { %v3353_v53 = vsel %vm904_vm7, %v3351_v17, %v3300_v14  ;;  %v10220_v17 = vld [vmem:[%s8124_s5 + $0xbc] sm:$0x3] }
 0x42f   : > { %3394 = vmatpush.bf16.msra.mxu0 %v3353_v53  ;;  %v10078_v53 = vld [vmem:[%s8124_s5 + $0x30] sm:$0xf]  ;;  %13190 = vst [vmem:[#allocation7_spill] sm:$0xff] %v10220_v17 }
 0x431   : > { %v3441_v41 = vpop.permute.xlu2 %3440 }
 0x432   : > { %v3308_v27 = vpop.permute.xlu0 %3307 }
 0x433   : > { %v3357_v7 = vsel %vm885_vm1, %v3303_v8, %v3308_v27  ;;  %v10087_v8 = vld [vmem:[%s8124_s5 + $0x48] sm:$0xf] }
 0x434   : > { %v3313_v26 = vpop.permute.xlu1 %3312 }
 0x435   : > { %v3359_v25 = vsel %vm889_vm2, %v3357_v7, %v3313_v26  ;;  %v10091_v7 = vld [vmem:[%s8124_s5 + $0x54] sm:$0xf] }
 0x436   : > { %v3361_v6 = vsel %vm892_vm3, %v3359_v25, %v3318_v21  ;;  %v10212_v25 = vld [vmem:[%s8124_s5 + $0xb0] sm:$0x3] }
 0x437   : > { %13188 = vst [vmem:[#allocation5_spill] sm:$0xff] %v10212_v25 }
 0x439   : > { %v3447_v48 = vpop.permute.xlu2 %3446 }
 0x43a   : > { %v3323_v3 = vpop.permute.xlu0 %3322 }
 0x43b   : > { %v3363_v29 = vsel %vm895_vm4, %v3361_v6, %v3323_v3  ;;  %v10098_v6 = vld [vmem:[%s8124_s5 + $0x60] sm:$0xf] }
 0x43c   : > { %v3328_v12 = vpop.permute.xlu1 %3327 }
 0x43d   : > { %v3365_v51 = vsel %vm898_vm5, %v3363_v29, %v3328_v12  ;;  %v10102_v12 = vld [vmem:[%s8124_s5 + $0x6c] sm:$0xf] }
 0x43e   : > { %v3367_v56 = vsel %vm901_vm6, %v3365_v51, %v3333_v62  ;;  %v10063_v62 = vld [vmem:[%s8124_s5 + $0xc] sm:$0xf]  ;;  %v10192_v51 = vld [vmem:[%s8124_s5 + $0x80] sm:$0x3] }
 0x43f   : > { %13183 = vst [vmem:[#allocation28_spill] sm:$0xff] %v10192_v51  ;;  %v10200_v29 = vld [vmem:[%s8124_s5 + $0x8c] sm:$0x3] }
 0x440   : > { %13185 = vst [vmem:[#allocation30_spill] sm:$0xff] %v10200_v29 }
 0x441   : > { %v10022_v24 = vpop.permute.xlu2 %3452 }
 0x442   : > { %v3338_v32 = vpop.permute.xlu0 %3337 }
 0x443   : > { %v3369_v49 = vsel %vm904_vm7, %v3367_v56, %v3338_v32 }
 0x444   : > { %v10026_v60 = vpop.permute.xlu1 %3438  ;;  %3413 = vmatpush.bf16.msra.mxu1 %v3369_v49  ;;  %v10108_v49 = vld [vmem:[%s8124_s5 + $0x78] sm:$0xf] }
 0x449   : > { %v3459_v15 = vpop.permute.xlu2 %3458 }
 0x44a   : > { %v3443_v20 = vpop.permute.xlu0 %3442  ;;  %v3562_v36 = vrot.slane %v3459_v15, 4 }
 0x44c   : > { %v10028_v58 = vpop.permute.xlu1 %3444  ;;  %v3563_v56 = vsel %vm489_vm0, %v3562_v36, %v3443_v20  ;;  %v10121_v20 = vld [vmem:[%s8124_s5 + $0x9c] sm:$0xf]  ;;  %v10149_v36 = vld [vmem:[%s8124_s5 + $0x20] sm:$0x3] }
 0x451   : > { %v3465_v42 = vpop.permute.xlu2 %3464 }
 0x452   : > { %v3449_v47 = vpop.permute.xlu0 %3448  ;;  %v3652_v57 = vrot.slane %v3465_v42, 4  ;;  %v10112_v42 = vld [vmem:[%s8124_s5 + $0x84] sm:$0xf] }
 0x454   : > { %v3451_v52 = vpop.permute.xlu1 %3450  ;;  %v3653_v46 = vsel %vm489_vm0, %v3652_v57, %v3449_v47  ;;  %v10116_v57 = vld [vmem:[%s8124_s5 + $0x90] sm:$0xf] }
 0x455   : > { %v3657_v30 = vperm.slane %v3653_v46, %v13176_v50 }
 0x457   : > { %v3658_v2 = vrot.slane %v3657_v30, 4 }
 0x459   : > { %v10031_v59 = vpop.permute.xlu2 %3470 }
 0x45a   : > { %v10034_v34 = vpop.permute.xlu0 %3454 }
 0x45b   : > { %v3534_v27 = vrot.slane %v10034_v34, 4  ;;  %v10181_v34 = vld [vmem:[%s8124_s5 + $0x68] sm:$0x3] }
 0x45c   : > { %v3457_v31 = vpop.permute.xlu1 %3456  ;;  %13181 = vst [vmem:[#allocation23_spill] sm:$0xff] %v10181_v34 }
 0x45d   : > { %v3646_v38 = vrot.slane %v3457_v31, 4  ;;  %v10125_v31 = vld [vmem:[%s8124_s5 + $0xa8] sm:$0xf] }
 0x45f   : > { %v3647_v23 = vsel %vm489_vm0, %v3646_v38, %v3441_v41  ;;  %v10176_v38 = vld [vmem:[%s8124_s5 + $0x5c] sm:$0x3] }
 0x460   : > { %v3651_v61 = vperm.slane %v3647_v23, %v13176_v50  ;;  %v10168_v23 = vld [vmem:[%s8124_s5 + $0x44] sm:$0x3]  ;;  %13180 = vst [vmem:[#allocation24_spill] sm:$0xff] %v10176_v38 }
 0x461   : > { %v10038_v5 = vpop.permute.xlu2 %3476  ;;  %13178 = vst [vmem:[#allocation18_spill] sm:$0xff] %v10168_v23 }
 0x462   : > { %v10041_v9 = vsel %vm489_vm0, %v3658_v2, %v3651_v61  ;;  %v3660_v16 = vrot.slane %v3651_v61, 4  ;;  %v10043_v39 = vpop.permute.xlu0 %3460  ;;  %v10129_v2 = vld [vmem:[%s8124_s5 + $0xb4] sm:$0xf]  ;;  %v3535_v61 = vsel %vm489_vm0, %v3534_v27, %v10026_v60 }
 0x463   : > { %v3674_v32 = vrot.slane %v10043_v39, 4  ;;  %v10135_v39 = vperm.slane %v3563_v56, %v13176_v50  ;;  %v3539_v60 = vperm.slane %v3535_v61, %v13176_v50  ;;  %v10188_v56 = vld [vmem:[%s8124_s5 + $0x74] sm:$0x3] }
 0x464   : > { %v10046_v14 = vsel %vm489_vm0, %v3657_v30, %v3660_v16  ;;  %v3463_v33 = vpop.permute.xlu1 %3462  ;;  %13182 = vst [vmem:[#allocation12_spill] sm:$0xff] %v10188_v56 }
 0x465   : > { %v3540_v13 = vrot.slane %v3463_v33, 4  ;;  %v3576_v10 = vrot.slane %v10135_v39, 4  ;;  %v3548_v15 = vrot.slane %v3539_v60, 4 }
 0x467   : > { %v3541_v37 = vsel %vm489_vm0, %v3540_v13, %v3447_v48 }
 0x468   : > { %v10095_v48 = vperm.slane %v3541_v37, %v13176_v50 }
 0x469   : > { %v10048_v11 = vpop.permute.xlu2 %3482 }
 0x46a   : > { %v3467_v55 = vpop.permute.xlu0 %3466  ;;  %v3546_v33 = vrot.slane %v10095_v48, 4 }
 0x46b   : > { %v3568_v28 = vrot.slane %v3467_v55, 4 }
 0x46c   : > { %v3469_v1 = vpop.permute.xlu1 %3468 }
 0x46d   : > { %v3569_v18 = vsel %vm489_vm0, %v3568_v28, %v3451_v52  ;;  %v3680_v3 = vrot.slane %v3469_v1, 4  ;;  %v10141_v28 = vld [vmem:[%s8124_s5 + $0x8] sm:$0x3]  ;;  %v3547_v52 = vsel %vm489_vm0, %v3546_v33, %v3539_v60 }
 0x46e   : > { %v10071_v0 = vperm.slane %v3569_v18, %v13176_v50  ;;  %v10145_v18 = vld [vmem:[%s8124_s5 + $0x14] sm:$0x3]  ;;  %v10216_v26 = vperm.slane %v3547_v52, %v8198_v4  ;;  %v10230_v52 = vperm.slane %v10046_v14, %v8198_v4 }
 0x46f   : > { %v3681_v55 = vsel %vm489_vm0, %v3680_v3, %v10022_v24  ;;  %v3675_v24 = vsel %vm489_vm0, %v3674_v32, %v10028_v58  ;;  %v10157_v3 = vld [vmem:[%s8124_s5 + $0x2c] sm:$0x3]  ;;  %v10172_v32 = vld [vmem:[%s8124_s5 + $0x50] sm:$0x3] }
 0x470   : > { %v3574_v46 = vrot.slane %v10071_v0, 4  ;;  %13179 = vst [vmem:[#allocation25_spill] sm:$0xff] %v10172_v32  ;;  %v3685_v61 = vperm.slane %v3681_v55, %v13176_v50  ;;  %v3679_v58 = vperm.slane %v3675_v24, %v13176_v50  ;;  %v10204_v24 = vld [vmem:[%s8124_s5 + $0x98] sm:$0x3] }
 0x471   : > { %v10050_v21 = vpop.permute.xlu2 %3488  ;;  %13186 = vst [vmem:[#allocation8_spill] sm:$0xff] %v10204_v24 }
 0x472   : > { %v10053_v35 = vpop.permute.xlu0 %3472  ;;  %v3575_v37 = vsel %vm489_vm0, %v3574_v46, %v10135_v39  ;;  %v3702_v46 = vrot.slane %v10050_v21, 4  ;;  %13189 = vst [vmem:[#allocation10_spill] sm:$0xff] %v10216_v26  ;;  %v3686_v21 = vrot.slane %v3685_v61, 4  ;;  %v3688_v43 = vrot.slane %v3679_v58, 4 }
 0x473   : > { %v10196_v13 = vperm.slane %v3575_v37, %v8198_v4  ;;  %v10226_v37 = vperm.slane %v10041_v9, %v8198_v4  ;;  %v3577_v39 = vsel %vm489_vm0, %v10071_v0, %v3576_v10 }
 0x474   : > { %v10056_v19 = vpop.permute.xlu1 %3474  ;;  %v3689_v60 = vsel %vm489_vm0, %v3685_v61, %v3688_v43  ;;  %v3687_v17 = vsel %vm489_vm0, %v3686_v21, %v3679_v58  ;;  %v3585_v0 = vperm.slane %v3577_v39, %v8198_v4 }
 0x475   : > { %13184 = vst [vmem:[#allocation29_spill] sm:$0xff] %v10196_v13  ;;  %v3762_v45 = vshrl.u32 %v10196_v13, 16  ;;  %v3586_v10 = vrot.slane %v10196_v13, 4  ;;  %v10262_v21 = vperm.slane %v3687_v17, %v8198_v4 }
 0x476   : > { %13191 = vst [vmem:[#allocation16_spill] sm:$0xff] %v10226_v37 }
 0x477   : > { %13192 = vst [vmem:[#allocation20_spill] sm:$0xff] %v10262_v21 }
 0x479   : > { %v3495_v30 = vpop.permute.xlu2 %3494 }
 0x47a   : > { %v3479_v16 = vpop.permute.xlu0 %3478  ;;  %v3596_v1 = vrot.slane %v3495_v30, 4  ;;  %v10161_v30 = vld [vmem:[%s8124_s5 + $0x38] sm:$0x3] }
 0x47b   : > { %13177 = vst [vmem:[#allocation22_spill] sm:$0xff] %v10161_v30 }
 0x47c   : > { %v10154_v27 = vpop.permute.xlu1 %3480  ;;  %v3597_v47 = vsel %vm489_vm0, %v3596_v1, %v3479_v16  ;;  %v10208_v1 = vld [vmem:[%s8124_s5 + $0xa4] sm:$0x3]  ;;  %v3549_v16 = vsel %vm489_vm0, %v10095_v48, %v3548_v15  ;;  %v3558_v48 = vrot.slane %v10216_v26, 4 }
 0x47d   : > { %13187 = vst [vmem:[#allocation21_spill] sm:$0xff] %v10208_v1  ;;  %v3601_v41 = vperm.slane %v3597_v47, %v13176_v50  ;;  %v3703_v47 = vsel %vm489_vm0, %v3702_v46, %v10053_v35  ;;  %v3761_v1 = vshrl.u32 %v10216_v26, 16  ;;  %v3557_v43 = vperm.slane %v3549_v16, %v8198_v4 }
 0x47e   : > { %v10244_v35 = vperm.slane %v3703_v47, %v13176_v50 }
 0x47f   : > { %v3602_v25 = vrot.slane %v3601_v41, 4  ;;  %v10253_v58 = vpack.i.b16 %v3762_v45, %v3761_v1  ;;  %v3772_v17 = vpack.i.b16 %v3585_v0, %v3557_v43 }
 0x480   : > { %v3716_v45 = vrot.slane %v10244_v35, 4 }
 0x481   : > { %v3501_v55 = vpop.permute.xlu2 %3500  ;;  %v13199_v30 = vunpack.c.l.b16 %v10253_v58 }
 0x482   : > { %v3485_v33 = vpop.permute.xlu0 %3484  ;;  %v3736_v54 = vrot.slane %v3501_v55, 4 }
 0x484   : > { %v3487_v55 = vpop.permute.xlu1 %3486  ;;  %v3737_v14 = vsel %vm489_vm0, %v3736_v54, %v3485_v33  ;;  %v10256_v54 = vperm.slane %v3689_v60, %v8198_v4  ;;  %v3559_v33 = vsel %vm489_vm0, 0, %v3558_v48  ;;  %v3774_v48 = vshrl.u32 %v3585_v0, 16 }
 0x485   : > { %v3590_v9 = vrot.slane %v3487_v55, 4  ;;  %v3741_v61 = vperm.slane %v3737_v14, %v13176_v50 }
 0x487   : > { %v3591_v46 = vsel %vm489_vm0, %v3590_v9, %v10031_v59  ;;  %v3587_v59 = vsel %vm489_vm0, 0, %v3586_v10  ;;  %v3767_v10 = vshrl.u32 %v3559_v33, 16 }
 0x488   : > { %v3595_v15 = vperm.slane %v3591_v46, %v13176_v50  ;;  %v3766_v39 = vpack.i.b16 %v3587_v59, %v3559_v33  ;;  %v3768_v9 = vshrl.u32 %v3587_v59, 16 }
 0x48a   : > { %v3603_v16 = vsel %vm489_vm0, %v3602_v25, %v3595_v15  ;;  %v3604_v47 = vrot.slane %v3595_v15, 4  ;;  %v3491_v55 = vpop.permute.xlu0 %3490  ;;  %v3742_v25 = vrot.slane %v3741_v61, 4  ;;  %v10278_v59 = vunpack.c.l.b16 %v3766_v39 }
 0x48b   : > { %v10267_v1 = vperm.slane %v3603_v16, %v8198_v4  ;;  %v3618_v60 = vrot.slane %v3491_v55, 4 }
 0x48c   : > { %v3605_v14 = vsel %vm489_vm0, %v3601_v41, %v3604_v47  ;;  %v3493_v46 = vpop.permute.xlu1 %3492  ;;  %v10280_v41 = vpack.i.b16 %v3768_v9, %v3767_v10  ;;  %v3560_v9 = vrot.slane %v3557_v43, 4  ;;  %v3588_v10 = vrot.slane %v3585_v0, 4 }
 0x48d   : > { %13193 = vst [vmem:[#allocation19_spill] sm:$0xff] %v10267_v1  ;;  %v10272_v13 = vperm.slane %v3605_v14, %v8198_v4  ;;  %v3619_v15 = vsel %vm489_vm0, %v3618_v60, %v10056_v19  ;;  %v3730_v26 = vrot.slane %v3493_v46, 4  ;;  %v3614_v55 = vrot.slane %v10267_v1, 4 }
 0x48e   : > { %v3623_v16 = vperm.slane %v3619_v15, %v13176_v50  ;;  %v3773_v14 = vshrl.u32 %v3557_v43, 16  ;;  %v10289_v60 = vunpack.c.l.b16 %v3772_v17  ;;  %v3561_v56 = vsel %vm489_vm0, 0, %v3560_v9 }
 0x48f   : > { %v3731_v33 = vsel %vm489_vm0, %v3730_v26, %v10038_v5  ;;  %v10287_v19 = vsel %vm489_vm0, 0, %v3614_v55  ;;  %v3821_v46 = vshrl.u32 %v10272_v13, 16  ;;  %v13197_v32 = vshrl.u32 %v10267_v1, 16 }
 0x490   : > { %v3735_v24 = vperm.slane %v3731_v33, %v13176_v50  ;;  %v3632_v39 = vrot.slane %v3623_v16, 4  ;;  %v10292_v15 = vpack.i.b16 %v3774_v48, %v3773_v14  ;;  %v3616_v33 = vrot.slane %v10272_v13, 4 }
 0x491   : > { %v13198_v1 = vshrl.u32 %v10287_v19, 16 }
 0x492   : > { %v3743_v5 = vsel %vm489_vm0, %v3742_v25, %v3735_v24  ;;  %v3744_v26 = vrot.slane %v3735_v24, 4  ;;  %v3497_v47 = vpop.permute.xlu0 %3496  ;;  %v3877_v0 = vunpack.c.l.b16 %v10292_v15  ;;  %v3589_v24 = vsel %vm489_vm0, 0, %v3588_v10 }
 0x493   : > { %v10298_v55 = vperm.slane %v3743_v5, %v8198_v4  ;;  %v3708_v17 = vrot.slane %v3497_v47, 4  ;;  %v10306_v25 = vsel %vm489_vm0, 0, %v3616_v33  ;;  %v3778_v29 = vpack.i.b16 %v3589_v24, %v3561_v56 }
 0x494   : > { %v3745_v48 = vsel %vm489_vm0, %v3741_v61, %v3744_v26  ;;  %v3499_v43 = vpop.permute.xlu1 %3498  ;;  %v3779_v47 = vshrl.u32 %v3561_v56, 16  ;;  %v3780_v61 = vshrl.u32 %v3589_v24, 16  ;;  %v3827_v26 = vshrl.u32 %v10306_v25, 16 }
 0x495   : > { %13194 = vst [vmem:[#allocation26_spill] sm:$0xff] %v10298_v55  ;;  %v3709_v14 = vsel %vm489_vm0, %v3708_v17, %v10154_v27  ;;  %v3624_v5 = vrot.slane %v3499_v43, 4  ;;  %v10311_v51 = vperm.slane %v3745_v48, %v8198_v4  ;;  %v10317_v10 = vunpack.c.l.b16 %v3778_v29 }
 0x496   : > { %v3713_v9 = vperm.slane %v3709_v14, %v13176_v50  ;;  %v3785_v33 = vshrl.u32 %v10226_v37, 16  ;;  %v3786_v27 = vshrl.u32 %v10262_v21, 16  ;;  %v10323_v43 = vpack.i.b16 %v3780_v61, %v3779_v47 }
 0x497   : > { %v3625_v15 = vsel %vm489_vm0, %v3624_v5, %v10048_v11  ;;  %v3834_v34 = vshrl.u32 %v10298_v55, 16  ;;  %v3670_v11 = vrot.slane %v10226_v37, 4 }
 0x498   : > { %v3714_v17 = vrot.slane %v3713_v9, 4  ;;  %v3717_v56 = vsel %vm489_vm0, %v3713_v9, %v3716_v45  ;;  %v3629_v48 = vperm.slane %v3625_v15, %v13176_v50  ;;  %v3787_v14 = vpack.i.b16 %v3786_v27, %v3785_v33 }
 0x499   : > { %v10326_v24 = vperm.slane %v3717_v56, %v8198_v4  ;;  %v3887_v45 = vunpack.c.l.b16 %v10323_v43  ;;  %v3671_v15 = vsel %vm489_vm0, 0, %v3670_v11  ;;  %v3698_v27 = vrot.slane %v10262_v21, 4 }
 0x49a   : > { %v3715_v29 = vsel %vm489_vm0, %v3714_v17, %v10244_v35  ;;  %v3630_v5 = vrot.slane %v3629_v48, 4  ;;  %v3633_v38 = vsel %vm489_vm0, %v3629_v48, %v3632_v39  ;;  %v3895_v61 = vunpack.c.l.b16 %v3787_v14 }
 0x49b   : > { %v10335_v9 = vperm.slane %v3715_v29, %v8198_v4  ;;  %v3641_v47 = vperm.slane %v3633_v38, %v8198_v4  ;;  %v3754_v56 = vrot.slane %v10298_v55, 4  ;;  %v3791_v35 = vshrl.u32 %v3671_v15, 16 }
 0x49c   : > { %v3631_v33 = vsel %vm489_vm0, %v3630_v5, %v3623_v16  ;;  %v3699_v38 = vsel %vm489_vm0, 0, %v3698_v27 }
 0x49d   : > { %13195 = vst [vmem:[#allocation27_spill] sm:$0xff] %v10335_v9  ;;  %v10343_v17 = vperm.slane %v3631_v33, %v8198_v4  ;;  %v3820_v39 = vpack.i.b16 %v3641_v47, %v10272_v13  ;;  %v3822_v48 = vshrl.u32 %v3641_v47, 16  ;;  %v3644_v43 = vrot.slane %v3641_v47, 4 }
 0x49e   : > { %v3833_v29 = vshrl.u32 %v10335_v9, 16  ;;  %v3726_v14 = vrot.slane %v10335_v9, 4  ;;  %v3755_v16 = vsel %vm489_vm0, 0, %v3754_v56  ;;  %v3790_v55 = vpack.i.b16 %v3699_v38, %v3671_v15 }
 0x49f   : > { %13196 = vst [vmem:[#allocation15_spill] sm:$0xff] %v10343_v17  ;;  %v3810_v11 = vshrl.u32 %v10343_v17, 16  ;;  %v3642_v5 = vrot.slane %v10343_v17, 4  ;;  %v10352_v21 = vunpack.c.l.b16 %v3820_v39  ;;  %v3823_v33 = vpack.i.b16 %v3822_v48, %v3821_v46 }
 0x4a0   : > { %v3645_v37 = vsel %vm489_vm0, 0, %v3644_v43  ;;  %v3835_v13 = vpack.i.b16 %v3834_v34, %v3833_v29  ;;  %v3727_v47 = vsel %vm489_vm0, 0, %v3726_v14 }
 0x4a1   : > { %v3811_v27 = vpack.i.b16 %v3810_v11, %v13197_v32  ;;  %v3643_v9 = vsel %vm489_vm0, 0, %v3642_v5  ;;  %v3874_v56 = vpack.c.b16 %v10352_v21, %v10289_v60  ;;  %v3878_v23 = vunpack.c.l.b16 %v3823_v33 }
 0x4a2   : > { %v3814_v17 = vpack.i.b16 %v3643_v9, %v10287_v19  ;;  %v3816_v39 = vshrl.u32 %v3643_v9, 16  ;;  %v3826_v46 = vpack.i.b16 %v3645_v37, %v10306_v25  ;;  %v3828_v48 = vshrl.u32 %v3645_v37, 16 }
 0x4a3   : > { %v3858_v43 = vunpack.c.l.b16 %v3811_v27  ;;  %v3879_v34 = vpack.c.b16 %v3878_v23, %v3877_v0  ;;  %v3896_v29 = vunpack.c.l.b16 %v3835_v13  ;;  %v3838_v14 = vpack.i.b16 %v3755_v16, %v3727_v47 }
 0x4a4   : > { %v3863_v15 = vunpack.c.l.b16 %v3814_v17  ;;  %v3817_v32 = vpack.i.b16 %v3816_v39, %v13198_v1  ;;  %v3883_v11 = vunpack.c.l.b16 %v3826_v46  ;;  %v3829_v5 = vpack.i.b16 %v3828_v48, %v3827_v26 }
 0x4a5   : > { %v3859_v21 = vpack.c.b16 %v3858_v43, %v13199_v30  ;;  %v10367_v60 = vpack.c.b16 %v3896_v29, %v3895_v61  ;;  %v10369_v33 = vunpack.c.l.b16 %v3790_v55  ;;  %v10371_v9 = vunpack.c.l.b16 %v3838_v14 }
 0x4a6   : > { %v3864_v37 = vpack.c.b16 %v3863_v15, %v10278_v59  ;;  %v3868_v23 = vunpack.c.l.b16 %v3817_v32  ;;  %v3884_v0 = vpack.c.b16 %v3883_v11, %v10317_v10  ;;  %v3888_v25 = vunpack.c.l.b16 %v3829_v5 }
 0x4a7   : > { %3860 = vrot.lane.b32.xlu0 %v3859_v21, %s7908_s28  ;;  %v3902_v1 = vpack.c.b16 %v10371_v9, %v10369_v33  ;;  %v3792_v19 = vshrl.u32 %v3699_v38, 16  ;;  %v3839_v58 = vshrl.u32 %v3727_v47, 16  ;;  %v3840_v30 = vshrl.u32 %v3755_v16, 16 }
 0x4a8   : > { %3865 = vrot.lane.b32.xlu1 %v3864_v37, %s7909_s22  ;;  %v13200_v55 = vunpack.c.l.b16 %v10280_v41  ;;  %v10381_v61 = vpack.c.b16 %v3888_v25, %v3887_v45  ;;  %v3796_v59 = vpack.i.b16 %v10256_v54, %v10230_v52  ;;  %v3844_v10 = vpack.i.b16 %v10311_v51, %v10326_v24 }
 0x4a9   : > { %v3793_v17 = vpack.i.b16 %v3792_v19, %v3791_v35  ;;  %v3841_v13 = vpack.i.b16 %v3840_v30, %v3839_v58  ;;  %v3797_v27 = vshrl.u32 %v10230_v52, 16  ;;  %v3798_v38 = vshrl.u32 %v10256_v54, 16 }
 0x4aa   : > { %v3869_v26 = vpack.c.b16 %v3868_v23, %v13200_v55  ;;  %v10390_v16 = vunpack.c.l.b16 %v3796_v59  ;;  %v10392_v41 = vunpack.c.l.b16 %v3844_v10  ;;  %v3845_v45 = vshrl.u32 %v10326_v24, 16 }
 0x4ab   : > { %v3846_v47 = vshrl.u32 %v10311_v51, 16  ;;  %v3905_v39 = vunpack.c.l.b16 %v3793_v17  ;;  %v3906_v46 = vunpack.c.l.b16 %v3841_v13  ;;  %v3799_v48 = vpack.i.b16 %v3798_v38, %v3797_v27  ;;  %v10426_v27 = vld [vmem:[%s8124_s5 + $0x10] sm:$0xf] }
 0x4ac   : > { %3870 = vrot.lane.b32.xlu2 %v3869_v26, %s7912_s3  ;;  %v3672_v35 = vrot.slane %v10230_v52, 4  ;;  %v3912_v43 = vpack.c.b16 %v10392_v41, %v10390_v16  ;;  %v3700_v14 = vrot.slane %v10256_v54, 4  ;;  %v3728_v15 = vrot.slane %v10326_v24, 4 }
 0x4ad   : > { %v3847_v29 = vpack.i.b16 %v3846_v47, %v3845_v45  ;;  %v10401_v32 = vpack.c.b16 %v3906_v46, %v3905_v39  ;;  %v3915_v11 = vunpack.c.l.b16 %v3799_v48  ;;  %v3756_v21 = vrot.slane %v10311_v51, 4  ;;  %v10430_v45 = vld [vmem:[%s8124_s5 + $0x1c] sm:$0xf]  ;;  %v10442_v48 = vld [vmem:[%s8124_s5 + $0x28] sm:$0xf] }
 0x4ae   : > { %v3673_v5 = vsel %vm489_vm0, 0, %v3672_v35  ;;  %v3701_v23 = vsel %vm489_vm0, 0, %v3700_v14  ;;  %v3729_v52 = vsel %vm489_vm0, 0, %v3728_v15  ;;  %v12978_v38 = vrot.slane %v10426_v27, 6 }
 0x4af   : > { %v3916_v37 = vunpack.c.l.b16 %v3847_v29  ;;  %v3803_v25 = vshrl.u32 %v3673_v5, 16  ;;  %3875 = vrot.lane.b32.xlu0 %v3874_v56, %s7906_s9  ;;  %v3757_v54 = vsel %vm489_vm0, 0, %v3756_v21  ;;  %v3802_v19 = vpack.i.b16 %v3701_v23, %v3673_v5  ;;  %v10415_v56 = vld [vmem:[%s8124_s5 + $0x4] sm:$0xf]  ;;  %v10446_v29 = vld [vmem:[%s8124_s5 + $0x34] sm:$0xf] }
 0x4b0   : > { %v3804_v24 = vshrl.u32 %v3701_v23, 16  ;;  %v3851_v58 = vshrl.u32 %v3729_v52, 16  ;;  %3880 = vrot.lane.b32.xlu1 %v3879_v34, %s7907_s11  ;;  %v3850_v51 = vpack.i.b16 %v3757_v54, %v3729_v52  ;;  %v3852_v55 = vshrl.u32 %v3757_v54, 16 }
 0x4b1   : > { %v10410_v30 = vpack.c.b16 %v3916_v37, %v3915_v11  ;;  %v10412_v26 = vunpack.c.l.b16 %v3802_v19  ;;  %v12979_v10 = vrot.slane %v10415_v56, 6  ;;  %v12977_v47 = vrot.slane %v10430_v45, 6  ;;  %v10488_v19 = vld [vmem:[%s8124_s5 + $0x4c] sm:$0xf] }
 0x4b2   : > { %v3805_v59 = vpack.i.b16 %v3804_v24, %v3803_v25  ;;  %v10419_v17 = vunpack.c.l.b16 %v3850_v51  ;;  %v3853_v34 = vpack.i.b16 %v3852_v55, %v3851_v58  ;;  %v12975_v35 = vrot.slane %v10442_v48, 6  ;;  %v10484_v25 = vld [vmem:[%s8124_s5 + $0x40] sm:$0xf]  ;;  %v10494_v58 = vld [vmem:[%s8124_s5 + $0x58] sm:$0xf] }
 0x4b3   : > { %v12974_v14 = vrot.slane %v10446_v29, 6  ;;  %v13205_v21 = vrot.slane %v10067_v40, 10  ;;  %v13206_v23 = vrot.slane %v10074_v44, 10  ;;  %v12970_v54 = vrot.slane %v10484_v25, 6  ;;  %v10498_v51 = vld [vmem:[%s8124_s5 + $0x64] sm:$0xf] }
 0x4b4   : > { %3885 = vrot.lane.b32.xlu2 %v3884_v0, %s7910_s27  ;;  %v3925_v39 = vunpack.c.l.b16 %v3805_v59  ;;  %v13203_v0 = vrot.slane %v10059_v63, 10  ;;  %v3926_v11 = vunpack.c.l.b16 %v3853_v34  ;;  %v13204_v63 = vrot.slane %v10063_v62, 10  ;;  %v10502_v59 = vld [vmem:[%s8124_s5 + $0x70] sm:$0xf] }
 0x4b5   : > { %v10465_v37 = vsel %vm10421_vm13, %v13205_v21, %v12977_v47  ;;  %v10473_v52 = vsel %vm10421_vm13, %v13206_v23, %v12975_v35  ;;  %v13207_v62 = vrot.slane %v10078_v53, 10  ;;  %v12964_v44 = vrot.slane %v10488_v19, 6  ;;  %v10524_v21 = vld [vmem:[%s8124_s5 + $0x7c] sm:$0xf]  ;;  %v10528_v23 = vld [vmem:[%s8124_s5 + $0x88] sm:$0xf] }
 0x4b6   : > { %v10439_v46 = vsel %vm10421_vm13, %v13203_v0, %v12979_v10  ;;  %v10457_v5 = vsel %vm10421_vm13, %v13204_v63, %v12978_v38  ;;  %v10491_v24 = vpack.c.b16 %v3926_v11, %v3925_v39  ;;  %v12967_v53 = vrot.slane %v10494_v58, 6 }
 0x4b7   : > { %v10481_v40 = vsel %vm10421_vm13, %v13207_v62, %v12974_v14  ;;  %v12966_v55 = vrot.slane %v10498_v51, 6  ;;  %v12965_v34 = vrot.slane %v10502_v59, 6  ;;  %3890 = vrot.lane.b32.xlu0 %v10381_v61, %s7911_s30  ;;  %v13208_v39 = vrot.slane %v10082_v22, 10 }
 0x4b8   : > { %v13209_v11 = vrot.slane %v10087_v8, 10  ;;  %v12969_v61 = vrot.slane %v10524_v21, 6  ;;  %v12968_v22 = vrot.slane %v10528_v23, 6  ;;  %3898 = vrot.lane.b32.xlu1 %v10367_v60, %s7908_s28  ;;  %v13210_v8 = vrot.slane %v10091_v7, 10  ;;  %v10558_v7 = vld [vmem:[%s8124_s5 + $0x94] sm:$0xf] }
 0x4b9   : > { %v10513_v0 = vsel %vm10421_vm13, %v13208_v39, %v12970_v54  ;;  %v13211_v39 = vrot.slane %v10098_v6, 10  ;;  %v13213_v60 = vrot.slane %v10102_v12, 10  ;;  %v13215_v6 = vrot.slane %v10108_v49, 10 }
 0x4ba   : > { %v10521_v63 = vsel %vm10421_vm13, %v13209_v11, %v12964_v44  ;;  %v10539_v62 = vsel %vm10421_vm13, %v13210_v8, %v12967_v53  ;;  %v12971_v8 = vrot.slane %v10558_v7, 6  ;;  %v13217_v12 = vrot.slane %v10112_v42, 10  ;;  %v10582_v53 = vld [vmem:[%s8124_s5 + $0xac] sm:$0xf] }
 0x4bb   : > { %v10547_v11 = vsel %vm10421_vm13, %v13211_v39, %v12966_v55  ;;  %v10555_v44 = vsel %vm10421_vm13, %v13213_v60, %v12965_v34  ;;  %v10567_v39 = vsel %vm10421_vm13, %v13215_v6, %v12969_v61  ;;  %v10578_v34 = vld [vmem:[%s8124_s5 + $0xa0] sm:$0xf]  ;;  %v12973_v49 = vrot.slane %v10582_v53, 6 }
 0x4bc   : > { %13212 = vst [vmem:[#allocation6_spill] sm:$0xff] %v10547_v11  ;;  %v10575_v60 = vsel %vm10421_vm13, %v13217_v12, %v12968_v22  ;;  %v12972_v55 = vrot.slane %v10578_v34, 6  ;;  %3903 = vrot.lane.b32.xlu2 %v3902_v1, %s7909_s22  ;;  %v13219_v42 = vrot.slane %v10116_v57, 10  ;;  %v10598_v12 = vld [vmem:[%s8124_s5 + $0xb8] sm:$0xf]  ;;  %v4176_v61 = vrot.slane %v10481_v40, 4 }
 0x4bd   : > { %13214 = vst [vmem:[#allocation13_spill] sm:$0xff] %v10555_v44  ;;  %v12976_v22 = vrot.slane %v10598_v12, 6  ;;  %v4182_v54 = vrot.slane %v10521_v63, 4  ;;  %v13221_v33 = vrot.slane %v10121_v20, 10  ;;  %v13223_v57 = vrot.slane %v10125_v31, 10  ;;  %s7918_s5 = smov (!%p7596_p3), 64  }
 0x4be   : > { %13216 = vst [vmem:[#allocation17_spill] sm:$0xff] %v10567_v39  ;;  %v10595_v6 = vsel %vm10421_vm13, %v13219_v42, %v12971_v8  ;;  %v4204_v42 = vrot.slane %v10513_v0, 4  ;;  %v4210_v8 = vrot.slane %v10539_v62, 4  ;;  %v13224_v20 = vrot.slane %v10129_v2, 10 }
 0x4bf   : > { %13218 = vst [vmem:[#allocation14_spill] sm:$0xff] %v10575_v60  ;;  %v10609_v9 = vsel %vm10421_vm13, %v13221_v33, %v12972_v55  ;;  %v10617_v1 = vsel %vm10421_vm13, %v13223_v57, %v12973_v49  ;;  %v4177_v55 = vsel %vm489_vm0, %v4176_v61, %v10439_v46  ;;  %v4183_v31 = vsel %vm489_vm0, %v4182_v54, %v10465_v37 }
 0x4c0   : > { %13220 = vst [vmem:[#allocation31_spill] sm:$0xff] %v10595_v6  ;;  %v10627_v33 = vsel %vm10421_vm13, %v13224_v20, %v12976_v22  ;;  %v4232_v57 = vrot.slane %v10595_v6, 4  ;;  %v4181_v49 = vperm.slane %v4177_v55, %v13176_v50  ;;  %v4187_v14 = vperm.slane %v4183_v31, %v13176_v50  ;;  %3908 = vrot.lane.b32.xlu0 %v10401_v32, %s7912_s3 }
 0x4c1   : > { %13222 = vst [vmem:[#allocation32_spill] sm:$0xff] %v10609_v9  ;;  %v4205_v35 = vsel %vm489_vm0, %v4204_v42, %v10457_v5  ;;  %v4211_v2 = vsel %vm489_vm0, %v4210_v8, %v10473_v52  ;;  %v4238_v54 = vrot.slane %v10617_v1, 4  ;;  %v4260_v42 = vrot.slane %v10609_v9, 4  ;;  %3913 = vrot.lane.b32.xlu1 %v3912_v43, %s7906_s9 }
 0x4c2   : > { %v4209_v20 = vperm.slane %v4205_v35, %v13176_v50  ;;  %v4215_v22 = vperm.slane %v4211_v2, %v13176_v50  ;;  %v4233_v61 = vsel %vm489_vm0, %v4232_v57, %v10547_v11  ;;  %v4188_v55 = vrot.slane %v4187_v14, 4 }
 0x4c3   : > { %v4237_v31 = vperm.slane %v4233_v61, %v13176_v50  ;;  %v4266_v47 = vrot.slane %v10627_v33, 4  ;;  %v4239_v8 = vsel %vm489_vm0, %v4238_v54, %v10567_v39  ;;  %v4190_v57 = vrot.slane %v4181_v49, 4 }
 0x4c4   : > { %v4216_v35 = vrot.slane %v4215_v22, 4  ;;  %v4218_v2 = vrot.slane %v4209_v20, 4  ;;  %v4189_v32 = vsel %vm489_vm0, %v4188_v55, %v4181_v49  ;;  %v4243_v38 = vperm.slane %v4239_v8, %v13176_v50  ;;  %3918 = vrot.lane.b32.xlu2 %v10410_v30, %s7907_s11 }
 0x4c5   : > { %v4261_v61 = vsel %vm489_vm0, %v4260_v42, %v10555_v44  ;;  %v4267_v10 = vsel %vm489_vm0, %v4266_v47, %v10575_v60  ;;  %v10665_v16 = vperm.slane %v4189_v32, %v8198_v4  ;;  %v4191_v42 = vsel %vm489_vm0, %v4187_v14, %v4190_v57 }
 0x4c6   : > { %v4217_v41 = vsel %vm489_vm0, %v4216_v35, %v4209_v20  ;;  %v4265_v43 = vperm.slane %v4261_v61, %v13176_v50  ;;  %v4271_v49 = vperm.slane %v4267_v10, %v13176_v50  ;;  %v4244_v55 = vrot.slane %v4243_v38, 4 }
 0x4c7   : > { %v10671_v54 = vperm.slane %v4217_v41, %v8198_v4  ;;  %v4219_v47 = vsel %vm489_vm0, %v4215_v22, %v4218_v2  ;;  %v4403_v30 = vshrl.u32 %v10665_v16, 16  ;;  %v4200_v32 = vrot.slane %v10665_v16, 4 }
 0x4c8   : > { %v4272_v8 = vrot.slane %v4271_v49, 4  ;;  %v4199_v15 = vperm.slane %v4191_v42, %v8198_v4  ;;  %v4245_v20 = vsel %vm489_vm0, %v4244_v55, %v4237_v31  ;;  %v4227_v61 = vperm.slane %v4219_v47, %v8198_v4 }
 0x4c9   : > { %13225 = vst [vmem:[#allocation33_spill] sm:$0xff] %v10671_v54  ;;  %v4404_v35 = vshrl.u32 %v10671_v54, 16  ;;  %v4228_v10 = vrot.slane %v10671_v54, 4  ;;  %v10683_v41 = vperm.slane %v4245_v20, %v8198_v4  ;;  %v4201_v22 = vsel %vm489_vm0, 0, %v4200_v32  ;;  %3928 = vrot.lane.b32.xlu1 %v10491_v24, %s7911_s30 }
 0x4ca   : > { %v4273_v14 = vsel %vm489_vm0, %v4272_v8, %v4265_v43  ;;  %v4246_v57 = vrot.slane %v4237_v31, 4  ;;  %v13227_v2 = vpack.c.b16 %v10419_v17, %v10412_v26  ;;  %v4409_v47 = vshrl.u32 %v4201_v22, 16 }
 0x4cb   : > { %13226 = vst [vmem:[#allocation34_spill] sm:$0xff] %v10683_v41  ;;  %v10692_v55 = vperm.slane %v4273_v14, %v8198_v4  ;;  %v4405_v42 = vpack.i.b16 %v4404_v35, %v4403_v30  ;;  %v4229_v44 = vsel %vm489_vm0, 0, %v4228_v10  ;;  %v4451_v8 = vshrl.u32 %v10683_v41, 16 }
 0x4cc   : > { %3923 = vrot.lane.b32.xlu0 %v13227_v2, %s7910_s27  ;;  %v4256_v32 = vrot.slane %v10683_v41, 4  ;;  %v4408_v31 = vpack.i.b16 %v4229_v44, %v4201_v22  ;;  %v4410_v20 = vshrl.u32 %v4229_v44, 16  ;;  %v4247_v14 = vsel %vm489_vm0, %v4243_v38, %v4246_v57 }
 0x4cd   : > { %13228 = vst [vmem:[#allocation35_spill] sm:$0xff] %v10692_v55  ;;  %v4452_v11 = vshrl.u32 %v10692_v55, 16  ;;  %v4499_v26 = vunpack.c.l.b16 %v4405_v42  ;;  %v4284_v17 = vrot.slane %v10692_v55, 4  ;;  %v4255_v2 = vperm.slane %v4247_v14, %v8198_v4 }
 0x4ce   : > { %v4257_v30 = vsel %vm489_vm0, 0, %v4256_v32  ;;  %v4504_v35 = vunpack.c.l.b16 %v4408_v31  ;;  %v4411_v10 = vpack.i.b16 %v4410_v20, %v4409_v47  ;;  %v4274_v60 = vrot.slane %v4265_v43, 4 }
 0x4cf   : > { %v4453_v24 = vpack.i.b16 %v4452_v11, %v4451_v8  ;;  %v4285_v9 = vsel %vm489_vm0, 0, %v4284_v17  ;;  %v4457_v6 = vshrl.u32 %v4257_v30, 16  ;;  %v4414_v41 = vpack.i.b16 %v4227_v61, %v4199_v15 }
 0x4d0   : > { %v4456_v22 = vpack.i.b16 %v4285_v9, %v4257_v30  ;;  %v4458_v44 = vshrl.u32 %v4285_v9, 16  ;;  %v4509_v39 = vunpack.c.l.b16 %v4411_v10  ;;  %v4275_v55 = vsel %vm489_vm0, %v4271_v49, %v4274_v60 }
 0x4d1   : > { %v4500_v42 = vunpack.c.l.b16 %v4453_v24  ;;  %v4415_v54 = vshrl.u32 %v4199_v15, 16  ;;  %v4416_v38 = vshrl.u32 %v4227_v61, 16  ;;  %v4283_v47 = vperm.slane %v4275_v55, %v8198_v4 }
 0x4d2   : > { %v4505_v57 = vunpack.c.l.b16 %v4456_v22  ;;  %v4459_v32 = vpack.i.b16 %v4458_v44, %v4457_v6  ;;  %v4514_v31 = vunpack.c.l.b16 %v4414_v41  ;;  %v4463_v8 = vshrl.u32 %v4255_v2, 16 }
 0x4d3   : > { %v4501_v20 = vpack.c.b16 %v4500_v42, %v4499_v26  ;;  %v4417_v11 = vpack.i.b16 %v4416_v38, %v4415_v54  ;;  %v4202_v17 = vrot.slane %v4199_v15, 4  ;;  %v4462_v30 = vpack.i.b16 %v4283_v47, %v4255_v2 }
 0x4d4   : > { %v4506_v14 = vpack.c.b16 %v4505_v57, %v4504_v35  ;;  %v4510_v43 = vunpack.c.l.b16 %v4459_v32  ;;  %v4464_v9 = vshrl.u32 %v4283_v47, 16  ;;  %v4230_v49 = vrot.slane %v4227_v61, 4 }
 0x4d5   : > { %4502 = vrot.lane.b32.xlu2 %v4501_v20, %s7908_s28  ;;  %v4519_v10 = vunpack.c.l.b16 %v4417_v11  ;;  %v4203_v60 = vsel %vm489_vm0, 0, %v4202_v17  ;;  %v4258_v24 = vrot.slane %v4255_v2, 4  ;;  %v4515_v55 = vunpack.c.l.b16 %v4462_v30 }
 0x4d6   : > { %4507 = vrot.lane.b32.xlu0 %v4506_v14, %s7909_s22  ;;  %v4511_v6 = vpack.c.b16 %v4510_v43, %v4509_v39  ;;  %v4465_v41 = vpack.i.b16 %v4464_v9, %v4463_v8  ;;  %v4286_v26 = vrot.slane %v4283_v47, 4  ;;  %v4231_v54 = vsel %vm489_vm0, 0, %v4230_v49 }
 0x4d7   : > { %v4259_v15 = vsel %vm489_vm0, 0, %v4258_v24  ;;  %v4421_v35 = vshrl.u32 %v4203_v60, 16  ;;  %v13229_v22 = vrot.slane %v10415_v56, 6  ;;  %v4516_v42 = vpack.c.b16 %v4515_v55, %v4514_v31 }
 0x4d8   : > { %4512 = vrot.lane.b32.xlu1 %v4511_v6, %s7912_s3  ;;  %v4520_v38 = vunpack.c.l.b16 %v4465_v41  ;;  %v4287_v61 = vsel %vm489_vm0, 0, %v4286_v26  ;;  %v4420_v2 = vpack.i.b16 %v4231_v54, %v4203_v60  ;;  %v4422_v39 = vshrl.u32 %v4231_v54, 16 }
 0x4d9   : > { %v4036_v44 = vrot.slane %v13229_v22, 4  ;;  %v4468_v57 = vpack.i.b16 %v4287_v61, %v4259_v15  ;;  %v4469_v32 = vshrl.u32 %v4259_v15, 16  ;;  %v4470_v20 = vshrl.u32 %v4287_v61, 16 }
 0x4da   : > { %v4521_v47 = vpack.c.b16 %v4520_v38, %v4519_v10  ;;  %v4524_v11 = vunpack.c.l.b16 %v4420_v2  ;;  %v13230_v8 = vrot.slane %v10141_v28, 6  ;;  %v13231_v56 = vrot.slane %v10426_v27, 6 }
 0x4db   : > { %v4525_v31 = vunpack.c.l.b16 %v4468_v57  ;;  %v4423_v43 = vpack.i.b16 %v4422_v39, %v4421_v35  ;;  %v4471_v30 = vpack.i.b16 %v4470_v20, %v4469_v32  ;;  %v13232_v9 = vrot.slane %v10430_v45, 6 }
 0x4dc   : > { %v10720_v17 = vsel %vm10421_vm13, %v4036_v44, %v13230_v8  ;;  %v4043_v14 = vrot.slane %v13231_v56, 4  ;;  %v13233_v49 = vrot.slane %v10145_v18, 6  ;;  %v13234_v28 = vrot.slane %v10442_v48, 6  ;;  %v13241_v44 = vld [vmem:[#allocation18_spill] sm:$0xff] }
 0x4dd   : > { %v4050_v60 = vrot.slane %v13232_v9, 4  ;;  %v13235_v6 = vrot.slane %v10446_v29, 6  ;;  %v13236_v27 = vrot.slane %v10484_v25, 6  ;;  %4517 = vrot.lane.b32.xlu2 %v4516_v42, %s7906_s9  ;;  %v4526_v26 = vpack.c.b16 %v4525_v31, %v4524_v11  ;;  %v13239_v25 = vld [vmem:[#allocation22_spill] sm:$0xff]  ;;  %v13247_v11 = vld [vmem:[#allocation25_spill] sm:$0xff] }
 0x4de   : > { %v10730_v10 = vsel %vm10421_vm13, %v4043_v14, %v13233_v49  ;;  %v4057_v24 = vrot.slane %v13234_v28, 4  ;;  %v4529_v45 = vunpack.c.l.b16 %v4423_v43  ;;  %v4530_v54 = vunpack.c.l.b16 %v4471_v30  ;;  %4522 = vrot.lane.b32.xlu0 %v4521_v47, %s7907_s11  ;;  %v13252_v30 = vld [vmem:[#allocation24_spill] sm:$0xff] }
 0x4df   : > { %v4064_v55 = vrot.slane %v13235_v6, 4  ;;  %v4071_v41 = vrot.slane %v13236_v27, 4  ;;  %v13237_v18 = vrot.slane %v10149_v36, 6  ;;  %v13238_v48 = vrot.slane %v10157_v3, 6 }
 0x4e0   : > { %v13240_v35 = vrot.slane %v13239_v25, 6  ;;  %v13242_v36 = vrot.slane %v13241_v44, 6  ;;  %v13243_v38 = vrot.slane %v10488_v19, 6  ;;  %v4531_v3 = vpack.c.b16 %v4530_v54, %v4529_v45  ;;  %4527 = vrot.lane.b32.xlu1 %v4526_v26, %s7910_s27  ;;  %v13261_v26 = vld [vmem:[#allocation30_spill] sm:$0xff]  ;;  %v13266_v44 = vld [vmem:[#allocation21_spill] sm:$0xff] }
 0x4e1   : > { %v10743_v15 = vsel %vm10421_vm13, %v4050_v60, %v13237_v18  ;;  %v10750_v29 = vsel %vm10421_vm13, %v4057_v24, %v13238_v48  ;;  %v13244_v2 = vrot.slane %v10494_v58, 6  ;;  %v13245_v39 = vrot.slane %v10498_v51, 6  ;;  %v13254_v60 = vld [vmem:[#allocation23_spill] sm:$0xff]  ;;  %v13263_v18 = vld [vmem:[#allocation8_spill] sm:$0xff] }
 0x4e2   : > { %v10756_v22 = vsel %vm10421_vm13, %v4064_v55, %v13240_v35  ;;  %v10762_v42 = vsel %vm10421_vm13, %v4071_v41, %v13242_v36  ;;  %v4078_v61 = vrot.slane %v13243_v38, 4  ;;  %v13246_v20 = vrot.slane %v10502_v59, 6  ;;  %v13259_v55 = vld [vmem:[#allocation28_spill] sm:$0xff] }
 0x4e3   : > { %v4085_v57 = vrot.slane %v13244_v2, 4  ;;  %v4092_v32 = vrot.slane %v13245_v39, 4  ;;  %v13248_v8 = vrot.slane %v13247_v11, 6  ;;  %v13249_v19 = vrot.slane %v10524_v21, 6  ;;  %v13256_v21 = vld [vmem:[#allocation12_spill] sm:$0xff] }
 0x4e4   : > { %v4099_v47 = vrot.slane %v13246_v20, 4  ;;  %v13250_v58 = vrot.slane %v10528_v23, 6  ;;  %v13251_v51 = vrot.slane %v10558_v7, 6  ;;  %v13253_v59 = vrot.slane %v13252_v30, 6 }
 0x4e5   : > { %v10777_v56 = vsel %vm10421_vm13, %v4078_v61, %v13248_v8  ;;  %v4106_v14 = vrot.slane %v13249_v19, 4  ;;  %v13255_v49 = vrot.slane %v13254_v60, 6  ;;  %v13257_v24 = vrot.slane %v13256_v21, 6  ;;  %4532 = vrot.lane.b32.xlu2 %v4531_v3, %s7911_s30 }
 0x4e6   : > { %v4113_v31 = vrot.slane %v13250_v58, 4  ;;  %v4120_v43 = vrot.slane %v13251_v51, 4  ;;  %v10789_v9 = vsel %vm10421_vm13, %v4085_v57, %v13253_v59  ;;  %v13258_v7 = vrot.slane %v10578_v34, 6 }
 0x4e7   : > { %v10795_v28 = vsel %vm10421_vm13, %v4092_v32, %v13255_v49  ;;  %v10801_v23 = vsel %vm10421_vm13, %v4099_v47, %v13257_v24  ;;  %v13260_v27 = vrot.slane %v13259_v55, 6  ;;  %v13262_v45 = vrot.slane %v13261_v26, 6  ;;  %v13269_v32 = vld [vmem:[#allocation5_spill] sm:$0xff] }
 0x4e8   : > { %v4127_v6 = vrot.slane %v13258_v7, 4  ;;  %v13264_v48 = vrot.slane %v13263_v18, 6  ;;  %v13265_v34 = vrot.slane %v10582_v53, 6  ;;  %v13267_v36 = vrot.slane %v13266_v44, 6 }
 0x4e9   : > { %v10809_v41 = vsel %vm10421_vm13, %v4106_v14, %v13260_v27  ;;  %v10815_v54 = vsel %vm10421_vm13, %v4113_v31, %v13262_v45  ;;  %v13268_v61 = vrot.slane %v10598_v12, 6  ;;  %v4288_v57 = vrot.slane %v10756_v22, 4  ;;  %v13271_v12 = vld [vmem:[#allocation7_spill] sm:$0xff] }
 0x4ea   : > { %v10821_v25 = vsel %vm10421_vm13, %v4120_v43, %v13264_v48  ;;  %v4134_v35 = vrot.slane %v13265_v34, 4  ;;  %v10829_v38 = vsel %vm10421_vm13, %v4127_v6, %v13267_v36  ;;  %v4294_v39 = vrot.slane %v10777_v56, 4 }
 0x4eb   : > { %v4141_v2 = vrot.slane %v13268_v61, 4  ;;  %v13270_v20 = vrot.slane %v13269_v32, 6  ;;  %v4316_v53 = vrot.slane %v10762_v42, 4  ;;  %v4322_v11 = vrot.slane %v10789_v9, 4 }
 0x4ec   : > { %v4344_v8 = vrot.slane %v10821_v25, 4  ;;  %v13272_v19 = vrot.slane %v13271_v12, 6  ;;  %v4289_v58 = vsel %vm489_vm0, %v4288_v57, %v10720_v17  ;;  %v4295_v31 = vsel %vm489_vm0, %v4294_v39, %v10743_v15 }
 0x4ed   : > { %v10839_v47 = vsel %vm10421_vm13, %v4134_v35, %v13270_v20  ;;  %v4293_v43 = vperm.slane %v4289_v58, %v13176_v50  ;;  %v4299_v30 = vperm.slane %v4295_v31, %v13176_v50  ;;  %v4317_v3 = vsel %vm489_vm0, %v4316_v53, %v10730_v10 }
 0x4ee   : > { %v10849_v14 = vsel %vm10421_vm13, %v4141_v2, %v13272_v19  ;;  %v4350_v51 = vrot.slane %v10839_v47, 4  ;;  %v4323_v13 = vsel %vm489_vm0, %v4322_v11, %v10750_v29  ;;  %v4321_v59 = vperm.slane %v4317_v3, %v13176_v50 }
 0x4ef   : > { %v4327_v60 = vperm.slane %v4323_v13, %v13176_v50  ;;  %v4345_v49 = vsel %vm489_vm0, %v4344_v8, %v10795_v28  ;;  %v4300_v24 = vrot.slane %v4299_v30, 4  ;;  %v4372_v55 = vrot.slane %v10829_v38, 4 }
 0x4f0   : > { %v4351_v21 = vsel %vm489_vm0, %v4350_v51, %v10809_v41  ;;  %v4349_v7 = vperm.slane %v4345_v49, %v13176_v50  ;;  %v4378_v26 = vrot.slane %v10849_v14, 4  ;;  %v4302_v45 = vrot.slane %v4293_v43, 4 }
 0x4f1   : > { %v4355_v6 = vperm.slane %v4351_v21, %v13176_v50  ;;  %v4328_v27 = vrot.slane %v4327_v60, 4  ;;  %v4330_v18 = vrot.slane %v4321_v59, 4  ;;  %v4301_v48 = vsel %vm489_vm0, %v4300_v24, %v4293_v43 }
 0x4f2   : > { %v4373_v35 = vsel %vm489_vm0, %v4372_v55, %v10801_v23  ;;  %v4358_v44 = vrot.slane %v4349_v7, 4  ;;  %v10876_v36 = vperm.slane %v4301_v48, %v8198_v4  ;;  %v4379_v57 = vsel %vm489_vm0, %v4378_v26, %v10815_v54 }
 0x4f3   : > { %v4356_v34 = vrot.slane %v4355_v6, 4  ;;  %v4329_v61 = vsel %vm489_vm0, %v4328_v27, %v4321_v59  ;;  %v4377_v2 = vperm.slane %v4373_v35, %v13176_v50  ;;  %v4383_v20 = vperm.slane %v4379_v57, %v13176_v50 }
 0x4f4   : > { %v10883_v39 = vperm.slane %v4329_v61, %v8198_v4  ;;  %v4303_v53 = vsel %vm489_vm0, %v4299_v30, %v4302_v45  ;;  %v4427_v8 = vshrl.u32 %v10876_v36, 16  ;;  %v4312_v12 = vrot.slane %v10876_v36, 4 }
 0x4f5   : > { %v4357_v32 = vsel %vm489_vm0, %v4356_v34, %v4349_v7  ;;  %v4311_v19 = vperm.slane %v4303_v53, %v8198_v4  ;;  %v4384_v58 = vrot.slane %v4383_v20, 4  ;;  %v4331_v43 = vsel %vm489_vm0, %v4327_v60, %v4330_v18 }
 0x4f6   : > { %v10889_v11 = vperm.slane %v4357_v32, %v8198_v4  ;;  %v4428_v31 = vshrl.u32 %v10883_v39, 16  ;;  %v4340_v51 = vrot.slane %v10883_v39, 4  ;;  %v4313_v30 = vsel %vm489_vm0, 0, %v4312_v12 }
 0x4f7   : > { %v4339_v59 = vperm.slane %v4331_v43, %v8198_v4  ;;  %v4385_v49 = vsel %vm489_vm0, %v4384_v58, %v4377_v2  ;;  %v4433_v7 = vshrl.u32 %v4313_v30, 16  ;;  %v4359_v18 = vsel %vm489_vm0, %v4355_v6, %v4358_v44 }
 0x4f8   : > { %v4475_v3 = vshrl.u32 %v10889_v11, 16  ;;  %v4368_v13 = vrot.slane %v10889_v11, 4  ;;  %v4429_v21 = vpack.i.b16 %v4428_v31, %v4427_v8  ;;  %v4341_v24 = vsel %vm489_vm0, 0, %v4340_v51 }
 0x4f9   : > { %v10904_v55 = vperm.slane %v4385_v49, %v8198_v4  ;;  %v4432_v60 = vpack.i.b16 %v4341_v24, %v4313_v30  ;;  %v4434_v26 = vshrl.u32 %v4341_v24, 16  ;;  %v4386_v48 = vrot.slane %v4377_v2, 4 }
 0x4fa   : > { %v4369_v27 = vsel %vm489_vm0, 0, %v4368_v13  ;;  %v4537_v45 = vunpack.c.l.b16 %v4429_v21  ;;  %v4367_v53 = vperm.slane %v4359_v18, %v8198_v4  ;;  %v4439_v12 = vshrl.u32 %v4311_v19, 16 }
 0x4fb   : > { %v4476_v34 = vshrl.u32 %v10904_v55, 16  ;;  %v4396_v35 = vrot.slane %v10904_v55, 4  ;;  %v4435_v61 = vpack.i.b16 %v4434_v26, %v4433_v7  ;;  %v4481_v57 = vshrl.u32 %v4369_v27, 16 }
 0x4fc   : > { %v4542_v32 = vunpack.c.l.b16 %v4432_v60  ;;  %v4387_v8 = vsel %vm489_vm0, %v4383_v20, %v4386_v48  ;;  %v4438_v43 = vpack.i.b16 %v4339_v59, %v4311_v19  ;;  %v4440_v30 = vshrl.u32 %v4339_v59, 16 }
 0x4fd   : > { %v4477_v58 = vpack.i.b16 %v4476_v34, %v4475_v3  ;;  %v4397_v31 = vsel %vm489_vm0, 0, %v4396_v35  ;;  %v4395_v51 = vperm.slane %v4387_v8, %v8198_v4  ;;  %v4547_v2 = vunpack.c.l.b16 %v4435_v61 }
 0x4fe   : > { %v4480_v6 = vpack.i.b16 %v4397_v31, %v4369_v27  ;;  %v4482_v44 = vshrl.u32 %v4397_v31, 16  ;;  %v4487_v21 = vshrl.u32 %v4367_v53, 16  ;;  %v4441_v26 = vpack.i.b16 %v4440_v30, %v4439_v12 }
 0x4ff   : > { %v4538_v13 = vunpack.c.l.b16 %v4477_v58  ;;  %v4486_v49 = vpack.i.b16 %v4395_v51, %v4367_v53  ;;  %v4488_v24 = vshrl.u32 %v4395_v51, 16  ;;  %v4314_v18 = vrot.slane %v4311_v19, 4 }
 0x500   : > { %v4543_v7 = vunpack.c.l.b16 %v4480_v6  ;;  %v4483_v60 = vpack.i.b16 %v4482_v44, %v4481_v57  ;;  %v4552_v48 = vunpack.c.l.b16 %v4438_v43  ;;  %v4342_v34 = vrot.slane %v4339_v59, 4 }
 0x501   : > { %v4539_v20 = vpack.c.b16 %v4538_v13, %v4537_v45  ;;  %v4489_v3 = vpack.i.b16 %v4488_v24, %v4487_v21  ;;  %v4553_v8 = vunpack.c.l.b16 %v4486_v49  ;;  %v4315_v27 = vsel %vm489_vm0, 0, %v4314_v18  ;;  %v13274_v18 = vld [vmem:[#allocation15_spill] sm:$0xff] }
 0x502   : > { %v4544_v35 = vpack.c.b16 %v4543_v7, %v4542_v32  ;;  %v4548_v50 = vunpack.c.l.b16 %v4483_v60  ;;  %v4557_v61 = vunpack.c.l.b16 %v4441_v26  ;;  %v4343_v31 = vsel %vm489_vm0, 0, %v4342_v34  ;;  %v13273_v26 = vld [vmem:[#allocation19_spill] sm:$0xff] }
 0x503   : > { %4540 = vrot.lane.b32.xlu0 %v4539_v20, %s7908_s28  ;;  %v4558_v58 = vunpack.c.l.b16 %v4489_v3  ;;  %v4370_v4 = vrot.slane %v4367_v53, 4  ;;  %v4398_v19 = vrot.slane %v4395_v51, 4  ;;  %v4444_v45 = vpack.i.b16 %v4343_v31, %v4315_v27  ;;  %v13276_v3 = vld [vmem:[#allocation29_spill] sm:$0xff] }
 0x504   : > { %4545 = vrot.lane.b32.xlu1 %v4544_v35, %s7909_s22  ;;  %v4549_v57 = vpack.c.b16 %v4548_v50, %v4547_v2  ;;  %v4445_v12 = vshrl.u32 %v4315_v27, 16  ;;  %v4446_v32 = vshrl.u32 %v4343_v31, 16  ;;  %v4554_v43 = vpack.c.b16 %v4553_v8, %v4552_v48  ;;  %v13275_v48 = vld [vmem:[#allocation10_spill] sm:$0xff] }
 0x505   : > { %v4371_v59 = vsel %vm489_vm0, 0, %v4370_v4  ;;  %v4399_v6 = vsel %vm489_vm0, 0, %v4398_v19  ;;  %v4562_v13 = vunpack.c.l.b16 %v4444_v45  ;;  %v4559_v53 = vpack.c.b16 %v4558_v58, %v4557_v61 }
 0x506   : > { %4550 = vrot.lane.b32.xlu2 %v4549_v57, %s7912_s3  ;;  %v4493_v44 = vshrl.u32 %v4371_v59, 16  ;;  %v4492_v30 = vpack.i.b16 %v4399_v6, %v4371_v59  ;;  %v4447_v49 = vpack.i.b16 %v4446_v32, %v4445_v12  ;;  %v4494_v21 = vshrl.u32 %v4399_v6, 16  ;;  %v3871_v60 = vpop.permute.xlu2 %3870 }
 0x507   : > { %v3808_v20 = vpack.i.b16 %v13274_v18, %v13273_v26  ;;  %v3760_v34 = vpack.i.b16 %v13276_v3, %v13275_v48 }
 0x508   : > { %v4563_v24 = vunpack.c.l.b16 %v4492_v30  ;;  %v4495_v7 = vpack.i.b16 %v4494_v21, %v4493_v44  ;;  %v4567_v51 = vunpack.c.l.b16 %v4447_v49  ;;  %v13277_v44 = vld [vmem:[#allocation27_spill] sm:$0xff]  ;;  %v13278_v30 = vld [vmem:[#allocation26_spill] sm:$0xff]  ;;  %v13279_v21 = vld [vmem:[#allocation16_spill] sm:$0xff] }
 0x509   : > { %v3855_v35 = vunpack.c.l.b16 %v3808_v20  ;;  %v3854_v27 = vunpack.c.l.b16 %v3760_v34 }
 0x50a   : > { %v4564_v50 = vpack.c.b16 %v4563_v24, %v4562_v13  ;;  %v4568_v2 = vunpack.c.l.b16 %v4495_v7  ;;  %v3832_v13 = vpack.i.b16 %v13278_v30, %v13277_v44 }
 0x50b   : > { %4555 = vrot.lane.b32.xlu0 %v4554_v43, %s7906_s9  ;;  %v3856_v58 = vpack.c.b16 %v3855_v35, %v3854_v27  ;;  %v7603_v43 = vld [vmem:[%s8122_s29] sm:$0xff] }
 0x50c   : > { %4560 = vrot.lane.b32.xlu1 %v4559_v53, %s7907_s11  ;;  %v4569_v4 = vpack.c.b16 %v4568_v2, %v4567_v51  ;;  %7448 = vmatmul.msk.bf16.vlgmr.msrb.gmra.mxu2 %vm885_vm1, %v7603_v43  ;;  %v13280_v53 = vld [vmem:[#allocation20_spill] sm:$0xff]  ;;  %v3893_v51 = vunpack.c.l.b16 %v3832_v13  ;;  %v13285_v13 = vld [vmem:[#allocation14_spill] sm:$0xff] }
 0x50d   : > { %7450 = vmatmul.msk.bf16.vlgmr.msrb.gmra.mxu3 %vm885_vm1, %v7603_v43  ;;  %v3784_v24 = vpack.i.b16 %v13280_v53, %v13279_v21 }
 0x50e   : > { %4565 = vrot.lane.b32.xlu2 %v4564_v50, %s7910_s27  ;;  %v3886_v8 = vpop.permute.xlu2 %3885 }
 0x513   : > { %4570 = vrot.lane.b32.xlu0 %v4569_v4, %s7911_s30 }
 0x514   : > { %4671 = vrot.lane.b32.xlu1 %v10439_v46, %s7913_s4 }
 0x516   : > { %4673 = vrot.lane.b32.xlu2 %v10720_v17, %s7913_s4  ;;  %v3904_v12 = vpop.permute.xlu2 %3903 }
 0x519   : > { %v3861_v61 = vpop.permute.xlu0 %3860 }
 0x51a   : > { %v3866_v31 = vpop.permute.xlu1 %3865  ;;  %v3932_v57 = vsel %vm885_vm1, %v3856_v58, %v3861_v61  ;;  %v13281_v61 = vld [vmem:[#allocation33_spill] sm:$0xff] }
 0x51b   : > { %4675 = vrot.lane.b32.xlu0 %v10457_v5, %s7913_s4  ;;  %v3934_v19 = vsel %vm889_vm2, %v3932_v57, %v3866_v31  ;;  %v4402_v58 = vpack.i.b16 %v13281_v61, %v10665_v16  ;;  %v13282_v31 = vld [vmem:[#allocation34_spill] sm:$0xff]  ;;  %v13283_v57 = vld [vmem:[#allocation35_spill] sm:$0xff] }
 0x51c   : > { %4695 = vrot.lane.b32.xlu1 %v10521_v63, %s7913_s4  ;;  %v3936_v59 = vsel %vm892_vm3, %v3934_v19, %v3871_v60  ;;  %v3892_v60 = vunpack.c.l.b16 %v3784_v24  ;;  %v4450_v19 = vpack.i.b16 %v13283_v57, %v13282_v31  ;;  %v7607_v24 = vld [vmem:[%s8122_s29 + $0x20] sm:$0xff]  ;;  %v4474_v31 = vpack.i.b16 %v10904_v55, %v10889_v11 }
 0x51d   : > { %7464 = vmatmul.msk.bf16.vlgmr.msrb.gmra.mxu0 %vm885_vm1, %v7607_v24  ;;  %7466 = vmatmul.msk.bf16.vlgmr.msrb.gmra.mxu1 %vm885_vm1, %v7607_v24 }
 0x51e   : > { %4697 = vrot.lane.b32.xlu2 %v10777_v56, %s7913_s4  ;;  %v3919_v26 = vpop.permute.xlu2 %3918  ;;  %v3894_v18 = vpack.c.b16 %v3893_v51, %v3892_v60  ;;  %v4497_v44 = vunpack.c.l.b16 %v4450_v19  ;;  %v13286_v51 = vld [vmem:[#allocation31_spill] sm:$0xff] }
 0x521   : > { %v3876_v45 = vpop.permute.xlu0 %3875 }
 0x522   : > { %v3881_v32 = vpop.permute.xlu1 %3880  ;;  %v3938_v6 = vsel %vm895_vm4, %v3936_v59, %v3876_v45  ;;  %v13284_v59 = vld [vmem:[#allocation17_spill] sm:$0xff] }
 0x523   : > { %4699 = vrot.lane.b32.xlu0 %v10539_v62, %s7913_s4  ;;  %v3940_v49 = vsel %vm898_vm5, %v3938_v6, %v3881_v32  ;;  %v4496_v6 = vunpack.c.l.b16 %v4402_v58  ;;  %v4426_v58 = vpack.i.b16 %v10883_v39, %v10876_v36 }
 0x524   : > { %4701 = vrot.lane.b32.xlu1 %v10789_v9, %s7913_s4  ;;  %v3942_v7 = vsel %vm901_vm6, %v3940_v49, %v3886_v8 }
 0x525   : > { %v4498_v30 = vpack.c.b16 %v4497_v44, %v4496_v6  ;;  %v4534_v19 = vunpack.c.l.b16 %v4426_v58 }
 0x526   : > { %4727 = vrot.lane.b32.xlu2 %v10617_v1, %s7913_s4 }
 0x529   : > { %v3891_v50 = vpop.permute.xlu0 %3890 }
 0x52a   : > { %v3944_v2 = vsel %vm904_vm7, %v3942_v7, %v3891_v50  ;;  %v3899_v4 = vpop.permute.xlu1 %3898 }
 0x52b   : > { %4729 = vrot.lane.b32.xlu0 %v10839_v47, %s7913_s4  ;;  %3985 = vmatpush.bf16.msrb.mxu2 %v3944_v2  ;;  %v3948_v20 = vsel %vm885_vm1, %v3894_v18, %v3899_v4  ;;  %v13287_v4 = vld [vmem:[#allocation32_spill] sm:$0xff] }
 0x52c   : > { %4731 = vrot.lane.b32.xlu1 %v10627_v33, %s7913_s4  ;;  %v3950_v3 = vsel %vm889_vm2, %v3948_v20, %v3904_v12 }
 0x52e   : > { %4733 = vrot.lane.b32.xlu2 %v10849_v14, %s7913_s4 }
 0x52f   : > { %v4503_v8 = vpop.permute.xlu2 %4502 }
 0x530   : > { %v4574_v21 = vsel %vm885_vm1, %v4498_v30, %v4503_v8 }
 0x532   : > { %v3909_v48 = vpop.permute.xlu0 %3908 }
 0x533   : > { %4679 = vrot.lane.b32.xlu0 %v10465_v37, %s7913_s4  ;;  %v3914_v34 = vpop.permute.xlu1 %3913  ;;  %v3952_v35 = vsel %vm892_vm3, %v3950_v3, %v3909_v48 }
 0x534   : > { %4681 = vrot.lane.b32.xlu1 %v10743_v15, %s7913_s4  ;;  %v3954_v27 = vsel %vm895_vm4, %v3952_v35, %v3914_v34  ;;  %v13288_v35 = vld [vmem:[#allocation6_spill] sm:$0xff] }
 0x535   : > { %v3956_v45 = vsel %vm898_vm5, %v3954_v27, %v3919_v26  ;;  %v13289_v27 = vld [vmem:[#allocation13_spill] sm:$0xff] }
 0x536   : > { %4683 = vrot.lane.b32.xlu2 %v10473_v52, %s7913_s4 }
 0x537   : > { %v4518_v49 = vpop.permute.xlu2 %4517 }
 0x53b   : > { %4685 = vrot.lane.b32.xlu0 %v10750_v29, %s7913_s4  ;;  %v3929_v43 = vpop.permute.xlu1 %3928 }
 0x53c   : > { %4687 = vrot.lane.b32.xlu1 %v10481_v40, %s7913_s4 }
 0x53e   : > { %4689 = vrot.lane.b32.xlu2 %v10756_v22, %s7913_s4  ;;  %v3924_v12 = vpop.permute.xlu0 %3923 }
 0x53f   : > { %v3958_v32 = vsel %vm901_vm6, %v3956_v45, %v3924_v12  ;;  %v4533_v60 = vpop.permute.xlu2 %4532  ;;  %v4535_v45 = vunpack.c.l.b16 %v4474_v31 }
 0x540   : > { %v3960_v16 = vsel %vm904_vm7, %v3958_v32, %v3929_v43 }
 0x541   : > { %4004 = vmatpush.bf16.msrb.mxu3 %v3960_v16 }
 0x543   : > { %4691 = vrot.lane.b32.xlu0 %v10513_v0, %s7913_s4 }
 0x544   : > { %4693 = vrot.lane.b32.xlu1 %v10762_v42, %s7913_s4 }
 0x546   : > { %4711 = vrot.lane.b32.xlu2 %v13284_v59, %s7913_s4 }
 0x548   : > { %v4508_v53 = vpop.permute.xlu0 %4507 }
 0x549   : > { %v4576_v7 = vsel %vm889_vm2, %v4574_v21, %v4508_v53 }
 0x54a   : > { %v4513_v50 = vpop.permute.xlu1 %4512 }
 0x54b   : > { %4713 = vrot.lane.b32.xlu0 %v10809_v41, %s7913_s4  ;;  %v4578_v2 = vsel %vm892_vm3, %v4576_v7, %v4513_v50 }
 0x54c   : > { %4715 = vrot.lane.b32.xlu1 %v13285_v13, %s7913_s4  ;;  %v4580_v26 = vsel %vm895_vm4, %v4578_v2, %v4518_v49 }
 0x54e   : > { %4717 = vrot.lane.b32.xlu2 %v10815_v54, %s7913_s4 }
 0x550   : > { %v4523_v18 = vpop.permute.xlu0 %4522 }
 0x551   : > { %v4582_v20 = vsel %vm898_vm5, %v4580_v26, %v4523_v18 }
 0x552   : > { %v4528_v48 = vpop.permute.xlu1 %4527 }
 0x553   : > { %4719 = vrot.lane.b32.xlu0 %v13286_v51, %s7913_s4  ;;  %v4584_v3 = vsel %vm901_vm6, %v4582_v20, %v4528_v48 }
 0x554   : > { %4721 = vrot.lane.b32.xlu1 %v10821_v25, %s7913_s4  ;;  %v4586_v34 = vsel %vm904_vm7, %v4584_v3, %v4533_v60 }
 0x555   : > { %4627 = vmatpush.bf16.msrb.mxu0 %v4586_v34 }
 0x556   : > { %4723 = vrot.lane.b32.xlu2 %v13287_v4, %s7913_s4 }
 0x55b   : > { %4725 = vrot.lane.b32.xlu0 %v10829_v38, %s7913_s4 }
 0x55c   : > { %4677 = vrot.lane.b32.xlu1 %v10730_v10, %s7913_s4 }
 0x55e   : > { %4703 = vrot.lane.b32.xlu2 %v13288_v35, %s7913_s4 }
 0x560   : > { %v4551_v8 = vpop.permute.xlu2 %4550 }
 0x563   : > { %4705 = vrot.lane.b32.xlu0 %v10795_v28, %s7913_s4 }
 0x564   : > { %4707 = vrot.lane.b32.xlu1 %v13289_v27, %s7913_s4 }
 0x566   : > { %4709 = vrot.lane.b32.xlu2 %v10801_v23, %s7913_s4 }
 0x568   : > { %v4566_v61 = vpop.permute.xlu2 %4565 }
 0x56b   : > { %5286 = vrot.lane.b32.xlu0 %v10521_v63, %s7914_s6  ;;  %v4536_v63 = vpack.c.b16 %v4535_v45, %v4534_v19 }
 0x56c   : > { %5288 = vrot.lane.b32.xlu1 %v10777_v56, %s7914_s6 }
 0x56e   : > { %5290 = vrot.lane.b32.xlu2 %v10539_v62, %s7914_s6 }
 0x570   : > { %v4674_v57 = vpop.permute.xlu2 %4673 }
 0x573   : > { %5292 = vrot.lane.b32.xlu0 %v10789_v9, %s7914_s6 }
 0x574   : > { %5318 = vrot.lane.b32.xlu1 %v10617_v1, %s7914_s6 }
 0x575   : > { %v4541_v56 = vpop.permute.xlu0 %4540 }
 0x576   : > { %v4546_v12 = vpop.permute.xlu1 %4545  ;;  %5320 = vrot.lane.b32.xlu2 %v10839_v47, %s7914_s6  ;;  %v4590_v36 = vsel %vm885_vm1, %v4536_v63, %v4541_v56 }
 0x577   : > { %v4592_v62 = vsel %vm889_vm2, %v4590_v36, %v4546_v12 }
 0x578   : > { %v4698_v39 = vpop.permute.xlu2 %4697  ;;  %v4594_v1 = vsel %vm892_vm3, %v4592_v62, %v4551_v8 }
 0x57b   : > { %5322 = vrot.lane.b32.xlu0 %v10627_v33, %s7914_s6 }
 0x57c   : > { %5324 = vrot.lane.b32.xlu1 %v10849_v14, %s7914_s6 }
 0x57d   : > { %v4556_v9 = vpop.permute.xlu0 %4555 }
 0x57e   : > { %v4561_v11 = vpop.permute.xlu1 %4560  ;;  %5270 = vrot.lane.b32.xlu2 %v10465_v37, %s7914_s6  ;;  %v4596_v47 = vsel %vm895_vm4, %v4594_v1, %v4556_v9 }
 0x57f   : > { %v4598_v32 = vsel %vm898_vm5, %v4596_v47, %v4561_v11 }
 0x580   : > { %v11054_v55 = vpop.permute.xlu2 %4727  ;;  %v4600_v33 = vsel %vm901_vm6, %v4598_v32, %v4566_v61 }
 0x581   : > { %v4829_v63 = vrot.slane %v11054_v55, 4 }
 0x583   : > { %5272 = vrot.lane.b32.xlu0 %v10743_v15, %s7914_s6 }
 0x584   : > { %5274 = vrot.lane.b32.xlu1 %v10473_v52, %s7914_s6 }
 0x585   : > { %v4571_v14 = vpop.permute.xlu0 %4570 }
 0x586   : > { %v4602_v43 = vsel %vm904_vm7, %v4600_v33, %v4571_v14  ;;  %v4672_v6 = vpop.permute.xlu1 %4671  ;;  %5276 = vrot.lane.b32.xlu2 %v10750_v29, %s7914_s6 }
 0x587   : > { %4646 = vmatpush.bf16.msrb.mxu1 %v4602_v43 }
 0x588   : > { %v11065_v37 = vpop.permute.xlu2 %4733 }
 0x589   : > { %v4969_v36 = vrot.slane %v11065_v37, 4 }
 0x58b   : > { %5278 = vrot.lane.b32.xlu0 %v10481_v40, %s7914_s6 }
 0x58c   : > { %5280 = vrot.lane.b32.xlu1 %v10756_v22, %s7914_s6 }
 0x58d   : > { %v11071_v15 = vpop.permute.xlu0 %4675 }
 0x58e   : > { %v4696_v52 = vpop.permute.xlu1 %4695  ;;  %5282 = vrot.lane.b32.xlu2 %v10513_v0, %s7914_s6 }
 0x590   : > { %v4684_v44 = vpop.permute.xlu2 %4683 }
 0x593   : > { %5284 = vrot.lane.b32.xlu0 %v10762_v42, %s7914_s6 }
 0x594   : > { %5302 = vrot.lane.b32.xlu1 %v13284_v59, %s7914_s6 }
 0x595   : > { %v4700_v29 = vpop.permute.xlu0 %4699 }
 0x596   : > { %v11079_v16 = vpop.permute.xlu1 %4701  ;;  %5304 = vrot.lane.b32.xlu2 %v10809_v41, %s7914_s6  ;;  %v13290_v41 = vld [vmem:[#allocation9_spill] sm:$0xff] }
 0x598   : > { %v4690_v40 = vpop.permute.xlu2 %4689 }
 0x599   : > { %v4879_v0 = vrot.slane %v4690_v40, 4 }
 0x59b   : > { %5306 = vrot.lane.b32.xlu0 %v13285_v13, %s7914_s6  ;;  %v4880_v30 = vsel %vm489_vm0, %v4879_v0, %v4674_v57  ;;  %v4801_v57 = vrot.slane %v4700_v29, 4  ;;  %v13291_v29 = vld [vmem:[#allocation11_spill] sm:$0xff] }
 0x59c   : > { %5308 = vrot.lane.b32.xlu1 %v10815_v54, %s7914_s6  ;;  %v4884_v49 = vperm.slane %v4880_v30, %v13290_v41  ;;  %v4885_v54 = vrot.slane %v4698_v39, 4  ;;  %v4913_v39 = vrot.slane %v11079_v16, 4 }
 0x59d   : > { %v11087_v22 = vpop.permute.xlu0 %4729 }
 0x59e   : > { %v11089_v42 = vpop.permute.xlu1 %4731  ;;  %5310 = vrot.lane.b32.xlu2 %v13286_v51, %s7914_s6  ;;  %v4893_v24 = vrot.slane %v4884_v49, 4  ;;  %v4773_v51 = vrot.slane %v4696_v52, 4 }
 0x5a0   : > { %v4712_v59 = vpop.permute.xlu2 %4711 }
 0x5a3   : > { %5312 = vrot.lane.b32.xlu0 %v10821_v25, %s7914_s6 }
 0x5a4   : > { %5314 = vrot.lane.b32.xlu1 %v13287_v4, %s7914_s6 }
 0x5a5   : > { %v4680_v13 = vpop.permute.xlu0 %4679 }
 0x5a6   : > { %v4682_v21 = vpop.permute.xlu1 %4681  ;;  %5316 = vrot.lane.b32.xlu2 %v10829_v38, %s7914_s6  ;;  %v4774_v60 = vsel %vm489_vm0, %v4773_v51, %v4680_v13 }
 0x5a7   : > { %v4886_v53 = vsel %vm489_vm0, %v4885_v54, %v4682_v21  ;;  %v4778_v26 = vperm.slane %v4774_v60, %v13290_v41 }
 0x5a8   : > { %v4890_v7 = vperm.slane %v4886_v53, %v13290_v41  ;;  %v4718_v50 = vpop.permute.xlu2 %4717 }
 0x5a9   : > { %v4779_v34 = vrot.slane %v4778_v26, 4  ;;  %v4970_v1 = vsel %vm489_vm0, %v4969_v36, %v4718_v50 }
 0x5aa   : > { %v4891_v2 = vrot.slane %v4890_v7, 4  ;;  %v11104_v25 = vsel %vm489_vm0, %v4890_v7, %v4893_v24  ;;  %v11152_v37 = vperm.slane %v4970_v1, %v13290_v41 }
 0x5ab   : > { %5262 = vrot.lane.b32.xlu0 %v10439_v46, %s7914_s6 }
 0x5ac   : > { %v11110_v4 = vsel %vm489_vm0, %v4891_v2, %v4884_v49  ;;  %5264 = vrot.lane.b32.xlu1 %v10720_v17, %s7914_s6  ;;  %v4975_v54 = vrot.slane %v11152_v37, 4 }
 0x5ad   : > { %v4686_v38 = vpop.permute.xlu0 %4685 }
 0x5ae   : > { %v4688_v18 = vpop.permute.xlu1 %4687  ;;  %5266 = vrot.lane.b32.xlu2 %v10457_v5, %s7914_s6  ;;  %v4914_v11 = vsel %vm489_vm0, %v4913_v39, %v4686_v38 }
 0x5af   : > { %v4767_v20 = vrot.slane %v4688_v18, 4 }
 0x5b0   : > { %v11117_v48 = vpop.permute.xlu2 %4723 }
 0x5b1   : > { %v4768_v3 = vsel %vm489_vm0, %v4767_v20, %v4672_v6 }
 0x5b2   : > { %v4772_v46 = vperm.slane %v4768_v3, %v13290_v41 }
 0x5b3   : > { %5268 = vrot.lane.b32.xlu0 %v10730_v10, %s7914_s6 }
 0x5b4   : > { %v4780_v17 = vsel %vm489_vm0, %v4779_v34, %v4772_v46  ;;  %v4781_v8 = vrot.slane %v4772_v46, 4  ;;  %5294 = vrot.lane.b32.xlu1 %v13288_v35, %s7914_s6  ;;  %v4802_v35 = vsel %vm489_vm0, %v4801_v57, %v4684_v44  ;;  %v4941_v44 = vrot.slane %v11087_v22, 4 }
 0x5b5   : > { %v4692_v61 = vpop.permute.xlu0 %4691  ;;  %v11163_v0 = vperm.slane %v4780_v17, %v13291_v29  ;;  %v11194_v17 = vperm.slane %v11110_v4, %v13291_v29 }
 0x5b6   : > { %v11127_v5 = vsel %vm489_vm0, %v4778_v26, %v4781_v8  ;;  %v4694_v58 = vpop.permute.xlu1 %4693  ;;  %5296 = vrot.lane.b32.xlu2 %v10795_v28, %s7914_s6  ;;  %v4795_v10 = vrot.slane %v4692_v61, 4  ;;  %v4806_v28 = vperm.slane %v4802_v35, %v13290_v41  ;;  %v4851_v8 = vrot.slane %v11117_v48, 4 }
 0x5b7   : > { %v4907_v21 = vrot.slane %v4694_v58, 4  ;;  %v4994_v26 = vshrl.u32 %v11163_v0, 16  ;;  %v4791_v46 = vrot.slane %v11163_v0, 4 }
 0x5b8   : > { %v4704_v31 = vpop.permute.xlu2 %4703  ;;  %v4796_v56 = vsel %vm489_vm0, %v4795_v10, %v11071_v15  ;;  %v4807_v62 = vrot.slane %v4806_v28, 4  ;;  %v11155_v15 = vperm.slane %v4914_v11, %v13290_v41 }
 0x5ba   : > { %v4919_v13 = vrot.slane %v11155_v15, 4 }
 0x5bb   : > { %5298 = vrot.lane.b32.xlu0 %v13289_v27, %s7914_s6  ;;  %v4800_v27 = vperm.slane %v4796_v56, %v13290_v41 }
 0x5bc   : > { %5300 = vrot.lane.b32.xlu1 %v10801_v23, %s7914_s6  ;;  %v4830_v23 = vsel %vm489_vm0, %v4829_v63, %v4712_v59  ;;  %v4857_v59 = vrot.slane %v11089_v42, 4 }
 0x5bd   : > { %v4714_v19 = vpop.permute.xlu0 %4713  ;;  %v4834_v32 = vperm.slane %v4830_v23, %v13290_v41  ;;  %v4808_v33 = vsel %vm489_vm0, %v4807_v62, %v4800_v27  ;;  %v4809_v14 = vrot.slane %v4800_v27, 4  ;;  %v5018_v27 = vshrl.u32 %v11194_v17, 16 }
 0x5be   : > { %v4716_v45 = vpop.permute.xlu1 %4715  ;;  %v11160_v16 = vperm.slane %v4808_v33, %v13291_v29  ;;  %v4942_v49 = vsel %vm489_vm0, %v4941_v44, %v4714_v19  ;;  %v4903_v23 = vrot.slane %v11194_v17, 4 }
 0x5bf   : > { %v4835_v40 = vrot.slane %v4834_v32, 4  ;;  %v4810_v30 = vsel %vm489_vm0, %v4806_v28, %v4809_v14  ;;  %v4858_v24 = vsel %vm489_vm0, %v4857_v59, %v4716_v45  ;;  %v11178_v60 = vperm.slane %v4942_v49, %v13290_v41 }
 0x5c0   : > { %v4710_v12 = vpop.permute.xlu2 %4709  ;;  %v4995_v51 = vshrl.u32 %v11160_v16, 16  ;;  %v4819_v42 = vrot.slane %v11160_v16, 4  ;;  %v11175_v2 = vperm.slane %v4810_v30, %v13291_v29  ;;  %v11198_v61 = vperm.slane %v4858_v24, %v13290_v41 }
 0x5c1   : > { %v4947_v19 = vrot.slane %v11178_v60, 4 }
 0x5c2   : > { %v11209_v10 = vpack.i.b16 %v4995_v51, %v4994_v26  ;;  %v4820_v4 = vsel %vm489_vm0, 0, %v4819_v42  ;;  %v4863_v28 = vrot.slane %v11198_v61, 4 }
 0x5c4   : > { %v5090_v11 = vunpack.c.l.b16 %v11209_v10 }
 0x5c5   : > { %v4720_v9 = vpop.permute.xlu0 %4719 }
 0x5c6   : > { %v4823_v47 = vrot.slane %v4720_v9, 4  ;;  %v4722_v55 = vpop.permute.xlu1 %4721 }
 0x5c7   : > { %v4935_v35 = vrot.slane %v4722_v55, 4 }
 0x5c8   : > { %v4824_v43 = vsel %vm489_vm0, %v4823_v47, %v4704_v31  ;;  %v11149_v6 = vpop.permute.xlu2 %5290  ;;  %v11205_v31 = vperm.slane %v11127_v5, %v13291_v29  ;;  %v4792_v5 = vsel %vm489_vm0, 0, %v4791_v46  ;;  %v5001_v47 = vshrl.u32 %v4820_v4, 16 }
 0x5c9   : > { %v4828_v52 = vperm.slane %v4824_v43, %v13290_v41  ;;  %v4999_v39 = vpack.i.b16 %v4820_v4, %v4792_v5  ;;  %v5000_v43 = vshrl.u32 %v4792_v5, 16 }
 0x5cb   : > { %v4836_v22 = vsel %vm489_vm0, %v4835_v40, %v4828_v52  ;;  %v4837_v48 = vrot.slane %v4828_v52, 4 }
 0x5cc   : > { %v11183_v18 = vperm.slane %v4836_v22, %v13291_v29 }
 0x5cd   : > { %v4726_v53 = vpop.permute.xlu0 %4725  ;;  %v11231_v55 = vsel %vm489_vm0, %v4834_v32, %v4837_v48 }
 0x5ce   : > { %v4963_v7 = vrot.slane %v4726_v53, 4  ;;  %v4678_v50 = vpop.permute.xlu1 %4677  ;;  %v4847_v56 = vrot.slane %v11183_v18, 4  ;;  %v5042_v32 = vshrl.u32 %v11183_v18, 16  ;;  %v11250_v53 = vpack.i.b16 %v5001_v47, %v5000_v43 }
 0x5cf   : > { %v4908_v38 = vsel %vm489_vm0, %v4907_v21, %v4678_v50 }
 0x5d0   : > { %v4964_v20 = vsel %vm489_vm0, %v4963_v7, %v4710_v12  ;;  %v11187_v3 = vperm.slane %v4908_v38, %v13290_v41  ;;  %v11189_v34 = vpop.permute.xlu2 %5320  ;;  %v5005_v12 = vpack.i.b16 %v11175_v2, %v11205_v31  ;;  %v4848_v30 = vsel %vm489_vm0, 0, %v4847_v56 }
 0x5d1   : > { %v11201_v58 = vperm.slane %v4964_v20, %v13290_v41  ;;  %v5048_v42 = vshrl.u32 %v4848_v30, 16 }
 0x5d2   : > { %v4920_v57 = vsel %vm489_vm0, %v4919_v13, %v11187_v3  ;;  %v11244_v13 = vsel %vm489_vm0, 0, %v4903_v23  ;;  %v4921_v7 = vrot.slane %v11187_v3, 4 }
 0x5d3   : > { %v4976_v45 = vsel %vm489_vm0, %v4975_v54, %v11201_v58  ;;  %v11216_v63 = vperm.slane %v4920_v57, %v13291_v29  ;;  %v5095_v54 = vunpack.c.l.b16 %v4999_v39 }
 0x5d4   : > { %v11226_v62 = vperm.slane %v4976_v45, %v13291_v29  ;;  %v4922_v56 = vsel %vm489_vm0, %v11155_v15, %v4921_v7 }
 0x5d5   : > { %v4706_v36 = vpop.permute.xlu0 %4705  ;;  %v4931_v52 = vrot.slane %v11216_v63, 4  ;;  %v5019_v59 = vshrl.u32 %v11216_v63, 16 }
 0x5d6   : > { %v4936_v9 = vsel %vm489_vm0, %v4935_v35, %v4706_v36  ;;  %v4708_v1 = vpop.permute.xlu1 %4707  ;;  %v4987_v24 = vrot.slane %v11226_v62, 4  ;;  %v5067_v51 = vshrl.u32 %v11226_v62, 16 }
 0x5d7   : > { %v4940_v33 = vperm.slane %v4936_v9, %v13290_v41  ;;  %v4852_v14 = vsel %vm489_vm0, %v4851_v8, %v4708_v1  ;;  %v5020_v26 = vpack.i.b16 %v5019_v59, %v5018_v27  ;;  %v4932_v46 = vsel %vm489_vm0, 0, %v4931_v52 }
 0x5d8   : > { %v4856_v44 = vperm.slane %v4852_v14, %v13290_v41  ;;  %v11237_v40 = vpop.permute.xlu2 %5270  ;;  %v4977_v8 = vrot.slane %v11201_v58, 4  ;;  %v4988_v5 = vsel %vm489_vm0, 0, %v4987_v24  ;;  %v5025_v36 = vshrl.u32 %v4932_v46, 16 }
 0x5d9   : > { %v4948_v49 = vsel %vm489_vm0, %v4947_v19, %v4940_v33  ;;  %v4949_v19 = vrot.slane %v4940_v33, 4  ;;  %v5128_v39 = vunpack.c.l.b16 %v5020_v26  ;;  %v5073_v43 = vshrl.u32 %v4988_v5, 16 }
 0x5da   : > { %v11247_v21 = vperm.slane %v4948_v49, %v13291_v29  ;;  %v4864_v22 = vsel %vm489_vm0, %v4863_v28, %v4856_v44  ;;  %v4865_v57 = vrot.slane %v4856_v44, 4  ;;  %v4978_v49 = vsel %vm489_vm0, %v11152_v37, %v4977_v8 }
 0x5db   : > { %v11255_v50 = vperm.slane %v4864_v22, %v13291_v29  ;;  %v4950_v52 = vsel %vm489_vm0, %v11178_v60, %v4949_v19  ;;  %v11283_v24 = vperm.slane %v4922_v56, %v13291_v29  ;;  %v5023_v37 = vpack.i.b16 %v4932_v46, %v11244_v13 }
 0x5dc   : > { %v4959_v38 = vrot.slane %v11247_v21, 4  ;;  %v5066_v20 = vshrl.u32 %v11247_v21, 16  ;;  %v4866_v47 = vsel %vm489_vm0, %v11198_v61, %v4865_v57  ;;  %v11288_v60 = vperm.slane %v4950_v52, %v13291_v29 }
 0x5dd   : > { %v4875_v10 = vrot.slane %v11255_v50, 4  ;;  %v11263_v4 = vpop.permute.xlu0 %5286  ;;  %v5043_v3 = vshrl.u32 %v11255_v50, 16  ;;  %v4874_v61 = vperm.slane %v4866_v47, %v13291_v29  ;;  %v4846_v26 = vperm.slane %v11231_v55, %v13291_v29 }
 0x5de   : > { %v11266_v48 = vpop.permute.xlu1 %5288  ;;  %v5068_v35 = vpack.i.b16 %v5067_v51, %v5066_v20  ;;  %v4960_v45 = vsel %vm489_vm0, 0, %v4959_v38  ;;  %v5007_v38 = vshrl.u32 %v11175_v2, 16  ;;  %v11303_v57 = vperm.slane %v11104_v25, %v13291_v29 }
 0x5df   : > { %v5044_v28 = vpack.i.b16 %v5043_v3, %v5042_v32  ;;  %v4876_v58 = vsel %vm489_vm0, 0, %v4875_v10  ;;  %v5072_v14 = vshrl.u32 %v4960_v45, 16  ;;  %v5071_v22 = vpack.i.b16 %v4988_v5, %v4960_v45 }
 0x5e0   : > { %v11273_v27 = vpop.permute.xlu2 %5276  ;;  %v5129_v23 = vunpack.c.l.b16 %v5068_v35  ;;  %v5047_v9 = vpack.i.b16 %v4876_v58, %v4848_v30  ;;  %v5049_v1 = vshrl.u32 %v4876_v58, 16  ;;  %v5024_v30 = vshrl.u32 %v11244_v13, 16 }
 0x5e1   : > { %v5091_v33 = vunpack.c.l.b16 %v5044_v28  ;;  %v5074_v51 = vpack.i.b16 %v5073_v43, %v5072_v14  ;;  %v4986_v10 = vperm.slane %v4978_v49, %v13291_v29  ;;  %v5134_v13 = vunpack.c.l.b16 %v5071_v22 }
 0x5e2   : > { %v5130_v15 = vpack.c.b16 %v5129_v23, %v5128_v39  ;;  %v5096_v44 = vunpack.c.l.b16 %v5047_v9  ;;  %v5050_v59 = vpack.i.b16 %v5049_v1, %v5048_v42  ;;  %v5026_v8 = vpack.i.b16 %v5025_v36, %v5024_v30 }
 0x5e3   : > { %v5092_v32 = vpack.c.b16 %v5091_v33, %v5090_v11  ;;  %v5006_v11 = vshrl.u32 %v11205_v31, 16  ;;  %v5100_v19 = vunpack.c.l.b16 %v11250_v53  ;;  %v5139_v35 = vunpack.c.l.b16 %v5074_v51 }
 0x5e4   : > { %5131 = vrot.lane.b32.xlu0 %v5130_v15, %s7908_s28  ;;  %v5097_v7 = vpack.c.b16 %v5096_v44, %v5095_v54  ;;  %v5101_v54 = vunpack.c.l.b16 %v5050_v59  ;;  %v5055_v55 = vshrl.u32 %v4874_v61, 16  ;;  %v4793_v45 = vrot.slane %v11205_v31, 4 }
 0x5e5   : > { %5093 = vrot.lane.b32.xlu2 %v5092_v32, %s7908_s28  ;;  %v11291_v42 = vpop.permute.xlu0 %5292  ;;  %v5008_v46 = vpack.i.b16 %v5007_v38, %v5006_v11  ;;  %v5133_v5 = vunpack.c.l.b16 %v5023_v37  ;;  %v5029_v56 = vpack.i.b16 %v11283_v24, %v11303_v57  ;;  %v5077_v28 = vpack.i.b16 %v4986_v10, %v11288_v60 }
 0x5e6   : > { %v11298_v20 = vpop.permute.xlu1 %5318  ;;  %5098 = vrot.lane.b32.xlu1 %v5097_v7, %s7909_s22  ;;  %v4821_v25 = vrot.slane %v11175_v2, 4  ;;  %v5102_v58 = vpack.c.b16 %v5101_v54, %v5100_v19  ;;  %v5138_v36 = vunpack.c.l.b16 %v5026_v8  ;;  %v5053_v39 = vpack.i.b16 %v4874_v61, %v4846_v26 }
 0x5e7   : > { %v5054_v23 = vshrl.u32 %v4846_v26, 16  ;;  %v5135_v9 = vpack.c.b16 %v5134_v13, %v5133_v5  ;;  %v4794_v1 = vsel %vm489_vm0, 0, %v4793_v45  ;;  %v4877_v47 = vrot.slane %v4874_v61, 4 }
 0x5e8   : > { %v11306_v3 = vpop.permute.xlu2 %5282  ;;  %v4822_v53 = vsel %vm489_vm0, 0, %v4821_v25  ;;  %v5140_v33 = vpack.c.b16 %v5139_v35, %v5138_v36  ;;  %v5144_v15 = vunpack.c.l.b16 %v5077_v28  ;;  %v4849_v44 = vrot.slane %v4846_v26, 4 }
 0x5e9   : > { %v5056_v14 = vpack.i.b16 %v5055_v55, %v5054_v23  ;;  %v5011_v43 = vpack.i.b16 %v4822_v53, %v4794_v1  ;;  %v4905_v59 = vrot.slane %v11303_v57, 4  ;;  %v5106_v32 = vunpack.c.l.b16 %v5053_v39 }
 0x5ea   : > { %v5143_v22 = vunpack.c.l.b16 %v5029_v56  ;;  %v5105_v30 = vunpack.c.l.b16 %v5005_v12  ;;  %v4878_v61 = vsel %vm489_vm0, 0, %v4877_v47  ;;  %v5078_v7 = vshrl.u32 %v11288_v60, 16 }
 0x5eb   : > { %v5111_v37 = vunpack.c.l.b16 %v5056_v14  ;;  %v4933_v11 = vrot.slane %v11283_v24, 4  ;;  %v4961_v38 = vrot.slane %v11288_v60, 4  ;;  %v4989_v26 = vrot.slane %v4986_v10, 4 }
 0x5ec   : > { %5103 = vrot.lane.b32.xlu0 %v5102_v58, %s7912_s3  ;;  %v5145_v54 = vpack.c.b16 %v5144_v15, %v5143_v22  ;;  %v4850_v8 = vsel %vm489_vm0, 0, %v4849_v44  ;;  %v5031_v13 = vshrl.u32 %v11283_v24, 16  ;;  %v5079_v19 = vshrl.u32 %v4986_v10, 16 }
 0x5ed   : > { %5136 = vrot.lane.b32.xlu2 %v5135_v9, %s7909_s22  ;;  %v11318_v52 = vpop.permute.xlu0 %5322  ;;  %v5107_v2 = vpack.c.b16 %v5106_v32, %v5105_v30  ;;  %v5110_v31 = vunpack.c.l.b16 %v5008_v46  ;;  %v5059_v12 = vpack.i.b16 %v4878_v61, %v4850_v8  ;;  %v4962_v35 = vsel %vm489_vm0, 0, %v4961_v38 }
 0x5ee   : > { %v11321_v49 = vpop.permute.xlu1 %5324  ;;  %5141 = vrot.lane.b32.xlu1 %v5140_v33, %s7912_s3  ;;  %v5030_v55 = vshrl.u32 %v11303_v57, 16  ;;  %v5080_v45 = vpack.i.b16 %v5079_v19, %v5078_v7  ;;  %v4934_v5 = vsel %vm489_vm0, 0, %v4933_v11  ;;  %v4990_v56 = vsel %vm489_vm0, 0, %v4989_v26 }
 0x5ef   : > { %v5112_v60 = vpack.c.b16 %v5111_v37, %v5110_v31  ;;  %v5083_v28 = vpack.i.b16 %v4990_v56, %v4962_v35  ;;  %v5012_v25 = vshrl.u32 %v4794_v1, 16  ;;  %v5013_v58 = vshrl.u32 %v4822_v53, 16 }
 0x5f0   : > { %v11329_v51 = vpop.permute.xlu2 %5304  ;;  %v5032_v10 = vpack.i.b16 %v5031_v13, %v5030_v55  ;;  %v4906_v46 = vsel %vm489_vm0, 0, %v4905_v59  ;;  %v5116_v57 = vunpack.c.l.b16 %v5059_v12  ;;  %v5084_v23 = vshrl.u32 %v4962_v35, 16 }
 0x5f1   : > { %v5035_v39 = vpack.i.b16 %v4934_v5, %v4906_v46  ;;  %v5014_v9 = vpack.i.b16 %v5013_v58, %v5012_v25  ;;  %v5149_v47 = vunpack.c.l.b16 %v5080_v45  ;;  %v5061_v33 = vshrl.u32 %v4878_v61, 16  ;;  %v7604_v45 = vld [vmem:[%s8122_s29 + $0x8] sm:$0xff] }
 0x5f2   : > { %v5115_v14 = vunpack.c.l.b16 %v5011_v43  ;;  %v5154_v15 = vunpack.c.l.b16 %v5083_v28  ;;  %v5037_v1 = vshrl.u32 %v4934_v5, 16  ;;  %v5085_v53 = vshrl.u32 %v4990_v56, 16  ;;  %7449 = vmatmul.msk.bf16.gmra.mxu2 %vm885_vm1, %v7604_v45  ;;  %7451 = vmatmul.msk.bf16.gmra.mxu3 %vm885_vm1, %v7604_v45 }
 0x5f3   : > { %v5148_v32 = vunpack.c.l.b16 %v5032_v10  ;;  %v5060_v22 = vshrl.u32 %v4850_v8, 16  ;;  %v5153_v7 = vunpack.c.l.b16 %v5035_v39  ;;  %v5036_v59 = vshrl.u32 %v4906_v46, 16 }
 0x5f4   : > { %5146 = vrot.lane.b32.xlu0 %v5145_v54, %s7906_s9  ;;  %v5117_v30 = vpack.c.b16 %v5116_v57, %v5115_v14  ;;  %v5086_v37 = vpack.i.b16 %v5085_v53, %v5084_v23  ;;  %v5392_v25 = vrot.slane %v11149_v6, 4  ;;  %v5532_v58 = vrot.slane %v11189_v34, 4 }
 0x5f5   : > { %5108 = vrot.lane.b32.xlu2 %v5107_v2, %s7906_s9  ;;  %v11341_v24 = vpop.permute.xlu0 %5272  ;;  %v5150_v11 = vpack.c.b16 %v5149_v47, %v5148_v32  ;;  %v5062_v38 = vpack.i.b16 %v5061_v33, %v5060_v22  ;;  %v5155_v26 = vpack.c.b16 %v5154_v15, %v5153_v7  ;;  %v5038_v54 = vpack.i.b16 %v5037_v1, %v5036_v59 }
 0x5f6   : > { %v5275_v36 = vpop.permute.xlu1 %5274  ;;  %5113 = vrot.lane.b32.xlu1 %v5112_v60, %s7907_s11  ;;  %v5159_v8 = vunpack.c.l.b16 %v5086_v37  ;;  %v5120_v2 = vunpack.c.l.b16 %v5014_v9  ;;  %v5386_v10 = vrot.slane %v11306_v3, 4  ;;  %v5364_v46 = vrot.slane %v11263_v4, 4 }
 0x5f7   : > { %v5121_v13 = vunpack.c.l.b16 %v5062_v38  ;;  %v5158_v19 = vunpack.c.l.b16 %v5038_v54  ;;  %v5504_v57 = vrot.slane %v11291_v42, 4  ;;  %v5393_v39 = vsel %vm489_vm0, %v5392_v25, %v5275_v36  ;;  %v7609_v42 = vld [vmem:[%s8122_s29 + $0x30] sm:$0xff] }
 0x5f8   : > { %v11345_v44 = vpop.permute.xlu2 %5310  ;;  %v5533_v23 = vsel %vm489_vm0, %v5532_v58, %v11329_v51  ;;  %v5365_v47 = vsel %vm489_vm0, %v5364_v46, %v11237_v40  ;;  %v5476_v6 = vrot.slane %v11266_v48, 4  ;;  %v5397_v3 = vperm.slane %v5393_v39, %v13290_v41  ;;  %v7608_v39 = vld [vmem:[%s8122_s29 + $0x28] sm:$0xff] }
 0x5f9   : > { %v5160_v31 = vpack.c.b16 %v5159_v8, %v5158_v19  ;;  %v5122_v35 = vpack.c.b16 %v5121_v13, %v5120_v2  ;;  %v5505_v34 = vsel %vm489_vm0, %v5504_v57, %v11273_v27  ;;  %v11380_v36 = vperm.slane %v5533_v23, %v13290_v41  ;;  %7465 = vmatmul.msk.bf16.gmra.mxu0 %vm885_vm1, %v7608_v39 }
 0x5fa   : > { %v5477_v51 = vsel %vm489_vm0, %v5476_v6, %v11341_v24  ;;  %v5369_v48 = vperm.slane %v5365_v47, %v13290_v41  ;;  %v11389_v27 = vperm.slane %v5505_v34, %v13290_v41  ;;  %v5420_v1 = vrot.slane %v11298_v20, 4  ;;  %7467 = vmatmul.msk.bf16.gmra.mxu1 %vm885_vm1, %v7608_v39 }
 0x5fb   : > { %v5398_v53 = vrot.slane %v5397_v3, 4  ;;  %v5481_v24 = vperm.slane %v5477_v51, %v13290_v41  ;;  %v5448_v7 = vrot.slane %v11318_v52, 4  ;;  %v5538_v59 = vrot.slane %v11380_v36, 4 }
 0x5fc   : > { %5118 = vrot.lane.b32.xlu0 %v5117_v30, %s7910_s27  ;;  %v5510_v38 = vrot.slane %v11389_v27, 4 }
 0x5fd   : > { %5151 = vrot.lane.b32.xlu2 %v5150_v11, %s7907_s11  ;;  %v11349_v43 = vpop.permute.xlu0 %5278  ;;  %v5370_v11 = vrot.slane %v5369_v48, 4  ;;  %v5482_v52 = vrot.slane %v5481_v24, 4 }
 0x5fe   : > { %v11351_v61 = vpop.permute.xlu1 %5280  ;;  %5156 = vrot.lane.b32.xlu1 %v5155_v26, %s7910_s27  ;;  %v5560_v26 = vrot.slane %v11321_v49, 4  ;;  %v5358_v54 = vrot.slane %v11349_v43, 4  ;;  %v5414_v49 = vrot.slane %v11345_v44, 4 }
 0x5ff   : > { %v5470_v2 = vrot.slane %v11351_v61, 4 }
 0x600   : > { %v11354_v12 = vpop.permute.xlu2 %5316 }
 0x601   : > { %v5554_v43 = vrot.slane %v11354_v12, 4 }
 0x602   : > { %7496 = vmatmul.msk.bf16.vlgmr.msra.gmra.mxu2 %vm885_vm1, %v7609_v42  ;;  %7498 = vmatmul.msk.bf16.vlgmr.msra.gmra.mxu3 %vm885_vm1, %v7609_v42 }
 0x604   : > { %5161 = vrot.lane.b32.xlu0 %v5160_v31, %s7911_s30 }
 0x605   : > { %5123 = vrot.lane.b32.xlu2 %v5122_v35, %s7911_s30  ;;  %v11358_v55 = vpop.permute.xlu0 %5284 }
 0x606   : > { %v5303_v5 = vpop.permute.xlu1 %5302 }
 0x607   : > { %v5421_v22 = vsel %vm489_vm0, %v5420_v1, %v5303_v5 }
 0x608   : > { %v5267_v56 = vpop.permute.xlu2 %5266  ;;  %v11405_v8 = vperm.slane %v5421_v22, %v13290_v41 }
 0x609   : > { %v5387_v9 = vsel %vm489_vm0, %v5386_v10, %v5267_v56  ;;  %v5498_v10 = vrot.slane %v11358_v55, 4 }
 0x60a   : > { %v5391_v14 = vperm.slane %v5387_v9, %v13290_v41  ;;  %v5426_v44 = vrot.slane %v11405_v8, 4 }
 0x60c   : > { %v5399_v37 = vsel %vm489_vm0, %v5398_v53, %v5391_v14  ;;  %v5400_v20 = vrot.slane %v5391_v14, 4 }
 0x60d   : > { %v5307_v60 = vpop.permute.xlu0 %5306  ;;  %v11411_v31 = vperm.slane %v5399_v37, %v13291_v29 }
 0x60e   : > { %v5309_v28 = vpop.permute.xlu1 %5308  ;;  %v5449_v13 = vsel %vm489_vm0, %v5448_v7, %v5307_v60  ;;  %v5401_v5 = vsel %vm489_vm0, %v5397_v3, %v5400_v20 }
 0x60f   : > { %v5561_v35 = vsel %vm489_vm0, %v5560_v26, %v5309_v28  ;;  %v11419_v25 = vperm.slane %v5449_v13, %v13290_v41  ;;  %v11434_v23 = vperm.slane %v5401_v5, %v13291_v29  ;;  %v5410_v9 = vrot.slane %v11411_v31, 4 }
 0x610   : > { %v5297_v33 = vpop.permute.xlu2 %5296  ;;  %v11429_v46 = vperm.slane %v5561_v35, %v13290_v41  ;;  %v5586_v22 = vshrl.u32 %v11411_v31, 16 }
 0x611   : > { %v5411_v37 = vsel %vm489_vm0, 0, %v5410_v9 }
 0x612   : > { %v5566_v1 = vrot.slane %v11429_v46, 4 }
 0x615   : > { %v5313_v4 = vpop.permute.xlu0 %5312 }
 0x616   : > { %v5526_v15 = vrot.slane %v5313_v4, 4  ;;  %v11385_v40 = vpop.permute.xlu1 %5314 }
 0x618   : > { %v5527_v32 = vsel %vm489_vm0, %v5526_v15, %v5297_v33  ;;  %v5454_v33 = vrot.slane %v11419_v25, 4  ;;  %v7610_v15 = vld [vmem:[%s8122_s29 + $0x38] sm:$0xff] }
 0x619   : > { %v5531_v30 = vperm.slane %v5527_v32, %v13290_v41  ;;  %7497 = vmatmul.msk.bf16.gmra.mxu2 %vm885_vm1, %v7610_v15  ;;  %7499 = vmatmul.msk.bf16.gmra.mxu3 %vm885_vm1, %v7610_v15 }
 0x61b   : > { %v5539_v19 = vsel %vm489_vm0, %v5538_v59, %v5531_v30  ;;  %v5540_v34 = vrot.slane %v5531_v30, 4  ;;  %v5442_v30 = vrot.slane %v11385_v40, 4 }
 0x61c   : > { %v11422_v61 = vperm.slane %v5539_v19, %v13291_v29 }
 0x61d   : > { %v5263_v45 = vpop.permute.xlu0 %5262  ;;  %v11463_v20 = vsel %vm489_vm0, %v11380_v36, %v5540_v34 }
 0x61e   : > { %v5359_v56 = vsel %vm489_vm0, %v5358_v54, %v5263_v45  ;;  %v5265_v60 = vpop.permute.xlu1 %5264  ;;  %v5550_v42 = vrot.slane %v11422_v61, 4  ;;  %v5657_v54 = vshrl.u32 %v11422_v61, 16  ;;  %v5592_v45 = vshrl.u32 %v5411_v37, 16 }
 0x61f   : > { %v5363_v58 = vperm.slane %v5359_v56, %v13290_v41  ;;  %v5471_v28 = vsel %vm489_vm0, %v5470_v2, %v5265_v60 }
 0x620   : > { %v5475_v57 = vperm.slane %v5471_v28, %v13290_v41 }
 0x621   : > { %v5371_v47 = vsel %vm489_vm0, %v5370_v11, %v5363_v58  ;;  %v5372_v6 = vrot.slane %v5363_v58, 4 }
 0x622   : > { %v11439_v55 = vperm.slane %v5371_v47, %v13291_v29  ;;  %v5483_v3 = vsel %vm489_vm0, %v5482_v52, %v5475_v57  ;;  %v5484_v4 = vrot.slane %v5475_v57, 4  ;;  %v11475_v52 = vsel %vm489_vm0, 0, %v5550_v42 }
 0x623   : > { %v5373_v51 = vsel %vm489_vm0, %v5369_v48, %v5372_v6  ;;  %v11448_v14 = vperm.slane %v5483_v3, %v13291_v29 }
 0x624   : > { %v5382_v53 = vrot.slane %v11439_v55, 4  ;;  %v5485_v32 = vsel %vm489_vm0, %v5481_v24, %v5484_v4  ;;  %v11457_v7 = vperm.slane %v5373_v51, %v13291_v29  ;;  %v5585_v48 = vshrl.u32 %v11439_v55, 16 }
 0x625   : > { %v5269_v59 = vpop.permute.xlu0 %5268  ;;  %v5494_v11 = vrot.slane %v11448_v14, 4  ;;  %v11469_v40 = vperm.slane %v5485_v32, %v13291_v29  ;;  %v5609_v2 = vshrl.u32 %v11448_v14, 16 }
 0x626   : > { %v5499_v24 = vsel %vm489_vm0, %v5498_v10, %v5269_v59  ;;  %v5295_v26 = vpop.permute.xlu1 %5294  ;;  %v5383_v35 = vsel %vm489_vm0, 0, %v5382_v53  ;;  %v5596_v60 = vpack.i.b16 %v11434_v23, %v11457_v7 }
 0x627   : > { %v5503_v13 = vperm.slane %v5499_v24, %v13290_v41  ;;  %v5415_v19 = vsel %vm489_vm0, %v5414_v49, %v5295_v26  ;;  %v11484_v49 = vpack.i.b16 %v5586_v22, %v5585_v48  ;;  %v11493_v57 = vsel %vm489_vm0, 0, %v5494_v11  ;;  %v7611_v26 = vld [vmem:[%s8122_s29 + $0x40] sm:$0xff] }
 0x628   : > { %v5419_v36 = vperm.slane %v5415_v19, %v13290_v41  ;;  %v5590_v9 = vpack.i.b16 %v5411_v37, %v5383_v35  ;;  %v5591_v47 = vshrl.u32 %v5383_v35, 16  ;;  %v5615_v15 = vshrl.u32 %v11493_v57, 16  ;;  %7512 = vmatmul.msk.bf16.vlgmr.msra.gmra.mxu0 %vm885_vm1, %v7611_v26  ;;  %7514 = vmatmul.msk.bf16.vlgmr.msra.gmra.mxu1 %vm885_vm1, %v7611_v26 }
 0x629   : > { %v5511_v5 = vsel %vm489_vm0, %v5510_v38, %v5503_v13  ;;  %v5512_v56 = vrot.slane %v5503_v13, 4  ;;  %v5681_v51 = vunpack.c.l.b16 %v11484_v49 }
 0x62a   : > { %v11489_v58 = vperm.slane %v5511_v5, %v13291_v29  ;;  %v5427_v28 = vsel %vm489_vm0, %v5426_v44, %v5419_v36  ;;  %v5428_v10 = vrot.slane %v5419_v36, 4  ;;  %v5663_v44 = vshrl.u32 %v11475_v52, 16 }
 0x62b   : > { %v5513_v39 = vsel %vm489_vm0, %v11389_v27, %v5512_v56  ;;  %v11498_v38 = vperm.slane %v5427_v28, %v13291_v29  ;;  %v5686_v11 = vunpack.c.l.b16 %v5590_v9  ;;  %v11521_v24 = vpack.i.b16 %v5592_v45, %v5591_v47 }
 0x62c   : > { %v11501_v6 = vperm.slane %v5513_v39, %v13291_v29  ;;  %v5522_v34 = vrot.slane %v11489_v58, 4  ;;  %v5610_v3 = vshrl.u32 %v11489_v58, 16  ;;  %v5429_v4 = vsel %vm489_vm0, %v11405_v8, %v5428_v10  ;;  %v7613_v10 = vld [vmem:[%s8122_s29 + $0x50] sm:$0xff] }
 0x62d   : > { %v5438_v27 = vrot.slane %v11498_v38, 4  ;;  %v5299_v42 = vpop.permute.xlu0 %5298  ;;  %v5633_v19 = vshrl.u32 %v11498_v38, 16  ;;  %v11529_v36 = vunpack.c.l.b16 %v5596_v60  ;;  %v5597_v28 = vshrl.u32 %v11457_v7, 16  ;;  %7528 = vmatmul.msk.bf16.vlgmr.msrb.gmra.mxu2 %vm885_vm1, %v7613_v10  ;;  %7530 = vmatmul.msk.bf16.vlgmr.msrb.gmra.mxu3 %vm885_vm1, %v7613_v10 }
 0x62e   : > { %v5443_v53 = vsel %vm489_vm0, %v5442_v30, %v5299_v42  ;;  %v5301_v32 = vpop.permute.xlu1 %5300  ;;  %v5611_v22 = vpack.i.b16 %v5610_v3, %v5609_v2  ;;  %v11513_v59 = vsel %vm489_vm0, 0, %v5522_v34  ;;  %v5620_v48 = vpack.i.b16 %v11501_v6, %v11469_v40 }
 0x62f   : > { %v5447_v37 = vperm.slane %v5443_v53, %v13290_v41  ;;  %v5555_v8 = vsel %vm489_vm0, %v5554_v43, %v5301_v32  ;;  %v11525_v30 = vperm.slane %v5429_v4, %v13291_v29  ;;  %v5439_v43 = vsel %vm489_vm0, 0, %v5438_v27 }
 0x630   : > { %v5559_v13 = vperm.slane %v5555_v8, %v13290_v41  ;;  %v5614_v35 = vpack.i.b16 %v11513_v59, %v11493_v57  ;;  %v5719_v56 = vunpack.c.l.b16 %v5611_v22  ;;  %v5616_v60 = vshrl.u32 %v11513_v59, 16 }
 0x631   : > { %v5455_v12 = vsel %vm489_vm0, %v5454_v33, %v5447_v37  ;;  %v5456_v2 = vrot.slane %v5447_v37, 4  ;;  %v5598_v9 = vshrl.u32 %v11434_v23, 16  ;;  %v5639_v3 = vshrl.u32 %v5439_v43, 16 }
 0x632   : > { %v11538_v45 = vperm.slane %v5455_v12, %v13291_v29  ;;  %v5567_v41 = vsel %vm489_vm0, %v5566_v1, %v5559_v13  ;;  %v5568_v5 = vrot.slane %v5559_v13, 4  ;;  %v5617_v8 = vpack.i.b16 %v5616_v60, %v5615_v15 }
 0x633   : > { %v5457_v33 = vsel %vm489_vm0, %v11419_v25, %v5456_v2  ;;  %v11548_v49 = vperm.slane %v5567_v41, %v13291_v29  ;;  %v5599_v53 = vpack.i.b16 %v5598_v9, %v5597_v28  ;;  %v11583_v60 = vperm.slane %v11463_v20, %v13291_v29 }
 0x634   : > { %v11554_v57 = vperm.slane %v5457_v33, %v13291_v29  ;;  %v5466_v1 = vrot.slane %v11538_v45, 4  ;;  %v5634_v39 = vshrl.u32 %v11538_v45, 16  ;;  %v5569_v25 = vsel %vm489_vm0, %v11429_v46, %v5568_v5 }
 0x635   : > { %v5578_v47 = vrot.slane %v11548_v49, 4  ;;  %v5658_v34 = vshrl.u32 %v11548_v49, 16  ;;  %v5691_v10 = vunpack.c.l.b16 %v11521_v24  ;;  %v5622_v24 = vshrl.u32 %v11501_v6, 16 }
 0x636   : > { %v5635_v4 = vpack.i.b16 %v5634_v39, %v5633_v19  ;;  %v5467_v27 = vsel %vm489_vm0, 0, %v5466_v1  ;;  %v5644_v42 = vpack.i.b16 %v11554_v57, %v11525_v30  ;;  %v5645_v1 = vshrl.u32 %v11525_v30, 16 }
 0x637   : > { %v5659_v32 = vpack.i.b16 %v5658_v34, %v5657_v54  ;;  %v5638_v22 = vpack.i.b16 %v5467_v27, %v5439_v43  ;;  %v5579_v59 = vsel %vm489_vm0, 0, %v5578_v47  ;;  %v5640_v37 = vshrl.u32 %v5467_v27, 16 }
 0x638   : > { %v5682_v46 = vunpack.c.l.b16 %v5635_v4  ;;  %v5664_v26 = vshrl.u32 %v5579_v59, 16  ;;  %v11571_v13 = vunpack.c.l.b16 %v5644_v42  ;;  %v5662_v2 = vpack.i.b16 %v5579_v59, %v11475_v52 }
 0x639   : > { %v5720_v19 = vunpack.c.l.b16 %v5659_v32  ;;  %v5687_v12 = vunpack.c.l.b16 %v5638_v22  ;;  %v5641_v41 = vpack.i.b16 %v5640_v37, %v5639_v3  ;;  %v11575_v54 = vperm.slane %v5569_v25, %v13291_v29  ;;  %v7612_v3 = vld [vmem:[%s8122_s29 + $0x48] sm:$0xff] }
 0x63a   : > { %v5683_v43 = vpack.c.b16 %v5682_v46, %v5681_v51  ;;  %v5698_v5 = vpack.c.b16 %v11571_v13, %v11529_v36  ;;  %v5665_v15 = vpack.i.b16 %v5664_v26, %v5663_v44  ;;  %v5646_v51 = vshrl.u32 %v11554_v57, 16  ;;  %7513 = vmatmul.msk.bf16.gmra.mxu0 %vm885_vm1, %v7612_v3  ;;  %7515 = vmatmul.msk.bf16.gmra.mxu1 %vm885_vm1, %v7612_v3 }
 0x63b   : > { %v5721_v33 = vpack.c.b16 %v5720_v19, %v5719_v56  ;;  %v5688_v28 = vpack.c.b16 %v5687_v12, %v5686_v11  ;;  %v5724_v11 = vunpack.c.l.b16 %v5614_v35  ;;  %v5725_v52 = vunpack.c.l.b16 %v5662_v2  ;;  %v7614_v19 = vld [vmem:[%s8122_s29 + $0x58] sm:$0xff] }
 0x63c   : > { %5684 = vrot.lane.b32.xlu1 %v5683_v43, %s7908_s28  ;;  %v5692_v44 = vunpack.c.l.b16 %v5641_v41  ;;  %v5729_v56 = vunpack.c.l.b16 %v5617_v8  ;;  %v5668_v29 = vpack.i.b16 %v11575_v54, %v11583_v60  ;;  %v5647_v20 = vpack.i.b16 %v5646_v51, %v5645_v1 }
 0x63d   : > { %5722 = vrot.lane.b32.xlu2 %v5721_v33, %s7908_s28  ;;  %5689 = vrot.lane.b32.xlu0 %v5688_v28, %s7909_s22  ;;  %v5621_v39 = vshrl.u32 %v11469_v40, 16  ;;  %v5730_v9 = vunpack.c.l.b16 %v5665_v15  ;;  %v5384_v25 = vrot.slane %v11457_v7, 4  ;;  %v5412_v47 = vrot.slane %v11434_v23, 4  ;;  %s7921_s28 = smov (!%p7596_p3), 16  }
 0x63e   : > { %v5440_v34 = vrot.slane %v11525_v30, 4  ;;  %v5701_v35 = vunpack.c.l.b16 %v5599_v53  ;;  %v5702_v4 = vunpack.c.l.b16 %v5647_v20  ;;  %v5468_v42 = vrot.slane %v11554_v57, 4  ;;  %7529 = vmatmul.msk.bf16.gmra.mxu2 %vm885_vm1, %v7614_v19  ;;  %7531 = vmatmul.msk.bf16.gmra.mxu3 %vm885_vm1, %v7614_v19 }
 0x63f   : > { %v11599_v27 = vpack.i.b16 %v5622_v24, %v5621_v39  ;;  %v5726_v32 = vpack.c.b16 %v5725_v52, %v5724_v11  ;;  %v5693_v22 = vpack.c.b16 %v5692_v44, %v5691_v10  ;;  %v5385_v59 = vsel %vm489_vm0, 0, %v5384_v25  ;;  %v11619_v1 = vpop.permute.xlu2 %5093 }
 0x640   : > { %v5413_v37 = vsel %vm489_vm0, 0, %v5412_v47  ;;  %v5703_v46 = vpack.c.b16 %v5702_v4, %v5701_v35  ;;  %v5441_v7 = vsel %vm489_vm0, 0, %v5440_v34  ;;  %v5469_v23 = vsel %vm489_vm0, 0, %v5468_v42 }
 0x641   : > { %v5602_v30 = vpack.i.b16 %v5413_v37, %v5385_v59  ;;  %v5731_v53 = vpack.c.b16 %v5730_v9, %v5729_v56  ;;  %v5650_v8 = vpack.i.b16 %v5469_v23, %v5441_v7  ;;  %v5496_v57 = vrot.slane %v11469_v40, 4 }
 0x642   : > { %v5524_v26 = vrot.slane %v11501_v6, 4  ;;  %v5580_v12 = vrot.slane %v11575_v54, 4  ;;  %v5670_v28 = vshrl.u32 %v11575_v54, 16  ;;  %v5552_v15 = vrot.slane %v11583_v60, 4 }
 0x643   : > { %v5706_v2 = vunpack.c.l.b16 %v5602_v30  ;;  %v5707_v41 = vunpack.c.l.b16 %v5650_v8  ;;  %v5497_v43 = vsel %vm489_vm0, 0, %v5496_v57  ;;  %v5735_v51 = vunpack.c.l.b16 %v5668_v29 }
 0x644   : > { %5727 = vrot.lane.b32.xlu1 %v5726_v32, %s7909_s22  ;;  %v5525_v33 = vsel %vm489_vm0, 0, %v5524_v26  ;;  %v5603_v52 = vshrl.u32 %v5385_v59, 16  ;;  %v5604_v44 = vshrl.u32 %v5413_v37, 16  ;;  %v5669_v56 = vshrl.u32 %v11583_v60, 16  ;;  %v7615_v59 = vld [vmem:[%s8122_s29 + $0x60] sm:$0xff] }
 0x645   : > { %5694 = vrot.lane.b32.xlu2 %v5693_v22, %s7912_s3  ;;  %5732 = vrot.lane.b32.xlu0 %v5731_v53, %s7912_s3  ;;  %v5626_v10 = vpack.i.b16 %v5525_v33, %v5497_v43  ;;  %v5708_v11 = vpack.c.b16 %v5707_v41, %v5706_v2  ;;  %v5581_v20 = vsel %vm489_vm0, 0, %v5580_v12  ;;  %v5651_v39 = vshrl.u32 %v5441_v7, 16  ;;  %v7616_v2 = vld [vmem:[%s8122_s29 + $0x68] sm:$0xff] }
 0x646   : > { %v5652_v24 = vshrl.u32 %v5469_v23, 16  ;;  %v5734_v54 = vunpack.c.l.b16 %v5620_v48  ;;  %v5605_v9 = vpack.i.b16 %v5604_v44, %v5603_v52  ;;  %v5627_v25 = vshrl.u32 %v5497_v43, 16 }
 0x647   : > { %v5628_v29 = vshrl.u32 %v5525_v33, 16  ;;  %v5671_v47 = vpack.i.b16 %v5670_v28, %v5669_v56  ;;  %v5553_v34 = vsel %vm489_vm0, 0, %v5552_v15  ;;  %v5676_v22 = vshrl.u32 %v5581_v20, 16  ;;  %v5137_v7 = vpop.permute.xlu2 %5136 }
 0x648   : > { %v5653_v3 = vpack.i.b16 %v5652_v24, %v5651_v39  ;;  %v5736_v35 = vpack.c.b16 %v5735_v51, %v5734_v54  ;;  %v5674_v4 = vpack.i.b16 %v5581_v20, %v5553_v34  ;;  %v5711_v60 = vunpack.c.l.b16 %v5605_v9 }
 0x649   : > { %v5629_v42 = vpack.i.b16 %v5628_v29, %v5627_v25  ;;  %v5740_v40 = vunpack.c.l.b16 %v5671_v47  ;;  %v5739_v37 = vunpack.c.l.b16 %v11599_v27  ;;  %v5744_v23 = vunpack.c.l.b16 %v5626_v10  ;;  %v1515_v10 = vpop.f32.mrf.mxu2  ;;  %v7617_v47 = vld [vmem:[%s8122_s29 + $0x70] sm:$0xff] }
 0x64a   : > { %v5712_v32 = vunpack.c.l.b16 %v5653_v3  ;;  %v5745_v48 = vunpack.c.l.b16 %v5674_v4  ;;  %v5675_v30 = vshrl.u32 %v5553_v34, 16  ;;  %7560 = vmatmul.msk.bf16.vlgmr.msrb.gmra.mxu0 %vm885_vm1, %v7615_v59  ;;  %7562 = vmatmul.msk.bf16.vlgmr.msrb.gmra.mxu1 %vm885_vm1, %v7615_v59  ;;  %v5041_v19 = vpack.i.b16 %v11255_v50, %v11183_v18 }
 0x64b   : > { %v5741_v53 = vpack.c.b16 %v5740_v40, %v5739_v37  ;;  %v5749_v8 = vunpack.c.l.b16 %v5629_v42  ;;  %v4993_v41 = vpack.i.b16 %v11160_v16, %v11163_v0  ;;  %v5065_v28 = vpack.i.b16 %v11226_v62, %v11247_v21  ;;  %v1534_v21 = vpop.f32.mrf.mxu3 }
 0x64c   : > { %5699 = vrot.lane.b32.xlu1 %v5698_v5, %s7906_s9  ;;  %v5713_v6 = vpack.c.b16 %v5712_v32, %v5711_v60  ;;  %v5746_v36 = vpack.c.b16 %v5745_v48, %v5744_v23  ;;  %v5677_v13 = vpack.i.b16 %v5676_v22, %v5675_v30  ;;  %v5088_v33 = vunpack.c.l.b16 %v5041_v19  ;;  %v1510_v48 = vpop.f32.mrf.mxu0  ;;  %v1529_v22 = vpop.f32.mrf.mxu1  ;;  %v7618_v30 = vld [vmem:[%s8122_s29 + $0x78] sm:$0xff] }
 0x64d   : > { %5737 = vrot.lane.b32.xlu2 %v5736_v35, %s7906_s9  ;;  %5704 = vrot.lane.b32.xlu0 %v5703_v46, %s7907_s11  ;;  %v5087_v15 = vunpack.c.l.b16 %v4993_v41  ;;  %v5017_v51 = vpack.i.b16 %v11216_v63, %v11194_v17  ;;  %v5126_v52 = vunpack.c.l.b16 %v5065_v28  ;;  %s7919_s9 = smov (!%p7596_p3), 48  }
 0x64e   : > { %v5750_v46 = vunpack.c.l.b16 %v5677_v13 }
 0x64f   : > { %v5109_v57 = vpop.permute.xlu2 %5108  ;;  %v5089_v50 = vpack.c.b16 %v5088_v33, %v5087_v15  ;;  %v5125_v0 = vunpack.c.l.b16 %v5017_v51 }
 0x650   : > { %v5751_v26 = vpack.c.b16 %v5750_v46, %v5749_v8 }
 0x651   : > { %v5165_v16 = vsel %vm885_vm1, %v5089_v50, %v11619_v1  ;;  %v5127_v62 = vpack.c.b16 %v5126_v52, %v5125_v0  ;;  %v1517_v39 = vpop.f32.mrf.mxu2 }
 0x653   : > { %v1536_v4 = vpop.f32.mrf.mxu3 }
 0x654   : > { %5742 = vrot.lane.b32.xlu1 %v5741_v53, %s7907_s11  ;;  %v1512_v53 = vpop.f32.mrf.mxu0  ;;  %s7920_s11 = smov (!%p7596_p3), 32  }
 0x655   : > { %5709 = vrot.lane.b32.xlu2 %v5708_v11, %s7910_s27  ;;  %5747 = vrot.lane.b32.xlu0 %v5746_v36, %s7910_s27  ;;  %v1531_v36 = vpop.f32.mrf.mxu1 }
 0x656   : > { %v5132_v5 = vpop.permute.xlu0 %5131 }
 0x657   : > { %v5152_v18 = vpop.permute.xlu2 %5151  ;;  %v5181_v24 = vsel %vm885_vm1, %v5127_v62, %v5132_v5 }
 0x658   : > { %v5099_v27 = vpop.permute.xlu1 %5098  ;;  %v5183_v25 = vsel %vm889_vm2, %v5181_v24, %v5137_v7 }
 0x659   : > { %v5167_v44 = vsel %vm889_vm2, %v5165_v16, %v5099_v27  ;;  %v1564_v60 = vpop.f32.mrf.mxu2 }
 0x65a   : > { %7561 = vmatmul.msk.bf16.gmra.mxu0 %vm885_vm1, %v7616_v2  ;;  %7563 = vmatmul.msk.bf16.gmra.mxu1 %vm885_vm1, %v7616_v2  ;;  %v1565_v59 = vadd.f32 %v1564_v60, %v1510_v48 }
 0x65b   : > { %v1583_v37 = vpop.f32.mrf.mxu3 }
 0x65c   : > { %5714 = vrot.lane.b32.xlu1 %v5713_v6, %s7911_s30  ;;  %v1584_v7 = vadd.f32 %v1583_v37, %v1529_v22  ;;  %v2147_v27 = vpop.f32.mrf.mxu0 }
 0x65d   : > { %5752 = vrot.lane.b32.xlu2 %v5751_v26, %s7911_s30  ;;  %v2166_v8 = vpop.f32.mrf.mxu1 }
 0x65e   : > { %v5104_v12 = vpop.permute.xlu0 %5103  ;;  %v11677_v26 = vadd.f32 %v2166_v8, %v1584_v7 }
 0x65f   : > { %v5169_v20 = vsel %vm892_vm3, %v5167_v44, %v5104_v12  ;;  %v5124_v9 = vpop.permute.xlu2 %5123 }
 0x660   : > { %v5142_v43 = vpop.permute.xlu1 %5141  ;;  %v5171_v17 = vsel %vm895_vm4, %v5169_v20, %v5109_v57  ;;  %v11675_v57 = vadd.f32 %v2147_v27, %v1565_v59 }
 0x661   : > { %v5185_v34 = vsel %vm892_vm3, %v5183_v25, %v5142_v43  ;;  %v1566_v23 = vpop.f32.mrf.mxu2  ;;  %v5632_v25 = vpack.i.b16 %v11538_v45, %v11498_v38 }
 0x662   : > { %v1567_v13 = vadd.f32 %v1566_v23, %v1512_v53 }
 0x663   : > { %v1585_v5 = vpop.f32.mrf.mxu3 }
 0x664   : > { %v1586_v46 = vadd.f32 %v1585_v5, %v1531_v36  ;;  %v2149_v43 = vpop.f32.mrf.mxu0 }
 0x665   : > { %v2168_v33 = vpop.f32.mrf.mxu1  ;;  %v11680_v28 = vadd.f32 %v2149_v43, %v1567_v13 }
 0x666   : > { %v5147_v11 = vpop.permute.xlu0 %5146  ;;  %v11682_v15 = vadd.f32 %v2168_v33, %v1586_v46  ;;  %v7620_v46 = vld [vmem:[%s8122_s29 + $0x88] sm:$0xff] }
 0x667   : > { %v5187_v3 = vsel %vm895_vm4, %v5185_v34, %v5147_v11  ;;  %v5584_v34 = vpack.i.b16 %v11411_v31, %v11439_v55 }
 0x668   : > { %v5114_v56 = vpop.permute.xlu1 %5113  ;;  %v5189_v42 = vsel %vm898_vm5, %v5187_v3, %v5152_v18 }
 0x669   : > { %v5173_v63 = vsel %vm898_vm5, %v5171_v17, %v5114_v56 }
 0x66e   : > { %v5119_v54 = vpop.permute.xlu0 %5118 }
 0x66f   : > { %v5175_v1 = vsel %vm901_vm6, %v5173_v63, %v5119_v54 }
 0x670   : > { %v5177_v29 = vsel %vm904_vm7, %v5175_v1, %v5124_v9  ;;  %v5157_v35 = vpop.permute.xlu1 %5156  ;;  %v5608_v1 = vpack.i.b16 %v11489_v58, %v11448_v14 }
 0x671   : > { %5218 = vmatpush.bf16.msra.mxu2 %v5177_v29  ;;  %v5191_v32 = vsel %vm901_vm6, %v5189_v42, %v5157_v35  ;;  %v5679_v35 = vunpack.c.l.b16 %v5632_v25  ;;  %v5678_v42 = vunpack.c.l.b16 %v5584_v34 }
 0x672   : > { %v5716_v3 = vunpack.c.l.b16 %v5608_v1 }
 0x674   : > { %7576 = vmatmul.msk.bf16.vlgmr.msra.gmra.mxu2 %vm885_vm1, %v7617_v47 }
 0x675   : > { %v1569_v19 = vpop.f32.mrf.mxu2  ;;  %v1588_v2 = vpop.f32.mrf.mxu3 }
 0x676   : > { %v5162_v40 = vpop.permute.xlu0 %5161  ;;  %v1570_v12 = vadd.f32 %v1569_v19, %v1515_v10  ;;  %v1589_v41 = vadd.f32 %v1588_v2, %v1534_v21  ;;  %v2152_v52 = vpop.f32.mrf.mxu0 }
 0x677   : > { %v5193_v6 = vsel %vm904_vm7, %v5191_v32, %v5162_v40  ;;  %v2171_v44 = vpop.f32.mrf.mxu1 }
 0x678   : > { %5237 = vmatpush.bf16.msra.mxu3 %v5193_v6  ;;  %v11684_v0 = vadd.f32 %v2152_v52, %v1570_v12  ;;  %v11686_v56 = vadd.f32 %v2171_v44, %v1589_v41 }
 0x67b   : > { %7578 = vmatmul.msk.bf16.vlgmr.msra.gmra.mxu3 %vm885_vm1, %v7617_v47 }
 0x67d   : > { %v1571_v51 = vpop.f32.mrf.mxu2  ;;  %v1590_v50 = vpop.f32.mrf.mxu3 }
 0x67e   : > { %v1572_v18 = vadd.f32 %v1571_v51, %v1517_v39  ;;  %v1591_v11 = vadd.f32 %v1590_v50, %v1536_v4  ;;  %v2154_v10 = vpop.f32.mrf.mxu0  ;;  %v5656_v39 = vpack.i.b16 %v11548_v49, %v11422_v61  ;;  %v5680_v49 = vpack.c.b16 %v5679_v35, %v5678_v42 }
 0x67f   : > { %v2173_v62 = vpop.f32.mrf.mxu1 }
 0x680   : > { %v11688_v20 = vadd.f32 %v2154_v10, %v1572_v18  ;;  %v11690_v21 = vadd.f32 %v2173_v62, %v1591_v11  ;;  %v5717_v47 = vunpack.c.l.b16 %v5656_v39 }
 0x682   : > { %v5718_v4 = vpack.c.b16 %v5717_v47, %v5716_v3 }
 0x684   : > { %7577 = vmatmul.msk.bf16.gmra.mxu2 %vm885_vm1, %v7618_v30 }
 0x685   : > { %v2824_v27 = vpop.f32.mrf.mxu3  ;;  %v2805_v8 = vpop.f32.mrf.mxu2 }
 0x686   : > { %v2835_v3 = vadd.f32 %v2824_v27, %v11677_v26  ;;  %v5848_v27 = vld [vmem:[#allocation2 + $0x30] sm:$0xff] }
 0x68b   : > { %7579 = vmatmul.msk.bf16.gmra.mxu3 %vm885_vm1, %v7618_v30  ;;  %v7619_v30 = vld [vmem:[%s8122_s29 + $0x80] sm:$0xff]  ;;  %s7916_s29 = smov (!%p7596_p3), 96  }
 0x68d   : > { %v2826_v19 = vpop.f32.mrf.mxu3  ;;  %v2807_v2 = vpop.f32.mrf.mxu2 }
 0x68e   : > { %v2836_v26 = vadd.f32 %v2807_v2, %v11680_v28 }
 0x697   : > { %v5723_v16 = vpop.permute.xlu2 %5722 }
 0x698   : > { %v5772_v61 = vsel %vm885_vm1, %v5718_v4, %v5723_v16 }
 0x69c   : > { %v2829_v43 = vpop.f32.mrf.mxu3  ;;  %v2810_v51 = vpop.f32.mrf.mxu2 }
 0x69d   : > { %v2838_v28 = vadd.f32 %v2810_v51, %v11684_v0  ;;  %v5850_v51 = vld [vmem:[#allocation2 + $0x18] sm:$0xff] }
 0x69f   : > { %v5695_v24 = vpop.permute.xlu2 %5694 }
 0x6a4   : > { %v2831_v50 = vpop.f32.mrf.mxu3  ;;  %v11720_v52 = vpop.f32.mrf.mxu2 }
 0x6a5   : > { %v3415_v12 = vpop.f32.mrf.mxu1  ;;  %v3396_v41 = vpop.f32.mrf.mxu0 }
 0x6a6   : > { %v3426_v42 = vadd.f32 %v3415_v12, %v2835_v3 }
 0x6a7   : > { %v5738_v54 = vpop.permute.xlu2 %5737 }
 0x6ad   : > { %v3417_v33 = vpop.f32.mrf.mxu1  ;;  %v3398_v18 = vpop.f32.mrf.mxu0 }
 0x6ae   : > { %v5685_v17 = vpop.permute.xlu1 %5684 }
 0x6af   : > { %v5690_v63 = vpop.permute.xlu0 %5689  ;;  %v5710_v60 = vpop.permute.xlu2 %5709  ;;  %v5756_v58 = vsel %vm885_vm1, %v5680_v49, %v5685_v17  ;;  %v2837_v49 = vadd.f32 %v2826_v19, %v11682_v15 }
 0x6b0   : > { %v5758_v45 = vsel %vm889_vm2, %v5756_v58, %v5690_v63  ;;  %v4006_v44 = vpop.f32.mrf.mxu3  ;;  %v3987_v62 = vpop.f32.mrf.mxu2 }
 0x6b1   : > { %v5760_v6 = vsel %vm892_vm3, %v5758_v45, %v5695_v24 }
 0x6b6   : > { %v5728_v9 = vpop.permute.xlu1 %5727 }
 0x6b7   : > { %v5733_v29 = vpop.permute.xlu0 %5732  ;;  %v5774_v14 = vsel %vm889_vm2, %v5772_v61, %v5728_v9  ;;  %v5753_v59 = vpop.permute.xlu2 %5752 }
 0x6b8   : > { %v5776_v38 = vsel %vm892_vm3, %v5774_v14, %v5733_v29  ;;  %v3420_v11 = vpop.f32.mrf.mxu1  ;;  %v3401_v16 = vpop.f32.mrf.mxu0 }
 0x6b9   : > { %v5778_v55 = vsel %vm895_vm4, %v5776_v38, %v5738_v54  ;;  %v4008_v17 = vpop.f32.mrf.mxu3  ;;  %v3989_v54 = vpop.f32.mrf.mxu2  ;;  %v3428_v38 = vadd.f32 %v3417_v33, %v2837_v49 }
 0x6be   : > { %v5700_v32 = vpop.permute.xlu1 %5699 }
 0x6bf   : > { %v5705_v40 = vpop.permute.xlu0 %5704  ;;  %v5762_v37 = vsel %vm895_vm4, %v5760_v6, %v5700_v32  ;;  %v2834_v32 = vadd.f32 %v2805_v8, %v11675_v57  ;;  %v2839_v57 = vadd.f32 %v2829_v43, %v11686_v56  ;;  %v2841_v56 = vadd.f32 %v2831_v50, %v11690_v21 }
 0x6c0   : > { %v5764_v53 = vsel %vm898_vm5, %v5762_v37, %v5705_v40  ;;  %v3422_v10 = vpop.f32.mrf.mxu1  ;;  %v11722_v24 = vpop.f32.mrf.mxu0  ;;  %v4017_v40 = vadd.f32 %v4006_v44, %v3426_v42  ;;  %v4019_v37 = vadd.f32 %v4008_v17, %v3428_v38 }
 0x6c1   : > { %v5766_v13 = vsel %vm901_vm6, %v5764_v53, %v5710_v60  ;;  %v4011_v9 = vpop.f32.mrf.mxu3  ;;  %v3992_v25 = vpop.f32.mrf.mxu2  ;;  %v3425_v14 = vadd.f32 %v3396_v41, %v2834_v32  ;;  %v3430_v53 = vadd.f32 %v3420_v11, %v2839_v57  ;;  %v5851_v41 = vld [vmem:[#allocation2 + $0x10] sm:$0xff]  ;;  %v3429_v11 = vadd.f32 %v3401_v16, %v2838_v28 }
 0x6c3   : > { %v4021_v43 = vadd.f32 %v4011_v9, %v3430_v53  ;;  %v4020_v3 = vadd.f32 %v3992_v25, %v3429_v11  ;;  %v5852_v25 = vld [vmem:[#allocation2 + $0x8] sm:$0xff] }
 0x6c6   : > { %v5743_v31 = vpop.permute.xlu1 %5742 }
 0x6c7   : > { %v5780_v48 = vsel %vm898_vm5, %v5778_v55, %v5743_v31  ;;  %v5748_v22 = vpop.permute.xlu0 %5747  ;;  %v4016_v55 = vadd.f32 %v3987_v62, %v3425_v14 }
 0x6c8   : > { %v5782_v7 = vsel %vm901_vm6, %v5780_v48, %v5748_v22  ;;  %v4648_v63 = vpop.f32.mrf.mxu1  ;;  %v4629_v39 = vpop.f32.mrf.mxu0 }
 0x6c9   : > { %v5784_v23 = vsel %vm904_vm7, %v5782_v7, %v5753_v59  ;;  %v11724_v47 = vpop.f32.mrf.mxu3  ;;  %v11727_v35 = vpop.f32.mrf.mxu2  ;;  %v4659_v45 = vadd.f32 %v4648_v63, %v4017_v40  ;;  %v5849_v59 = vld [vmem:[#allocation2] sm:$0xff]  ;;  %v4658_v15 = vadd.f32 %v4629_v39, %v4016_v55  ;;  %v3432_v63 = vadd.f32 %v3422_v10, %v2841_v56 }
 0x6ca   : > { %5828 = vmatpush.bf16.msra.mxu1 %v5784_v23  ;;  %v3427_v23 = vadd.f32 %v3398_v18, %v2836_v26  ;;  %v5855_v26 = vld [vmem:[#allocation2 + $0x38] sm:$0xff] }
 0x6cb   : > { %v4023_v16 = vadd.f32 %v11724_v47, %v3432_v63 }
 0x6cc   : > { %v4018_v8 = vadd.f32 %v3989_v54, %v3427_v23  ;;  %v2840_v54 = vadd.f32 %v11720_v52, %v11688_v20 }
 0x6cd   : > { %7594 = vmatmul.msk.bf16.vlgmr.msra.gmra.mxu1 %vm885_vm1, %v7619_v30 }
 0x6ce   : > { %v5715_v36 = vpop.permute.xlu1 %5714  ;;  %v3431_v10 = vadd.f32 %v11722_v24, %v2840_v54 }
 0x6cf   : > { %v5768_v5 = vsel %vm904_vm7, %v5766_v13, %v5715_v36 }
 0x6d0   : > { %5809 = vmatpush.bf16.msra.mxu0 %v5768_v5  ;;  %v4650_v1 = vpop.f32.mrf.mxu1  ;;  %v4631_v29 = vpop.f32.mrf.mxu0 }
 0x6d1   : > { %v4661_v36 = vadd.f32 %v4650_v1, %v4019_v37  ;;  %v4660_v62 = vadd.f32 %v4631_v29, %v4018_v8 }
 0x6d3   : > { %7592 = vmatmul.msk.bf16.vlgmr.msra.gmra.mxu0 %vm885_vm1, %v7619_v30 }
 0x6d8   : > { %v4653_v34 = vpop.f32.mrf.mxu1  ;;  %v11729_v4 = vpop.f32.mrf.mxu0 }
 0x6d9   : > { %v4663_v39 = vadd.f32 %v4653_v34, %v4021_v43  ;;  %v4662_v34 = vadd.f32 %v11729_v4, %v4020_v3 }
 0x6dd   : > { %7595 = vmatmul.msk.bf16.gmra.mxu1 %vm885_vm1, %v7620_v46 }
 0x6e0   : > { %v11732_v61 = vpop.f32.mrf.mxu1  ;;  %v11735_v31 = vpop.f32.mrf.mxu0 }
 0x6e1   : > { %v4665_v14 = vadd.f32 %v11732_v61, %v4023_v16 }
 0x6e3   : > { %7593 = vmatmul.msk.bf16.gmra.mxu0 %vm885_vm1, %v7620_v46 }
 0x6f7   : > { %v5220_v58 = vpop.f32.mrf.mxu2 }
 0x6f8   : > { %v5249_v13 = vadd.f32 %v5220_v58, %v4658_v15  ;;  %v4022_v58 = vadd.f32 %v11727_v35, %v3431_v10 }
 0x6fa   : > { %v4664_v4 = vadd.f32 %v11735_v31, %v4022_v58 }
 0x6fe   : > { %v5239_v60 = vpop.f32.mrf.mxu3 }
 0x6ff   : > { %v5250_v6 = vadd.f32 %v5239_v60, %v4659_v45  ;;  %v5222_v5 = vpop.f32.mrf.mxu2  ;;  %v5853_v60 = vld [vmem:[#allocation2 + $0x20] sm:$0xff] }
 0x700   : > { %v5251_v1 = vadd.f32 %v5222_v5, %v4660_v62 }
 0x706   : > { %v5241_v48 = vpop.f32.mrf.mxu3 }
 0x707   : > { %v5252_v19 = vadd.f32 %v5241_v48, %v4661_v36  ;;  %v5225_v50 = vpop.f32.mrf.mxu2 }
 0x708   : > { %v5253_v20 = vadd.f32 %v5225_v50, %v4662_v34 }
 0x70e   : > { %v5244_v44 = vpop.f32.mrf.mxu3 }
 0x70f   : > { %v5254_v42 = vadd.f32 %v5244_v44, %v4663_v39  ;;  %v5227_v24 = vpop.f32.mrf.mxu2 }
 0x716   : > { %v5246_v40 = vpop.f32.mrf.mxu3 }
 0x717   : > { %v5256_v38 = vadd.f32 %v5246_v40, %v4665_v14 }
 0x74a   : > { %v5830_v22 = vpop.f32.mrf.mxu1 }
 0x74b   : > { %v5841_v7 = vadd.f32 %v5830_v22, %v5250_v6  ;;  %v5255_v22 = vadd.f32 %v5227_v24, %v4664_v4 }
 0x74d   : > { %v5857_v30 = vadd.f32 %v5849_v59, %v5841_v7  ;;  %v5854_v59 = vld [vmem:[#allocation2 + $0x28] sm:$0xff] }
 0x74f   : > { %5865 = vst [vmem:[#allocation2] sm:$0xff] %v5857_v30 }
 0x750   : > { %v5811_v46 = vpop.f32.mrf.mxu0 }
 0x751   : > { %v5840_v12 = vadd.f32 %v5811_v46, %v5249_v13 }
 0x752   : > { %v5832_v2 = vpop.f32.mrf.mxu1 }
 0x753   : > { %v5856_v33 = vadd.f32 %v5848_v27, %v5840_v12  ;;  %v5843_v18 = vadd.f32 %v5832_v2, %v5252_v19 }
 0x755   : > { %5864 = vst [vmem:[#allocation2 + $0x30] sm:$0xff] %v5856_v33  ;;  %v5859_v17 = vadd.f32 %v5851_v41, %v5843_v18 }
 0x757   : > { %5867 = vst [vmem:[#allocation2 + $0x10] sm:$0xff] %v5859_v17 }
 0x758   : > { %v5813_v0 = vpop.f32.mrf.mxu0 }
 0x759   : > { %v5842_v21 = vadd.f32 %v5813_v0, %v5251_v1 }
 0x75a   : > { %v5835_v9 = vpop.f32.mrf.mxu1 }
 0x75b   : > { %v5858_v29 = vadd.f32 %v5850_v51, %v5842_v21  ;;  %v5845_v32 = vadd.f32 %v5835_v9, %v5254_v42 }
 0x75d   : > { %5866 = vst [vmem:[#allocation2 + $0x18] sm:$0xff] %v5858_v29  ;;  %v5861_v49 = vadd.f32 %v5853_v60, %v5845_v32 }
 0x75f   : > { %5869 = vst [vmem:[#allocation2 + $0x20] sm:$0xff] %v5861_v49 }
 0x760   : > { %v5816_v52 = vpop.f32.mrf.mxu0 }
 0x761   : > { %v5844_v45 = vadd.f32 %v5816_v52, %v5253_v20 }
 0x762   : > { %v5837_v47 = vpop.f32.mrf.mxu1 }
 0x763   : > { %v5860_v55 = vadd.f32 %v5852_v25, %v5844_v45  ;;  %v5847_v6 = vadd.f32 %v5837_v47, %v5256_v38 }
 0x765   : > { %5868 = vst [vmem:[#allocation2 + $0x8] sm:$0xff] %v5860_v55  ;;  %v5863_v48 = vadd.f32 %v5855_v26, %v5847_v6 }
 0x767   : > { %5871 = vst [vmem:[#allocation2 + $0x38] sm:$0xff] %v5863_v48 }
 0x768   : > { %v5818_v61 = vpop.f32.mrf.mxu0 }
 0x769   : > { %v5846_v57 = vadd.f32 %v5818_v61, %v5255_v22  ;;  %5875 = sbr.rel (%p7596_p3) target bundleno = 2188 (0x88c), region = 77 }
 0x76b   : > { %v5862_v37 = vadd.f32 %v5854_v59, %v5846_v57 }
 0x76d   : > { %5870 = vst [vmem:[#allocation2 + $0x28] sm:$0xff] %v5862_v37 }
 0x76e   : > { %v11750_v35 = vld [vmem:[#allocation2 + $0x8] sm:$0xff]  ;;  %v11752_v7 = vld [vmem:[#allocation2 + $0x30] sm:$0xff]  ;;  %v11762_v23 = vld [vmem:[#allocation2 + $0x18] sm:$0xff] }
 0x76f   : > { %5892 = vrot.lane.b32.xlu1 %v11750_v35, %s7915_s7  ;;  %5888 = vrot.lane.b32.xlu0 %v11752_v7, %s7915_s7  ;;  %v11812_v15 = vld [vmem:[#allocation2] sm:$0xff]  ;;  %v11814_v30 = vld [vmem:[#allocation2 + $0x10] sm:$0xff]  ;;  %v11822_v53 = vld [vmem:[#allocation2 + $0x38] sm:$0xff]  ;;  %v6063_v27 = vrot.slane %v11752_v7, 4  ;;  %v6287_v25 = vrot.slane %v11762_v23, 4  ;;  %v6511_v45 = vrot.slane %v11750_v35, 4 }
 0x770   : > { %5900 = vrot.lane.b32.xlu2 %v11752_v7, %s7916_s29  ;;  %v11824_v36 = vld [vmem:[#allocation2 + $0x20] sm:$0xff] }
 0x771   : > { %v13292_v12 = vld [vmem:[#allocation9_spill] sm:$0xff] }
 0x774   : > { %v11760_v31 = vld [vmem:[#allocation2 + $0x28] sm:$0xff] }
 0x775   : > { %v6735_v6 = vrot.slane %v11760_v31, 4 }
 0x777   : > { %5894 = vrot.lane.b32.xlu1 %v11760_v31, %s7915_s7  ;;  %5890 = vrot.lane.b32.xlu0 %v11762_v23, %s7915_s7 }
 0x778   : > { %5902 = vrot.lane.b32.xlu2 %v11762_v23, %s7916_s29 }
 0x77f   : > { %5906 = vrot.lane.b32.xlu1 %v11760_v31, %s7916_s29  ;;  %5904 = vrot.lane.b32.xlu0 %v11750_v35, %s7916_s29 }
 0x780   : > { %5912 = vrot.lane.b32.xlu2 %v11752_v7, %s7917_s13 }
 0x787   : > { %5916 = vrot.lane.b32.xlu1 %v11750_v35, %s7917_s13  ;;  %5914 = vrot.lane.b32.xlu0 %v11762_v23, %s7917_s13 }
 0x788   : > { %5918 = vrot.lane.b32.xlu2 %v11760_v31, %s7917_s13 }
 0x78f   : > { %5926 = vrot.lane.b32.xlu1 %v11762_v23, %s7918_s5  ;;  %5924 = vrot.lane.b32.xlu0 %v11752_v7, %s7918_s5 }
 0x790   : > { %5928 = vrot.lane.b32.xlu2 %v11750_v35, %s7918_s5 }
 0x797   : > { %5936 = vrot.lane.b32.xlu1 %v11752_v7, %s7919_s9  ;;  %5930 = vrot.lane.b32.xlu0 %v11760_v31, %s7918_s5 }
 0x798   : > { %5938 = vrot.lane.b32.xlu2 %v11762_v23, %s7919_s9 }
 0x79f   : > { %5942 = vrot.lane.b32.xlu1 %v11760_v31, %s7919_s9  ;;  %5940 = vrot.lane.b32.xlu0 %v11750_v35, %s7919_s9 }
 0x7a0   : > { %5948 = vrot.lane.b32.xlu2 %v11752_v7, %s7920_s11 }
 0x7a7   : > { %5952 = vrot.lane.b32.xlu1 %v11750_v35, %s7920_s11  ;;  %5950 = vrot.lane.b32.xlu0 %v11762_v23, %s7920_s11 }
 0x7a8   : > { %5954 = vrot.lane.b32.xlu2 %v11760_v31, %s7920_s11 }
 0x7af   : > { %5962 = vrot.lane.b32.xlu1 %v11762_v23, %s7921_s28  ;;  %5960 = vrot.lane.b32.xlu0 %v11752_v7, %s7921_s28 }
 0x7b0   : > { %5964 = vrot.lane.b32.xlu2 %v11750_v35, %s7921_s28 }
 0x7b7   : > { %5976 = vrot.lane.b32.xlu1 %v11812_v15, %s7915_s7  ;;  %5966 = vrot.lane.b32.xlu0 %v11760_v31, %s7921_s28 }
 0x7b8   : > { %5978 = vrot.lane.b32.xlu2 %v11814_v30, %s7915_s7 }
 0x7bf   : > { %5982 = vrot.lane.b32.xlu1 %v11822_v53, %s7915_s7  ;;  %5980 = vrot.lane.b32.xlu0 %v11824_v36, %s7915_s7 }
 0x7c0   : > { %5988 = vrot.lane.b32.xlu2 %v11812_v15, %s7916_s29 }
 0x7c7   : > { %5992 = vrot.lane.b32.xlu1 %v11824_v36, %s7916_s29  ;;  %5990 = vrot.lane.b32.xlu0 %v11814_v30, %s7916_s29 }
 0x7c8   : > { %5994 = vrot.lane.b32.xlu2 %v11822_v53, %s7916_s29 }
 0x7ca   : > { %v5901_v13 = vpop.permute.xlu2 %5900 }
 0x7cb   : > { %v6060_v46 = vrot.slane %v5901_v13, 4  ;;  %v6064_v19 = vsel %vm489_vm0, %v5901_v13, %v6063_v27  ;;  %v13293_v13 = vld [vmem:[#allocation11_spill] sm:$0xff] }
 0x7cc   : > { %v6072_v56 = vperm.slane %v6064_v19, %v13292_v12 }
 0x7cd   : > { %v6062_v28 = vsel %vm489_vm0, %v6060_v46, %v11752_v7 }
 0x7ce   : > { %v6068_v2 = vperm.slane %v6062_v28, %v13292_v12  ;;  %v6123_v17 = vrot.slane %v6072_v56, 4 }
 0x7cf   : > { %6002 = vrot.lane.b32.xlu1 %v11814_v30, %s7917_s13  ;;  %6000 = vrot.lane.b32.xlu0 %v11812_v15, %s7917_s13 }
 0x7d0   : > { %6004 = vrot.lane.b32.xlu2 %v11824_v36, %s7917_s13  ;;  %v6111_v33 = vrot.slane %v6068_v2, 4 }
 0x7d2   : > { %v11844_v5 = vpop.permute.xlu2 %5902 }
 0x7d3   : > { %v6285_v58 = vrot.slane %v11844_v5, 4  ;;  %v6288_v38 = vsel %vm489_vm0, %v11844_v5, %v6287_v25 }
 0x7d4   : > { %v6296_v61 = vperm.slane %v6288_v38, %v13292_v12 }
 0x7d5   : > { %v6286_v55 = vsel %vm489_vm0, %v6285_v58, %v11762_v23 }
 0x7d6   : > { %v6292_v59 = vperm.slane %v6286_v55, %v13292_v12 }
 0x7d7   : > { %6012 = vrot.lane.b32.xlu1 %v11812_v15, %s7918_s5  ;;  %6006 = vrot.lane.b32.xlu0 %v11822_v53, %s7917_s13 }
 0x7d8   : > { %6014 = vrot.lane.b32.xlu2 %v11814_v30, %s7918_s5 }
 0x7da   : > { %v5913_v8 = vpop.permute.xlu2 %5912 }
 0x7db   : > { %v6073_v41 = vrot.slane %v5913_v8, 4 }
 0x7df   : > { %6018 = vrot.lane.b32.xlu1 %v11822_v53, %s7918_s5  ;;  %6016 = vrot.lane.b32.xlu0 %v11824_v36, %s7918_s5 }
 0x7e0   : > { %6024 = vrot.lane.b32.xlu2 %v11812_v15, %s7919_s9 }
 0x7e1   : > { %v11864_v43 = vpop.permute.xlu1 %5892  ;;  %v5889_v18 = vpop.permute.xlu0 %5888 }
 0x7e2   : > { %v6074_v44 = vsel %vm489_vm0, %v6073_v41, %v5889_v18  ;;  %v6075_v11 = vrot.slane %v5889_v18, 4  ;;  %v5919_v62 = vpop.permute.xlu2 %5918  ;;  %v6523_v57 = vrot.slane %v11864_v43, 4  ;;  %v6347_v41 = vrot.slane %v6296_v61, 4 }
 0x7e3   : > { %v6080_v63 = vperm.slane %v6074_v44, %v13292_v12  ;;  %v6745_v54 = vrot.slane %v5919_v62, 4 }
 0x7e4   : > { %v6076_v39 = vsel %vm489_vm0, %v5913_v8, %v6075_v11 }
 0x7e5   : > { %v6084_v1 = vperm.slane %v6076_v39, %v13292_v12  ;;  %v6109_v0 = vrot.slane %v6080_v63, 4  ;;  %v6112_v51 = vsel %vm489_vm0, %v6080_v63, %v6111_v33 }
 0x7e6   : > { %v11923_v5 = vperm.slane %v6112_v51, %v13293_v13 }
 0x7e7   : > { %v6110_v3 = vsel %vm489_vm0, %v6109_v0, %v6068_v2  ;;  %v6121_v42 = vrot.slane %v6084_v1, 4  ;;  %v6124_v21 = vsel %vm489_vm0, %v6084_v1, %v6123_v17  ;;  %6028 = vrot.lane.b32.xlu1 %v11824_v36, %s7919_s9  ;;  %6026 = vrot.lane.b32.xlu0 %v11814_v30, %s7919_s9 }
 0x7e8   : > { %6030 = vrot.lane.b32.xlu2 %v11822_v53, %s7919_s9 }
 0x7e9   : > { %v6122_v50 = vsel %vm489_vm0, %v6121_v42, %v6072_v56  ;;  %v5895_v9 = vpop.permute.xlu1 %5894  ;;  %v5891_v60 = vpop.permute.xlu0 %5890  ;;  %v11937_v56 = vperm.slane %v6110_v3, %v13293_v13 }
 0x7ea   : > { %v6746_v16 = vsel %vm489_vm0, %v6745_v54, %v5895_v9  ;;  %v6747_v29 = vrot.slane %v5895_v9, 4  ;;  %v11881_v32 = vpop.permute.xlu2 %5928  ;;  %v6299_v37 = vrot.slane %v5891_v60, 4  ;;  %v11941_v44 = vperm.slane %v6122_v50, %v13293_v13 }
 0x7eb   : > { %v6335_v54 = vrot.slane %v6292_v59, 4  ;;  %v11958_v42 = vperm.slane %v6746_v16, %v13292_v12  ;;  %v6535_v9 = vrot.slane %v11881_v32, 4 }
 0x7ec   : > { %v6748_v10 = vsel %vm489_vm0, %v5919_v62, %v6747_v29 }
 0x7ed   : > { %v11926_v23 = vperm.slane %v6748_v10, %v13292_v12  ;;  %v6781_v38 = vrot.slane %v11958_v42, 4 }
 0x7ef   : > { %6038 = vrot.lane.b32.xlu1 %v11814_v30, %s7920_s11  ;;  %6036 = vrot.lane.b32.xlu0 %v11812_v15, %s7920_s11 }
 0x7f0   : > { %6040 = vrot.lane.b32.xlu2 %v11824_v36, %s7920_s11 }
 0x7f1   : > { %v5907_v34 = vpop.permute.xlu1 %5906  ;;  %v5905_v49 = vpop.permute.xlu0 %5904 }
 0x7f2   : > { %v11890_v40 = vpop.permute.xlu2 %5938  ;;  %v6509_v48 = vrot.slane %v5905_v49, 4  ;;  %v6512_v7 = vsel %vm489_vm0, %v5905_v49, %v6511_v45  ;;  %v6736_v46 = vsel %vm489_vm0, %v5907_v34, %v6735_v6  ;;  %v6733_v33 = vrot.slane %v5907_v34, 4 }
 0x7f3   : > { %v6520_v18 = vperm.slane %v6512_v7, %v13292_v12 }
 0x7f4   : > { %v6510_v28 = vsel %vm489_vm0, %v6509_v48, %v11750_v35  ;;  %v6744_v35 = vperm.slane %v6736_v46, %v13292_v12 }
 0x7f5   : > { %v6516_v63 = vperm.slane %v6510_v28, %v13292_v12  ;;  %v6571_v29 = vrot.slane %v6520_v18, 4 }
 0x7f6   : > { %v6795_v6 = vrot.slane %v6744_v35, 4 }
 0x7f7   : > { %6048 = vrot.lane.b32.xlu1 %v11812_v15, %s7921_s28  ;;  %6042 = vrot.lane.b32.xlu0 %v11822_v53, %s7920_s11 }
 0x7f8   : > { %6050 = vrot.lane.b32.xlu2 %v11814_v30, %s7921_s28 }
 0x7f9   : > { %v5917_v14 = vpop.permute.xlu1 %5916  ;;  %v5915_v20 = vpop.permute.xlu0 %5914 }
 0x7fa   : > { %v11898_v52 = vpop.permute.xlu2 %5948  ;;  %v6521_v24 = vrot.slane %v5917_v14, 4  ;;  %v6297_v22 = vrot.slane %v5915_v20, 4  ;;  %v6524_v8 = vsel %vm489_vm0, %v5917_v14, %v6523_v57  ;;  %v6300_v2 = vsel %vm489_vm0, %v5915_v20, %v6299_v37 }
 0x7fb   : > { %v6532_v39 = vperm.slane %v6524_v8, %v13292_v12  ;;  %v6308_v0 = vperm.slane %v6300_v2, %v13292_v12  ;;  %v6559_v20 = vrot.slane %v6516_v63, 4  ;;  %v6085_v46 = vrot.slane %v11898_v52, 4 }
 0x7fc   : > { %v6522_v27 = vsel %vm489_vm0, %v6521_v24, %v11864_v43  ;;  %v6298_v19 = vsel %vm489_vm0, %v6297_v22, %v5891_v60  ;;  %v11944_v43 = vperm.slane %v6124_v21, %v13293_v13  ;;  %v6793_v21 = vrot.slane %v11926_v23, 4 }
 0x7fd   : > { %v6528_v11 = vperm.slane %v6522_v27, %v13292_v12  ;;  %v6304_v1 = vperm.slane %v6298_v19, %v13292_v12  ;;  %v6734_v60 = vsel %vm489_vm0, %v6733_v33, %v11760_v31  ;;  %v6572_v16 = vsel %vm489_vm0, %v6532_v39, %v6571_v29 }
 0x7fe   : > { %v6794_v10 = vsel %vm489_vm0, %v6793_v21, %v6744_v35  ;;  %v6345_v58 = vrot.slane %v6308_v0, 4  ;;  %v11971_v45 = vperm.slane %v6734_v60, %v13292_v12  ;;  %v6323_v31 = vrot.slane %v11890_v40, 4 }
 0x7ff   : > { %6054 = vrot.lane.b32.xlu1 %v11822_v53, %s7921_s28  ;;  %6052 = vrot.lane.b32.xlu0 %v11824_v36, %s7921_s28  ;;  %v6557_v34 = vrot.slane %v6528_v11, 4  ;;  %v6333_v25 = vrot.slane %v6304_v1, 4  ;;  %v6569_v55 = vrot.slane %v6532_v39, 4  ;;  %v11975_v24 = vperm.slane %v6794_v10, %v13293_v13 }
 0x800   : > { %v6560_v48 = vsel %vm489_vm0, %v6528_v11, %v6559_v20  ;;  %v6348_v22 = vsel %vm489_vm0, %v6308_v0, %v6347_v41  ;;  %v11981_v37 = vperm.slane %v6572_v16, %v13293_v13  ;;  %v6336_v7 = vsel %vm489_vm0, %v6304_v1, %v6335_v54 }
 0x801   : > { %v11909_v47 = vpop.permute.xlu1 %5926  ;;  %v11911_v26 = vpop.permute.xlu0 %5924  ;;  %v6558_v57 = vsel %vm489_vm0, %v6557_v34, %v6516_v63  ;;  %v6334_v8 = vsel %vm489_vm0, %v6333_v25, %v6292_v59  ;;  %v6346_v19 = vsel %vm489_vm0, %v6345_v58, %v6296_v61  ;;  %v11992_v41 = vperm.slane %v6560_v48, %v13293_v13 }
 0x802   : > { %v11916_v4 = vpop.permute.xlu2 %5954  ;;  %v6570_v11 = vsel %vm489_vm0, %v6569_v55, %v6520_v18  ;;  %v11996_v63 = vperm.slane %v6348_v22, %v13293_v13  ;;  %v6087_v39 = vrot.slane %v11911_v26, 4  ;;  %v12001_v1 = vsel %vm489_vm0, %v6781_v38, %v11971_v45 }
 0x803   : > { %v6783_v61 = vrot.slane %v11971_v45, 4  ;;  %v12005_v59 = vperm.slane %v6336_v7, %v13293_v13  ;;  %v12009_v54 = vperm.slane %v6558_v57, %v13293_v13  ;;  %v12012_v18 = vperm.slane %v6334_v8, %v13293_v13 }
 0x804   : > { %v12015_v21 = vperm.slane %v6346_v19, %v13293_v13  ;;  %v6086_v60 = vsel %vm489_vm0, %v6085_v46, %v11911_v26  ;;  %v12021_v29 = vsel %vm489_vm0, %v11926_v23, %v6795_v6  ;;  %v6576_v10 = vperm.slane %v6570_v11, %v13293_v13 }
 0x805   : > { %v6611_v20 = vrot.slane %v11992_v41, 4  ;;  %v6395_v16 = vrot.slane %v11996_v63, 4  ;;  %v6088_v25 = vsel %vm489_vm0, %v11898_v52, %v6087_v39  ;;  %v6387_v26 = vrot.slane %v12005_v59, 4 }
 0x806   : > { %v6311_v23 = vrot.slane %v11909_v47, 4  ;;  %v12034_v38 = vperm.slane %v6086_v60, %v13292_v12  ;;  %v6757_v55 = vrot.slane %v11916_v4, 4  ;;  %v6383_v6 = vrot.slane %v12012_v18, 4 }
 0x807   : > { %v6391_v48 = vrot.slane %v12015_v21, 4  ;;  %v6607_v52 = vrot.slane %v12009_v54, 4  ;;  %v12042_v46 = vperm.slane %v6088_v25, %v13292_v12  ;;  %v6615_v39 = vrot.slane %v6576_v10, 4 }
 0x808   : > { %v6135_v60 = vrot.slane %v12034_v38, 4  ;;  %v13294_v45 = vrot.slane %v11937_v56, 4 }
 0x809   : > { %v11948_v62 = vpop.permute.xlu1 %5936  ;;  %v11950_v17 = vpop.permute.xlu0 %5930  ;;  %v6147_v50 = vrot.slane %v12042_v46, 4 }
 0x80a   : > { %v5965_v51 = vpop.permute.xlu2 %5964  ;;  %v6758_v3 = vsel %vm489_vm0, %v6757_v55, %v11950_v17 }
 0x80b   : > { %v6545_v2 = vrot.slane %v5965_v51, 4 }
 0x811   : > { %v11985_v27 = vpop.permute.xlu1 %5942  ;;  %v5941_v28 = vpop.permute.xlu0 %5940 }
 0x812   : > { %v6547_v33 = vrot.slane %v5941_v28, 4  ;;  %v11989_v35 = vpop.permute.xlu2 %5978  ;;  %v6546_v34 = vsel %vm489_vm0, %v6545_v2, %v5941_v28 }
 0x813   : > { %v6552_v22 = vperm.slane %v6546_v34, %v13292_v12  ;;  %v6759_v34 = vrot.slane %v11950_v17, 4 }
 0x814   : > { %v6548_v0 = vsel %vm489_vm0, %v5965_v51, %v6547_v33  ;;  %v6619_v51 = vrot.slane %v11981_v37, 4 }
 0x815   : > { %v6556_v58 = vperm.slane %v6548_v0, %v13292_v12 }
 0x817   : > { %v6593_v11 = vrot.slane %v6556_v58, 4 }
 0x819   : > { %v5953_v57 = vpop.permute.xlu1 %5952  ;;  %v5951_v7 = vpop.permute.xlu0 %5950 }
 0x81a   : > { %v6533_v28 = vrot.slane %v5953_v57, 4  ;;  %v6536_v8 = vsel %vm489_vm0, %v5953_v57, %v6535_v9  ;;  %v6309_v19 = vrot.slane %v5951_v7, 4  ;;  %v12047_v2 = vpop.permute.xlu2 %5988  ;;  %v6312_v0 = vsel %vm489_vm0, %v5951_v7, %v6311_v23 }
 0x81b   : > { %v6544_v33 = vperm.slane %v6536_v8, %v13292_v12  ;;  %v6581_v9 = vrot.slane %v6552_v22, 4  ;;  %v6320_v7 = vperm.slane %v6312_v0, %v13292_v12  ;;  %v6760_v0 = vsel %vm489_vm0, %v11916_v4, %v6759_v34 }
 0x81c   : > { %v6534_v25 = vsel %vm489_vm0, %v6533_v28, %v11881_v32  ;;  %v6310_v14 = vsel %vm489_vm0, %v6309_v19, %v11909_v47 }
 0x81d   : > { %v6540_v57 = vperm.slane %v6534_v25, %v13292_v12  ;;  %v6594_v49 = vsel %vm489_vm0, %v6593_v11, %v6544_v33  ;;  %v6595_v8 = vrot.slane %v6544_v33, 4  ;;  %v6316_v19 = vperm.slane %v6310_v14, %v13292_v12 }
 0x81e   : > { %v6600_v23 = vperm.slane %v6594_v49, %v13293_v13  ;;  %v6099_v49 = vrot.slane %v11948_v62, 4  ;;  %v12074_v25 = vperm.slane %v6758_v3, %v13292_v12 }
 0x81f   : > { %v6582_v32 = vsel %vm489_vm0, %v6581_v9, %v6540_v57  ;;  %v6583_v28 = vrot.slane %v6540_v57, 4  ;;  %v6596_v47 = vsel %vm489_vm0, %v6556_v58, %v6595_v8  ;;  %v6359_v3 = vrot.slane %v6316_v19, 4 }
 0x820   : > { %v6588_v11 = vperm.slane %v6582_v32, %v13293_v13  ;;  %v6604_v33 = vperm.slane %v6596_v47, %v13293_v13  ;;  %v6613_v17 = vrot.slane %v6600_v23, 4  ;;  %v6616_v55 = vsel %vm489_vm0, %v6600_v23, %v6615_v39 }
 0x821   : > { %v6584_v58 = vsel %vm489_vm0, %v6552_v22, %v6583_v28  ;;  %6999 = vst.msk [vmem:[%s8126_s25 + $0x150] sm:$0xff] %vm885_vm1, %v6616_v55  ;;  %v5963_v14 = vpop.permute.xlu1 %5962  ;;  %v5961_v9 = vpop.permute.xlu0 %5960  ;;  %v6371_v22 = vrot.slane %v6320_v7, 4 }
 0x822   : > { %v6592_v57 = vperm.slane %v6584_v58, %v13293_v13  ;;  %v6605_v8 = vrot.slane %v6588_v11, 4  ;;  %v6608_v39 = vsel %vm489_vm0, %v6588_v11, %v6607_v52  ;;  %v6614_v23 = vsel %vm489_vm0, %v6613_v17, %v6576_v10  ;;  %v12082_v32 = vpop.permute.xlu2 %5994 }
 0x823   : > { %v6617_v4 = vrot.slane %v6604_v33, 4  ;;  %6991 = vst.msk [vmem:[%s8126_s25 + $0x110] sm:$0xff] %vm885_vm1, %v6608_v39  ;;  %v6321_v34 = vrot.slane %v5963_v14, 4  ;;  %v6324_v10 = vsel %vm489_vm0, %v5963_v14, %v6323_v31  ;;  %v6097_v55 = vrot.slane %v5961_v9, 4 }
 0x824   : > { %v6606_v28 = vsel %vm489_vm0, %v6605_v8, %v12009_v54  ;;  %v6609_v47 = vrot.slane %v6592_v57, 4  ;;  %v6612_v52 = vsel %vm489_vm0, %v6592_v57, %v6611_v20  ;;  %6997 = vst.msk [vmem:[%s8126_s25 + $0x140] sm:$0xff] %vm885_vm1, %v6614_v23  ;;  %v6332_v17 = vperm.slane %v6324_v10, %v13292_v12 }
 0x825   : > { %v6618_v11 = vsel %vm489_vm0, %v6617_v4, %v11981_v37  ;;  %6989 = vst.msk [vmem:[%s8126_s25 + $0x100] sm:$0xff] %vm885_vm1, %v6606_v28  ;;  %v6322_v54 = vsel %vm489_vm0, %v6321_v34, %v11890_v40  ;;  %v6620_v31 = vsel %vm489_vm0, %v6604_v33, %v6619_v51  ;;  %v6100_v14 = vsel %vm489_vm0, %v5961_v9, %v6099_v49 }
 0x826   : > { %v6610_v20 = vsel %vm489_vm0, %v6609_v47, %v11992_v41  ;;  %6995 = vst.msk [vmem:[%s8126_s25 + $0x130] sm:$0xff] %vm885_vm1, %v6612_v52  ;;  %v6328_v58 = vperm.slane %v6322_v54, %v13292_v12  ;;  %v6369_v40 = vrot.slane %v6332_v17, 4  ;;  %v6372_v57 = vsel %vm489_vm0, %v6332_v17, %v6371_v22 }
 0x827   : > { %6993 = vst.msk [vmem:[%s8126_s25 + $0x120] sm:$0xff] %vm885_vm1, %v6610_v20  ;;  %v6098_v8 = vsel %vm489_vm0, %v6097_v55, %v11948_v62  ;;  %v6108_v41 = vperm.slane %v6100_v14, %v13292_v12  ;;  %v6380_v33 = vperm.slane %v6372_v57, %v13293_v13  ;;  %v12124_v49 = vperm.slane %v6760_v0, %v13292_v12 }
 0x828   : > { %7001 = vst.msk [vmem:[%s8126_s25 + $0x160] sm:$0xff] %vm885_vm1, %v6618_v11  ;;  %v6357_v37 = vrot.slane %v6328_v58, 4  ;;  %v6360_v51 = vsel %vm489_vm0, %v6328_v58, %v6359_v3  ;;  %v6104_v39 = vperm.slane %v6098_v8, %v13292_v12  ;;  %v6370_v62 = vsel %vm489_vm0, %v6369_v40, %v6320_v7 }
 0x829   : > { %7003 = vst.msk [vmem:[%s8126_s25 + $0x170] sm:$0xff] %vm885_vm1, %v6620_v31  ;;  %v6368_v9 = vperm.slane %v6360_v51, %v13293_v13  ;;  %v6145_v23 = vrot.slane %v6108_v41, 4  ;;  %v12130_v4 = vpop.permute.xlu1 %5976  ;;  %v12132_v22 = vpop.permute.xlu0 %5966  ;;  %v6376_v34 = vperm.slane %v6370_v62, %v13293_v13  ;;  %v6393_v28 = vrot.slane %v6380_v33, 4 }
 0x82a   : > { %v6358_v3 = vsel %vm489_vm0, %v6357_v37, %v6316_v19  ;;  %v6396_v0 = vsel %vm489_vm0, %v6380_v33, %v6395_v16  ;;  %v12139_v47 = vpop.permute.xlu2 %6004  ;;  %v6133_v19 = vrot.slane %v6104_v39, 4  ;;  %v6136_v16 = vsel %vm489_vm0, %v6104_v39, %v6135_v60 }
 0x82b   : > { %v6364_v7 = vperm.slane %v6358_v3, %v13293_v13  ;;  %v6385_v52 = vrot.slane %v6368_v9, 4  ;;  %v6388_v10 = vsel %vm489_vm0, %v6368_v9, %v6387_v26  ;;  %6987 = vst.msk [vmem:[%s8126_s25 + $0xf0] sm:$0xff] %vm885_vm1, %v6396_v0  ;;  %v6389_v11 = vrot.slane %v6376_v34, 4 }
 0x82c   : > { %v6392_v54 = vsel %vm489_vm0, %v6376_v34, %v6391_v48  ;;  %6979 = vst.msk [vmem:[%s8126_s25 + $0xb0] sm:$0xff] %vm885_vm1, %v6388_v10  ;;  %v6148_v17 = vsel %vm489_vm0, %v6108_v41, %v6147_v50  ;;  %v6134_v20 = vsel %vm489_vm0, %v6133_v19, %v12034_v38  ;;  %v6144_v31 = vperm.slane %v6136_v16, %v13293_v13 }
 0x82d   : > { %v6381_v26 = vrot.slane %v6364_v7, 4  ;;  %v6384_v55 = vsel %vm489_vm0, %v6364_v7, %v6383_v6  ;;  %v6386_v48 = vsel %vm489_vm0, %v6385_v52, %v12005_v59  ;;  %6983 = vst.msk [vmem:[%s8126_s25 + $0xd0] sm:$0xff] %vm885_vm1, %v6392_v54  ;;  %v6390_v60 = vsel %vm489_vm0, %v6389_v11, %v12015_v21 }
 0x82e   : > { %6975 = vst.msk [vmem:[%s8126_s25 + $0x90] sm:$0xff] %vm885_vm1, %v6384_v55  ;;  %v6140_v50 = vperm.slane %v6134_v20, %v13293_v13  ;;  %v6146_v6 = vsel %vm489_vm0, %v6145_v23, %v12042_v46  ;;  %v6394_v58 = vsel %vm489_vm0, %v6393_v28, %v11996_v63  ;;  %v6156_v38 = vperm.slane %v6148_v17, %v13293_v13 }
 0x82f   : > { %v6382_v59 = vsel %vm489_vm0, %v6381_v26, %v12012_v18  ;;  %6977 = vst.msk [vmem:[%s8126_s25 + $0xa0] sm:$0xff] %vm885_vm1, %v6386_v48  ;;  %v6152_v21 = vperm.slane %v6146_v6, %v13293_v13  ;;  %v6784_v14 = vsel %vm489_vm0, %v11958_v42, %v6783_v61  ;;  %v12189_v46 = vperm.slane %v12001_v1, %v13293_v13 }
 0x830   : > { %6973 = vst.msk [vmem:[%s8126_s25 + $0x80] sm:$0xff] %vm885_vm1, %v6382_v59  ;;  %v6157_v18 = vrot.slane %v6140_v50, 4  ;;  %v6161_v63 = vrot.slane %v6144_v31, 4  ;;  %v12195_v40 = vperm.slane %v12021_v29, %v13293_v13  ;;  %v6839_v57 = vrot.slane %v11975_v24, 4 }
 0x831   : > { %6981 = vst.msk [vmem:[%s8126_s25 + $0xc0] sm:$0xff] %vm885_vm1, %v6390_v60  ;;  %v6160_v42 = vsel %vm489_vm0, %v6140_v50, %v13294_v45  ;;  %v6165_v1 = vrot.slane %v6152_v21, 4  ;;  %v12203_v61 = vpop.permute.xlu1 %5982  ;;  %v5981_v8 = vpop.permute.xlu0 %5980  ;;  %v6771_v41 = vrot.slane %v11985_v27, 4  ;;  %v6169_v51 = vrot.slane %v6156_v38, 4 }
 0x832   : > { %6985 = vst.msk [vmem:[%s8126_s25 + $0xe0] sm:$0xff] %vm885_vm1, %v6394_v58  ;;  %v6158_v29 = vsel %vm489_vm0, %v6157_v18, %v11937_v56  ;;  %v6162_v37 = vsel %vm489_vm0, %v6161_v63, %v11923_v5  ;;  %v12212_v33 = vpop.permute.xlu2 %6014  ;;  %v6792_v39 = vperm.slane %v6784_v14, %v13293_v13  ;;  %v6807_v9 = vrot.slane %v12074_v25, 4 }
 0x833   : > { %v13295_v62 = vrot.slane %v11923_v5, 4  ;;  %6957 = vst.msk [vmem:[%s8126_s25] sm:$0xff] %vm885_vm1, %v6158_v29  ;;  %v6819_v56 = vrot.slane %v12124_v49, 4  ;;  %v6166_v3 = vsel %vm489_vm0, %v6165_v1, %v11941_v44  ;;  %v6769_v34 = vrot.slane %v12132_v22, 4 }
 0x834   : > { %6959 = vst.msk [vmem:[%s8126_s25 + $0x10] sm:$0xff] %vm885_vm1, %v6160_v42  ;;  %v6772_v28 = vsel %vm489_vm0, %v12132_v22, %v6771_v41  ;;  %v6633_v0 = vrot.slane %v12139_v47, 4  ;;  %v13296_v5 = vrot.slane %v11941_v44, 4  ;;  %v13297_v52 = vrot.slane %v11944_v43, 4 }
 0x835   : > { %v6164_v23 = vsel %vm489_vm0, %v6144_v31, %v13295_v62  ;;  %6961 = vst.msk [vmem:[%s8126_s25 + $0x20] sm:$0xff] %vm885_vm1, %v6162_v37  ;;  %v6780_v19 = vperm.slane %v6772_v28, %v13292_v12  ;;  %v6635_v11 = vrot.slane %v5981_v8, 4  ;;  %v6170_v22 = vsel %vm489_vm0, %v6169_v51, %v11944_v43 }
 0x836   : > { %v6168_v7 = vsel %vm489_vm0, %v6152_v21, %v13296_v5  ;;  %v6172_v10 = vsel %vm489_vm0, %v6156_v38, %v13297_v52  ;;  %6963 = vst.msk [vmem:[%s8126_s25 + $0x30] sm:$0xff] %vm885_vm1, %v6164_v23  ;;  %v6770_v44 = vsel %vm489_vm0, %v6769_v34, %v11985_v27  ;;  %v6634_v54 = vsel %vm489_vm0, %v6633_v0, %v5981_v8 }
 0x837   : > { %v6623_v16 = vrot.slane %v11824_v36, 4  ;;  %6965 = vst.msk [vmem:[%s8126_s25 + $0x40] sm:$0xff] %vm885_vm1, %v6166_v3  ;;  %v6776_v17 = vperm.slane %v6770_v44, %v13292_v12  ;;  %v6817_v26 = vrot.slane %v6780_v19, 4  ;;  %v6820_v55 = vsel %vm489_vm0, %v6780_v19, %v6819_v56 }
 0x838   : > { %v6636_v43 = vsel %vm489_vm0, %v12139_v47, %v6635_v11  ;;  %v6831_v48 = vrot.slane %v12189_v46, 4  ;;  %6967 = vst.msk [vmem:[%s8126_s25 + $0x50] sm:$0xff] %vm885_vm1, %v6168_v7  ;;  %v6835_v27 = vrot.slane %v6792_v39, 4  ;;  %v6843_v20 = vrot.slane %v12195_v40, 4 }
 0x839   : > { %v6828_v60 = vperm.slane %v6820_v55, %v13293_v13  ;;  %6969 = vst.msk [vmem:[%s8126_s25 + $0x60] sm:$0xff] %vm885_vm1, %v6170_v22  ;;  %v6805_v50 = vrot.slane %v6776_v17, 4  ;;  %v6808_v31 = vsel %vm489_vm0, %v6776_v17, %v6807_v9  ;;  %v6818_v6 = vsel %vm489_vm0, %v6817_v26, %v12124_v49  ;;  %v5993_v59 = vpop.permute.xlu1 %5992  ;;  %v12264_v58 = vpop.permute.xlu0 %5990 }
 0x83a   : > { %v6640_v47 = vperm.slane %v6634_v54, %v13292_v12  ;;  %6971 = vst.msk [vmem:[%s8126_s25 + $0x70] sm:$0xff] %vm885_vm1, %v6172_v10  ;;  %v6816_v21 = vperm.slane %v6808_v31, %v13293_v13  ;;  %v6824_v38 = vperm.slane %v6818_v6, %v13293_v13  ;;  %v6644_v18 = vperm.slane %v6636_v43, %v13292_v12  ;;  %v12272_v63 = vpop.permute.xlu2 %6024 }
 0x83b   : > { %v6844_v14 = vsel %vm489_vm0, %v6828_v60, %v6843_v20  ;;  %v6806_v49 = vsel %vm489_vm0, %v6805_v50, %v12074_v25  ;;  %v6841_v45 = vrot.slane %v6828_v60, 4  ;;  %v6621_v42 = vrot.slane %v5993_v59, 4 }
 0x83c   : > { %7019 = vst.msk [vmem:[%s8126_s25 + $0x1f0] sm:$0xff] %vm885_vm1, %v6844_v14  ;;  %v6624_v1 = vsel %vm489_vm0, %v5993_v59, %v6623_v16  ;;  %v6812_v8 = vperm.slane %v6806_v49, %v13293_v13  ;;  %v6833_v41 = vrot.slane %v6816_v21, 4  ;;  %v6836_v29 = vsel %vm489_vm0, %v6816_v21, %v6835_v27 }
 0x83d   : > { %v6837_v37 = vrot.slane %v6824_v38, 4  ;;  %v6840_v51 = vsel %vm489_vm0, %v6824_v38, %v6839_v57  ;;  %7011 = vst.msk [vmem:[%s8126_s25 + $0x1b0] sm:$0xff] %vm885_vm1, %v6836_v29  ;;  %v6622_v25 = vsel %vm489_vm0, %v6621_v42, %v11824_v36  ;;  %v6632_v9 = vperm.slane %v6624_v1, %v13292_v12 }
 0x83e   : > { %v6829_v62 = vrot.slane %v6812_v8, 4  ;;  %v6832_v23 = vsel %vm489_vm0, %v6812_v8, %v6831_v48  ;;  %v6834_v56 = vsel %vm489_vm0, %v6833_v41, %v6792_v39  ;;  %7015 = vst.msk [vmem:[%s8126_s25 + $0x1d0] sm:$0xff] %vm885_vm1, %v6840_v51  ;;  %v6669_v3 = vrot.slane %v6640_v47, 4 }
 0x83f   : > { %v6838_v57 = vsel %vm489_vm0, %v6837_v37, %v11975_v24  ;;  %7007 = vst.msk [vmem:[%s8126_s25 + $0x190] sm:$0xff] %vm885_vm1, %v6832_v23  ;;  %v6628_v34 = vperm.slane %v6622_v25, %v13292_v12  ;;  %v6681_v36 = vrot.slane %v6644_v18, 4  ;;  %v6683_v28 = vrot.slane %v6632_v9, 4 }
 0x840   : > { %v6830_v0 = vsel %vm489_vm0, %v6829_v62, %v12189_v46  ;;  %v6842_v39 = vsel %vm489_vm0, %v6841_v45, %v12195_v40  ;;  %7009 = vst.msk [vmem:[%s8126_s25 + $0x1a0] sm:$0xff] %vm885_vm1, %v6834_v56  ;;  %v6847_v40 = vrot.slane %v11822_v53, 4  ;;  %v6399_v44 = vrot.slane %v11814_v30, 4 }
 0x841   : > { %7005 = vst.msk [vmem:[%s8126_s25 + $0x180] sm:$0xff] %vm885_vm1, %v6830_v0  ;;  %v12307_v5 = vsel %vm489_vm0, %v6669_v3, %v6628_v34  ;;  %v6671_v24 = vrot.slane %v6628_v34, 4  ;;  %v12310_v7 = vsel %vm489_vm0, %v6681_v36, %v6632_v9  ;;  %v12313_v52 = vsel %vm489_vm0, %v6644_v18, %v6683_v28  ;;  %v6003_v10 = vpop.permute.xlu1 %6002  ;;  %v6001_v19 = vpop.permute.xlu0 %6000 }
 0x842   : > { %7013 = vst.msk [vmem:[%s8126_s25 + $0x1c0] sm:$0xff] %vm885_vm1, %v6838_v57  ;;  %v12317_v46 = vpop.permute.xlu2 %6030  ;;  %v6848_v22 = vsel %vm489_vm0, %v12082_v32, %v6847_v40  ;;  %v6175_v54 = vrot.slane %v11812_v15, 4  ;;  %v6397_v16 = vrot.slane %v12264_v58, 4  ;;  %v6173_v17 = vrot.slane %v12047_v2, 4 }
 0x843   : > { %7017 = vst.msk [vmem:[%s8126_s25 + $0x1e0] sm:$0xff] %vm885_vm1, %v6842_v39  ;;  %v12323_v11 = vsel %vm489_vm0, %v6640_v47, %v6671_v24  ;;  %v6409_v26 = vrot.slane %v6003_v10, 4  ;;  %v6185_v55 = vrot.slane %v6001_v19, 4  ;;  %v6411_v27 = vrot.slane %v11989_v35, 4 }
 0x844   : > { %v6845_v20 = vrot.slane %v12082_v32, 4  ;;  %v6856_v60 = vperm.slane %v6848_v22, %v13292_v12  ;;  %v6187_v50 = vrot.slane %v12130_v4, 4  ;;  %v6859_v31 = vrot.slane %v12203_v61, 4 }
 0x845   : > { %v6400_v6 = vsel %vm489_vm0, %v12264_v58, %v6399_v44  ;;  %v6176_v47 = vsel %vm489_vm0, %v12047_v2, %v6175_v54  ;;  %v6398_v59 = vsel %vm489_vm0, %v6397_v16, %v11814_v30  ;;  %v6412_v21 = vsel %vm489_vm0, %v6003_v10, %v6411_v27 }
 0x846   : > { %v6188_v38 = vsel %vm489_vm0, %v6001_v19, %v6187_v50  ;;  %v6174_v14 = vsel %vm489_vm0, %v6173_v17, %v11812_v15  ;;  %v6410_v18 = vsel %vm489_vm0, %v6409_v26, %v11989_v35  ;;  %v6186_v58 = vsel %vm489_vm0, %v6185_v55, %v12130_v4 }
 0x847   : > { %v6846_v30 = vsel %vm489_vm0, %v6845_v20, %v11822_v53  ;;  %v6907_v49 = vrot.slane %v6856_v60, 4  ;;  %v6408_v45 = vperm.slane %v6400_v6, %v13292_v12  ;;  %v6404_v1 = vperm.slane %v6398_v59, %v13292_v12 }
 0x848   : > { %v6420_v15 = vperm.slane %v6412_v21, %v13292_v12  ;;  %v6196_v8 = vperm.slane %v6188_v38, %v13292_v12  ;;  %v6416_v35 = vperm.slane %v6410_v18, %v13292_v12  ;;  %v6192_v4 = vperm.slane %v6186_v58, %v13292_v12 }
 0x849   : > { %v12331_v43 = vpop.permute.xlu1 %6012  ;;  %v6007_v48 = vpop.permute.xlu0 %6006  ;;  %v6180_v53 = vperm.slane %v6174_v14, %v13292_v12  ;;  %v6184_v37 = vperm.slane %v6176_v47, %v13292_v12  ;;  %v6852_v51 = vperm.slane %v6846_v30, %v13292_v12  ;;  %v6459_v23 = vrot.slane %v6408_v45, 4 }
 0x84a   : > { %v12346_v32 = vpop.permute.xlu2 %6040  ;;  %v6860_v2 = vsel %vm489_vm0, %v6007_v48, %v6859_v31  ;;  %v6857_v25 = vrot.slane %v6007_v48, 4  ;;  %v6447_v3 = vrot.slane %v6404_v1, 4  ;;  %v6233_v57 = vrot.slane %v6196_v8, 4 }
 0x84b   : > { %v6868_v42 = vperm.slane %v6860_v2, %v13292_v12  ;;  %v6445_v34 = vrot.slane %v6416_v35, 4  ;;  %v6457_v36 = vrot.slane %v6420_v15, 4  ;;  %v6460_v28 = vsel %vm489_vm0, %v6420_v15, %v6459_v23 }
 0x84c   : > { %v6221_v0 = vrot.slane %v6192_v4, 4  ;;  %v6223_v39 = vrot.slane %v6180_v53, 4  ;;  %v6235_v24 = vrot.slane %v6184_v37, 4  ;;  %v6895_v10 = vrot.slane %v6852_v51, 4 }
 0x84d   : > { %v6905_v41 = vrot.slane %v6868_v42, 4  ;;  %v6908_v29 = vsel %vm489_vm0, %v6868_v42, %v6907_v49  ;;  %v6858_v19 = vsel %vm489_vm0, %v6857_v25, %v12203_v61  ;;  %v6423_v40 = vrot.slane %v12212_v33, 4 }
 0x84e   : > { %v12379_v22 = vperm.slane %v12307_v5, %v13293_v13  ;;  %v6211_v44 = vrot.slane %v12272_v63, 4  ;;  %v6448_v54 = vsel %vm489_vm0, %v6416_v35, %v6447_v3  ;;  %v12384_v17 = vperm.slane %v6460_v28, %v13293_v13 }
 0x84f   : > { %v6906_v56 = vsel %vm489_vm0, %v6905_v41, %v6856_v60  ;;  %v6224_v26 = vsel %vm489_vm0, %v6192_v4, %v6223_v39  ;;  %v6234_v55 = vsel %vm489_vm0, %v6233_v57, %v6184_v37  ;;  %v6236_v61 = vsel %vm489_vm0, %v6196_v8, %v6235_v24 }
 0x850   : > { %v6446_v48 = vsel %vm489_vm0, %v6445_v34, %v6404_v1  ;;  %v6458_v27 = vsel %vm489_vm0, %v6457_v36, %v6408_v45  ;;  %v6222_v5 = vsel %vm489_vm0, %v6221_v0, %v6180_v53  ;;  %v6864_v20 = vperm.slane %v6858_v19, %v13292_v12 }
 0x851   : > { %v12368_v9 = vpop.permute.xlu1 %6018  ;;  %v12370_v62 = vpop.permute.xlu0 %6016  ;;  %v12395_v60 = vperm.slane %v12323_v11, %v13293_v13  ;;  %v12399_v50 = vperm.slane %v12310_v7, %v13293_v13  ;;  %v12402_v31 = vperm.slane %v6448_v54, %v13293_v13  ;;  %v12407_v21 = vperm.slane %v6224_v26, %v13293_v13 }
 0x852   : > { %v6051_v16 = vpop.permute.xlu2 %6050  ;;  %v12410_v38 = vperm.slane %v6234_v55, %v13293_v13  ;;  %v12413_v11 = vperm.slane %v6236_v61, %v13293_v13  ;;  %v12416_v7 = vperm.slane %v6446_v48, %v13293_v13  ;;  %v12419_v18 = vperm.slane %v6458_v27, %v13293_v13 }
 0x853   : > { %v6433_v6 = vrot.slane %v6051_v16, 4  ;;  %v12422_v58 = vperm.slane %v6222_v5, %v13293_v13  ;;  %v6883_v2 = vrot.slane %v12317_v46, 4  ;;  %v6507_v30 = vrot.slane %v12384_v17, 4 }
 0x854   : > { %v6893_v49 = vrot.slane %v6864_v20, 4  ;;  %v6645_v45 = vrot.slane %v12346_v32, 4  ;;  %v6499_v1 = vrot.slane %v12402_v31, 4  ;;  %v6199_v15 = vrot.slane %v12331_v43, 4 }
 0x855   : > { %v12431_v8 = vperm.slane %v6908_v29, %v13293_v13  ;;  %v6275_v4 = vrot.slane %v12407_v21, 4  ;;  %v6279_v41 = vrot.slane %v12410_v38, 4  ;;  %v6283_v53 = vrot.slane %v12413_v11, 4 }
 0x856   : > { %v6896_v37 = vsel %vm489_vm0, %v6864_v20, %v6895_v10  ;;  %v6271_v25 = vrot.slane %v12422_v58, 4  ;;  %v6495_v3 = vrot.slane %v12416_v7, 4  ;;  %v6503_v57 = vrot.slane %v12419_v18, 4 }
 0x857   : > { %v6894_v29 = vsel %vm489_vm0, %v6893_v49, %v6852_v51  ;;  %v6871_v34 = vrot.slane %v12368_v9, 4  ;;  %v6646_v36 = vsel %vm489_vm0, %v6645_v45, %v12370_v62  ;;  %v12448_v0 = vperm.slane %v6896_v37, %v13293_v13 }
 0x858   : > { %v12451_v39 = vperm.slane %v6906_v56, %v13293_v13  ;;  %v6955_v24 = vrot.slane %v12431_v8, 4  ;;  %v6647_v10 = vrot.slane %v12370_v62, 4  ;;  %v12458_v61 = vperm.slane %v6894_v29, %v13293_v13 }
 0x859   : > { %v12404_v47 = vpop.permute.xlu1 %6028  ;;  %v6027_v59 = vpop.permute.xlu0 %6026  ;;  %v12461_v48 = vperm.slane %v6646_v36, %v13292_v12  ;;  %v6947_v45 = vrot.slane %v12448_v0, 4 }
 0x85a   : > { %v6435_v14 = vrot.slane %v6027_v59, 4  ;;  %v6434_v35 = vsel %vm489_vm0, %v6433_v6, %v6027_v59 }
 0x85b   : > { %v6440_v28 = vperm.slane %v6434_v35, %v13292_v12 }
 0x85c   : > { %v6436_v42 = vsel %vm489_vm0, %v6051_v16, %v6435_v14 }
 0x85d   : > { %v6444_v23 = vperm.slane %v6436_v42, %v13292_v12  ;;  %v6469_v5 = vrot.slane %v6440_v28, 4  ;;  %v6951_v42 = vrot.slane %v12451_v39, 4 }
 0x85f   : > { %v6481_v27 = vrot.slane %v6444_v23, 4 }
 0x861   : > { %v6039_v19 = vpop.permute.xlu1 %6038  ;;  %v6037_v54 = vpop.permute.xlu0 %6036 }
 0x862   : > { %v6421_v51 = vrot.slane %v6039_v19, 4  ;;  %v6424_v16 = vsel %vm489_vm0, %v6039_v19, %v6423_v40  ;;  %v6197_v26 = vrot.slane %v6037_v54, 4  ;;  %v6200_v55 = vsel %vm489_vm0, %v6037_v54, %v6199_v15 }
 0x863   : > { %v6432_v56 = vperm.slane %v6424_v16, %v13292_v12  ;;  %v6208_v40 = vperm.slane %v6200_v55, %v13292_v12  ;;  %v6943_v16 = vrot.slane %v12458_v61, 4 }
 0x864   : > { %v6422_v62 = vsel %vm489_vm0, %v6421_v51, %v12212_v33  ;;  %v6198_v20 = vsel %vm489_vm0, %v6197_v26, %v12331_v43  ;;  %v6648_v33 = vsel %vm489_vm0, %v12346_v32, %v6647_v10  ;;  %v6695_v43 = vrot.slane %v12461_v48, 4 }
 0x865   : > { %v6428_v6 = vperm.slane %v6422_v62, %v13292_v12  ;;  %v6482_v59 = vsel %vm489_vm0, %v6481_v27, %v6432_v56  ;;  %v6483_v14 = vrot.slane %v6432_v56, 4  ;;  %v6204_v49 = vperm.slane %v6198_v20, %v13292_v12 }
 0x866   : > { %v6488_v15 = vperm.slane %v6482_v59, %v13293_v13  ;;  %v6259_v26 = vrot.slane %v6208_v40, 4 }
 0x867   : > { %v6470_v35 = vsel %vm489_vm0, %v6469_v5, %v6428_v6  ;;  %v6471_v37 = vrot.slane %v6428_v6, 4  ;;  %v6484_v29 = vsel %vm489_vm0, %v6444_v23, %v6483_v14  ;;  %v6247_v10 = vrot.slane %v6204_v49, 4 }
 0x868   : > { %v6476_v36 = vperm.slane %v6470_v35, %v13293_v13  ;;  %v6492_v19 = vperm.slane %v6484_v29, %v13293_v13  ;;  %v6501_v54 = vrot.slane %v6488_v15, 4  ;;  %v6504_v51 = vsel %vm489_vm0, %v6488_v15, %v6503_v57 }
 0x869   : > { %v6472_v32 = vsel %vm489_vm0, %v6440_v28, %v6471_v37  ;;  %6984 = vst.msk [vmem:[%s8126_s25 + $0xd8] sm:$0xff] %vm885_vm1, %v6504_v51  ;;  %v6049_v55 = vpop.permute.xlu1 %6048  ;;  %v6043_v56 = vpop.permute.xlu0 %6042  ;;  %v12523_v29 = vperm.slane %v6648_v33, %v13292_v12  ;;  %v6659_v51 = vrot.slane %v12404_v47, 4 }
 0x86a   : > { %v6480_v23 = vperm.slane %v6472_v32, %v13293_v13  ;;  %v6493_v27 = vrot.slane %v6476_v36, 4  ;;  %v6496_v5 = vsel %vm489_vm0, %v6476_v36, %v6495_v3  ;;  %v6502_v57 = vsel %vm489_vm0, %v6501_v54, %v12419_v18 }
 0x86b   : > { %v6505_v62 = vrot.slane %v6492_v19, 4  ;;  %v6508_v28 = vsel %vm489_vm0, %v6492_v19, %v6507_v30  ;;  %6976 = vst.msk [vmem:[%s8126_s25 + $0x98] sm:$0xff] %vm885_vm1, %v6496_v5  ;;  %v6209_v20 = vrot.slane %v6049_v55, 4  ;;  %v6212_v6 = vsel %vm489_vm0, %v6049_v55, %v6211_v44 }
 0x86c   : > { %v6494_v59 = vsel %vm489_vm0, %v6493_v27, %v12416_v7  ;;  %v6497_v3 = vrot.slane %v6480_v23, 4  ;;  %v6500_v18 = vsel %vm489_vm0, %v6480_v23, %v6499_v1  ;;  %6982 = vst.msk [vmem:[%s8126_s25 + $0xc8] sm:$0xff] %vm885_vm1, %v6502_v57  ;;  %v6220_v30 = vperm.slane %v6212_v6, %v13292_v12 }
 0x86d   : > { %v6506_v14 = vsel %vm489_vm0, %v6505_v62, %v12384_v17  ;;  %6974 = vst.msk [vmem:[%s8126_s25 + $0x88] sm:$0xff] %vm885_vm1, %v6494_v59  ;;  %v6210_v44 = vsel %vm489_vm0, %v6209_v20, %v12272_v63  ;;  %v6869_v7 = vrot.slane %v6043_v56, 4  ;;  %v6872_v15 = vsel %vm489_vm0, %v6043_v56, %v6871_v34 }
 0x86e   : > { %v6498_v1 = vsel %vm489_vm0, %v6497_v3, %v12402_v31  ;;  %6980 = vst.msk [vmem:[%s8126_s25 + $0xb8] sm:$0xff] %vm885_vm1, %v6500_v18  ;;  %v6216_v35 = vperm.slane %v6210_v44, %v13292_v12  ;;  %v6257_v37 = vrot.slane %v6220_v30, 4  ;;  %v6260_v17 = vsel %vm489_vm0, %v6220_v30, %v6259_v26 }
 0x86f   : > { %6978 = vst.msk [vmem:[%s8126_s25 + $0xa8] sm:$0xff] %vm885_vm1, %v6498_v1  ;;  %v6268_v63 = vperm.slane %v6260_v17, %v13293_v13  ;;  %v6870_v34 = vsel %vm489_vm0, %v6869_v7, %v12368_v9  ;;  %v6880_v31 = vperm.slane %v6872_v15, %v13292_v12 }
 0x870   : > { %6986 = vst.msk [vmem:[%s8126_s25 + $0xe8] sm:$0xff] %vm885_vm1, %v6506_v14  ;;  %v6245_v36 = vrot.slane %v6216_v35, 4  ;;  %v6248_v19 = vsel %vm489_vm0, %v6216_v35, %v6247_v10  ;;  %v6258_v54 = vsel %vm489_vm0, %v6257_v37, %v6208_v40  ;;  %v6876_v33 = vperm.slane %v6870_v34, %v13292_v12 }
 0x871   : > { %6988 = vst.msk [vmem:[%s8126_s25 + $0xf8] sm:$0xff] %vm885_vm1, %v6508_v28  ;;  %v6256_v32 = vperm.slane %v6248_v19, %v13293_v13  ;;  %v6264_v9 = vperm.slane %v6258_v54, %v13293_v13  ;;  %v6284_v26 = vsel %vm489_vm0, %v6268_v63, %v6283_v53  ;;  %v6055_v55 = vpop.permute.xlu1 %6054  ;;  %v6281_v56 = vrot.slane %v6268_v63, 4  ;;  %v6053_v28 = vpop.permute.xlu0 %6052 }
 0x872   : > { %v6246_v10 = vsel %vm489_vm0, %v6245_v36, %v6204_v49  ;;  %6972 = vst.msk [vmem:[%s8126_s25 + $0x78] sm:$0xff] %vm885_vm1, %v6284_v26  ;;  %v6919_v40 = vrot.slane %v6876_v33, 4  ;;  %v6881_v23 = vrot.slane %v6055_v55, 4  ;;  %v6931_v49 = vrot.slane %v6880_v31, 4 }
 0x873   : > { %v6252_v27 = vperm.slane %v6246_v10, %v13293_v13  ;;  %v6273_v5 = vrot.slane %v6256_v32, 4  ;;  %v6276_v57 = vsel %vm489_vm0, %v6256_v32, %v6275_v4  ;;  %v6277_v62 = vrot.slane %v6264_v9, 4 }
 0x874   : > { %v6280_v53 = vsel %vm489_vm0, %v6264_v9, %v6279_v41  ;;  %6964 = vst.msk [vmem:[%s8126_s25 + $0x38] sm:$0xff] %vm885_vm1, %v6276_v57  ;;  %v6882_v20 = vsel %vm489_vm0, %v6881_v23, %v12317_v46  ;;  %v6884_v6 = vsel %vm489_vm0, %v6055_v55, %v6883_v2  ;;  %v6657_v18 = vrot.slane %v6053_v28, 4 }
 0x875   : > { %v6269_v59 = vrot.slane %v6252_v27, 4  ;;  %v6272_v4 = vsel %vm489_vm0, %v6252_v27, %v6271_v25  ;;  %v6274_v41 = vsel %vm489_vm0, %v6273_v5, %v12407_v21  ;;  %v6278_v3 = vsel %vm489_vm0, %v6277_v62, %v12410_v38  ;;  %6968 = vst.msk [vmem:[%s8126_s25 + $0x58] sm:$0xff] %vm885_vm1, %v6280_v53 }
 0x876   : > { %6960 = vst.msk [vmem:[%s8126_s25 + $0x18] sm:$0xff] %vm885_vm1, %v6272_v4  ;;  %v6888_v46 = vperm.slane %v6882_v20, %v13292_v12  ;;  %v6892_v2 = vperm.slane %v6884_v6, %v13292_v12  ;;  %v6660_v30 = vsel %vm489_vm0, %v6053_v28, %v6659_v51  ;;  %v6282_v21 = vsel %vm489_vm0, %v6281_v56, %v12413_v11 }
 0x877   : > { %v6270_v25 = vsel %vm489_vm0, %v6269_v59, %v12422_v58  ;;  %6962 = vst.msk [vmem:[%s8126_s25 + $0x28] sm:$0xff] %vm885_vm1, %v6274_v41  ;;  %v6707_v38 = vrot.slane %v12523_v29, 4  ;;  %v6668_v14 = vperm.slane %v6660_v30, %v13292_v12  ;;  %v6658_v35 = vsel %vm489_vm0, %v6657_v18, %v12404_v47 }
 0x878   : > { %6958 = vst.msk [vmem:[%s8126_s25 + $0x8] sm:$0xff] %vm885_vm1, %v6270_v25  ;;  %v6917_v44 = vrot.slane %v6888_v46, 4  ;;  %v6920_v7 = vsel %vm489_vm0, %v6888_v46, %v6919_v40  ;;  %v6929_v15 = vrot.slane %v6892_v2, 4  ;;  %v6932_v1 = vsel %vm489_vm0, %v6892_v2, %v6931_v49 }
 0x879   : > { %6966 = vst.msk [vmem:[%s8126_s25 + $0x48] sm:$0xff] %vm885_vm1, %v6278_v3  ;;  %v6928_v58 = vperm.slane %v6920_v7, %v13293_v13  ;;  %v6940_v11 = vperm.slane %v6932_v1, %v13293_v13  ;;  %v6705_v37 = vrot.slane %v6668_v14, 4  ;;  %v6664_v34 = vperm.slane %v6658_v35, %v13292_v12 }
 0x87a   : > { %6970 = vst.msk [vmem:[%s8126_s25 + $0x68] sm:$0xff] %vm885_vm1, %v6282_v21  ;;  %v6918_v17 = vsel %vm489_vm0, %v6917_v44, %v6876_v33  ;;  %v6930_v63 = vsel %vm489_vm0, %v6929_v15, %v6880_v31  ;;  %v6708_v36 = vsel %vm489_vm0, %v6668_v14, %v6707_v38  ;;  %v6692_v5 = vperm.slane %v12313_v52, %v13293_v13 }
 0x87b   : > { %v6924_v19 = vperm.slane %v6918_v17, %v13293_v13  ;;  %v6936_v54 = vperm.slane %v6930_v63, %v13293_v13  ;;  %v6945_v51 = vrot.slane %v6928_v58, 4  ;;  %v6948_v47 = vsel %vm489_vm0, %v6928_v58, %v6947_v45 }
 0x87c   : > { %v6953_v32 = vrot.slane %v6940_v11, 4  ;;  %v6956_v31 = vsel %vm489_vm0, %v6940_v11, %v6955_v24  ;;  %7012 = vst.msk [vmem:[%s8126_s25 + $0x1b8] sm:$0xff] %vm885_vm1, %v6948_v47  ;;  %v6693_v12 = vrot.slane %v6664_v34, 4  ;;  %v6696_v33 = vsel %vm489_vm0, %v6664_v34, %v6695_v43 }
 0x87d   : > { %v6941_v9 = vrot.slane %v6924_v19, 4  ;;  %v6944_v26 = vsel %vm489_vm0, %v6924_v19, %v6943_v16  ;;  %v6946_v45 = vsel %vm489_vm0, %v6945_v51, %v12448_v0  ;;  %v6949_v55 = vrot.slane %v6936_v54, 4  ;;  %7020 = vst.msk [vmem:[%s8126_s25 + $0x1f8] sm:$0xff] %vm885_vm1, %v6956_v31 }
 0x87e   : > { %v6719_v24 = vrot.slane %v12379_v22, 4  ;;  %v6952_v10 = vsel %vm489_vm0, %v6936_v54, %v6951_v42  ;;  %7008 = vst.msk [vmem:[%s8126_s25 + $0x198] sm:$0xff] %vm885_vm1, %v6944_v26  ;;  %v6694_v43 = vsel %vm489_vm0, %v6693_v12, %v12461_v48  ;;  %v6704_v16 = vperm.slane %v6696_v33, %v13293_v13 }
 0x87f   : > { %v6942_v0 = vsel %vm489_vm0, %v6941_v9, %v12458_v61  ;;  %v6950_v56 = vsel %vm489_vm0, %v6949_v55, %v12451_v39  ;;  %7010 = vst.msk [vmem:[%s8126_s25 + $0x1a8] sm:$0xff] %vm885_vm1, %v6946_v45  ;;  %v6700_v40 = vperm.slane %v6694_v43, %v13293_v13  ;;  %v6706_v42 = vsel %vm489_vm0, %v6705_v37, %v12523_v29 }
 0x880   : > { %v6954_v23 = vsel %vm489_vm0, %v6953_v32, %v12431_v8  ;;  %7006 = vst.msk [vmem:[%s8126_s25 + $0x188] sm:$0xff] %vm885_vm1, %v6942_v0  ;;  %v6712_v48 = vperm.slane %v6706_v42, %v13293_v13  ;;  %v6716_v61 = vperm.slane %v6708_v36, %v13293_v13  ;;  %v6721_v27 = vrot.slane %v6704_v16, 4 }
 0x881   : > { %7014 = vst.msk [vmem:[%s8126_s25 + $0x1c8] sm:$0xff] %vm885_vm1, %v6950_v56  ;;  %v6717_v39 = vrot.slane %v6700_v40, 4  ;;  %v6723_v8 = vrot.slane %v12395_v60, 4  ;;  %v6720_v29 = vsel %vm489_vm0, %v6700_v40, %v6719_v24  ;;  %v6727_v28 = vrot.slane %v12399_v50, 4 }
 0x882   : > { %7016 = vst.msk [vmem:[%s8126_s25 + $0x1d8] sm:$0xff] %vm885_vm1, %v6952_v10  ;;  %v6725_v57 = vrot.slane %v6712_v48, 4  ;;  %v6722_v13 = vsel %vm489_vm0, %v6721_v27, %v12395_v60  ;;  %v6729_v52 = vrot.slane %v6716_v61, 4  ;;  %v6731_v20 = vrot.slane %v6692_v5, 4 }
 0x883   : > { %7018 = vst.msk [vmem:[%s8126_s25 + $0x1e8] sm:$0xff] %vm885_vm1, %v6954_v23  ;;  %v6718_v62 = vsel %vm489_vm0, %v6717_v39, %v12379_v22  ;;  %v6724_v53 = vsel %vm489_vm0, %v6704_v16, %v6723_v8  ;;  %v6728_v22 = vsel %vm489_vm0, %v6712_v48, %v6727_v28 }
 0x884   : > { %6990 = vst.msk [vmem:[%s8126_s25 + $0x108] sm:$0xff] %vm885_vm1, %v6718_v62  ;;  %v6726_v49 = vsel %vm489_vm0, %v6725_v57, %v12399_v50  ;;  %v6730_v60 = vsel %vm489_vm0, %v6729_v52, %v6692_v5  ;;  %v6732_v6 = vsel %vm489_vm0, %v6716_v61, %v6731_v20 }
 0x885   : > { %6992 = vst.msk [vmem:[%s8126_s25 + $0x118] sm:$0xff] %vm885_vm1, %v6720_v29 }
 0x886   : > { %6994 = vst.msk [vmem:[%s8126_s25 + $0x128] sm:$0xff] %vm885_vm1, %v6722_v13 }
 0x887   : > { %6996 = vst.msk [vmem:[%s8126_s25 + $0x138] sm:$0xff] %vm885_vm1, %v6724_v53 }
 0x888   : > { %6998 = vst.msk [vmem:[%s8126_s25 + $0x148] sm:$0xff] %vm885_vm1, %v6726_v49 }
 0x889   : > { %7000 = vst.msk [vmem:[%s8126_s25 + $0x158] sm:$0xff] %vm885_vm1, %v6728_v22 }
 0x88a   : > { %7002 = vst.msk [vmem:[%s8126_s25 + $0x168] sm:$0xff] %vm885_vm1, %v6730_v60 }
 0x88b   : > { %7004 = vst.msk [vmem:[%s8126_s25 + $0x178] sm:$0xff] %vm885_vm1, %v6732_v6 }
 0x88c PF: > { %7027 = sbr.rel (!%p8026_p10) target bundleno = 2257 (0x8d1), region = 81  ;;  %s7598_s22 = sshll.u32 (%p8026_p10), %s7881_s14, 1  ;;  %v7187_v50 = vld [vmem:[%s8126_s25] sm:$0xff] (%p8026_p10)  ;;  %v7189_v59 = vld [vmem:[%s8126_s25 + $0x8] sm:$0xff] (%p8026_p10)  ;;  %v7191_v4 = vld [vmem:[%s8126_s25 + $0x10] sm:$0xff] (%p8026_p10) }
 0x88d   : > { %s7599_s27 = sshll.u32 (%p8026_p10), %s7885_s15, 10  ;;  %v7193_v41 = vld [vmem:[%s8126_s25 + $0x18] sm:$0xff] (%p8026_p10)  ;;  %v7195_v3 = vld [vmem:[%s8126_s25 + $0x20] sm:$0xff] (%p8026_p10)  ;;  %v7197_v46 = vld [vmem:[%s8126_s25 + $0x28] sm:$0xff] (%p8026_p10) }
 0x88e   : > { %s7030_s30 = sadd.s32 (%p8026_p10), %s7599_s27, %s7598_s22  ;;  %v7199_v2 = vld [vmem:[%s8126_s25 + $0x30] sm:$0xff] (%p8026_p10)  ;;  %v7201_v18 = vld [vmem:[%s8126_s25 + $0x38] sm:$0xff] (%p8026_p10)  ;;  %v7203_v30 = vld [vmem:[%s8126_s25 + $0x40] sm:$0xff] (%p8026_p10) }
 0x88f   : > { %s7600_s3 = sshll.u32 (%p8026_p10), %s7030_s30, 3  ;;  %v7205_v25 = vld [vmem:[%s8126_s25 + $0x48] sm:$0xff] (%p8026_p10)  ;;  %v7207_v21 = vld [vmem:[%s8126_s25 + $0x50] sm:$0xff] (%p8026_p10)  ;;  %v7209_v38 = vld [vmem:[%s8126_s25 + $0x58] sm:$0xff] (%p8026_p10) }
 0x890   : > { %s12689_s6 = scalar_lea.vmem (%p8026_p10), %s12852_s2, %s7600_s3  ;;  %v7211_v14 = vld [vmem:[%s8126_s25 + $0x60] sm:$0xff] (%p8026_p10)  ;;  %v7213_v44 = vld [vmem:[%s8126_s25 + $0x68] sm:$0xff] (%p8026_p10)  ;;  %v7215_v7 = vld [vmem:[%s8126_s25 + $0x70] sm:$0xff] (%p8026_p10) }
 0x891   : > { %7188 = vst [vmem:[%s12689_s6] sm:$0xff] %v7187_v50  ;;  %v7217_v15 = vld [vmem:[%s8126_s25 + $0x78] sm:$0xff]  ;;  %v7219_v1 = vld [vmem:[%s8126_s25 + $0x80] sm:$0xff]  ;;  %v7221_v58 = vld [vmem:[%s8126_s25 + $0x88] sm:$0xff] }
 0x892   : > { %7190 = vst [vmem:[%s12689_s6 + $0x8] sm:$0xff] %v7189_v59  ;;  %v7223_v11 = vld [vmem:[%s8126_s25 + $0x90] sm:$0xff]  ;;  %v7225_v35 = vld [vmem:[%s8126_s25 + $0x98] sm:$0xff]  ;;  %v7227_v37 = vld [vmem:[%s8126_s25 + $0xa0] sm:$0xff] }
 0x893   : > { %7192 = vst [vmem:[%s12689_s6 + $0x100] sm:$0xff] %v7191_v4  ;;  %v7229_v17 = vld [vmem:[%s8126_s25 + $0xa8] sm:$0xff]  ;;  %v7231_v63 = vld [vmem:[%s8126_s25 + $0xb0] sm:$0xff]  ;;  %v7233_v34 = vld [vmem:[%s8126_s25 + $0xb8] sm:$0xff] }
 0x894   : > { %7194 = vst [vmem:[%s12689_s6 + $0x108] sm:$0xff] %v7193_v41  ;;  %v7235_v36 = vld [vmem:[%s8126_s25 + $0xc0] sm:$0xff]  ;;  %v7237_v19 = vld [vmem:[%s8126_s25 + $0xc8] sm:$0xff]  ;;  %v7239_v54 = vld [vmem:[%s8126_s25 + $0xd0] sm:$0xff] }
 0x895   : > { %7196 = vst [vmem:[%s12689_s6 + $0x200] sm:$0xff] %v7195_v3  ;;  %v7241_v51 = vld [vmem:[%s8126_s25 + $0xd8] sm:$0xff]  ;;  %v7243_v47 = vld [vmem:[%s8126_s25 + $0xe0] sm:$0xff]  ;;  %v7245_v32 = vld [vmem:[%s8126_s25 + $0xe8] sm:$0xff] }
 0x896   : > { %7198 = vst [vmem:[%s12689_s6 + $0x208] sm:$0xff] %v7197_v46  ;;  %v7247_v31 = vld [vmem:[%s8126_s25 + $0xf0] sm:$0xff]  ;;  %v7249_v12 = vld [vmem:[%s8126_s25 + $0xf8] sm:$0xff]  ;;  %v7251_v33 = vld [vmem:[%s8126_s25 + $0x100] sm:$0xff] }
 0x897   : > { %7200 = vst [vmem:[%s12689_s6 + $0x300] sm:$0xff] %v7199_v2  ;;  %v7253_v9 = vld [vmem:[%s8126_s25 + $0x108] sm:$0xff]  ;;  %v7255_v26 = vld [vmem:[%s8126_s25 + $0x110] sm:$0xff]  ;;  %v7257_v45 = vld [vmem:[%s8126_s25 + $0x118] sm:$0xff] }
 0x898   : > { %7202 = vst [vmem:[%s12689_s6 + $0x308] sm:$0xff] %v7201_v18  ;;  %v7259_v55 = vld [vmem:[%s8126_s25 + $0x120] sm:$0xff]  ;;  %v7261_v24 = vld [vmem:[%s8126_s25 + $0x128] sm:$0xff]  ;;  %v7263_v10 = vld [vmem:[%s8126_s25 + $0x130] sm:$0xff] }
 0x899   : > { %7204 = vst [vmem:[%s12689_s6 + $0x400] sm:$0xff] %v7203_v30  ;;  %v7265_v43 = vld [vmem:[%s8126_s25 + $0x138] sm:$0xff]  ;;  %v7267_v16 = vld [vmem:[%s8126_s25 + $0x140] sm:$0xff]  ;;  %v7269_v0 = vld [vmem:[%s8126_s25 + $0x148] sm:$0xff] }
 0x89a   : > { %7206 = vst [vmem:[%s12689_s6 + $0x408] sm:$0xff] %v7205_v25  ;;  %v7271_v56 = vld [vmem:[%s8126_s25 + $0x150] sm:$0xff]  ;;  %v7273_v40 = vld [vmem:[%s8126_s25 + $0x158] sm:$0xff]  ;;  %v7275_v42 = vld [vmem:[%s8126_s25 + $0x160] sm:$0xff] }
 0x89b   : > { %7208 = vst [vmem:[%s12689_s6 + $0x500] sm:$0xff] %v7207_v21  ;;  %v7277_v23 = vld [vmem:[%s8126_s25 + $0x168] sm:$0xff]  ;;  %v7279_v48 = vld [vmem:[%s8126_s25 + $0x170] sm:$0xff]  ;;  %v7281_v61 = vld [vmem:[%s8126_s25 + $0x178] sm:$0xff] }
 0x89c   : > { %7210 = vst [vmem:[%s12689_s6 + $0x508] sm:$0xff] %v7209_v38  ;;  %v7283_v27 = vld [vmem:[%s8126_s25 + $0x180] sm:$0xff]  ;;  %v7285_v39 = vld [vmem:[%s8126_s25 + $0x188] sm:$0xff]  ;;  %v7287_v5 = vld [vmem:[%s8126_s25 + $0x190] sm:$0xff] }
 0x89d   : > { %7212 = vst [vmem:[%s12689_s6 + $0x600] sm:$0xff] %v7211_v14  ;;  %v7289_v8 = vld [vmem:[%s8126_s25 + $0x198] sm:$0xff]  ;;  %v7291_v29 = vld [vmem:[%s8126_s25 + $0x1a0] sm:$0xff]  ;;  %v7293_v57 = vld [vmem:[%s8126_s25 + $0x1a8] sm:$0xff] }
 0x89e   : > { %7214 = vst [vmem:[%s12689_s6 + $0x608] sm:$0xff] %v7213_v44  ;;  %v7295_v62 = vld [vmem:[%s8126_s25 + $0x1b0] sm:$0xff]  ;;  %v7297_v13 = vld [vmem:[%s8126_s25 + $0x1b8] sm:$0xff]  ;;  %v7299_v52 = vld [vmem:[%s8126_s25 + $0x1c0] sm:$0xff] }
 0x89f   : > { %7216 = vst [vmem:[%s12689_s6 + $0x700] sm:$0xff] %v7215_v7  ;;  %v7301_v28 = vld [vmem:[%s8126_s25 + $0x1c8] sm:$0xff]  ;;  %v7303_v53 = vld [vmem:[%s8126_s25 + $0x1d0] sm:$0xff]  ;;  %v7305_v49 = vld [vmem:[%s8126_s25 + $0x1d8] sm:$0xff] }
 0x8a0   : > { %7218 = vst [vmem:[%s12689_s6 + $0x708] sm:$0xff] %v7217_v15  ;;  %v7307_v20 = vld [vmem:[%s8126_s25 + $0x1e0] sm:$0xff]  ;;  %v7309_v22 = vld [vmem:[%s8126_s25 + $0x1e8] sm:$0xff]  ;;  %v7311_v60 = vld [vmem:[%s8126_s25 + $0x1f0] sm:$0xff] }
 0x8a1   : > { %7220 = vst [vmem:[%s12689_s6 + $0x800] sm:$0xff] %v7219_v1  ;;  %v7313_v6 = vld [vmem:[%s8126_s25 + $0x1f8] sm:$0xff] }
 0x8a2   : > { %7222 = vst [vmem:[%s12689_s6 + $0x808] sm:$0xff] %v7221_v58 }
 0x8a3   : > { %7224 = vst [vmem:[%s12689_s6 + $0x900] sm:$0xff] %v7223_v11 }
 0x8a4   : > { %7226 = vst [vmem:[%s12689_s6 + $0x908] sm:$0xff] %v7225_v35 }
 0x8a5   : > { %7228 = vst [vmem:[%s12689_s6 + $0xa00] sm:$0xff] %v7227_v37 }
 0x8a6   : > { %7230 = vst [vmem:[%s12689_s6 + $0xa08] sm:$0xff] %v7229_v17 }
 0x8a7   : > { %7232 = vst [vmem:[%s12689_s6 + $0xb00] sm:$0xff] %v7231_v63 }
 0x8a8   : > { %7234 = vst [vmem:[%s12689_s6 + $0xb08] sm:$0xff] %v7233_v34 }
 0x8a9   : > { %7236 = vst [vmem:[%s12689_s6 + $0xc00] sm:$0xff] %v7235_v36 }
 0x8aa   : > { %7238 = vst [vmem:[%s12689_s6 + $0xc08] sm:$0xff] %v7237_v19 }
 0x8ab   : > { %7240 = vst [vmem:[%s12689_s6 + $0xd00] sm:$0xff] %v7239_v54 }
 0x8ac   : > { %7242 = vst [vmem:[%s12689_s6 + $0xd08] sm:$0xff] %v7241_v51 }
 0x8ad   : > { %7244 = vst [vmem:[%s12689_s6 + $0xe00] sm:$0xff] %v7243_v47 }
 0x8ae   : > { %7246 = vst [vmem:[%s12689_s6 + $0xe08] sm:$0xff] %v7245_v32 }
 0x8af   : > { %7248 = vst [vmem:[%s12689_s6 + $0xf00] sm:$0xff] %v7247_v31 }
 0x8b0   : > { %7250 = vst [vmem:[%s12689_s6 + $0xf08] sm:$0xff] %v7249_v12 }
 0x8b1   : > { %7252 = vst [vmem:[%s12689_s6 + $0x1000] sm:$0xff] %v7251_v33 }
 0x8b2   : > { %7254 = vst [vmem:[%s12689_s6 + $0x1008] sm:$0xff] %v7253_v9 }
 0x8b3   : > { %7256 = vst [vmem:[%s12689_s6 + $0x1100] sm:$0xff] %v7255_v26 }
 0x8b4   : > { %7258 = vst [vmem:[%s12689_s6 + $0x1108] sm:$0xff] %v7257_v45 }
 0x8b5   : > { %7260 = vst [vmem:[%s12689_s6 + $0x1200] sm:$0xff] %v7259_v55 }
 0x8b6   : > { %7262 = vst [vmem:[%s12689_s6 + $0x1208] sm:$0xff] %v7261_v24 }
 0x8b7   : > { %7264 = vst [vmem:[%s12689_s6 + $0x1300] sm:$0xff] %v7263_v10 }
 0x8b8   : > { %7266 = vst [vmem:[%s12689_s6 + $0x1308] sm:$0xff] %v7265_v43 }
 0x8b9   : > { %7268 = vst [vmem:[%s12689_s6 + $0x1400] sm:$0xff] %v7267_v16 }
 0x8ba   : > { %7270 = vst [vmem:[%s12689_s6 + $0x1408] sm:$0xff] %v7269_v0 }
 0x8bb   : > { %7272 = vst [vmem:[%s12689_s6 + $0x1500] sm:$0xff] %v7271_v56 }
 0x8bc   : > { %7274 = vst [vmem:[%s12689_s6 + $0x1508] sm:$0xff] %v7273_v40 }
 0x8bd   : > { %7276 = vst [vmem:[%s12689_s6 + $0x1600] sm:$0xff] %v7275_v42 }
 0x8be   : > { %7278 = vst [vmem:[%s12689_s6 + $0x1608] sm:$0xff] %v7277_v23 }
 0x8bf   : > { %7280 = vst [vmem:[%s12689_s6 + $0x1700] sm:$0xff] %v7279_v48 }
 0x8c0   : > { %7282 = vst [vmem:[%s12689_s6 + $0x1708] sm:$0xff] %v7281_v61 }
 0x8c1   : > { %7284 = vst [vmem:[%s12689_s6 + $0x1800] sm:$0xff] %v7283_v27 }
 0x8c2   : > { %7286 = vst [vmem:[%s12689_s6 + $0x1808] sm:$0xff] %v7285_v39 }
 0x8c3   : > { %7288 = vst [vmem:[%s12689_s6 + $0x1900] sm:$0xff] %v7287_v5 }
 0x8c4   : > { %7290 = vst [vmem:[%s12689_s6 + $0x1908] sm:$0xff] %v7289_v8 }
 0x8c5   : > { %7292 = vst [vmem:[%s12689_s6 + $0x1a00] sm:$0xff] %v7291_v29 }
 0x8c6   : > { %7294 = vst [vmem:[%s12689_s6 + $0x1a08] sm:$0xff] %v7293_v57 }
 0x8c7   : > { %7296 = vst [vmem:[%s12689_s6 + $0x1b00] sm:$0xff] %v7295_v62 }
 0x8c8   : > { %7298 = vst [vmem:[%s12689_s6 + $0x1b08] sm:$0xff] %v7297_v13 }
 0x8c9   : > { %7300 = vst [vmem:[%s12689_s6 + $0x1c00] sm:$0xff] %v7299_v52 }
 0x8ca   : > { %7302 = vst [vmem:[%s12689_s6 + $0x1c08] sm:$0xff] %v7301_v28 }
 0x8cb   : > { %7304 = vst [vmem:[%s12689_s6 + $0x1d00] sm:$0xff] %v7303_v53 }
 0x8cc   : > { %7306 = vst [vmem:[%s12689_s6 + $0x1d08] sm:$0xff] %v7305_v49 }
 0x8cd   : > { %7308 = vst [vmem:[%s12689_s6 + $0x1e00] sm:$0xff] %v7307_v20 }
 0x8ce   : > { %7310 = vst [vmem:[%s12689_s6 + $0x1e08] sm:$0xff] %v7309_v22 }
 0x8cf   : > { %7312 = vst [vmem:[%s12689_s6 + $0x1f00] sm:$0xff] %v7311_v60 }
 0x8d0   : > { %7314 = vst [vmem:[%s12689_s6 + $0x1f08] sm:$0xff] %v7313_v6 }
 0x8d1 PF: > { %s12_s19 = sadd.s32 1, %s7901_s19   ;;  %s13298_s9 = smov %s7865_s10 }
 0x8d2   : > { %p9_p4 = scmp.ge.s32.totalorder %s12_s19, 98   ;;  %s13299_s10 = smov %s8034_s26 }
 0x8d3   : > { %s13300_s11 = smov %s7873_s12  ;;  %s13301_s12 = smov %s8031_s23 }
 0x8d4   : > { %s13302_s13 = smov %s7889_s16  ;;  %s13303_s14 = smov %s7893_s17 }
 0x8d5   : > { %s13304_s15 = smov %s7897_s18  ;;  %s13305_s16 = smov %s13309_s20 }
 0x8d6   : > { %s13306_s17 = smov %s13313_s21  ;;  %s13307_s18 = smov %s13317_s24 }
 0x8d7   :  { %11 = sbr.rel (!%p9_p4) target bundleno = 6 (0x6), region = 161 }

</bundles_post_ra>
